<compile_context>
chip_gen: v7x
topology: tpu7x:2x2x1
jax: 0.10.0
libtpu: 0.0.40
codegen_flags: <defaults>
</compile_context>

<pallas_src>
import functools
import math

import numpy as np
import jax
import jax.numpy as jnp
from jax import lax
from jax.experimental import pallas as pl
from jax.experimental.pallas import tpu as pltpu


# ---------------------------------------------------------------------------
# Fused whole-network kernel.  One grid step = one batch block of BB images.
#
# Row layouts (rows = sublane-ish dim, channels on lanes):
#   c1  : (784*BB, 64)  rows = (ho, b, wo)        conv1 raw output
#   wp  : (392*BB, 64)  rows = (ho, b, w2)        after W max-pool
#   h1  : (196*BB+8,64) rows = (h2, b, w2)        pool1 + bias + ReLU (+pad)
#   c2  : (168*BB, 32)  rows = (h2o, b, w2[0:14)) conv2 raw (cols 12,13 junk)
#   hp2 : ( 84*BB, 32)  rows = (h3, b, w2)        after H max-pool
#   h2  : ( 42*BB, 32)  rows = (h3, b, w2p[0:7))  pool2 + bias + ReLU
#   feat: (BB, 1152)    lanes = (h3, w2p, c)      matches permuted fc1 weights
# ---------------------------------------------------------------------------
def _net_kernel(xs_ref, w1_ref, b1_ref, w2_ref, b2_ref,
                fc1w_ref, fc1b_ref, fc2w_ref, fc2b_ref, o_ref,
                c1_ref, wp_ref, h1_ref, c2_ref, hp2_ref, h2_ref, feat_ref,
                *, BB):
    f32 = jnp.float32
    blk = 14 * BB                      # rows per (h2 / h2o) plane

    # ---- conv1: single im2col matmul on the MXU --------------------------
    c1_ref[...] = jnp.dot(xs_ref[0], w1_ref[...], preferred_element_type=f32)

    # ---- pool1 (pool raw conv, then bias+ReLU: relu(max(x)+b)) -----------
    # W-pool: stride-2 over rows (wo is the innermost row index).
    wp_ref[...] = jnp.maximum(c1_ref[pl.ds(0, 392 * BB, 2), :],
                              c1_ref[pl.ds(1, 392 * BB, 2), :])
    # H-pool + bias + ReLU, one 14*BB-row block per output row h2.
    b1 = b1_ref[...]
    for h2 in range(14):
        m = jnp.maximum(wp_ref[pl.ds((2 * h2) * blk, blk), :],
                        wp_ref[pl.ds((2 * h2 + 1) * blk, blk), :])
        h1_ref[pl.ds(h2 * blk, blk), :] = jnp.maximum(m + b1, 0.0)
    # Zero the overflow pad rows touched by the shifted conv2 windows.
    h1_ref[pl.ds(196 * BB, 8), :] = jnp.zeros((8, 64), f32)

    # ---- conv2: 9 tap-wise matmuls over shifted row windows --------------
    # Row of c2 at (h2o, b, w2) needs h1 row (h2o+kh, b, w2+kw), which is the
    # same row index shifted by kh*blk + kw.  Columns w2 in {12,13} collect
    # out-of-window junk and are never read downstream.
    M2 = 168 * BB
    for kh in range(3):
        for kw in range(3):
            contrib = jnp.dot(h1_ref[pl.ds(kh * blk + kw, M2), :],
                              w2_ref[kh, kw], preferred_element_type=f32)
            if kh == 0 and kw == 0:
                c2_ref[...] = contrib
            else:
                c2_ref[...] += contrib

    # ---- pool2 + bias + ReLU ---------------------------------------------
    for h3 in range(6):
        hp2_ref[pl.ds(h3 * blk, blk), :] = jnp.maximum(
            c2_ref[pl.ds((2 * h3) * blk, blk), :],
            c2_ref[pl.ds((2 * h3 + 1) * blk, blk), :])
    h2v = jnp.maximum(hp2_ref[pl.ds(0, 42 * BB, 2), :],
                      hp2_ref[pl.ds(1, 42 * BB, 2), :])
    h2_ref[...] = jnp.maximum(h2v + b2_ref[...], 0.0)

    # ---- flatten: gather per-image features into lane-dense rows ---------
    # feat[b, (h3*6+w2p)*32 + c] = h2[(h3, b, w2p), c]; fc1 weights were
    # permuted in the wrapper so this order matches PyTorch's NCHW flatten.
    for h3 in range(6):
        for w2p in range(6):
            off = (h3 * 6 + w2p) * 32
            feat_ref[:, off:off + 32] = h2_ref[pl.ds(h3 * 7 * BB + w2p, BB, 7), :]

    # ---- fused MLP head: fc1 + ReLU + fc2 ---------------------------------
    h = jnp.dot(feat_ref[...], fc1w_ref[...], preferred_element_type=f32)
    h = jnp.maximum(h + fc1b_ref[...], 0.0)
    o_ref[0] = (jnp.dot(h, fc2w_ref[...], preferred_element_type=f32)
                + fc2b_ref[...])


# ---------------------------------------------------------------------------
# Wrapper: parameter re-layout + conv1 im2col prep + single pallas_call.
# ---------------------------------------------------------------------------
def _prep_weights(p):
    w1 = p["conv1_w"].reshape(64, 9).T                    # (9, 64), t = 3*kh+kw
    b1 = p["conv1_b"].reshape(1, 64)
    w2 = jnp.transpose(p["conv2_w"], (2, 3, 1, 0))        # (3, 3, 64, 32) HWIO
    b2 = p["conv2_b"].reshape(1, 32)
    # fc1: PyTorch (128, 1152) with input index c*36 + h*6 + w  ->  rows
    # reordered to (h*6 + w)*32 + c so the in-kernel NHWC-ish gather matches.
    fc1 = p["fc1_w"].reshape(128, 32, 6, 6)
    fc1 = jnp.transpose(fc1, (2, 3, 1, 0)).reshape(1152, 128)
    fc1b = p["fc1_b"].reshape(1, 128)
    fc2 = p["fc2_w"].T                                     # (128, num_classes)
    fc2b = p["fc2_b"].reshape(1, -1)
    return w1, b1, w2, b2, fc1, fc1b, fc2, fc2b


def _prep_patches(x_nchw, nc, BB):
    """Build conv1 im2col patches with rows ordered (ho, b, wo)."""
    B = x_nchw.shape[0]
    x = x_nchw[:, 0]                                       # (B, 28, 28)
    if nc * BB != B:
        x = jnp.concatenate(
            [x, jnp.zeros((nc * BB - B, 28, 28), x.dtype)], axis=0)
    xp = jnp.pad(x, ((0, 0), (1, 1), (1, 1)))              # (Bpad, 30, 30)
    taps = [xp[:, kh:kh + 28, kw:kw + 28]
            for kh in range(3) for kw in range(3)]
    patches = jnp.stack(taps, axis=-1)                     # (Bpad, 28, 28, 9)
    xs = patches.reshape(nc, BB, 28, 28, 9)
    xs = jnp.transpose(xs, (0, 2, 1, 3, 4))                # (nc, ho, b, wo, 9)
    return xs.reshape(nc, 784 * BB, 9)


@jax.jit
def net_forward(x_nchw, params):
    B = x_nchw.shape[0]
    BB = min(B, 8)                       # images per grid step
    nc = -(-B // BB)                     # number of batch blocks
    num_classes = params["fc2_w"].shape[0]

    xs = _prep_patches(x_nchw, nc, BB)
    w1, b1, w2, b2, fc1, fc1b, fc2, fc2b = _prep_weights(params)

    kernel = functools.partial(_net_kernel, BB=BB)
    out = pl.pallas_call(
        kernel,
        out_shape=jax.ShapeDtypeStruct((nc, BB, num_classes), jnp.float32),
        grid=(nc,),
        in_specs=[
            pl.BlockSpec((1, 784 * BB, 9), lambda i: (i, 0, 0)),
            pl.BlockSpec((9, 64), lambda i: (0, 0)),
            pl.BlockSpec((1, 64), lambda i: (0, 0)),
            pl.BlockSpec((3, 3, 64, 32), lambda i: (0, 0, 0, 0)),
            pl.BlockSpec((1, 32), lambda i: (0, 0)),
            pl.BlockSpec((1152, 128), lambda i: (0, 0)),
            pl.BlockSpec((1, 128), lambda i: (0, 0)),
            pl.BlockSpec((128, num_classes), lambda i: (0, 0)),
            pl.BlockSpec((1, num_classes), lambda i: (0, 0)),
        ],
        out_specs=pl.BlockSpec((1, BB, num_classes), lambda i: (i, 0, 0)),
        scratch_shapes=[
            pltpu.VMEM((784 * BB, 64), jnp.float32),    # conv1 raw
            pltpu.VMEM((392 * BB, 64), jnp.float32),    # W-pooled conv1
            pltpu.VMEM((196 * BB + 8, 64), jnp.float32),  # pool1 out (+pad)
            pltpu.VMEM((168 * BB, 32), jnp.float32),    # conv2 raw
            pltpu.VMEM((84 * BB, 32), jnp.float32),     # H-pooled conv2
            pltpu.VMEM((42 * BB, 32), jnp.float32),     # pool2 out
            pltpu.VMEM((BB, 1152), jnp.float32),        # flattened features
        ],
        compiler_params=pltpu.CompilerParams(
            dimension_semantics=("parallel",),
            vmem_limit_bytes=32 * 1024 * 1024),
    )(xs, w1, b1, w2, b2, fc1, fc1b, fc2, fc2b)

    return out.reshape(nc * BB, num_classes)[:B]


# ---------------------------------------------------------------------------
# Pure-JAX reference (PyTorch semantics) for the correctness check.
# ---------------------------------------------------------------------------
def net_reference(x_nchw, p):
    dn = ("NCHW", "OIHW", "NCHW")
    y = lax.conv_general_dilated(x_nchw, p["conv1_w"], (1, 1), ((1, 1), (1, 1)),
                                 dimension_numbers=dn,
                                 precision=lax.Precision.HIGHEST)
    y = jnp.maximum(y + p["conv1_b"].reshape(1, -1, 1, 1), 0.0)
    y = lax.reduce_window(y, -jnp.inf, lax.max, (1, 1, 2, 2), (1, 1, 2, 2), "VALID")
    y = lax.conv_general_dilated(y, p["conv2_w"], (1, 1), "VALID",
                                 dimension_numbers=dn,
                                 precision=lax.Precision.HIGHEST)
    y = jnp.maximum(y + p["conv2_b"].reshape(1, -1, 1, 1), 0.0)
    y = lax.reduce_window(y, -jnp.inf, lax.max, (1, 1, 2, 2), (1, 1, 2, 2), "VALID")
    feat = y.reshape(x_nchw.shape[0], -1)                 # NCHW flatten
    h = jnp.maximum(jnp.dot(feat, p["fc1_w"].T,
                            precision=lax.Precision.HIGHEST) + p["fc1_b"], 0.0)
    return jnp.dot(h, p["fc2_w"].T,
                   precision=lax.Precision.HIGHEST) + p["fc2_b"]


def init_params(key, num_classes=10):
    ks = jax.random.split(key, 8)
    f32 = jnp.float32
    return {
        # PyTorch layouts: conv OIHW, linear (out, in).
        "conv1_w": jax.random.normal(ks[0], (64, 1, 3, 3), f32) / 3.0,
        "conv1_b": jax.random.normal(ks[1], (64,), f32) * 0.1,
        "conv2_w": jax.random.normal(ks[2], (32, 64, 3, 3), f32) / 24.0,
        "conv2_b": jax.random.normal(ks[3], (32,), f32) * 0.1,
        "fc1_w": jax.random.normal(ks[4], (128, 1152), f32) / math.sqrt(1152),
        "fc1_b": jax.random.normal(ks[5], (128,), f32) * 0.1,
        "fc2_w": jax.random.normal(ks[6], (num_classes, 128), f32) / math.sqrt(128),
        "fc2_b": jax.random.normal(ks[7], (num_classes,), f32) * 0.1,
    }


if __name__ == "__main__":
    root = jax.random.PRNGKey(0)
    k_param, k_x = jax.random.split(root)
    params = init_params(k_param)
    # MNIST-shaped input (fc1 hard-codes 28x28, as in the original module).
    x = jax.random.normal(k_x, (2, 1, 28, 28), jnp.float32)

    out = jax.block_until_ready(net_forward(x, params))
    ref = jax.block_until_ready(net_reference(x, params))

    assert out.shape == (2, 10), out.shape
    # Loose-ish tolerance: the kernel runs matmuls at default MXU precision
    # (bf16 inputs, f32 accumulation) while the reference uses HIGHEST.
    # Structural bugs produce O(1) errors, far above this threshold.
    err = float(np.max(np.abs(np.asarray(out) - np.asarray(ref))))
    assert np.allclose(np.asarray(out), np.asarray(ref), rtol=5e-2, atol=1e-1), (
        "mismatch vs reference", err)
    print("KERNEL_OK")
</pallas_src>

<mosaic_0001>
module attributes {stable_mosaic.version = 11 : i64} {
  func.func @_net_kernel(%arg0: i32, %arg1: memref<1x1568x9xf32, #tpu.memory_space<vmem>>, %arg2: memref<9x64xf32, #tpu.memory_space<vmem>>, %arg3: memref<1x64xf32, #tpu.memory_space<vmem>>, %arg4: memref<3x3x64x32xf32, #tpu.memory_space<vmem>>, %arg5: memref<1x32xf32, #tpu.memory_space<vmem>>, %arg6: memref<1152x128xf32, #tpu.memory_space<vmem>>, %arg7: memref<1x128xf32, #tpu.memory_space<vmem>>, %arg8: memref<128x10xf32, #tpu.memory_space<vmem>>, %arg9: memref<1x10xf32, #tpu.memory_space<vmem>>, %arg10: memref<1x2x10xf32, #tpu.memory_space<vmem>>, %arg11: memref<1568x64xf32, #tpu.memory_space<vmem>>, %arg12: memref<784x64xf32, #tpu.memory_space<vmem>>, %arg13: memref<400x64xf32, #tpu.memory_space<vmem>>, %arg14: memref<336x32xf32, #tpu.memory_space<vmem>>, %arg15: memref<168x32xf32, #tpu.memory_space<vmem>>, %arg16: memref<84x32xf32, #tpu.memory_space<vmem>>, %arg17: memref<2x1152xf32, #tpu.memory_space<vmem>>) attributes {dimension_semantics = [#tpu.dimension_semantics<parallel>], iteration_bounds = array<i64: 1>, scalar_prefetch = 0 : i64, scratch_operands = 7 : i64, tpu.core_type = #tpu.core_type<tc>, window_params = [{transform_indices = @transform_0, window_bounds = array<i64: 1, 1568, 9>}, {pipeline_mode = #tpu.pipeline_mode<synchronous>, transform_indices = @transform_1, window_bounds = array<i64: 9, 64>}, {pipeline_mode = #tpu.pipeline_mode<synchronous>, transform_indices = @transform_2, window_bounds = array<i64: 1, 64>}, {pipeline_mode = #tpu.pipeline_mode<synchronous>, transform_indices = @transform_3, window_bounds = array<i64: 3, 3, 64, 32>}, {pipeline_mode = #tpu.pipeline_mode<synchronous>, transform_indices = @transform_4, window_bounds = array<i64: 1, 32>}, {pipeline_mode = #tpu.pipeline_mode<synchronous>, transform_indices = @transform_5, window_bounds = array<i64: 1152, 128>}, {pipeline_mode = #tpu.pipeline_mode<synchronous>, transform_indices = @transform_6, window_bounds = array<i64: 1, 128>}, {pipeline_mode = #tpu.pipeline_mode<synchronous>, transform_indices = @transform_7, window_bounds = array<i64: 128, 10>}, {pipeline_mode = #tpu.pipeline_mode<synchronous>, transform_indices = @transform_8, window_bounds = array<i64: 1, 10>}, {transform_indices = @transform_9, window_bounds = array<i64: 1, 2, 10>}]} {
    %c0 = arith.constant 0 : index
    %c0_0 = arith.constant 0 : index
    %c0_1 = arith.constant 0 : index
    %0 = vector.load %arg1[%c0, %c0_0, %c0_1] : memref<1x1568x9xf32, #tpu.memory_space<vmem>>, vector<1x1568x9xf32>
    %1 = vector.shape_cast %0 : vector<1x1568x9xf32> to vector<1568x9xf32>
    %c0_2 = arith.constant 0 : index
    %c0_3 = arith.constant 0 : index
    %2 = vector.load %arg2[%c0_2, %c0_3] : memref<9x64xf32, #tpu.memory_space<vmem>>, vector<9x64xf32>
    %cst = arith.constant dense<0.000000e+00> : vector<1568x64xf32>
    %3 = tpu.matmul %1, %2, %cst {dimension_numbers = #tpu.dot_dimension_numbers<[1], [0], [0], [1], [0, 0, 1, 1], [], []>} : vector<1568x9xf32>, vector<9x64xf32>, vector<1568x64xf32> -> vector<1568x64xf32>
    %c0_4 = arith.constant 0 : index
    %c0_5 = arith.constant 0 : index
    %4 = vector.load %arg11[%c0_4, %c0_5] : memref<1568x64xf32, #tpu.memory_space<vmem>>, vector<1568x64xf32>
    tpu.vector_store %arg11[%c0_4, %c0_5], %3 {strides = array<i32>} : memref<1568x64xf32, #tpu.memory_space<vmem>>, vector<1568x64xf32>,
    %c0_6 = arith.constant 0 : index
    %c0_7 = arith.constant 0 : index
    %5 = tpu.strided_load %arg11[%c0_6, %c0_7] {strides = array<i32: 2, 1>} : memref<1568x64xf32, #tpu.memory_space<vmem>>, vector<784x64xf32>
    %c1 = arith.constant 1 : index
    %c0_8 = arith.constant 0 : index
    %6 = tpu.strided_load %arg11[%c1, %c0_8] {strides = array<i32: 2, 1>} : memref<1568x64xf32, #tpu.memory_space<vmem>>, vector<784x64xf32>
    %7 = arith.maximumf %5, %6 : vector<784x64xf32>
    %c0_9 = arith.constant 0 : index
    %c0_10 = arith.constant 0 : index
    %8 = vector.load %arg12[%c0_9, %c0_10] : memref<784x64xf32, #tpu.memory_space<vmem>>, vector<784x64xf32>
    tpu.vector_store %arg12[%c0_9, %c0_10], %7 {strides = array<i32>} : memref<784x64xf32, #tpu.memory_space<vmem>>, vector<784x64xf32>,
    %c0_11 = arith.constant 0 : index
    %c0_12 = arith.constant 0 : index
    %9 = vector.load %arg3[%c0_11, %c0_12] : memref<1x64xf32, #tpu.memory_space<vmem>>, vector<1x64xf32>
    %c0_13 = arith.constant 0 : index
    %c0_14 = arith.constant 0 : index
    %10 = vector.load %arg12[%c0_13, %c0_14] : memref<784x64xf32, #tpu.memory_space<vmem>>, vector<28x64xf32>
    %c28 = arith.constant 28 : index
    %c0_15 = arith.constant 0 : index
    %11 = vector.load %arg12[%c28, %c0_15] : memref<784x64xf32, #tpu.memory_space<vmem>>, vector<28x64xf32>
    %12 = arith.maximumf %10, %11 : vector<28x64xf32>
    %13 = vector.broadcast %9 : vector<1x64xf32> to vector<28x64xf32>
    %14 = arith.addf %12, %13 : vector<28x64xf32>
    %cst_16 = arith.constant 0.000000e+00 : f32
    %15 = vector.broadcast %cst_16 : f32 to vector<28x64xf32>
    %16 = arith.maximumf %14, %15 : vector<28x64xf32>
    %c0_17 = arith.constant 0 : index
    %c0_18 = arith.constant 0 : index
    %17 = vector.load %arg13[%c0_17, %c0_18] : memref<400x64xf32, #tpu.memory_space<vmem>>, vector<28x64xf32>
    tpu.vector_store %arg13[%c0_17, %c0_18], %16 {strides = array<i32>} : memref<400x64xf32, #tpu.memory_space<vmem>>, vector<28x64xf32>,
    %c56 = arith.constant 56 : index
    %c0_19 = arith.constant 0 : index
    %18 = vector.load %arg12[%c56, %c0_19] : memref<784x64xf32, #tpu.memory_space<vmem>>, vector<28x64xf32>
    %c84 = arith.constant 84 : index
    %c0_20 = arith.constant 0 : index
    %19 = vector.load %arg12[%c84, %c0_20] : memref<784x64xf32, #tpu.memory_space<vmem>>, vector<28x64xf32>
    %20 = arith.maximumf %18, %19 : vector<28x64xf32>
    %21 = vector.broadcast %9 : vector<1x64xf32> to vector<28x64xf32>
    %22 = arith.addf %20, %21 : vector<28x64xf32>
    %cst_21 = arith.constant 0.000000e+00 : f32
    %23 = vector.broadcast %cst_21 : f32 to vector<28x64xf32>
    %24 = arith.maximumf %22, %23 : vector<28x64xf32>
    %c28_22 = arith.constant 28 : index
    %c0_23 = arith.constant 0 : index
    %25 = vector.load %arg13[%c28_22, %c0_23] : memref<400x64xf32, #tpu.memory_space<vmem>>, vector<28x64xf32>
    tpu.vector_store %arg13[%c28_22, %c0_23], %24 {strides = array<i32>} : memref<400x64xf32, #tpu.memory_space<vmem>>, vector<28x64xf32>,
    %c112 = arith.constant 112 : index
    %c0_24 = arith.constant 0 : index
    %26 = vector.load %arg12[%c112, %c0_24] : memref<784x64xf32, #tpu.memory_space<vmem>>, vector<28x64xf32>
    %c140 = arith.constant 140 : index
    %c0_25 = arith.constant 0 : index
    %27 = vector.load %arg12[%c140, %c0_25] : memref<784x64xf32, #tpu.memory_space<vmem>>, vector<28x64xf32>
    %28 = arith.maximumf %26, %27 : vector<28x64xf32>
    %29 = vector.broadcast %9 : vector<1x64xf32> to vector<28x64xf32>
    %30 = arith.addf %28, %29 : vector<28x64xf32>
    %cst_26 = arith.constant 0.000000e+00 : f32
    %31 = vector.broadcast %cst_26 : f32 to vector<28x64xf32>
    %32 = arith.maximumf %30, %31 : vector<28x64xf32>
    %c56_27 = arith.constant 56 : index
    %c0_28 = arith.constant 0 : index
    %33 = vector.load %arg13[%c56_27, %c0_28] : memref<400x64xf32, #tpu.memory_space<vmem>>, vector<28x64xf32>
    tpu.vector_store %arg13[%c56_27, %c0_28], %32 {strides = array<i32>} : memref<400x64xf32, #tpu.memory_space<vmem>>, vector<28x64xf32>,
    %c168 = arith.constant 168 : index
    %c0_29 = arith.constant 0 : index
    %34 = vector.load %arg12[%c168, %c0_29] : memref<784x64xf32, #tpu.memory_space<vmem>>, vector<28x64xf32>
    %c196 = arith.constant 196 : index
    %c0_30 = arith.constant 0 : index
    %35 = vector.load %arg12[%c196, %c0_30] : memref<784x64xf32, #tpu.memory_space<vmem>>, vector<28x64xf32>
    %36 = arith.maximumf %34, %35 : vector<28x64xf32>
    %37 = vector.broadcast %9 : vector<1x64xf32> to vector<28x64xf32>
    %38 = arith.addf %36, %37 : vector<28x64xf32>
    %cst_31 = arith.constant 0.000000e+00 : f32
    %39 = vector.broadcast %cst_31 : f32 to vector<28x64xf32>
    %40 = arith.maximumf %38, %39 : vector<28x64xf32>
    %c84_32 = arith.constant 84 : index
    %c0_33 = arith.constant 0 : index
    %41 = vector.load %arg13[%c84_32, %c0_33] : memref<400x64xf32, #tpu.memory_space<vmem>>, vector<28x64xf32>
    tpu.vector_store %arg13[%c84_32, %c0_33], %40 {strides = array<i32>} : memref<400x64xf32, #tpu.memory_space<vmem>>, vector<28x64xf32>,
    %c224 = arith.constant 224 : index
    %c0_34 = arith.constant 0 : index
    %42 = vector.load %arg12[%c224, %c0_34] : memref<784x64xf32, #tpu.memory_space<vmem>>, vector<28x64xf32>
    %c252 = arith.constant 252 : index
    %c0_35 = arith.constant 0 : index
    %43 = vector.load %arg12[%c252, %c0_35] : memref<784x64xf32, #tpu.memory_space<vmem>>, vector<28x64xf32>
    %44 = arith.maximumf %42, %43 : vector<28x64xf32>
    %45 = vector.broadcast %9 : vector<1x64xf32> to vector<28x64xf32>
    %46 = arith.addf %44, %45 : vector<28x64xf32>
    %cst_36 = arith.constant 0.000000e+00 : f32
    %47 = vector.broadcast %cst_36 : f32 to vector<28x64xf32>
    %48 = arith.maximumf %46, %47 : vector<28x64xf32>
    %c112_37 = arith.constant 112 : index
    %c0_38 = arith.constant 0 : index
    %49 = vector.load %arg13[%c112_37, %c0_38] : memref<400x64xf32, #tpu.memory_space<vmem>>, vector<28x64xf32>
    tpu.vector_store %arg13[%c112_37, %c0_38], %48 {strides = array<i32>} : memref<400x64xf32, #tpu.memory_space<vmem>>, vector<28x64xf32>,
    %c280 = arith.constant 280 : index
    %c0_39 = arith.constant 0 : index
    %50 = vector.load %arg12[%c280, %c0_39] : memref<784x64xf32, #tpu.memory_space<vmem>>, vector<28x64xf32>
    %c308 = arith.constant 308 : index
    %c0_40 = arith.constant 0 : index
    %51 = vector.load %arg12[%c308, %c0_40] : memref<784x64xf32, #tpu.memory_space<vmem>>, vector<28x64xf32>
    %52 = arith.maximumf %50, %51 : vector<28x64xf32>
    %53 = vector.broadcast %9 : vector<1x64xf32> to vector<28x64xf32>
    %54 = arith.addf %52, %53 : vector<28x64xf32>
    %cst_41 = arith.constant 0.000000e+00 : f32
    %55 = vector.broadcast %cst_41 : f32 to vector<28x64xf32>
    %56 = arith.maximumf %54, %55 : vector<28x64xf32>
    %c140_42 = arith.constant 140 : index
    %c0_43 = arith.constant 0 : index
    %57 = vector.load %arg13[%c140_42, %c0_43] : memref<400x64xf32, #tpu.memory_space<vmem>>, vector<28x64xf32>
    tpu.vector_store %arg13[%c140_42, %c0_43], %56 {strides = array<i32>} : memref<400x64xf32, #tpu.memory_space<vmem>>, vector<28x64xf32>,
    %c336 = arith.constant 336 : index
    %c0_44 = arith.constant 0 : index
    %58 = vector.load %arg12[%c336, %c0_44] : memref<784x64xf32, #tpu.memory_space<vmem>>, vector<28x64xf32>
    %c364 = arith.constant 364 : index
    %c0_45 = arith.constant 0 : index
    %59 = vector.load %arg12[%c364, %c0_45] : memref<784x64xf32, #tpu.memory_space<vmem>>, vector<28x64xf32>
    %60 = arith.maximumf %58, %59 : vector<28x64xf32>
    %61 = vector.broadcast %9 : vector<1x64xf32> to vector<28x64xf32>
    %62 = arith.addf %60, %61 : vector<28x64xf32>
    %cst_46 = arith.constant 0.000000e+00 : f32
    %63 = vector.broadcast %cst_46 : f32 to vector<28x64xf32>
    %64 = arith.maximumf %62, %63 : vector<28x64xf32>
    %c168_47 = arith.constant 168 : index
    %c0_48 = arith.constant 0 : index
    %65 = vector.load %arg13[%c168_47, %c0_48] : memref<400x64xf32, #tpu.memory_space<vmem>>, vector<28x64xf32>
    tpu.vector_store %arg13[%c168_47, %c0_48], %64 {strides = array<i32>} : memref<400x64xf32, #tpu.memory_space<vmem>>, vector<28x64xf32>,
    %c392 = arith.constant 392 : index
    %c0_49 = arith.constant 0 : index
    %66 = vector.load %arg12[%c392, %c0_49] : memref<784x64xf32, #tpu.memory_space<vmem>>, vector<28x64xf32>
    %c420 = arith.constant 420 : index
    %c0_50 = arith.constant 0 : index
    %67 = vector.load %arg12[%c420, %c0_50] : memref<784x64xf32, #tpu.memory_space<vmem>>, vector<28x64xf32>
    %68 = arith.maximumf %66, %67 : vector<28x64xf32>
    %69 = vector.broadcast %9 : vector<1x64xf32> to vector<28x64xf32>
    %70 = arith.addf %68, %69 : vector<28x64xf32>
    %cst_51 = arith.constant 0.000000e+00 : f32
    %71 = vector.broadcast %cst_51 : f32 to vector<28x64xf32>
    %72 = arith.maximumf %70, %71 : vector<28x64xf32>
    %c196_52 = arith.constant 196 : index
    %c0_53 = arith.constant 0 : index
    %73 = vector.load %arg13[%c196_52, %c0_53] : memref<400x64xf32, #tpu.memory_space<vmem>>, vector<28x64xf32>
    tpu.vector_store %arg13[%c196_52, %c0_53], %72 {strides = array<i32>} : memref<400x64xf32, #tpu.memory_space<vmem>>, vector<28x64xf32>,
    %c448 = arith.constant 448 : index
    %c0_54 = arith.constant 0 : index
    %74 = vector.load %arg12[%c448, %c0_54] : memref<784x64xf32, #tpu.memory_space<vmem>>, vector<28x64xf32>
    %c476 = arith.constant 476 : index
    %c0_55 = arith.constant 0 : index
    %75 = vector.load %arg12[%c476, %c0_55] : memref<784x64xf32, #tpu.memory_space<vmem>>, vector<28x64xf32>
    %76 = arith.maximumf %74, %75 : vector<28x64xf32>
    %77 = vector.broadcast %9 : vector<1x64xf32> to vector<28x64xf32>
    %78 = arith.addf %76, %77 : vector<28x64xf32>
    %cst_56 = arith.constant 0.000000e+00 : f32
    %79 = vector.broadcast %cst_56 : f32 to vector<28x64xf32>
    %80 = arith.maximumf %78, %79 : vector<28x64xf32>
    %c224_57 = arith.constant 224 : index
    %c0_58 = arith.constant 0 : index
    %81 = vector.load %arg13[%c224_57, %c0_58] : memref<400x64xf32, #tpu.memory_space<vmem>>, vector<28x64xf32>
    tpu.vector_store %arg13[%c224_57, %c0_58], %80 {strides = array<i32>} : memref<400x64xf32, #tpu.memory_space<vmem>>, vector<28x64xf32>,
    %c504 = arith.constant 504 : index
    %c0_59 = arith.constant 0 : index
    %82 = vector.load %arg12[%c504, %c0_59] : memref<784x64xf32, #tpu.memory_space<vmem>>, vector<28x64xf32>
    %c532 = arith.constant 532 : index
    %c0_60 = arith.constant 0 : index
    %83 = vector.load %arg12[%c532, %c0_60] : memref<784x64xf32, #tpu.memory_space<vmem>>, vector<28x64xf32>
    %84 = arith.maximumf %82, %83 : vector<28x64xf32>
    %85 = vector.broadcast %9 : vector<1x64xf32> to vector<28x64xf32>
    %86 = arith.addf %84, %85 : vector<28x64xf32>
    %cst_61 = arith.constant 0.000000e+00 : f32
    %87 = vector.broadcast %cst_61 : f32 to vector<28x64xf32>
    %88 = arith.maximumf %86, %87 : vector<28x64xf32>
    %c252_62 = arith.constant 252 : index
    %c0_63 = arith.constant 0 : index
    %89 = vector.load %arg13[%c252_62, %c0_63] : memref<400x64xf32, #tpu.memory_space<vmem>>, vector<28x64xf32>
    tpu.vector_store %arg13[%c252_62, %c0_63], %88 {strides = array<i32>} : memref<400x64xf32, #tpu.memory_space<vmem>>, vector<28x64xf32>,
    %c560 = arith.constant 560 : index
    %c0_64 = arith.constant 0 : index
    %90 = vector.load %arg12[%c560, %c0_64] : memref<784x64xf32, #tpu.memory_space<vmem>>, vector<28x64xf32>
    %c588 = arith.constant 588 : index
    %c0_65 = arith.constant 0 : index
    %91 = vector.load %arg12[%c588, %c0_65] : memref<784x64xf32, #tpu.memory_space<vmem>>, vector<28x64xf32>
    %92 = arith.maximumf %90, %91 : vector<28x64xf32>
    %93 = vector.broadcast %9 : vector<1x64xf32> to vector<28x64xf32>
    %94 = arith.addf %92, %93 : vector<28x64xf32>
    %cst_66 = arith.constant 0.000000e+00 : f32
    %95 = vector.broadcast %cst_66 : f32 to vector<28x64xf32>
    %96 = arith.maximumf %94, %95 : vector<28x64xf32>
    %c280_67 = arith.constant 280 : index
    %c0_68 = arith.constant 0 : index
    %97 = vector.load %arg13[%c280_67, %c0_68] : memref<400x64xf32, #tpu.memory_space<vmem>>, vector<28x64xf32>
    tpu.vector_store %arg13[%c280_67, %c0_68], %96 {strides = array<i32>} : memref<400x64xf32, #tpu.memory_space<vmem>>, vector<28x64xf32>,
    %c616 = arith.constant 616 : index
    %c0_69 = arith.constant 0 : index
    %98 = vector.load %arg12[%c616, %c0_69] : memref<784x64xf32, #tpu.memory_space<vmem>>, vector<28x64xf32>
    %c644 = arith.constant 644 : index
    %c0_70 = arith.constant 0 : index
    %99 = vector.load %arg12[%c644, %c0_70] : memref<784x64xf32, #tpu.memory_space<vmem>>, vector<28x64xf32>
    %100 = arith.maximumf %98, %99 : vector<28x64xf32>
    %101 = vector.broadcast %9 : vector<1x64xf32> to vector<28x64xf32>
    %102 = arith.addf %100, %101 : vector<28x64xf32>
    %cst_71 = arith.constant 0.000000e+00 : f32
    %103 = vector.broadcast %cst_71 : f32 to vector<28x64xf32>
    %104 = arith.maximumf %102, %103 : vector<28x64xf32>
    %c308_72 = arith.constant 308 : index
    %c0_73 = arith.constant 0 : index
    %105 = vector.load %arg13[%c308_72, %c0_73] : memref<400x64xf32, #tpu.memory_space<vmem>>, vector<28x64xf32>
    tpu.vector_store %arg13[%c308_72, %c0_73], %104 {strides = array<i32>} : memref<400x64xf32, #tpu.memory_space<vmem>>, vector<28x64xf32>,
    %c672 = arith.constant 672 : index
    %c0_74 = arith.constant 0 : index
    %106 = vector.load %arg12[%c672, %c0_74] : memref<784x64xf32, #tpu.memory_space<vmem>>, vector<28x64xf32>
    %c700 = arith.constant 700 : index
    %c0_75 = arith.constant 0 : index
    %107 = vector.load %arg12[%c700, %c0_75] : memref<784x64xf32, #tpu.memory_space<vmem>>, vector<28x64xf32>
    %108 = arith.maximumf %106, %107 : vector<28x64xf32>
    %109 = vector.broadcast %9 : vector<1x64xf32> to vector<28x64xf32>
    %110 = arith.addf %108, %109 : vector<28x64xf32>
    %cst_76 = arith.constant 0.000000e+00 : f32
    %111 = vector.broadcast %cst_76 : f32 to vector<28x64xf32>
    %112 = arith.maximumf %110, %111 : vector<28x64xf32>
    %c336_77 = arith.constant 336 : index
    %c0_78 = arith.constant 0 : index
    %113 = vector.load %arg13[%c336_77, %c0_78] : memref<400x64xf32, #tpu.memory_space<vmem>>, vector<28x64xf32>
    tpu.vector_store %arg13[%c336_77, %c0_78], %112 {strides = array<i32>} : memref<400x64xf32, #tpu.memory_space<vmem>>, vector<28x64xf32>,
    %c728 = arith.constant 728 : index
    %c0_79 = arith.constant 0 : index
    %114 = vector.load %arg12[%c728, %c0_79] : memref<784x64xf32, #tpu.memory_space<vmem>>, vector<28x64xf32>
    %c756 = arith.constant 756 : index
    %c0_80 = arith.constant 0 : index
    %115 = vector.load %arg12[%c756, %c0_80] : memref<784x64xf32, #tpu.memory_space<vmem>>, vector<28x64xf32>
    %116 = arith.maximumf %114, %115 : vector<28x64xf32>
    %117 = vector.broadcast %9 : vector<1x64xf32> to vector<28x64xf32>
    %118 = arith.addf %116, %117 : vector<28x64xf32>
    %cst_81 = arith.constant 0.000000e+00 : f32
    %119 = vector.broadcast %cst_81 : f32 to vector<28x64xf32>
    %120 = arith.maximumf %118, %119 : vector<28x64xf32>
    %c364_82 = arith.constant 364 : index
    %c0_83 = arith.constant 0 : index
    %121 = vector.load %arg13[%c364_82, %c0_83] : memref<400x64xf32, #tpu.memory_space<vmem>>, vector<28x64xf32>
    tpu.vector_store %arg13[%c364_82, %c0_83], %120 {strides = array<i32>} : memref<400x64xf32, #tpu.memory_space<vmem>>, vector<28x64xf32>,
    %cst_84 = arith.constant 0.000000e+00 : f32
    %122 = vector.broadcast %cst_84 : f32 to vector<8x64xf32>
    %c392_85 = arith.constant 392 : index
    %c0_86 = arith.constant 0 : index
    %123 = vector.load %arg13[%c392_85, %c0_86] : memref<400x64xf32, #tpu.memory_space<vmem>>, vector<8x64xf32>
    tpu.vector_store %arg13[%c392_85, %c0_86], %122 {strides = array<i32>} : memref<400x64xf32, #tpu.memory_space<vmem>>, vector<8x64xf32>,
    %c0_87 = arith.constant 0 : index
    %c0_88 = arith.constant 0 : index
    %124 = vector.load %arg13[%c0_87, %c0_88] : memref<400x64xf32, #tpu.memory_space<vmem>>, vector<336x64xf32>
    %c0_89 = arith.constant 0 : index
    %c0_90 = arith.constant 0 : index
    %c0_91 = arith.constant 0 : index
    %c0_92 = arith.constant 0 : index
    %125 = vector.load %arg4[%c0_89, %c0_90, %c0_91, %c0_92] : memref<3x3x64x32xf32, #tpu.memory_space<vmem>>, vector<1x1x64x32xf32>
    %126 = vector.shape_cast %125 : vector<1x1x64x32xf32> to vector<64x32xf32>
    %cst_93 = arith.constant dense<0.000000e+00> : vector<336x32xf32>
    %127 = tpu.matmul %124, %126, %cst_93 {dimension_numbers = #tpu.dot_dimension_numbers<[1], [0], [0], [1], [0, 0, 1, 1], [], []>} : vector<336x64xf32>, vector<64x32xf32>, vector<336x32xf32> -> vector<336x32xf32>
    %c0_94 = arith.constant 0 : index
    %c0_95 = arith.constant 0 : index
    %128 = vector.load %arg14[%c0_94, %c0_95] : memref<336x32xf32, #tpu.memory_space<vmem>>, vector<336x32xf32>
    tpu.vector_store %arg14[%c0_94, %c0_95], %127 {strides = array<i32>} : memref<336x32xf32, #tpu.memory_space<vmem>>, vector<336x32xf32>,
    %c1_96 = arith.constant 1 : index
    %c0_97 = arith.constant 0 : index
    %129 = vector.load %arg13[%c1_96, %c0_97] : memref<400x64xf32, #tpu.memory_space<vmem>>, vector<336x64xf32>
    %c0_98 = arith.constant 0 : index
    %c1_99 = arith.constant 1 : index
    %c0_100 = arith.constant 0 : index
    %c0_101 = arith.constant 0 : index
    %130 = vector.load %arg4[%c0_98, %c1_99, %c0_100, %c0_101] : memref<3x3x64x32xf32, #tpu.memory_space<vmem>>, vector<1x1x64x32xf32>
    %131 = vector.shape_cast %130 : vector<1x1x64x32xf32> to vector<64x32xf32>
    %cst_102 = arith.constant dense<0.000000e+00> : vector<336x32xf32>
    %132 = tpu.matmul %129, %131, %cst_102 {dimension_numbers = #tpu.dot_dimension_numbers<[1], [0], [0], [1], [0, 0, 1, 1], [], []>} : vector<336x64xf32>, vector<64x32xf32>, vector<336x32xf32> -> vector<336x32xf32>
    %c0_103 = arith.constant 0 : index
    %c0_104 = arith.constant 0 : index
    %133 = vector.load %arg14[%c0_103, %c0_104] : memref<336x32xf32, #tpu.memory_space<vmem>>, vector<336x32xf32>
    %134 = arith.addf %133, %132 : vector<336x32xf32>
    %c0_105 = arith.constant 0 : index
    %c0_106 = arith.constant 0 : index
    %135 = vector.load %arg14[%c0_105, %c0_106] : memref<336x32xf32, #tpu.memory_space<vmem>>, vector<336x32xf32>
    tpu.vector_store %arg14[%c0_105, %c0_106], %134 {strides = array<i32>} : memref<336x32xf32, #tpu.memory_space<vmem>>, vector<336x32xf32>,
    %c2 = arith.constant 2 : index
    %c0_107 = arith.constant 0 : index
    %136 = vector.load %arg13[%c2, %c0_107] : memref<400x64xf32, #tpu.memory_space<vmem>>, vector<336x64xf32>
    %c0_108 = arith.constant 0 : index
    %c2_109 = arith.constant 2 : index
    %c0_110 = arith.constant 0 : index
    %c0_111 = arith.constant 0 : index
    %137 = vector.load %arg4[%c0_108, %c2_109, %c0_110, %c0_111] : memref<3x3x64x32xf32, #tpu.memory_space<vmem>>, vector<1x1x64x32xf32>
    %138 = vector.shape_cast %137 : vector<1x1x64x32xf32> to vector<64x32xf32>
    %cst_112 = arith.constant dense<0.000000e+00> : vector<336x32xf32>
    %139 = tpu.matmul %136, %138, %cst_112 {dimension_numbers = #tpu.dot_dimension_numbers<[1], [0], [0], [1], [0, 0, 1, 1], [], []>} : vector<336x64xf32>, vector<64x32xf32>, vector<336x32xf32> -> vector<336x32xf32>
    %c0_113 = arith.constant 0 : index
    %c0_114 = arith.constant 0 : index
    %140 = vector.load %arg14[%c0_113, %c0_114] : memref<336x32xf32, #tpu.memory_space<vmem>>, vector<336x32xf32>
    %141 = arith.addf %140, %139 : vector<336x32xf32>
    %c0_115 = arith.constant 0 : index
    %c0_116 = arith.constant 0 : index
    %142 = vector.load %arg14[%c0_115, %c0_116] : memref<336x32xf32, #tpu.memory_space<vmem>>, vector<336x32xf32>
    tpu.vector_store %arg14[%c0_115, %c0_116], %141 {strides = array<i32>} : memref<336x32xf32, #tpu.memory_space<vmem>>, vector<336x32xf32>,
    %c28_117 = arith.constant 28 : index
    %c0_118 = arith.constant 0 : index
    %143 = vector.load %arg13[%c28_117, %c0_118] : memref<400x64xf32, #tpu.memory_space<vmem>>, vector<336x64xf32>
    %c1_119 = arith.constant 1 : index
    %c0_120 = arith.constant 0 : index
    %c0_121 = arith.constant 0 : index
    %c0_122 = arith.constant 0 : index
    %144 = vector.load %arg4[%c1_119, %c0_120, %c0_121, %c0_122] : memref<3x3x64x32xf32, #tpu.memory_space<vmem>>, vector<1x1x64x32xf32>
    %145 = vector.shape_cast %144 : vector<1x1x64x32xf32> to vector<64x32xf32>
    %cst_123 = arith.constant dense<0.000000e+00> : vector<336x32xf32>
    %146 = tpu.matmul %143, %145, %cst_123 {dimension_numbers = #tpu.dot_dimension_numbers<[1], [0], [0], [1], [0, 0, 1, 1], [], []>} : vector<336x64xf32>, vector<64x32xf32>, vector<336x32xf32> -> vector<336x32xf32>
    %c0_124 = arith.constant 0 : index
    %c0_125 = arith.constant 0 : index
    %147 = vector.load %arg14[%c0_124, %c0_125] : memref<336x32xf32, #tpu.memory_space<vmem>>, vector<336x32xf32>
    %148 = arith.addf %147, %146 : vector<336x32xf32>
    %c0_126 = arith.constant 0 : index
    %c0_127 = arith.constant 0 : index
    %149 = vector.load %arg14[%c0_126, %c0_127] : memref<336x32xf32, #tpu.memory_space<vmem>>, vector<336x32xf32>
    tpu.vector_store %arg14[%c0_126, %c0_127], %148 {strides = array<i32>} : memref<336x32xf32, #tpu.memory_space<vmem>>, vector<336x32xf32>,
    %c29 = arith.constant 29 : index
    %c0_128 = arith.constant 0 : index
    %150 = vector.load %arg13[%c29, %c0_128] : memref<400x64xf32, #tpu.memory_space<vmem>>, vector<336x64xf32>
    %c1_129 = arith.constant 1 : index
    %c1_130 = arith.constant 1 : index
    %c0_131 = arith.constant 0 : index
    %c0_132 = arith.constant 0 : index
    %151 = vector.load %arg4[%c1_129, %c1_130, %c0_131, %c0_132] : memref<3x3x64x32xf32, #tpu.memory_space<vmem>>, vector<1x1x64x32xf32>
    %152 = vector.shape_cast %151 : vector<1x1x64x32xf32> to vector<64x32xf32>
    %cst_133 = arith.constant dense<0.000000e+00> : vector<336x32xf32>
    %153 = tpu.matmul %150, %152, %cst_133 {dimension_numbers = #tpu.dot_dimension_numbers<[1], [0], [0], [1], [0, 0, 1, 1], [], []>} : vector<336x64xf32>, vector<64x32xf32>, vector<336x32xf32> -> vector<336x32xf32>
    %c0_134 = arith.constant 0 : index
    %c0_135 = arith.constant 0 : index
    %154 = vector.load %arg14[%c0_134, %c0_135] : memref<336x32xf32, #tpu.memory_space<vmem>>, vector<336x32xf32>
    %155 = arith.addf %154, %153 : vector<336x32xf32>
    %c0_136 = arith.constant 0 : index
    %c0_137 = arith.constant 0 : index
    %156 = vector.load %arg14[%c0_136, %c0_137] : memref<336x32xf32, #tpu.memory_space<vmem>>, vector<336x32xf32>
    tpu.vector_store %arg14[%c0_136, %c0_137], %155 {strides = array<i32>} : memref<336x32xf32, #tpu.memory_space<vmem>>, vector<336x32xf32>,
    %c30 = arith.constant 30 : index
    %c0_138 = arith.constant 0 : index
    %157 = vector.load %arg13[%c30, %c0_138] : memref<400x64xf32, #tpu.memory_space<vmem>>, vector<336x64xf32>
    %c1_139 = arith.constant 1 : index
    %c2_140 = arith.constant 2 : index
    %c0_141 = arith.constant 0 : index
    %c0_142 = arith.constant 0 : index
    %158 = vector.load %arg4[%c1_139, %c2_140, %c0_141, %c0_142] : memref<3x3x64x32xf32, #tpu.memory_space<vmem>>, vector<1x1x64x32xf32>
    %159 = vector.shape_cast %158 : vector<1x1x64x32xf32> to vector<64x32xf32>
    %cst_143 = arith.constant dense<0.000000e+00> : vector<336x32xf32>
    %160 = tpu.matmul %157, %159, %cst_143 {dimension_numbers = #tpu.dot_dimension_numbers<[1], [0], [0], [1], [0, 0, 1, 1], [], []>} : vector<336x64xf32>, vector<64x32xf32>, vector<336x32xf32> -> vector<336x32xf32>
    %c0_144 = arith.constant 0 : index
    %c0_145 = arith.constant 0 : index
    %161 = vector.load %arg14[%c0_144, %c0_145] : memref<336x32xf32, #tpu.memory_space<vmem>>, vector<336x32xf32>
    %162 = arith.addf %161, %160 : vector<336x32xf32>
    %c0_146 = arith.constant 0 : index
    %c0_147 = arith.constant 0 : index
    %163 = vector.load %arg14[%c0_146, %c0_147] : memref<336x32xf32, #tpu.memory_space<vmem>>, vector<336x32xf32>
    tpu.vector_store %arg14[%c0_146, %c0_147], %162 {strides = array<i32>} : memref<336x32xf32, #tpu.memory_space<vmem>>, vector<336x32xf32>,
    %c56_148 = arith.constant 56 : index
    %c0_149 = arith.constant 0 : index
    %164 = vector.load %arg13[%c56_148, %c0_149] : memref<400x64xf32, #tpu.memory_space<vmem>>, vector<336x64xf32>
    %c2_150 = arith.constant 2 : index
    %c0_151 = arith.constant 0 : index
    %c0_152 = arith.constant 0 : index
    %c0_153 = arith.constant 0 : index
    %165 = vector.load %arg4[%c2_150, %c0_151, %c0_152, %c0_153] : memref<3x3x64x32xf32, #tpu.memory_space<vmem>>, vector<1x1x64x32xf32>
    %166 = vector.shape_cast %165 : vector<1x1x64x32xf32> to vector<64x32xf32>
    %cst_154 = arith.constant dense<0.000000e+00> : vector<336x32xf32>
    %167 = tpu.matmul %164, %166, %cst_154 {dimension_numbers = #tpu.dot_dimension_numbers<[1], [0], [0], [1], [0, 0, 1, 1], [], []>} : vector<336x64xf32>, vector<64x32xf32>, vector<336x32xf32> -> vector<336x32xf32>
    %c0_155 = arith.constant 0 : index
    %c0_156 = arith.constant 0 : index
    %168 = vector.load %arg14[%c0_155, %c0_156] : memref<336x32xf32, #tpu.memory_space<vmem>>, vector<336x32xf32>
    %169 = arith.addf %168, %167 : vector<336x32xf32>
    %c0_157 = arith.constant 0 : index
    %c0_158 = arith.constant 0 : index
    %170 = vector.load %arg14[%c0_157, %c0_158] : memref<336x32xf32, #tpu.memory_space<vmem>>, vector<336x32xf32>
    tpu.vector_store %arg14[%c0_157, %c0_158], %169 {strides = array<i32>} : memref<336x32xf32, #tpu.memory_space<vmem>>, vector<336x32xf32>,
    %c57 = arith.constant 57 : index
    %c0_159 = arith.constant 0 : index
    %171 = vector.load %arg13[%c57, %c0_159] : memref<400x64xf32, #tpu.memory_space<vmem>>, vector<336x64xf32>
    %c2_160 = arith.constant 2 : index
    %c1_161 = arith.constant 1 : index
    %c0_162 = arith.constant 0 : index
    %c0_163 = arith.constant 0 : index
    %172 = vector.load %arg4[%c2_160, %c1_161, %c0_162, %c0_163] : memref<3x3x64x32xf32, #tpu.memory_space<vmem>>, vector<1x1x64x32xf32>
    %173 = vector.shape_cast %172 : vector<1x1x64x32xf32> to vector<64x32xf32>
    %cst_164 = arith.constant dense<0.000000e+00> : vector<336x32xf32>
    %174 = tpu.matmul %171, %173, %cst_164 {dimension_numbers = #tpu.dot_dimension_numbers<[1], [0], [0], [1], [0, 0, 1, 1], [], []>} : vector<336x64xf32>, vector<64x32xf32>, vector<336x32xf32> -> vector<336x32xf32>
    %c0_165 = arith.constant 0 : index
    %c0_166 = arith.constant 0 : index
    %175 = vector.load %arg14[%c0_165, %c0_166] : memref<336x32xf32, #tpu.memory_space<vmem>>, vector<336x32xf32>
    %176 = arith.addf %175, %174 : vector<336x32xf32>
    %c0_167 = arith.constant 0 : index
    %c0_168 = arith.constant 0 : index
    %177 = vector.load %arg14[%c0_167, %c0_168] : memref<336x32xf32, #tpu.memory_space<vmem>>, vector<336x32xf32>
    tpu.vector_store %arg14[%c0_167, %c0_168], %176 {strides = array<i32>} : memref<336x32xf32, #tpu.memory_space<vmem>>, vector<336x32xf32>,
    %c58 = arith.constant 58 : index
    %c0_169 = arith.constant 0 : index
    %178 = vector.load %arg13[%c58, %c0_169] : memref<400x64xf32, #tpu.memory_space<vmem>>, vector<336x64xf32>
    %c2_170 = arith.constant 2 : index
    %c2_171 = arith.constant 2 : index
    %c0_172 = arith.constant 0 : index
    %c0_173 = arith.constant 0 : index
    %179 = vector.load %arg4[%c2_170, %c2_171, %c0_172, %c0_173] : memref<3x3x64x32xf32, #tpu.memory_space<vmem>>, vector<1x1x64x32xf32>
    %180 = vector.shape_cast %179 : vector<1x1x64x32xf32> to vector<64x32xf32>
    %cst_174 = arith.constant dense<0.000000e+00> : vector<336x32xf32>
    %181 = tpu.matmul %178, %180, %cst_174 {dimension_numbers = #tpu.dot_dimension_numbers<[1], [0], [0], [1], [0, 0, 1, 1], [], []>} : vector<336x64xf32>, vector<64x32xf32>, vector<336x32xf32> -> vector<336x32xf32>
    %c0_175 = arith.constant 0 : index
    %c0_176 = arith.constant 0 : index
    %182 = vector.load %arg14[%c0_175, %c0_176] : memref<336x32xf32, #tpu.memory_space<vmem>>, vector<336x32xf32>
    %183 = arith.addf %182, %181 : vector<336x32xf32>
    %c0_177 = arith.constant 0 : index
    %c0_178 = arith.constant 0 : index
    %184 = vector.load %arg14[%c0_177, %c0_178] : memref<336x32xf32, #tpu.memory_space<vmem>>, vector<336x32xf32>
    tpu.vector_store %arg14[%c0_177, %c0_178], %183 {strides = array<i32>} : memref<336x32xf32, #tpu.memory_space<vmem>>, vector<336x32xf32>,
    %c0_179 = arith.constant 0 : index
    %c0_180 = arith.constant 0 : index
    %185 = vector.load %arg14[%c0_179, %c0_180] : memref<336x32xf32, #tpu.memory_space<vmem>>, vector<28x32xf32>
    %c28_181 = arith.constant 28 : index
    %c0_182 = arith.constant 0 : index
    %186 = vector.load %arg14[%c28_181, %c0_182] : memref<336x32xf32, #tpu.memory_space<vmem>>, vector<28x32xf32>
    %187 = arith.maximumf %185, %186 : vector<28x32xf32>
    %c0_183 = arith.constant 0 : index
    %c0_184 = arith.constant 0 : index
    %188 = vector.load %arg15[%c0_183, %c0_184] : memref<168x32xf32, #tpu.memory_space<vmem>>, vector<28x32xf32>
    tpu.vector_store %arg15[%c0_183, %c0_184], %187 {strides = array<i32>} : memref<168x32xf32, #tpu.memory_space<vmem>>, vector<28x32xf32>,
    %c56_185 = arith.constant 56 : index
    %c0_186 = arith.constant 0 : index
    %189 = vector.load %arg14[%c56_185, %c0_186] : memref<336x32xf32, #tpu.memory_space<vmem>>, vector<28x32xf32>
    %c84_187 = arith.constant 84 : index
    %c0_188 = arith.constant 0 : index
    %190 = vector.load %arg14[%c84_187, %c0_188] : memref<336x32xf32, #tpu.memory_space<vmem>>, vector<28x32xf32>
    %191 = arith.maximumf %189, %190 : vector<28x32xf32>
    %c28_189 = arith.constant 28 : index
    %c0_190 = arith.constant 0 : index
    %192 = vector.load %arg15[%c28_189, %c0_190] : memref<168x32xf32, #tpu.memory_space<vmem>>, vector<28x32xf32>
    tpu.vector_store %arg15[%c28_189, %c0_190], %191 {strides = array<i32>} : memref<168x32xf32, #tpu.memory_space<vmem>>, vector<28x32xf32>,
    %c112_191 = arith.constant 112 : index
    %c0_192 = arith.constant 0 : index
    %193 = vector.load %arg14[%c112_191, %c0_192] : memref<336x32xf32, #tpu.memory_space<vmem>>, vector<28x32xf32>
    %c140_193 = arith.constant 140 : index
    %c0_194 = arith.constant 0 : index
    %194 = vector.load %arg14[%c140_193, %c0_194] : memref<336x32xf32, #tpu.memory_space<vmem>>, vector<28x32xf32>
    %195 = arith.maximumf %193, %194 : vector<28x32xf32>
    %c56_195 = arith.constant 56 : index
    %c0_196 = arith.constant 0 : index
    %196 = vector.load %arg15[%c56_195, %c0_196] : memref<168x32xf32, #tpu.memory_space<vmem>>, vector<28x32xf32>
    tpu.vector_store %arg15[%c56_195, %c0_196], %195 {strides = array<i32>} : memref<168x32xf32, #tpu.memory_space<vmem>>, vector<28x32xf32>,
    %c168_197 = arith.constant 168 : index
    %c0_198 = arith.constant 0 : index
    %197 = vector.load %arg14[%c168_197, %c0_198] : memref<336x32xf32, #tpu.memory_space<vmem>>, vector<28x32xf32>
    %c196_199 = arith.constant 196 : index
    %c0_200 = arith.constant 0 : index
    %198 = vector.load %arg14[%c196_199, %c0_200] : memref<336x32xf32, #tpu.memory_space<vmem>>, vector<28x32xf32>
    %199 = arith.maximumf %197, %198 : vector<28x32xf32>
    %c84_201 = arith.constant 84 : index
    %c0_202 = arith.constant 0 : index
    %200 = vector.load %arg15[%c84_201, %c0_202] : memref<168x32xf32, #tpu.memory_space<vmem>>, vector<28x32xf32>
    tpu.vector_store %arg15[%c84_201, %c0_202], %199 {strides = array<i32>} : memref<168x32xf32, #tpu.memory_space<vmem>>, vector<28x32xf32>,
    %c224_203 = arith.constant 224 : index
    %c0_204 = arith.constant 0 : index
    %201 = vector.load %arg14[%c224_203, %c0_204] : memref<336x32xf32, #tpu.memory_space<vmem>>, vector<28x32xf32>
    %c252_205 = arith.constant 252 : index
    %c0_206 = arith.constant 0 : index
    %202 = vector.load %arg14[%c252_205, %c0_206] : memref<336x32xf32, #tpu.memory_space<vmem>>, vector<28x32xf32>
    %203 = arith.maximumf %201, %202 : vector<28x32xf32>
    %c112_207 = arith.constant 112 : index
    %c0_208 = arith.constant 0 : index
    %204 = vector.load %arg15[%c112_207, %c0_208] : memref<168x32xf32, #tpu.memory_space<vmem>>, vector<28x32xf32>
    tpu.vector_store %arg15[%c112_207, %c0_208], %203 {strides = array<i32>} : memref<168x32xf32, #tpu.memory_space<vmem>>, vector<28x32xf32>,
    %c280_209 = arith.constant 280 : index
    %c0_210 = arith.constant 0 : index
    %205 = vector.load %arg14[%c280_209, %c0_210] : memref<336x32xf32, #tpu.memory_space<vmem>>, vector<28x32xf32>
    %c308_211 = arith.constant 308 : index
    %c0_212 = arith.constant 0 : index
    %206 = vector.load %arg14[%c308_211, %c0_212] : memref<336x32xf32, #tpu.memory_space<vmem>>, vector<28x32xf32>
    %207 = arith.maximumf %205, %206 : vector<28x32xf32>
    %c140_213 = arith.constant 140 : index
    %c0_214 = arith.constant 0 : index
    %208 = vector.load %arg15[%c140_213, %c0_214] : memref<168x32xf32, #tpu.memory_space<vmem>>, vector<28x32xf32>
    tpu.vector_store %arg15[%c140_213, %c0_214], %207 {strides = array<i32>} : memref<168x32xf32, #tpu.memory_space<vmem>>, vector<28x32xf32>,
    %c0_215 = arith.constant 0 : index
    %c0_216 = arith.constant 0 : index
    %209 = tpu.strided_load %arg15[%c0_215, %c0_216] {strides = array<i32: 2, 1>} : memref<168x32xf32, #tpu.memory_space<vmem>>, vector<84x32xf32>
    %c1_217 = arith.constant 1 : index
    %c0_218 = arith.constant 0 : index
    %210 = tpu.strided_load %arg15[%c1_217, %c0_218] {strides = array<i32: 2, 1>} : memref<168x32xf32, #tpu.memory_space<vmem>>, vector<84x32xf32>
    %211 = arith.maximumf %209, %210 : vector<84x32xf32>
    %c0_219 = arith.constant 0 : index
    %c0_220 = arith.constant 0 : index
    %212 = vector.load %arg5[%c0_219, %c0_220] : memref<1x32xf32, #tpu.memory_space<vmem>>, vector<1x32xf32>
    %213 = vector.broadcast %212 : vector<1x32xf32> to vector<84x32xf32>
    %214 = arith.addf %211, %213 : vector<84x32xf32>
    %cst_221 = arith.constant 0.000000e+00 : f32
    %215 = vector.broadcast %cst_221 : f32 to vector<84x32xf32>
    %216 = arith.maximumf %214, %215 : vector<84x32xf32>
    %c0_222 = arith.constant 0 : index
    %c0_223 = arith.constant 0 : index
    %217 = vector.load %arg16[%c0_222, %c0_223] : memref<84x32xf32, #tpu.memory_space<vmem>>, vector<84x32xf32>
    tpu.vector_store %arg16[%c0_222, %c0_223], %216 {strides = array<i32>} : memref<84x32xf32, #tpu.memory_space<vmem>>, vector<84x32xf32>,
    %c0_224 = arith.constant 0 : index
    %c0_225 = arith.constant 0 : index
    %218 = tpu.strided_load %arg16[%c0_224, %c0_225] {strides = array<i32: 7, 1>} : memref<84x32xf32, #tpu.memory_space<vmem>>, vector<2x32xf32>
    %c0_226 = arith.constant 0 : index
    %c0_227 = arith.constant 0 : index
    %219 = vector.load %arg17[%c0_226, %c0_227] : memref<2x1152xf32, #tpu.memory_space<vmem>>, vector<2x32xf32>
    tpu.vector_store %arg17[%c0_226, %c0_227], %218 {strides = array<i32>} : memref<2x1152xf32, #tpu.memory_space<vmem>>, vector<2x32xf32>,
    %c1_228 = arith.constant 1 : index
    %c0_229 = arith.constant 0 : index
    %220 = tpu.strided_load %arg16[%c1_228, %c0_229] {strides = array<i32: 7, 1>} : memref<84x32xf32, #tpu.memory_space<vmem>>, vector<2x32xf32>
    %c0_230 = arith.constant 0 : index
    %c32 = arith.constant 32 : index
    %221 = vector.load %arg17[%c0_230, %c32] : memref<2x1152xf32, #tpu.memory_space<vmem>>, vector<2x32xf32>
    tpu.vector_store %arg17[%c0_230, %c32], %220 {strides = array<i32>} : memref<2x1152xf32, #tpu.memory_space<vmem>>, vector<2x32xf32>,
    %c2_231 = arith.constant 2 : index
    %c0_232 = arith.constant 0 : index
    %222 = tpu.strided_load %arg16[%c2_231, %c0_232] {strides = array<i32: 7, 1>} : memref<84x32xf32, #tpu.memory_space<vmem>>, vector<2x32xf32>
    %c0_233 = arith.constant 0 : index
    %c64 = arith.constant 64 : index
    %223 = vector.load %arg17[%c0_233, %c64] : memref<2x1152xf32, #tpu.memory_space<vmem>>, vector<2x32xf32>
    tpu.vector_store %arg17[%c0_233, %c64], %222 {strides = array<i32>} : memref<2x1152xf32, #tpu.memory_space<vmem>>, vector<2x32xf32>,
    %c3 = arith.constant 3 : index
    %c0_234 = arith.constant 0 : index
    %224 = tpu.strided_load %arg16[%c3, %c0_234] {strides = array<i32: 7, 1>} : memref<84x32xf32, #tpu.memory_space<vmem>>, vector<2x32xf32>
    %c0_235 = arith.constant 0 : index
    %c96 = arith.constant 96 : index
    %225 = vector.load %arg17[%c0_235, %c96] : memref<2x1152xf32, #tpu.memory_space<vmem>>, vector<2x32xf32>
    tpu.vector_store %arg17[%c0_235, %c96], %224 {strides = array<i32>} : memref<2x1152xf32, #tpu.memory_space<vmem>>, vector<2x32xf32>,
    %c4 = arith.constant 4 : index
    %c0_236 = arith.constant 0 : index
    %226 = tpu.strided_load %arg16[%c4, %c0_236] {strides = array<i32: 7, 1>} : memref<84x32xf32, #tpu.memory_space<vmem>>, vector<2x32xf32>
    %c0_237 = arith.constant 0 : index
    %c128 = arith.constant 128 : index
    %227 = vector.load %arg17[%c0_237, %c128] : memref<2x1152xf32, #tpu.memory_space<vmem>>, vector<2x32xf32>
    tpu.vector_store %arg17[%c0_237, %c128], %226 {strides = array<i32>} : memref<2x1152xf32, #tpu.memory_space<vmem>>, vector<2x32xf32>,
    %c5 = arith.constant 5 : index
    %c0_238 = arith.constant 0 : index
    %228 = tpu.strided_load %arg16[%c5, %c0_238] {strides = array<i32: 7, 1>} : memref<84x32xf32, #tpu.memory_space<vmem>>, vector<2x32xf32>
    %c0_239 = arith.constant 0 : index
    %c160 = arith.constant 160 : index
    %229 = vector.load %arg17[%c0_239, %c160] : memref<2x1152xf32, #tpu.memory_space<vmem>>, vector<2x32xf32>
    tpu.vector_store %arg17[%c0_239, %c160], %228 {strides = array<i32>} : memref<2x1152xf32, #tpu.memory_space<vmem>>, vector<2x32xf32>,
    %c14 = arith.constant 14 : index
    %c0_240 = arith.constant 0 : index
    %230 = tpu.strided_load %arg16[%c14, %c0_240] {strides = array<i32: 7, 1>} : memref<84x32xf32, #tpu.memory_space<vmem>>, vector<2x32xf32>
    %c0_241 = arith.constant 0 : index
    %c192 = arith.constant 192 : index
    %231 = vector.load %arg17[%c0_241, %c192] : memref<2x1152xf32, #tpu.memory_space<vmem>>, vector<2x32xf32>
    tpu.vector_store %arg17[%c0_241, %c192], %230 {strides = array<i32>} : memref<2x1152xf32, #tpu.memory_space<vmem>>, vector<2x32xf32>,
    %c15 = arith.constant 15 : index
    %c0_242 = arith.constant 0 : index
    %232 = tpu.strided_load %arg16[%c15, %c0_242] {strides = array<i32: 7, 1>} : memref<84x32xf32, #tpu.memory_space<vmem>>, vector<2x32xf32>
    %c0_243 = arith.constant 0 : index
    %c224_244 = arith.constant 224 : index
    %233 = vector.load %arg17[%c0_243, %c224_244] : memref<2x1152xf32, #tpu.memory_space<vmem>>, vector<2x32xf32>
    tpu.vector_store %arg17[%c0_243, %c224_244], %232 {strides = array<i32>} : memref<2x1152xf32, #tpu.memory_space<vmem>>, vector<2x32xf32>,
    %c16 = arith.constant 16 : index
    %c0_245 = arith.constant 0 : index
    %234 = tpu.strided_load %arg16[%c16, %c0_245] {strides = array<i32: 7, 1>} : memref<84x32xf32, #tpu.memory_space<vmem>>, vector<2x32xf32>
    %c0_246 = arith.constant 0 : index
    %c256 = arith.constant 256 : index
    %235 = vector.load %arg17[%c0_246, %c256] : memref<2x1152xf32, #tpu.memory_space<vmem>>, vector<2x32xf32>
    tpu.vector_store %arg17[%c0_246, %c256], %234 {strides = array<i32>} : memref<2x1152xf32, #tpu.memory_space<vmem>>, vector<2x32xf32>,
    %c17 = arith.constant 17 : index
    %c0_247 = arith.constant 0 : index
    %236 = tpu.strided_load %arg16[%c17, %c0_247] {strides = array<i32: 7, 1>} : memref<84x32xf32, #tpu.memory_space<vmem>>, vector<2x32xf32>
    %c0_248 = arith.constant 0 : index
    %c288 = arith.constant 288 : index
    %237 = vector.load %arg17[%c0_248, %c288] : memref<2x1152xf32, #tpu.memory_space<vmem>>, vector<2x32xf32>
    tpu.vector_store %arg17[%c0_248, %c288], %236 {strides = array<i32>} : memref<2x1152xf32, #tpu.memory_space<vmem>>, vector<2x32xf32>,
    %c18 = arith.constant 18 : index
    %c0_249 = arith.constant 0 : index
    %238 = tpu.strided_load %arg16[%c18, %c0_249] {strides = array<i32: 7, 1>} : memref<84x32xf32, #tpu.memory_space<vmem>>, vector<2x32xf32>
    %c0_250 = arith.constant 0 : index
    %c320 = arith.constant 320 : index
    %239 = vector.load %arg17[%c0_250, %c320] : memref<2x1152xf32, #tpu.memory_space<vmem>>, vector<2x32xf32>
    tpu.vector_store %arg17[%c0_250, %c320], %238 {strides = array<i32>} : memref<2x1152xf32, #tpu.memory_space<vmem>>, vector<2x32xf32>,
    %c19 = arith.constant 19 : index
    %c0_251 = arith.constant 0 : index
    %240 = tpu.strided_load %arg16[%c19, %c0_251] {strides = array<i32: 7, 1>} : memref<84x32xf32, #tpu.memory_space<vmem>>, vector<2x32xf32>
    %c0_252 = arith.constant 0 : index
    %c352 = arith.constant 352 : index
    %241 = vector.load %arg17[%c0_252, %c352] : memref<2x1152xf32, #tpu.memory_space<vmem>>, vector<2x32xf32>
    tpu.vector_store %arg17[%c0_252, %c352], %240 {strides = array<i32>} : memref<2x1152xf32, #tpu.memory_space<vmem>>, vector<2x32xf32>,
    %c28_253 = arith.constant 28 : index
    %c0_254 = arith.constant 0 : index
    %242 = tpu.strided_load %arg16[%c28_253, %c0_254] {strides = array<i32: 7, 1>} : memref<84x32xf32, #tpu.memory_space<vmem>>, vector<2x32xf32>
    %c0_255 = arith.constant 0 : index
    %c384 = arith.constant 384 : index
    %243 = vector.load %arg17[%c0_255, %c384] : memref<2x1152xf32, #tpu.memory_space<vmem>>, vector<2x32xf32>
    tpu.vector_store %arg17[%c0_255, %c384], %242 {strides = array<i32>} : memref<2x1152xf32, #tpu.memory_space<vmem>>, vector<2x32xf32>,
    %c29_256 = arith.constant 29 : index
    %c0_257 = arith.constant 0 : index
    %244 = tpu.strided_load %arg16[%c29_256, %c0_257] {strides = array<i32: 7, 1>} : memref<84x32xf32, #tpu.memory_space<vmem>>, vector<2x32xf32>
    %c0_258 = arith.constant 0 : index
    %c416 = arith.constant 416 : index
    %245 = vector.load %arg17[%c0_258, %c416] : memref<2x1152xf32, #tpu.memory_space<vmem>>, vector<2x32xf32>
    tpu.vector_store %arg17[%c0_258, %c416], %244 {strides = array<i32>} : memref<2x1152xf32, #tpu.memory_space<vmem>>, vector<2x32xf32>,
    %c30_259 = arith.constant 30 : index
    %c0_260 = arith.constant 0 : index
    %246 = tpu.strided_load %arg16[%c30_259, %c0_260] {strides = array<i32: 7, 1>} : memref<84x32xf32, #tpu.memory_space<vmem>>, vector<2x32xf32>
    %c0_261 = arith.constant 0 : index
    %c448_262 = arith.constant 448 : index
    %247 = vector.load %arg17[%c0_261, %c448_262] : memref<2x1152xf32, #tpu.memory_space<vmem>>, vector<2x32xf32>
    tpu.vector_store %arg17[%c0_261, %c448_262], %246 {strides = array<i32>} : memref<2x1152xf32, #tpu.memory_space<vmem>>, vector<2x32xf32>,
    %c31 = arith.constant 31 : index
    %c0_263 = arith.constant 0 : index
    %248 = tpu.strided_load %arg16[%c31, %c0_263] {strides = array<i32: 7, 1>} : memref<84x32xf32, #tpu.memory_space<vmem>>, vector<2x32xf32>
    %c0_264 = arith.constant 0 : index
    %c480 = arith.constant 480 : index
    %249 = vector.load %arg17[%c0_264, %c480] : memref<2x1152xf32, #tpu.memory_space<vmem>>, vector<2x32xf32>
    tpu.vector_store %arg17[%c0_264, %c480], %248 {strides = array<i32>} : memref<2x1152xf32, #tpu.memory_space<vmem>>, vector<2x32xf32>,
    %c32_265 = arith.constant 32 : index
    %c0_266 = arith.constant 0 : index
    %250 = tpu.strided_load %arg16[%c32_265, %c0_266] {strides = array<i32: 7, 1>} : memref<84x32xf32, #tpu.memory_space<vmem>>, vector<2x32xf32>
    %c0_267 = arith.constant 0 : index
    %c512 = arith.constant 512 : index
    %251 = vector.load %arg17[%c0_267, %c512] : memref<2x1152xf32, #tpu.memory_space<vmem>>, vector<2x32xf32>
    tpu.vector_store %arg17[%c0_267, %c512], %250 {strides = array<i32>} : memref<2x1152xf32, #tpu.memory_space<vmem>>, vector<2x32xf32>,
    %c33 = arith.constant 33 : index
    %c0_268 = arith.constant 0 : index
    %252 = tpu.strided_load %arg16[%c33, %c0_268] {strides = array<i32: 7, 1>} : memref<84x32xf32, #tpu.memory_space<vmem>>, vector<2x32xf32>
    %c0_269 = arith.constant 0 : index
    %c544 = arith.constant 544 : index
    %253 = vector.load %arg17[%c0_269, %c544] : memref<2x1152xf32, #tpu.memory_space<vmem>>, vector<2x32xf32>
    tpu.vector_store %arg17[%c0_269, %c544], %252 {strides = array<i32>} : memref<2x1152xf32, #tpu.memory_space<vmem>>, vector<2x32xf32>,
    %c42 = arith.constant 42 : index
    %c0_270 = arith.constant 0 : index
    %254 = tpu.strided_load %arg16[%c42, %c0_270] {strides = array<i32: 7, 1>} : memref<84x32xf32, #tpu.memory_space<vmem>>, vector<2x32xf32>
    %c0_271 = arith.constant 0 : index
    %c576 = arith.constant 576 : index
    %255 = vector.load %arg17[%c0_271, %c576] : memref<2x1152xf32, #tpu.memory_space<vmem>>, vector<2x32xf32>
    tpu.vector_store %arg17[%c0_271, %c576], %254 {strides = array<i32>} : memref<2x1152xf32, #tpu.memory_space<vmem>>, vector<2x32xf32>,
    %c43 = arith.constant 43 : index
    %c0_272 = arith.constant 0 : index
    %256 = tpu.strided_load %arg16[%c43, %c0_272] {strides = array<i32: 7, 1>} : memref<84x32xf32, #tpu.memory_space<vmem>>, vector<2x32xf32>
    %c0_273 = arith.constant 0 : index
    %c608 = arith.constant 608 : index
    %257 = vector.load %arg17[%c0_273, %c608] : memref<2x1152xf32, #tpu.memory_space<vmem>>, vector<2x32xf32>
    tpu.vector_store %arg17[%c0_273, %c608], %256 {strides = array<i32>} : memref<2x1152xf32, #tpu.memory_space<vmem>>, vector<2x32xf32>,
    %c44 = arith.constant 44 : index
    %c0_274 = arith.constant 0 : index
    %258 = tpu.strided_load %arg16[%c44, %c0_274] {strides = array<i32: 7, 1>} : memref<84x32xf32, #tpu.memory_space<vmem>>, vector<2x32xf32>
    %c0_275 = arith.constant 0 : index
    %c640 = arith.constant 640 : index
    %259 = vector.load %arg17[%c0_275, %c640] : memref<2x1152xf32, #tpu.memory_space<vmem>>, vector<2x32xf32>
    tpu.vector_store %arg17[%c0_275, %c640], %258 {strides = array<i32>} : memref<2x1152xf32, #tpu.memory_space<vmem>>, vector<2x32xf32>,
    %c45 = arith.constant 45 : index
    %c0_276 = arith.constant 0 : index
    %260 = tpu.strided_load %arg16[%c45, %c0_276] {strides = array<i32: 7, 1>} : memref<84x32xf32, #tpu.memory_space<vmem>>, vector<2x32xf32>
    %c0_277 = arith.constant 0 : index
    %c672_278 = arith.constant 672 : index
    %261 = vector.load %arg17[%c0_277, %c672_278] : memref<2x1152xf32, #tpu.memory_space<vmem>>, vector<2x32xf32>
    tpu.vector_store %arg17[%c0_277, %c672_278], %260 {strides = array<i32>} : memref<2x1152xf32, #tpu.memory_space<vmem>>, vector<2x32xf32>,
    %c46 = arith.constant 46 : index
    %c0_279 = arith.constant 0 : index
    %262 = tpu.strided_load %arg16[%c46, %c0_279] {strides = array<i32: 7, 1>} : memref<84x32xf32, #tpu.memory_space<vmem>>, vector<2x32xf32>
    %c0_280 = arith.constant 0 : index
    %c704 = arith.constant 704 : index
    %263 = vector.load %arg17[%c0_280, %c704] : memref<2x1152xf32, #tpu.memory_space<vmem>>, vector<2x32xf32>
    tpu.vector_store %arg17[%c0_280, %c704], %262 {strides = array<i32>} : memref<2x1152xf32, #tpu.memory_space<vmem>>, vector<2x32xf32>,
    %c47 = arith.constant 47 : index
    %c0_281 = arith.constant 0 : index
    %264 = tpu.strided_load %arg16[%c47, %c0_281] {strides = array<i32: 7, 1>} : memref<84x32xf32, #tpu.memory_space<vmem>>, vector<2x32xf32>
    %c0_282 = arith.constant 0 : index
    %c736 = arith.constant 736 : index
    %265 = vector.load %arg17[%c0_282, %c736] : memref<2x1152xf32, #tpu.memory_space<vmem>>, vector<2x32xf32>
    tpu.vector_store %arg17[%c0_282, %c736], %264 {strides = array<i32>} : memref<2x1152xf32, #tpu.memory_space<vmem>>, vector<2x32xf32>,
    %c56_283 = arith.constant 56 : index
    %c0_284 = arith.constant 0 : index
    %266 = tpu.strided_load %arg16[%c56_283, %c0_284] {strides = array<i32: 7, 1>} : memref<84x32xf32, #tpu.memory_space<vmem>>, vector<2x32xf32>
    %c0_285 = arith.constant 0 : index
    %c768 = arith.constant 768 : index
    %267 = vector.load %arg17[%c0_285, %c768] : memref<2x1152xf32, #tpu.memory_space<vmem>>, vector<2x32xf32>
    tpu.vector_store %arg17[%c0_285, %c768], %266 {strides = array<i32>} : memref<2x1152xf32, #tpu.memory_space<vmem>>, vector<2x32xf32>,
    %c57_286 = arith.constant 57 : index
    %c0_287 = arith.constant 0 : index
    %268 = tpu.strided_load %arg16[%c57_286, %c0_287] {strides = array<i32: 7, 1>} : memref<84x32xf32, #tpu.memory_space<vmem>>, vector<2x32xf32>
    %c0_288 = arith.constant 0 : index
    %c800 = arith.constant 800 : index
    %269 = vector.load %arg17[%c0_288, %c800] : memref<2x1152xf32, #tpu.memory_space<vmem>>, vector<2x32xf32>
    tpu.vector_store %arg17[%c0_288, %c800], %268 {strides = array<i32>} : memref<2x1152xf32, #tpu.memory_space<vmem>>, vector<2x32xf32>,
    %c58_289 = arith.constant 58 : index
    %c0_290 = arith.constant 0 : index
    %270 = tpu.strided_load %arg16[%c58_289, %c0_290] {strides = array<i32: 7, 1>} : memref<84x32xf32, #tpu.memory_space<vmem>>, vector<2x32xf32>
    %c0_291 = arith.constant 0 : index
    %c832 = arith.constant 832 : index
    %271 = vector.load %arg17[%c0_291, %c832] : memref<2x1152xf32, #tpu.memory_space<vmem>>, vector<2x32xf32>
    tpu.vector_store %arg17[%c0_291, %c832], %270 {strides = array<i32>} : memref<2x1152xf32, #tpu.memory_space<vmem>>, vector<2x32xf32>,
    %c59 = arith.constant 59 : index
    %c0_292 = arith.constant 0 : index
    %272 = tpu.strided_load %arg16[%c59, %c0_292] {strides = array<i32: 7, 1>} : memref<84x32xf32, #tpu.memory_space<vmem>>, vector<2x32xf32>
    %c0_293 = arith.constant 0 : index
    %c864 = arith.constant 864 : index
    %273 = vector.load %arg17[%c0_293, %c864] : memref<2x1152xf32, #tpu.memory_space<vmem>>, vector<2x32xf32>
    tpu.vector_store %arg17[%c0_293, %c864], %272 {strides = array<i32>} : memref<2x1152xf32, #tpu.memory_space<vmem>>, vector<2x32xf32>,
    %c60 = arith.constant 60 : index
    %c0_294 = arith.constant 0 : index
    %274 = tpu.strided_load %arg16[%c60, %c0_294] {strides = array<i32: 7, 1>} : memref<84x32xf32, #tpu.memory_space<vmem>>, vector<2x32xf32>
    %c0_295 = arith.constant 0 : index
    %c896 = arith.constant 896 : index
    %275 = vector.load %arg17[%c0_295, %c896] : memref<2x1152xf32, #tpu.memory_space<vmem>>, vector<2x32xf32>
    tpu.vector_store %arg17[%c0_295, %c896], %274 {strides = array<i32>} : memref<2x1152xf32, #tpu.memory_space<vmem>>, vector<2x32xf32>,
    %c61 = arith.constant 61 : index
    %c0_296 = arith.constant 0 : index
    %276 = tpu.strided_load %arg16[%c61, %c0_296] {strides = array<i32: 7, 1>} : memref<84x32xf32, #tpu.memory_space<vmem>>, vector<2x32xf32>
    %c0_297 = arith.constant 0 : index
    %c928 = arith.constant 928 : index
    %277 = vector.load %arg17[%c0_297, %c928] : memref<2x1152xf32, #tpu.memory_space<vmem>>, vector<2x32xf32>
    tpu.vector_store %arg17[%c0_297, %c928], %276 {strides = array<i32>} : memref<2x1152xf32, #tpu.memory_space<vmem>>, vector<2x32xf32>,
    %c70 = arith.constant 70 : index
    %c0_298 = arith.constant 0 : index
    %278 = tpu.strided_load %arg16[%c70, %c0_298] {strides = array<i32: 7, 1>} : memref<84x32xf32, #tpu.memory_space<vmem>>, vector<2x32xf32>
    %c0_299 = arith.constant 0 : index
    %c960 = arith.constant 960 : index
    %279 = vector.load %arg17[%c0_299, %c960] : memref<2x1152xf32, #tpu.memory_space<vmem>>, vector<2x32xf32>
    tpu.vector_store %arg17[%c0_299, %c960], %278 {strides = array<i32>} : memref<2x1152xf32, #tpu.memory_space<vmem>>, vector<2x32xf32>,
    %c71 = arith.constant 71 : index
    %c0_300 = arith.constant 0 : index
    %280 = tpu.strided_load %arg16[%c71, %c0_300] {strides = array<i32: 7, 1>} : memref<84x32xf32, #tpu.memory_space<vmem>>, vector<2x32xf32>
    %c0_301 = arith.constant 0 : index
    %c992 = arith.constant 992 : index
    %281 = vector.load %arg17[%c0_301, %c992] : memref<2x1152xf32, #tpu.memory_space<vmem>>, vector<2x32xf32>
    tpu.vector_store %arg17[%c0_301, %c992], %280 {strides = array<i32>} : memref<2x1152xf32, #tpu.memory_space<vmem>>, vector<2x32xf32>,
    %c72 = arith.constant 72 : index
    %c0_302 = arith.constant 0 : index
    %282 = tpu.strided_load %arg16[%c72, %c0_302] {strides = array<i32: 7, 1>} : memref<84x32xf32, #tpu.memory_space<vmem>>, vector<2x32xf32>
    %c0_303 = arith.constant 0 : index
    %c1024 = arith.constant 1024 : index
    %283 = vector.load %arg17[%c0_303, %c1024] : memref<2x1152xf32, #tpu.memory_space<vmem>>, vector<2x32xf32>
    tpu.vector_store %arg17[%c0_303, %c1024], %282 {strides = array<i32>} : memref<2x1152xf32, #tpu.memory_space<vmem>>, vector<2x32xf32>,
    %c73 = arith.constant 73 : index
    %c0_304 = arith.constant 0 : index
    %284 = tpu.strided_load %arg16[%c73, %c0_304] {strides = array<i32: 7, 1>} : memref<84x32xf32, #tpu.memory_space<vmem>>, vector<2x32xf32>
    %c0_305 = arith.constant 0 : index
    %c1056 = arith.constant 1056 : index
    %285 = vector.load %arg17[%c0_305, %c1056] : memref<2x1152xf32, #tpu.memory_space<vmem>>, vector<2x32xf32>
    tpu.vector_store %arg17[%c0_305, %c1056], %284 {strides = array<i32>} : memref<2x1152xf32, #tpu.memory_space<vmem>>, vector<2x32xf32>,
    %c74 = arith.constant 74 : index
    %c0_306 = arith.constant 0 : index
    %286 = tpu.strided_load %arg16[%c74, %c0_306] {strides = array<i32: 7, 1>} : memref<84x32xf32, #tpu.memory_space<vmem>>, vector<2x32xf32>
    %c0_307 = arith.constant 0 : index
    %c1088 = arith.constant 1088 : index
    %287 = vector.load %arg17[%c0_307, %c1088] : memref<2x1152xf32, #tpu.memory_space<vmem>>, vector<2x32xf32>
    tpu.vector_store %arg17[%c0_307, %c1088], %286 {strides = array<i32>} : memref<2x1152xf32, #tpu.memory_space<vmem>>, vector<2x32xf32>,
    %c75 = arith.constant 75 : index
    %c0_308 = arith.constant 0 : index
    %288 = tpu.strided_load %arg16[%c75, %c0_308] {strides = array<i32: 7, 1>} : memref<84x32xf32, #tpu.memory_space<vmem>>, vector<2x32xf32>
    %c0_309 = arith.constant 0 : index
    %c1120 = arith.constant 1120 : index
    %289 = vector.load %arg17[%c0_309, %c1120] : memref<2x1152xf32, #tpu.memory_space<vmem>>, vector<2x32xf32>
    tpu.vector_store %arg17[%c0_309, %c1120], %288 {strides = array<i32>} : memref<2x1152xf32, #tpu.memory_space<vmem>>, vector<2x32xf32>,
    %c0_310 = arith.constant 0 : index
    %c0_311 = arith.constant 0 : index
    %290 = vector.load %arg17[%c0_310, %c0_311] : memref<2x1152xf32, #tpu.memory_space<vmem>>, vector<2x1152xf32>
    %c0_312 = arith.constant 0 : index
    %c0_313 = arith.constant 0 : index
    %291 = vector.load %arg6[%c0_312, %c0_313] : memref<1152x128xf32, #tpu.memory_space<vmem>>, vector<1152x128xf32>
    %cst_314 = arith.constant dense<0.000000e+00> : vector<2x128xf32>
    %292 = tpu.matmul %290, %291, %cst_314 {dimension_numbers = #tpu.dot_dimension_numbers<[1], [0], [0], [1], [0, 0, 1, 1], [], []>} : vector<2x1152xf32>, vector<1152x128xf32>, vector<2x128xf32> -> vector<2x128xf32>
    %c0_315 = arith.constant 0 : index
    %c0_316 = arith.constant 0 : index
    %293 = vector.load %arg7[%c0_315, %c0_316] : memref<1x128xf32, #tpu.memory_space<vmem>>, vector<1x128xf32>
    %294 = vector.broadcast %293 : vector<1x128xf32> to vector<2x128xf32>
    %295 = arith.addf %292, %294 : vector<2x128xf32>
    %cst_317 = arith.constant 0.000000e+00 : f32
    %296 = vector.broadcast %cst_317 : f32 to vector<2x128xf32>
    %297 = arith.maximumf %295, %296 : vector<2x128xf32>
    %c0_318 = arith.constant 0 : index
    %c0_319 = arith.constant 0 : index
    %298 = vector.load %arg8[%c0_318, %c0_319] : memref<128x10xf32, #tpu.memory_space<vmem>>, vector<128x10xf32>
    %cst_320 = arith.constant dense<0.000000e+00> : vector<2x10xf32>
    %299 = tpu.matmul %297, %298, %cst_320 {dimension_numbers = #tpu.dot_dimension_numbers<[1], [0], [0], [1], [0, 0, 1, 1], [], []>} : vector<2x128xf32>, vector<128x10xf32>, vector<2x10xf32> -> vector<2x10xf32>
    %c0_321 = arith.constant 0 : index
    %c0_322 = arith.constant 0 : index
    %300 = vector.load %arg9[%c0_321, %c0_322] : memref<1x10xf32, #tpu.memory_space<vmem>>, vector<1x10xf32>
    %301 = vector.broadcast %300 : vector<1x10xf32> to vector<2x10xf32>
    %302 = arith.addf %299, %301 : vector<2x10xf32>
    %c0_323 = arith.constant 0 : index
    %c0_324 = arith.constant 0 : index
    %c0_325 = arith.constant 0 : index
    %303 = vector.load %arg10[%c0_323, %c0_324, %c0_325] : memref<1x2x10xf32, #tpu.memory_space<vmem>>, vector<1x2x10xf32>
    %304 = vector.shape_cast %303 : vector<1x2x10xf32> to vector<2x10xf32>
    %305 = vector.shape_cast %302 : vector<2x10xf32> to vector<1x2x10xf32>
    tpu.vector_store %arg10[%c0_323, %c0_324, %c0_325], %305 {strides = array<i32>} : memref<1x2x10xf32, #tpu.memory_space<vmem>>, vector<1x2x10xf32>,
    return
  }
  func.func @transform_0(%arg0: i32) -> (i32, i32, i32) {
    %c0_i32 = arith.constant 0 : i32
    %c0_i32_0 = arith.constant 0 : i32
    %c0_i32_1 = arith.constant 0 : i32
    return %arg0, %c0_i32, %c0_i32_0 : i32, i32, i32
  }
  func.func @transform_1(%arg0: i32) -> (i32, i32) {
    %c0_i32 = arith.constant 0 : i32
    %c0_i32_0 = arith.constant 0 : i32
    %c0_i32_1 = arith.constant 0 : i32
    return %c0_i32, %c0_i32_0 : i32, i32
  }
  func.func @transform_2(%arg0: i32) -> (i32, i32) {
    %c0_i32 = arith.constant 0 : i32
    %c0_i32_0 = arith.constant 0 : i32
    %c0_i32_1 = arith.constant 0 : i32
    return %c0_i32, %c0_i32_0 : i32, i32
  }
  func.func @transform_3(%arg0: i32) -> (i32, i32, i32, i32) {
    %c0_i32 = arith.constant 0 : i32
    %c0_i32_0 = arith.constant 0 : i32
    %c0_i32_1 = arith.constant 0 : i32
    %c0_i32_2 = arith.constant 0 : i32
    %c0_i32_3 = arith.constant 0 : i32
    return %c0_i32, %c0_i32_0, %c0_i32_1, %c0_i32_2 : i32, i32, i32, i32
  }
  func.func @transform_4(%arg0: i32) -> (i32, i32) {
    %c0_i32 = arith.constant 0 : i32
    %c0_i32_0 = arith.constant 0 : i32
    %c0_i32_1 = arith.constant 0 : i32
    return %c0_i32, %c0_i32_0 : i32, i32
  }
  func.func @transform_5(%arg0: i32) -> (i32, i32) {
    %c0_i32 = arith.constant 0 : i32
    %c0_i32_0 = arith.constant 0 : i32
    %c0_i32_1 = arith.constant 0 : i32
    return %c0_i32, %c0_i32_0 : i32, i32
  }
  func.func @transform_6(%arg0: i32) -> (i32, i32) {
    %c0_i32 = arith.constant 0 : i32
    %c0_i32_0 = arith.constant 0 : i32
    %c0_i32_1 = arith.constant 0 : i32
    return %c0_i32, %c0_i32_0 : i32, i32
  }
  func.func @transform_7(%arg0: i32) -> (i32, i32) {
    %c0_i32 = arith.constant 0 : i32
    %c0_i32_0 = arith.constant 0 : i32
    %c0_i32_1 = arith.constant 0 : i32
    return %c0_i32, %c0_i32_0 : i32, i32
  }
  func.func @transform_8(%arg0: i32) -> (i32, i32) {
    %c0_i32 = arith.constant 0 : i32
    %c0_i32_0 = arith.constant 0 : i32
    %c0_i32_1 = arith.constant 0 : i32
    return %c0_i32, %c0_i32_0 : i32, i32
  }
  func.func @transform_9(%arg0: i32) -> (i32, i32, i32) {
    %c0_i32 = arith.constant 0 : i32
    %c0_i32_0 = arith.constant 0 : i32
    %c0_i32_1 = arith.constant 0 : i32
    return %arg0, %c0_i32, %c0_i32_0 : i32, i32, i32
  }
}

</mosaic_0001>

<bundles_post_ra>
// kernel: net_forward.1
= control target key start
LH: loop header
LB: loop body
LE: loop exit
PB: predicated region body
PF: predicated region fallthrough
CT: control target
= control target key end

     0   :  { %vm820_vm0 = vcmask 1040384   ;;  %vm12292_vm1 = vmmov 1   ;;  %vm231_vm3 = vcmask 72704   ;;  %s15494_s0 = inlined_call_operand.vmem [shape: f32[1,1568,9], index: 0, kind: input, shape index: {}]   ;;  %s15495_s1 = inlined_call_operand.vmem [shape: f32[9,64], index: 1, kind: input, shape index: {}]   ;;  %s15496_s2 = inlined_call_operand.vmem [shape: f32[1,64], index: 2, kind: input, shape index: {}]   ;;  %s15497_s3 = inlined_call_operand.vmem [shape: f32[3,3,64,32], index: 3, kind: input, shape index: {}]   ;;  %s15498_s4 = inlined_call_operand.vmem [shape: f32[1,32], index: 4, kind: input, shape index: {}]   ;;  %s15499_s5 = inlined_call_operand.vmem [shape: f32[1152,128], index: 5, kind: input, shape index: {}]   ;;  %s15500_s6 = inlined_call_operand.vmem [shape: f32[1,128], index: 6, kind: input, shape index: {}]   ;;  %s15501_s7 = inlined_call_operand.vmem [shape: f32[128,10], index: 7, kind: input, shape index: {}]   ;;  %s15502_s8 = inlined_call_operand.vmem [shape: f32[1,10], index: 8, kind: input, shape index: {}]   ;;  %s15503_s9 = inlined_call_operand.hbm [shape: f32[1,2,10], index: 9, kind: output, shape index: {}]  }
   0x1   :  { %v229_v0 = vld [vmem:[%s15495_s1] sm:$0xff]  ;;  %v230_v1 = vld [vmem:[%s15495_s1 + $0x8] sm:$0x1]  ;;  %vm11928_vm2 = vmpackc.low %vm820_vm0, %vm12292_vm1 }
   0x2   :  { %v33_v2 = vld [vmem:[%s15494_s0] sm:$0xff]  ;;  %v11927_v3 = vpack.c.bf16 %v230_v1, %v229_v0  ;;  %v34_v4 = vld [vmem:[%s15494_s0 + $0x8] sm:$0xff]  ;;  %v35_v5 = vld [vmem:[%s15494_s0 + $0x10] sm:$0xff] }
   0x3   :  { %10852 = vmatprep.mubr.msk.f32.mxu0 %vm231_vm3, %v33_v2  ;;  %v36_v6 = vld [vmem:[%s15494_s0 + $0x18] sm:$0xff]  ;;  %v37_v7 = vld [vmem:[%s15494_s0 + $0x20] sm:$0xff]  ;;  %v38_v8 = vld [vmem:[%s15494_s0 + $0x28] sm:$0xff] }
   0x4   :  { %11929 = vmatprep.subr.msk.bf16.mxu0 %vm11928_vm2, %v11927_v3  ;;  %12253 = vmatprep.subr.msk.bf16.mxu1 %vm11928_vm2, %v11927_v3  ;;  %v39_v9 = vld [vmem:[%s15494_s0 + $0x30] sm:$0xff]  ;;  %v40_v10 = vld [vmem:[%s15494_s0 + $0x38] sm:$0xff]  ;;  %v41_v11 = vld [vmem:[%s15494_s0 + $0x40] sm:$0xff] }
   0x5   :  { %11932 = vmatpush3.bf16.msk.msra.mxu0 %vm11928_vm2, %v11927_v3  ;;  %12254 = vmatpush3.bf16.msk.msra.mxu1 %vm11928_vm2, %v11927_v3  ;;  %v42_v12 = vld [vmem:[%s15494_s0 + $0x48] sm:$0xff]  ;;  %v43_v13 = vld [vmem:[%s15494_s0 + $0x50] sm:$0xff]  ;;  %v44_v14 = vld [vmem:[%s15494_s0 + $0x58] sm:$0xff] }
   0x6   :  { %v45_v15 = vld [vmem:[%s15494_s0 + $0x60] sm:$0xff] }
   0x8   :  { %10853 = vmatmul.mubr.msk.f32.vlgmr.msra.gmra.mrb[0].mxu0 %vm231_vm3, %v34_v4 }
   0x9   :  { %10855 = vmatprep.mubr.msk.f32.mxu0 %vm231_vm3, %v35_v5 }
   0xc   :  { %10856 = vmatmul.mubr.msk.f32.gmra.mrb[2].mxu0 %vm231_vm3, %v36_v6 }
   0xd   :  { %10858 = vmatprep.mubr.msk.f32.mxu0 %vm231_vm3, %v37_v7 }
  0x10   :  { %10859 = vmatmul.mubr.msk.f32.gmra.mrb[4].mxu0 %vm231_vm3, %v38_v8 }
  0x11   :  { %10861 = vmatprep.mubr.msk.f32.mxu0 %vm231_vm3, %v39_v9 }
  0x14   :  { %10862 = vmatmul.mubr.msk.f32.gmra.mrb[6].mxu0 %vm231_vm3, %v40_v10 }
  0x15   :  { %10864 = vmatprep.mubr.msk.f32.mxu0 %vm231_vm3, %v41_v11 }
  0x18   :  { %10865 = vmatmul.mubr.msk.f32.gmra.mrb[8].mxu0 %vm231_vm3, %v42_v12 }
  0x19   :  { %10867 = vmatprep.mubr.msk.f32.mxu0 %vm231_vm3, %v43_v13 }
  0x1a   :  { %14 = vsyncpa [#allocation10], 0  ;;  %v46_v16 = vld [vmem:[%s15494_s0 + $0x68] sm:$0xff]  ;;  %v47_v17 = vld [vmem:[%s15494_s0 + $0x70] sm:$0xff]  ;;  %vm1869_vm4 = vcmask 523264   ;;  %vm2683_vm5 = vcmask 519168  }
  0x1b   :  { %v48_v18 = vld [vmem:[%s15494_s0 + $0x78] sm:$0xff]  ;;  %v49_v19 = vld [vmem:[%s15494_s0 + $0x80] sm:$0xff]  ;;  %v50_v20 = vld [vmem:[%s15494_s0 + $0x88] sm:$0xff]  ;;  %vm3449_vm6 = vcmask 261120   ;;  %vm8131_vm7 = vcmask 257024   ;;  %vm8308_vm8 = vcmask 254976  }
  0x1c   :  { %10868 = vmatmul.mubr.msk.f32.gmra.mrb[10].mxu0 %vm231_vm3, %v44_v14  ;;  %v51_v21 = vld [vmem:[%s15494_s0 + $0x90] sm:$0xff]  ;;  %v52_v22 = vld [vmem:[%s15494_s0 + $0x98] sm:$0xff]  ;;  %v53_v23 = vld [vmem:[%s15494_s0 + $0xa0] sm:$0xff]  ;;  %s12295_s30 = smov 32   ;;  %s12296_s1 = smov 64   ;;  %vm8323_vm9 = vcmask 517376  }
  0x1d   :  { %10870 = vmatprep.mubr.msk.f32.mxu0 %vm231_vm3, %v45_v15  ;;  %v54_v24 = vld [vmem:[%s15494_s0 + $0xa8] sm:$0xff]  ;;  %v55_v25 = vld [vmem:[%s15494_s0 + $0xb0] sm:$0xff]  ;;  %v56_v26 = vld [vmem:[%s15494_s0 + $0xb8] sm:$0xff]  ;;  %s12297_s19 = smov 96   ;;  %vm8338_vm10 = vcmask 779776   ;;  %vm8353_vm11 = vcmask 1042176  }
  0x1e   :  { %v57_v27 = vld [vmem:[%s15494_s0 + $0xc0] sm:$0xff]  ;;  %v58_v28 = vld [vmem:[%s15494_s0 + $0xc8] sm:$0xff]  ;;  %v59_v29 = vld [vmem:[%s15494_s0 + $0xd0] sm:$0xff]  ;;  %vm12299_vm12 = vmmov 0   ;;  %s12300_s12 = smov [#allocation9]   ;;  %vm9366_vm13 = vcmask 74752  }
  0x1f   :  { %v60_v30 = vld [vmem:[%s15494_s0 + $0xd8] sm:$0xff]  ;;  %v61_v31 = vld [vmem:[%s15494_s0 + $0xe0] sm:$0xff]  ;;  %v62_v32 = vld [vmem:[%s15494_s0 + $0xe8] sm:$0xff]  ;;  %s9374_s13 = sshll.u32 %s12300_s12, 4  ;;  %s9375_s13 = int_to_ptr.vmem [resolvable:$true] %s9374_s13 }
  0x20   :  { %10871 = vmatmul.mubr.msk.f32.gmra.mrb[12].mxu0 %vm231_vm3, %v46_v16  ;;  %v63_v33 = vld [vmem:[%s15494_s0 + $0xf0] sm:$0xff]  ;;  %v64_v34 = vld [vmem:[%s15494_s0 + $0xf8] sm:$0xff]  ;;  %v65_v35 = vld [vmem:[%s15494_s0 + $0x100] sm:$0xff]  ;;  %s12268_s14 = scalar_lea.vmem %s9375_s13, 32  ;;  %p12273_p1 = scmp.lt.s32.totalorder %s9375_s13, %s9375_s13 }
  0x21   :  { %10873 = vmatprep.mubr.msk.f32.mxu0 %vm231_vm3, %v47_v17  ;;  %v66_v36 = vld [vmem:[%s15494_s0 + $0x108] sm:$0xff]  ;;  %v67_v37 = vld [vmem:[%s15494_s0 + $0x110] sm:$0xff]  ;;  %v68_v38 = vld [vmem:[%s15494_s0 + $0x118] sm:$0xff]  ;;  %p12269_p0 = scmp.ne.s32.totalorder %s9375_s13, %s12268_s14  ;;  %p12274_p2 = scmp.lt.s32.totalorder %s12268_s14, %s12268_s14 }
  0x22   :  { %v69_v39 = vld [vmem:[%s15494_s0 + $0x120] sm:$0xff]  ;;  %v70_v40 = vld [vmem:[%s15494_s0 + $0x128] sm:$0xff]  ;;  %v71_v41 = vld [vmem:[%s15494_s0 + $0x130] sm:$0xff] }
  0x23   :  { %v72_v42 = vld [vmem:[%s15494_s0 + $0x138] sm:$0xff]  ;;  %v73_v43 = vld [vmem:[%s15494_s0 + $0x140] sm:$0xff]  ;;  %v74_v44 = vld [vmem:[%s15494_s0 + $0x148] sm:$0xff]  ;;  %p12275_p3 = por %p12274_p2, %p12273_p1 }
  0x24   :  { %10874 = vmatmul.mubr.msk.f32.gmra.mrb[14].mxu0 %vm231_vm3, %v48_v18  ;;  %v75_v45 = vld [vmem:[%s15494_s0 + $0x150] sm:$0xff]  ;;  %v76_v46 = vld [vmem:[%s15494_s0 + $0x158] sm:$0xff]  ;;  %v77_v47 = vld [vmem:[%s15494_s0 + $0x160] sm:$0xff] }
  0x25   :  { %10876 = vmatprep.mubr.msk.f32.mxu0 %vm231_vm3, %v49_v19  ;;  %v78_v48 = vld [vmem:[%s15494_s0 + $0x168] sm:$0xff]  ;;  %v79_v49 = vld [vmem:[%s15494_s0 + $0x170] sm:$0xff]  ;;  %v80_v50 = vld [vmem:[%s15494_s0 + $0x178] sm:$0xff]  ;;  %p12276_p4 = pnand %p12275_p3, %p12269_p0 }
  0x26   :  { %v81_v51 = vld [vmem:[%s15494_s0 + $0x180] sm:$0xff]  ;;  %v82_v52 = vld [vmem:[%s15494_s0 + $0x188] sm:$0xff]  ;;  %v83_v53 = vld [vmem:[%s15494_s0 + $0x190] sm:$0xff] }
  0x27   :  { %v84_v54 = vld [vmem:[%s15494_s0 + $0x198] sm:$0xff]  ;;  %v85_v55 = vld [vmem:[%s15494_s0 + $0x1a0] sm:$0xff]  ;;  %v86_v56 = vld [vmem:[%s15494_s0 + $0x1a8] sm:$0xff] }
  0x28   :  { %10877 = vmatmul.mubr.msk.f32.gmra.mrb[16].mxu0 %vm231_vm3, %v50_v20  ;;  %v87_v57 = vld [vmem:[%s15494_s0 + $0x1b0] sm:$0xff]  ;;  %v88_v58 = vld [vmem:[%s15494_s0 + $0x1b8] sm:$0xff]  ;;  %v89_v59 = vld [vmem:[%s15494_s0 + $0x1c0] sm:$0xff] }
  0x29   :  { %10879 = vmatprep.mubr.msk.f32.mxu0 %vm231_vm3, %v51_v21  ;;  %v90_v60 = vld [vmem:[%s15494_s0 + $0x1c8] sm:$0xff]  ;;  %v91_v61 = vld [vmem:[%s15494_s0 + $0x1d0] sm:$0xff]  ;;  %v92_v62 = vld [vmem:[%s15494_s0 + $0x1d8] sm:$0xff] }
  0x2a   :  { %v93_v63 = vld [vmem:[%s15494_s0 + $0x1e0] sm:$0xff]  ;;  %v94_v0 = vld [vmem:[%s15494_s0 + $0x1e8] sm:$0xff]  ;;  %v95_v1 = vld [vmem:[%s15494_s0 + $0x1f0] sm:$0xff] }
  0x2b   :  { %v221_v2 = vld [vmem:[%s15494_s0 + $0x5e0] sm:$0xff]  ;;  %v222_v4 = vld [vmem:[%s15494_s0 + $0x5e8] sm:$0xff]  ;;  %v96_v7 = vld [vmem:[%s15494_s0 + $0x1f8] sm:$0xff] }
  0x2c   :  { %10880 = vmatmul.mubr.msk.f32.gmra.mrb[18].mxu0 %vm231_vm3, %v52_v22  ;;  %v3040_v3 = vld [vmem:[%s15497_s3] sm:$0xff]  ;;  %11134 = vmatprep.mubr.msk.f32.mxu1 %vm231_vm3, %v221_v2  ;;  %v3041_v5 = vld [vmem:[%s15497_s3 + $0x8] sm:$0xff]  ;;  %v223_v9 = vld [vmem:[%s15494_s0 + $0x5f0] sm:$0xff] }
  0x2d   :  { %10882 = vmatprep.mubr.msk.f32.mxu0 %vm231_vm3, %v53_v23  ;;  %11135 = vmatmul.mubr.msk.f32.vlgmr.msra.gmra.mrb[0].mxu1 %vm231_vm3, %v222_v4  ;;  %v11933_v6 = vpack.c.bf16 %v3041_v5, %v3040_v3  ;;  %v97_v8 = vld [vmem:[%s15494_s0 + $0x200] sm:$0xff]  ;;  %v3042_v10 = vld [vmem:[%s15497_s3 + $0x10] sm:$0xff]  ;;  %v224_v11 = vld [vmem:[%s15494_s0 + $0x5f8] sm:$0xff] }
  0x2e   :  { %11137 = vmatprep.mubr.msk.f32.mxu1 %vm231_vm3, %v223_v9  ;;  %v3043_v12 = vld [vmem:[%s15497_s3 + $0x18] sm:$0xff]  ;;  %v98_v14 = vld [vmem:[%s15494_s0 + $0x208] sm:$0xff]  ;;  %v99_v15 = vld [vmem:[%s15494_s0 + $0x210] sm:$0xff] }
  0x2f   :  { %11934 = vmatprep.subr.bf16.mxu1 %v11933_v6  ;;  %v11937_v13 = vpack.c.bf16 %v3043_v12, %v3042_v10  ;;  %v225_v16 = vld [vmem:[%s15494_s0 + $0x600] sm:$0xff]  ;;  %v226_v18 = vld [vmem:[%s15494_s0 + $0x608] sm:$0xff]  ;;  %v100_v21 = vld [vmem:[%s15494_s0 + $0x218] sm:$0xff] }
  0x30   :  { %10883 = vmatmul.mubr.msk.f32.gmra.mrb[20].mxu0 %vm231_vm3, %v54_v24  ;;  %11936 = vmatpush3.bf16.msra.mxu1 %v11933_v6  ;;  %v3044_v17 = vld [vmem:[%s15497_s3 + $0x20] sm:$0xff]  ;;  %v3045_v19 = vld [vmem:[%s15497_s3 + $0x28] sm:$0xff]  ;;  %v227_v23 = vld [vmem:[%s15494_s0 + $0x610] sm:$0xff] }
  0x31   :  { %10885 = vmatprep.mubr.msk.f32.mxu0 %vm231_vm3, %v55_v25  ;;  %11138 = vmatmul.mubr.msk.f32.gmra.mrb[2].mxu1 %vm231_vm3, %v224_v11  ;;  %v11941_v20 = vpack.c.bf16 %v3045_v19, %v3044_v17  ;;  %v101_v22 = vld [vmem:[%s15494_s0 + $0x220] sm:$0xff]  ;;  %v3046_v24 = vld [vmem:[%s15497_s3 + $0x30] sm:$0xff]  ;;  %v228_v25 = vld [vmem:[%s15494_s0 + $0x618] sm:$0xff] }
  0x32   :  { %11938 = vmatprep.subr.bf16.mxu1 %v11937_v13  ;;  %11140 = vmatprep.mubr.msk.f32.mxu1 %vm231_vm3, %v225_v16  ;;  %v140_v2 = vld [vmem:[%s15494_s0 + $0x358] sm:$0xff]  ;;  %v141_v3 = vld [vmem:[%s15494_s0 + $0x360] sm:$0xff]  ;;  %v142_v6 = vld [vmem:[%s15494_s0 + $0x368] sm:$0xff] }
  0x33   :  { %v144_v10 = vld [vmem:[%s15494_s0 + $0x378] sm:$0xff]  ;;  %v145_v11 = vld [vmem:[%s15494_s0 + $0x380] sm:$0xff]  ;;  %v146_v17 = vld [vmem:[%s15494_s0 + $0x388] sm:$0xff] }
  0x34   :  { %10886 = vmatmul.mubr.msk.f32.gmra.mrb[22].mxu0 %vm231_vm3, %v56_v26  ;;  %11940 = vmatpush3.bf16.msra.mxu1 %v11937_v13  ;;  %v3047_v26 = vld [vmem:[%s15497_s3 + $0x38] sm:$0xff] }
  0x35   :  { %10888 = vmatprep.mubr.msk.f32.mxu0 %vm231_vm3, %v57_v27  ;;  %11141 = vmatmul.mubr.msk.f32.gmra.mrb[4].mxu1 %vm231_vm3, %v226_v18  ;;  %v11945_v27 = vpack.c.bf16 %v3047_v26, %v3046_v24  ;;  %v147_v18 = vld [vmem:[%s15494_s0 + $0x390] sm:$0xff]  ;;  %v148_v24 = vld [vmem:[%s15494_s0 + $0x398] sm:$0xff] }
  0x36   :  { %11942 = vmatprep.subr.bf16.mxu1 %v11941_v20  ;;  %11143 = vmatprep.mubr.msk.f32.mxu1 %vm231_vm3, %v227_v23 }
  0x38   :  { %10889 = vmatmul.mubr.msk.f32.gmra.mrb[24].mxu0 %vm231_vm3, %v58_v28  ;;  %11944 = vmatpush3.bf16.msra.mxu1 %v11941_v20  ;;  %v102_v28 = vld [vmem:[%s15494_s0 + $0x228] sm:$0xff] }
  0x39   :  { %10891 = vmatprep.mubr.msk.f32.mxu0 %vm231_vm3, %v59_v29  ;;  %11144 = vmatmul.mubr.msk.f32.gmra.mrb[6].mxu1 %vm231_vm3, %v228_v25  ;;  %v103_v29 = vld [vmem:[%s15494_s0 + $0x230] sm:$0xff]  ;;  %v149_v25 = vld [vmem:[%s15494_s0 + $0x3a0] sm:$0xff] }
  0x3a   :  { %11946 = vmatprep.subr.bf16.mxu1 %v11945_v27 }
  0x3c   :  { %10892 = vmatmul.mubr.msk.f32.gmra.mrb[26].mxu0 %vm231_vm3, %v60_v30  ;;  %11948 = vmatpush3.bf16.msra.mxu1 %v11945_v27  ;;  %v104_v30 = vld [vmem:[%s15494_s0 + $0x238] sm:$0xff] }
  0x3d   :  { %10894 = vmatprep.mubr.msk.f32.mxu0 %vm231_vm3, %v61_v31  ;;  %v105_v31 = vld [vmem:[%s15494_s0 + $0x240] sm:$0xff] }
  0x40   :  { %10895 = vmatmul.mubr.msk.f32.gmra.mrb[28].mxu0 %vm231_vm3, %v62_v32  ;;  %v106_v32 = vld [vmem:[%s15494_s0 + $0x248] sm:$0xff] }
  0x41   :  { %10897 = vmatprep.mubr.msk.f32.mxu0 %vm231_vm3, %v63_v33  ;;  %v107_v33 = vld [vmem:[%s15494_s0 + $0x250] sm:$0xff] }
  0x44   :  { %10898 = vmatmul.mubr.msk.f32.gmra.mrb[30].mxu0 %vm231_vm3, %v64_v34  ;;  %v108_v34 = vld [vmem:[%s15494_s0 + $0x258] sm:$0xff] }
  0x45   :  { %10900 = vmatprep.mubr.msk.f32.mxu0 %vm231_vm3, %v65_v35  ;;  %v109_v35 = vld [vmem:[%s15494_s0 + $0x260] sm:$0xff] }
  0x48   :  { %10901 = vmatmul.mubr.msk.f32.gmra.mrb[32].mxu0 %vm231_vm3, %v66_v36  ;;  %v110_v36 = vld [vmem:[%s15494_s0 + $0x268] sm:$0xff] }
  0x49   :  { %10903 = vmatprep.mubr.msk.f32.mxu0 %vm231_vm3, %v67_v37  ;;  %v111_v37 = vld [vmem:[%s15494_s0 + $0x270] sm:$0xff] }
  0x4c   :  { %10904 = vmatmul.mubr.msk.f32.gmra.mrb[34].mxu0 %vm231_vm3, %v68_v38  ;;  %v112_v38 = vld [vmem:[%s15494_s0 + $0x278] sm:$0xff] }
  0x4d   :  { %10906 = vmatprep.mubr.msk.f32.mxu0 %vm231_vm3, %v69_v39  ;;  %v113_v39 = vld [vmem:[%s15494_s0 + $0x280] sm:$0xff] }
  0x50   :  { %10907 = vmatmul.mubr.msk.f32.gmra.mrb[36].mxu0 %vm231_vm3, %v70_v40  ;;  %v114_v40 = vld [vmem:[%s15494_s0 + $0x288] sm:$0xff] }
  0x51   :  { %10909 = vmatprep.mubr.msk.f32.mxu0 %vm231_vm3, %v71_v41  ;;  %v115_v41 = vld [vmem:[%s15494_s0 + $0x290] sm:$0xff] }
  0x54   :  { %10910 = vmatmul.mubr.msk.f32.gmra.mrb[38].mxu0 %vm231_vm3, %v72_v42  ;;  %v116_v42 = vld [vmem:[%s15494_s0 + $0x298] sm:$0xff] }
  0x55   :  { %10912 = vmatprep.mubr.msk.f32.mxu0 %vm231_vm3, %v73_v43  ;;  %v117_v43 = vld [vmem:[%s15494_s0 + $0x2a0] sm:$0xff] }
  0x58   :  { %10913 = vmatmul.mubr.msk.f32.gmra.mrb[40].mxu0 %vm231_vm3, %v74_v44  ;;  %v118_v44 = vld [vmem:[%s15494_s0 + $0x2a8] sm:$0xff] }
  0x59   :  { %10915 = vmatprep.mubr.msk.f32.mxu0 %vm231_vm3, %v75_v45  ;;  %v119_v45 = vld [vmem:[%s15494_s0 + $0x2b0] sm:$0xff] }
  0x5c   :  { %10916 = vmatmul.mubr.msk.f32.gmra.mrb[42].mxu0 %vm231_vm3, %v76_v46  ;;  %v120_v46 = vld [vmem:[%s15494_s0 + $0x2b8] sm:$0xff] }
  0x5d   :  { %10918 = vmatprep.mubr.msk.f32.mxu0 %vm231_vm3, %v77_v47  ;;  %v121_v47 = vld [vmem:[%s15494_s0 + $0x2c0] sm:$0xff] }
  0x60   :  { %10919 = vmatmul.mubr.msk.f32.gmra.mrb[44].mxu0 %vm231_vm3, %v78_v48  ;;  %v122_v48 = vld [vmem:[%s15494_s0 + $0x2c8] sm:$0xff] }
  0x61   :  { %10921 = vmatprep.mubr.msk.f32.mxu0 %vm231_vm3, %v79_v49  ;;  %v123_v49 = vld [vmem:[%s15494_s0 + $0x2d0] sm:$0xff] }
  0x64   :  { %10922 = vmatmul.mubr.msk.f32.gmra.mrb[46].mxu0 %vm231_vm3, %v80_v50  ;;  %v124_v50 = vld [vmem:[%s15494_s0 + $0x2d8] sm:$0xff] }
  0x65   :  { %10924 = vmatprep.mubr.msk.f32.mxu0 %vm231_vm3, %v81_v51  ;;  %v125_v51 = vld [vmem:[%s15494_s0 + $0x2e0] sm:$0xff] }
  0x68   :  { %10925 = vmatmul.mubr.msk.f32.gmra.mrb[48].mxu0 %vm231_vm3, %v82_v52  ;;  %v126_v52 = vld [vmem:[%s15494_s0 + $0x2e8] sm:$0xff] }
  0x69   :  { %10927 = vmatprep.mubr.msk.f32.mxu0 %vm231_vm3, %v83_v53  ;;  %v127_v53 = vld [vmem:[%s15494_s0 + $0x2f0] sm:$0xff] }
  0x6c   :  { %10928 = vmatmul.mubr.msk.f32.gmra.mrb[50].mxu0 %vm231_vm3, %v84_v54  ;;  %v128_v54 = vld [vmem:[%s15494_s0 + $0x2f8] sm:$0xff] }
  0x6d   :  { %10930 = vmatprep.mubr.msk.f32.mxu0 %vm231_vm3, %v85_v55  ;;  %v129_v55 = vld [vmem:[%s15494_s0 + $0x300] sm:$0xff] }
  0x70   :  { %10931 = vmatmul.mubr.msk.f32.gmra.mrb[52].mxu0 %vm231_vm3, %v86_v56  ;;  %v130_v56 = vld [vmem:[%s15494_s0 + $0x308] sm:$0xff] }
  0x71   :  { %10933 = vmatprep.mubr.msk.f32.mxu0 %vm231_vm3, %v87_v57  ;;  %v131_v57 = vld [vmem:[%s15494_s0 + $0x310] sm:$0xff] }
  0x74   :  { %10934 = vmatmul.mubr.msk.f32.gmra.mrb[54].mxu0 %vm231_vm3, %v88_v58  ;;  %v132_v58 = vld [vmem:[%s15494_s0 + $0x318] sm:$0xff] }
  0x75   :  { %10936 = vmatprep.mubr.msk.f32.mxu0 %vm231_vm3, %v89_v59  ;;  %v133_v59 = vld [vmem:[%s15494_s0 + $0x320] sm:$0xff] }
  0x78   :  { %10937 = vmatmul.mubr.msk.f32.gmra.mrb[56].mxu0 %vm231_vm3, %v90_v60  ;;  %v134_v60 = vld [vmem:[%s15494_s0 + $0x328] sm:$0xff] }
  0x79   :  { %10939 = vmatprep.mubr.msk.f32.mxu0 %vm231_vm3, %v91_v61  ;;  %v135_v61 = vld [vmem:[%s15494_s0 + $0x330] sm:$0xff] }
  0x7c   :  { %10940 = vmatmul.mubr.msk.f32.gmra.mrb[58].mxu0 %vm231_vm3, %v92_v62  ;;  %v136_v62 = vld [vmem:[%s15494_s0 + $0x338] sm:$0xff] }
  0x7d   :  { %10942 = vmatprep.mubr.msk.f32.mxu0 %vm231_vm3, %v93_v63  ;;  %v137_v63 = vld [vmem:[%s15494_s0 + $0x340] sm:$0xff] }
  0x80   :  { %10943 = vmatmul.mubr.msk.f32.gmra.mrb[60].mxu0 %vm231_vm3, %v94_v0  ;;  %v138_v0 = vld [vmem:[%s15494_s0 + $0x348] sm:$0xff] }
  0x81   :  { %10945 = vmatprep.mubr.msk.f32.mxu0 %vm231_vm3, %v95_v1  ;;  %v139_v1 = vld [vmem:[%s15494_s0 + $0x350] sm:$0xff] }
  0x84   :  { %10946 = vmatmul.mubr.msk.f32.gmra.mrb[62].mxu0 %vm231_vm3, %v96_v7  ;;  %v143_v7 = vld [vmem:[%s15494_s0 + $0x370] sm:$0xff] }
  0x85   :  { %10948 = vmatprep.mubr.msk.f32.mxu0 %vm231_vm3, %v97_v8 }
  0x88   :  { %10949 = vmatmul.mubr.msk.f32.gmra.mrb[64].mxu0 %vm231_vm3, %v98_v14 }
  0x89   :  { %10951 = vmatprep.mubr.msk.f32.mxu0 %vm231_vm3, %v99_v15 }
  0x8c   :  { %10952 = vmatmul.mubr.msk.f32.gmra.mrb[66].mxu0 %vm231_vm3, %v100_v21 }
  0x8d   :  { %10954 = vmatprep.mubr.msk.f32.mxu0 %vm231_vm3, %v101_v22 }
  0x90   :  { %10955 = vmatmul.mubr.msk.f32.gmra.mrb[68].mxu0 %vm231_vm3, %v102_v28 }
  0x91   :  { %10957 = vmatprep.mubr.msk.f32.mxu0 %vm231_vm3, %v103_v29 }
  0x94   :  { %10958 = vmatmul.mubr.msk.f32.gmra.mrb[70].mxu0 %vm231_vm3, %v104_v30 }
  0x95   :  { %10960 = vmatprep.mubr.msk.f32.mxu0 %vm231_vm3, %v105_v31  ;;  %v150_v31 = vld [vmem:[%s15494_s0 + $0x3a8] sm:$0xff] }
  0x98   :  { %10961 = vmatmul.mubr.msk.f32.gmra.mrb[72].mxu0 %vm231_vm3, %v106_v32  ;;  %v151_v32 = vld [vmem:[%s15494_s0 + $0x3b0] sm:$0xff] }
  0x99   :  { %10963 = vmatprep.mubr.msk.f32.mxu0 %vm231_vm3, %v107_v33  ;;  %v9822_v33 = vld [vmem:[%s15497_s3 + $0x140] sm:$0xff] }
  0x9c   :  { %10964 = vmatmul.mubr.msk.f32.gmra.mrb[74].mxu0 %vm231_vm3, %v108_v34  ;;  %v9823_v34 = vld [vmem:[%s15497_s3 + $0x148] sm:$0xff] }
  0x9d   :  { %10966 = vmatprep.mubr.msk.f32.mxu0 %vm231_vm3, %v109_v35 }
  0xa0   :  { %10967 = vmatmul.mubr.msk.f32.gmra.mrb[76].mxu0 %vm231_vm3, %v110_v36  ;;  %v12013_v36 = vpack.c.bf16 %v9823_v34, %v9822_v33 }
  0xa1   :  { %10969 = vmatprep.mubr.msk.f32.mxu0 %vm231_vm3, %v111_v37 }
  0xa2   :  { %12014 = vmatprep.subr.bf16.mxu0 %v12013_v36 }
  0xa3   :  { %12016 = vmatpush3.bf16.msra.mxu0 %v12013_v36 }
  0xa4   :  { %10970 = vmatmul.mubr.msk.f32.gmra.mrb[78].mxu0 %vm231_vm3, %v112_v38 }
  0xa5   :  { %10972 = vmatprep.mubr.msk.f32.mxu0 %vm231_vm3, %v113_v39 }
  0xa8   :  { %10973 = vmatmul.mubr.msk.f32.gmra.mrb[80].mxu0 %vm231_vm3, %v114_v40 }
  0xa9   :  { %10975 = vmatprep.mubr.msk.f32.mxu0 %vm231_vm3, %v115_v41  ;;  %v152_v41 = vld [vmem:[%s15494_s0 + $0x3b8] sm:$0xff] }
  0xac   :  { %10976 = vmatmul.mubr.msk.f32.gmra.mrb[82].mxu0 %vm231_vm3, %v116_v42  ;;  %v153_v42 = vld [vmem:[%s15494_s0 + $0x3c0] sm:$0xff] }
  0xad   :  { %10978 = vmatprep.mubr.msk.f32.mxu0 %vm231_vm3, %v117_v43  ;;  %v9824_v43 = vld [vmem:[%s15497_s3 + $0x150] sm:$0xff] }
  0xb0   :  { %10979 = vmatmul.mubr.msk.f32.gmra.mrb[84].mxu0 %vm231_vm3, %v118_v44  ;;  %v9825_v44 = vld [vmem:[%s15497_s3 + $0x158] sm:$0xff] }
  0xb1   :  { %10981 = vmatprep.mubr.msk.f32.mxu0 %vm231_vm3, %v119_v45 }
  0xb4   :  { %10982 = vmatmul.mubr.msk.f32.gmra.mrb[86].mxu0 %vm231_vm3, %v120_v46  ;;  %v12017_v46 = vpack.c.bf16 %v9825_v44, %v9824_v43 }
  0xb5   :  { %10984 = vmatprep.mubr.msk.f32.mxu0 %vm231_vm3, %v121_v47 }
  0xb6   :  { %12018 = vmatprep.subr.bf16.mxu0 %v12017_v46 }
  0xb7   :  { %12020 = vmatpush3.bf16.msra.mxu0 %v12017_v46 }
  0xb8   :  { %10985 = vmatmul.mubr.msk.f32.gmra.mrb[88].mxu0 %vm231_vm3, %v122_v48 }
  0xb9   :  { %10987 = vmatprep.mubr.msk.f32.mxu0 %vm231_vm3, %v123_v49 }
  0xbc   :  { %10988 = vmatmul.mubr.msk.f32.gmra.mrb[90].mxu0 %vm231_vm3, %v124_v50 }
  0xbd   :  { %10990 = vmatprep.mubr.msk.f32.mxu0 %vm231_vm3, %v125_v51  ;;  %v154_v51 = vld [vmem:[%s15494_s0 + $0x3c8] sm:$0xff] }
  0xc0   :  { %10991 = vmatmul.mubr.msk.f32.gmra.mrb[92].mxu0 %vm231_vm3, %v126_v52  ;;  %v155_v52 = vld [vmem:[%s15494_s0 + $0x3d0] sm:$0xff] }
  0xc1   :  { %10993 = vmatprep.mubr.msk.f32.mxu0 %vm231_vm3, %v127_v53  ;;  %v9826_v53 = vld [vmem:[%s15497_s3 + $0x160] sm:$0xff] }
  0xc4   :  { %10994 = vmatmul.mubr.msk.f32.gmra.mrb[94].mxu0 %vm231_vm3, %v128_v54  ;;  %v9827_v54 = vld [vmem:[%s15497_s3 + $0x168] sm:$0xff] }
  0xc5   :  { %10996 = vmatprep.mubr.msk.f32.mxu0 %vm231_vm3, %v129_v55 }
  0xc8   :  { %10997 = vmatmul.mubr.msk.f32.gmra.mrb[96].mxu0 %vm231_vm3, %v130_v56  ;;  %v12021_v56 = vpack.c.bf16 %v9827_v54, %v9826_v53 }
  0xc9   :  { %10999 = vmatprep.mubr.msk.f32.mxu0 %vm231_vm3, %v131_v57 }
  0xca   :  { %12022 = vmatprep.subr.bf16.mxu0 %v12021_v56 }
  0xcb   :  { %12024 = vmatpush3.bf16.msra.mxu0 %v12021_v56 }
  0xcc   :  { %11000 = vmatmul.mubr.msk.f32.gmra.mrb[98].mxu0 %vm231_vm3, %v132_v58 }
  0xcd   :  { %11002 = vmatprep.mubr.msk.f32.mxu0 %vm231_vm3, %v133_v59 }
  0xd0   :  { %11003 = vmatmul.mubr.msk.f32.gmra.mrb[100].mxu0 %vm231_vm3, %v134_v60 }
  0xd1   :  { %11005 = vmatprep.mubr.msk.f32.mxu0 %vm231_vm3, %v135_v61  ;;  %v156_v61 = vld [vmem:[%s15494_s0 + $0x3d8] sm:$0xff] }
  0xd4   :  { %11006 = vmatmul.mubr.msk.f32.gmra.mrb[102].mxu0 %vm231_vm3, %v136_v62  ;;  %v157_v62 = vld [vmem:[%s15494_s0 + $0x3e0] sm:$0xff] }
  0xd5   :  { %11008 = vmatprep.mubr.msk.f32.mxu0 %vm231_vm3, %v137_v63  ;;  %v9828_v63 = vld [vmem:[%s15497_s3 + $0x170] sm:$0xff] }
  0xd8   :  { %11009 = vmatmul.mubr.msk.f32.gmra.mrb[104].mxu0 %vm231_vm3, %v138_v0  ;;  %v9829_v0 = vld [vmem:[%s15497_s3 + $0x178] sm:$0xff] }
  0xd9   :  { %11011 = vmatprep.mubr.msk.f32.mxu0 %vm231_vm3, %v139_v1 }
  0xdb   :  { %v10854_v4 = vpop.f32.mrb[0].mxu0 }
  0xdc   :  { %1871 = vst.msk [vmem:[#allocation2 + $0x8] sm:$0xff] %vm1869_vm4, %v10854_v4  ;;  %v890_v5 = vpop.f32.mrb[1].mxu0  ;;  %11012 = vmatmul.mubr.msk.f32.gmra.mrb[106].mxu0 %vm231_vm3, %v140_v2  ;;  %v12025_v2 = vpack.c.bf16 %v9829_v0, %v9828_v63 }
  0xdd   :  { %1870 = vst.msk [vmem:[#allocation2] sm:$0xff] %vm1869_vm4, %v890_v5  ;;  %11014 = vmatprep.mubr.msk.f32.mxu0 %vm231_vm3, %v141_v3 }
  0xde   :  { %12026 = vmatprep.subr.bf16.mxu0 %v12025_v2 }
  0xdf   :  { %v10857_v8 = vpop.f32.mrb[2].mxu0  ;;  %12028 = vmatpush3.bf16.msra.mxu0 %v12025_v2  ;;  %v169_v2 = vld [vmem:[%s15494_s0 + $0x440] sm:$0xff] }
  0xe0   :  { %1873 = vst.msk [vmem:[#allocation2 + $0x18] sm:$0xff] %vm1869_vm4, %v10857_v8  ;;  %v900_v9 = vpop.f32.mrb[3].mxu0  ;;  %11015 = vmatmul.mubr.msk.f32.gmra.mrb[108].mxu0 %vm231_vm3, %v142_v6  ;;  %v12967_v8 = vld [vmem:[%s15496_s2] ss:$0 sm:$0xff] }
  0xe1   :  { %1872 = vst.msk [vmem:[#allocation2 + $0x10] sm:$0xff] %vm1869_vm4, %v900_v9  ;;  %11017 = vmatprep.mubr.msk.f32.mxu0 %vm231_vm3, %v143_v7  ;;  %v158_v7 = vld [vmem:[%s15494_s0 + $0x3e8] sm:$0xff]  ;;  %v159_v9 = vld [vmem:[%s15494_s0 + $0x3f0] sm:$0xff] }
  0xe3   :  { %v10860_v12 = vpop.f32.mrb[4].mxu0 }
  0xe4   :  { %v2066_v13 = vld [vmem:[#allocation2] ss:$2 sm:$0xff]  ;;  %v2262_v14 = vld [vmem:[#allocation2 + $0x1] ss:$2 sm:$0xff]  ;;  %1875 = vst.msk [vmem:[#allocation2 + $0x28] sm:$0xff] %vm1869_vm4, %v10860_v12  ;;  %v910_v15 = vpop.f32.mrb[5].mxu0  ;;  %11018 = vmatmul.mubr.msk.f32.gmra.mrb[110].mxu0 %vm231_vm3, %v144_v10 }
  0xe5   :  { %v2457_v16 = vmax.f32 %v2066_v13, %v2262_v14  ;;  %1874 = vst.msk [vmem:[#allocation2 + $0x20] sm:$0xff] %vm1869_vm4, %v910_v15  ;;  %11020 = vmatprep.mubr.msk.f32.mxu0 %vm231_vm3, %v145_v11 }
  0xe7   :  { %2555 = vst.msk [vmem:[#allocation3] sm:$0xff] %vm1869_vm4, %v2457_v16  ;;  %v10863_v19 = vpop.f32.mrb[6].mxu0 }
  0xe8   :  { %v2068_v20 = vld [vmem:[#allocation2 + $0x10] ss:$2 sm:$0xff]  ;;  %v2264_v21 = vld [vmem:[#allocation2 + $0x11] ss:$2 sm:$0xff]  ;;  %1877 = vst.msk [vmem:[#allocation2 + $0x38] sm:$0xff] %vm1869_vm4, %v10863_v19  ;;  %v920_v22 = vpop.f32.mrb[7].mxu0  ;;  %11021 = vmatmul.mubr.msk.f32.gmra.mrb[112].mxu0 %vm231_vm3, %v146_v17 }
  0xe9   :  { %v2458_v23 = vmax.f32 %v2068_v20, %v2264_v21  ;;  %1876 = vst.msk [vmem:[#allocation2 + $0x30] sm:$0xff] %vm1869_vm4, %v920_v22  ;;  %11023 = vmatprep.mubr.msk.f32.mxu0 %vm231_vm3, %v147_v18  ;;  %v160_v18 = vld [vmem:[%s15494_s0 + $0x3f8] sm:$0xff]  ;;  %v161_v20 = vld [vmem:[%s15494_s0 + $0x400] sm:$0xff] }
  0xeb   :  { %2556 = vst.msk [vmem:[#allocation3 + $0x8] sm:$0xff] %vm1869_vm4, %v2458_v23  ;;  %v10866_v26 = vpop.f32.mrb[8].mxu0 }
  0xec   :  { %v2070_v27 = vld [vmem:[#allocation2 + $0x20] ss:$2 sm:$0xff]  ;;  %v2266_v28 = vld [vmem:[#allocation2 + $0x21] ss:$2 sm:$0xff]  ;;  %1879 = vst.msk [vmem:[#allocation2 + $0x48] sm:$0xff] %vm1869_vm4, %v10866_v26  ;;  %v930_v29 = vpop.f32.mrb[9].mxu0  ;;  %11024 = vmatmul.mubr.msk.f32.gmra.mrb[114].mxu0 %vm231_vm3, %v148_v24 }
  0xed   :  { %v2459_v30 = vmax.f32 %v2070_v27, %v2266_v28  ;;  %1878 = vst.msk [vmem:[#allocation2 + $0x40] sm:$0xff] %vm1869_vm4, %v930_v29  ;;  %11026 = vmatprep.mubr.msk.f32.mxu0 %vm231_vm3, %v149_v25 }
  0xee   :  { %v2654_v10 = vld [vmem:[#allocation3] sm:$0xff] }
  0xef   :  { %2557 = vst.msk [vmem:[#allocation3 + $0x10] sm:$0xff] %vm1869_vm4, %v2459_v30  ;;  %v10869_v35 = vpop.f32.mrb[10].mxu0  ;;  %v162_v30 = vld [vmem:[%s15494_s0 + $0x408] sm:$0xff] }
  0xf0   :  { %v2072_v37 = vld [vmem:[#allocation2 + $0x30] ss:$2 sm:$0xff]  ;;  %v2268_v38 = vld [vmem:[#allocation2 + $0x31] ss:$2 sm:$0xff]  ;;  %1881 = vst.msk [vmem:[#allocation2 + $0x58] sm:$0xff] %vm1869_vm4, %v10869_v35  ;;  %v940_v39 = vpop.f32.mrb[11].mxu0  ;;  %11027 = vmatmul.mubr.msk.f32.gmra.mrb[116].mxu0 %vm231_vm3, %v150_v31 }
  0xf1   :  { %v2460_v40 = vmax.f32 %v2072_v37, %v2268_v38  ;;  %1880 = vst.msk [vmem:[#allocation2 + $0x50] sm:$0xff] %vm1869_vm4, %v940_v39  ;;  %11029 = vmatprep.mubr.msk.f32.mxu0 %vm231_vm3, %v151_v32  ;;  %v163_v31 = vld [vmem:[%s15494_s0 + $0x410] sm:$0xff] }
  0xf2   :  { %v2655_v21 = vld [vmem:[#allocation3 + $0x8] sm:$0xff] }
  0xf3   :  { %2558 = vst.msk [vmem:[#allocation3 + $0x18] sm:$0xff] %vm1869_vm4, %v2460_v40  ;;  %v10872_v45 = vpop.f32.mrb[12].mxu0 }
  0xf4   :  { %v2074_v47 = vld [vmem:[#allocation2 + $0x40] ss:$2 sm:$0xff]  ;;  %v2270_v48 = vld [vmem:[#allocation2 + $0x41] ss:$2 sm:$0xff]  ;;  %1883 = vst.msk [vmem:[#allocation2 + $0x68] sm:$0xff] %vm1869_vm4, %v10872_v45  ;;  %v950_v49 = vpop.f32.mrb[13].mxu0  ;;  %11030 = vmatmul.mubr.msk.f32.gmra.mrb[118].mxu0 %vm231_vm3, %v152_v41 }
  0xf5   :  { %v2461_v50 = vmax.f32 %v2074_v47, %v2270_v48  ;;  %1882 = vst.msk [vmem:[#allocation2 + $0x60] sm:$0xff] %vm1869_vm4, %v950_v49  ;;  %11032 = vmatprep.mubr.msk.f32.mxu0 %vm231_vm3, %v153_v42  ;;  %v164_v45 = vld [vmem:[%s15494_s0 + $0x418] sm:$0xff]  ;;  %v165_v48 = vld [vmem:[%s15494_s0 + $0x420] sm:$0xff] }
  0xf6   :  { %v2656_v33 = vld [vmem:[#allocation3 + $0x10] sm:$0xff] }
  0xf7   :  { %2559 = vst.msk [vmem:[#allocation3 + $0x20] sm:$0xff] %vm1869_vm4, %v2461_v50  ;;  %v10875_v55 = vpop.f32.mrb[14].mxu0 }
  0xf8   :  { %v2076_v57 = vld [vmem:[#allocation2 + $0x50] ss:$2 sm:$0xff]  ;;  %v2272_v58 = vld [vmem:[#allocation2 + $0x51] ss:$2 sm:$0xff]  ;;  %1885 = vst.msk [vmem:[#allocation2 + $0x78] sm:$0xff] %vm1869_vm4, %v10875_v55  ;;  %v960_v59 = vpop.f32.mrb[15].mxu0  ;;  %11033 = vmatmul.mubr.msk.f32.gmra.mrb[120].mxu0 %vm231_vm3, %v154_v51 }
  0xf9   :  { %v2462_v60 = vmax.f32 %v2076_v57, %v2272_v58  ;;  %1884 = vst.msk [vmem:[#allocation2 + $0x70] sm:$0xff] %vm1869_vm4, %v960_v59  ;;  %11035 = vmatprep.mubr.msk.f32.mxu0 %vm231_vm3, %v155_v52  ;;  %v166_v57 = vld [vmem:[%s15494_s0 + $0x428] sm:$0xff]  ;;  %v167_v58 = vld [vmem:[%s15494_s0 + $0x430] sm:$0xff] }
  0xfa   :  { %v2657_v35 = vld [vmem:[#allocation3 + $0x18] sm:$0xf] }
  0xfb   :  { %2560 = vst.msk [vmem:[#allocation3 + $0x28] sm:$0xff] %vm1869_vm4, %v2462_v60  ;;  %v10878_v1 = vpop.f32.mrb[16].mxu0 }
  0xfc   :  { %v2078_v3 = vld [vmem:[#allocation2 + $0x60] ss:$2 sm:$0xff]  ;;  %v2274_v4 = vld [vmem:[#allocation2 + $0x61] ss:$2 sm:$0xff]  ;;  %1887 = vst.msk [vmem:[#allocation2 + $0x88] sm:$0xff] %vm1869_vm4, %v10878_v1  ;;  %v970_v5 = vpop.f32.mrb[17].mxu0  ;;  %11036 = vmatmul.mubr.msk.f32.gmra.mrb[122].mxu0 %vm231_vm3, %v156_v61 }
  0xfd   :  { %v2463_v6 = vmax.f32 %v2078_v3, %v2274_v4  ;;  %1886 = vst.msk [vmem:[#allocation2 + $0x80] sm:$0xff] %vm1869_vm4, %v970_v5  ;;  %11038 = vmatprep.mubr.msk.f32.mxu0 %vm231_vm3, %v157_v62  ;;  %v168_v1 = vld [vmem:[%s15494_s0 + $0x438] sm:$0xff] }
  0xfe   :  { %v2658_v11 = vld [vmem:[#allocation3 + $0x1c] sm:$0xff] }
  0xff   :  { %2561 = vst.msk [vmem:[#allocation3 + $0x30] sm:$0xff] %vm1869_vm4, %v2463_v6  ;;  %v10881_v12 = vpop.f32.mrb[18].mxu0  ;;  %v2662_v13 = vmax.f32 %v2654_v10, %v2658_v11  ;;  %v170_v10 = vld [vmem:[%s15494_s0 + $0x448] sm:$0xff]  ;;  %v171_v11 = vld [vmem:[%s15494_s0 + $0x450] sm:$0xff] }
 0x100   :  { %v2080_v14 = vld [vmem:[#allocation2 + $0x70] ss:$2 sm:$0xff]  ;;  %v2276_v15 = vld [vmem:[#allocation2 + $0x71] ss:$2 sm:$0xff]  ;;  %1889 = vst.msk [vmem:[#allocation2 + $0x98] sm:$0xff] %vm1869_vm4, %v10881_v12  ;;  %v980_v16 = vpop.f32.mrb[19].mxu0  ;;  %11039 = vmatmul.mubr.msk.f32.gmra.mrb[124].mxu0 %vm231_vm3, %v158_v7 }
 0x101   :  { %v2464_v17 = vmax.f32 %v2080_v14, %v2276_v15  ;;  %1888 = vst.msk [vmem:[#allocation2 + $0x90] sm:$0xff] %vm1869_vm4, %v980_v16  ;;  %11041 = vmatprep.mubr.msk.f32.mxu0 %vm231_vm3, %v159_v9  ;;  %v2672_v19 = vadd.f32 %v12967_v8, %v2662_v13 }
 0x102   :  { %v2659_v22 = vld [vmem:[#allocation3 + $0x24] sm:$0xff] }
 0x103   :  { %2562 = vst.msk [vmem:[#allocation3 + $0x38] sm:$0xff] %vm1869_vm4, %v2464_v17  ;;  %v10884_v23 = vpop.f32.mrb[20].mxu0  ;;  %v2676_v24 = vmax.f32 %v2672_v19, 0.0  ;;  %v2663_v25 = vmax.f32 %v2655_v21, %v2659_v22  ;;  %v172_v17 = vld [vmem:[%s15494_s0 + $0x458] sm:$0xff] }
 0x104   :  { %v2082_v26 = vld [vmem:[#allocation2 + $0x80] ss:$2 sm:$0xff]  ;;  %v2278_v27 = vld [vmem:[#allocation2 + $0x81] ss:$2 sm:$0xff]  ;;  %1891 = vst.msk [vmem:[#allocation2 + $0xa8] sm:$0xff] %vm1869_vm4, %v10884_v23  ;;  %v990_v28 = vpop.f32.mrb[21].mxu0  ;;  %11042 = vmatmul.mubr.msk.f32.gmra.mrb[126].mxu0 %vm231_vm3, %v160_v18 }
 0x105   :  { %v2465_v29 = vmax.f32 %v2082_v26, %v2278_v27  ;;  %1890 = vst.msk [vmem:[#allocation2 + $0xa0] sm:$0xff] %vm1869_vm4, %v990_v28  ;;  %11044 = vmatprep.mubr.msk.f32.mxu0 %vm231_vm3, %v161_v20  ;;  %2680 = vst.msk [vmem:[#allocation4] sm:$0xff] %vm1869_vm4, %v2676_v24  ;;  %v2673_v32 = vadd.f32 %v12967_v8, %v2663_v25  ;;  %v173_v18 = vld [vmem:[%s15494_s0 + $0x460] sm:$0xff]  ;;  %v174_v27 = vld [vmem:[%s15494_s0 + $0x468] sm:$0xff] }
 0x106   :  { %v2660_v34 = vld [vmem:[#allocation3 + $0x2c] sm:$0xff]  ;;  %v2661_v36 = vld [vmem:[#allocation3 + $0x34] sm:$0xf] }
 0x107   :  { %2563 = vst.msk [vmem:[#allocation3 + $0x40] sm:$0xff] %vm1869_vm4, %v2465_v29  ;;  %v10887_v37 = vpop.f32.mrb[22].mxu0  ;;  %v2677_v38 = vmax.f32 %v2673_v32, 0.0  ;;  %v2664_v39 = vmax.f32 %v2656_v33, %v2660_v34  ;;  %v2665_v40 = vmax.f32 %v2657_v35, %v2661_v36  ;;  %v175_v29 = vld [vmem:[%s15494_s0 + $0x470] sm:$0xff] }
 0x108   :  { %v2084_v41 = vld [vmem:[#allocation2 + $0x90] ss:$2 sm:$0xff]  ;;  %v2280_v42 = vld [vmem:[#allocation2 + $0x91] ss:$2 sm:$0xff]  ;;  %1893 = vst.msk [vmem:[#allocation2 + $0xb8] sm:$0xff] %vm1869_vm4, %v10887_v37  ;;  %v1000_v43 = vpop.f32.mrb[23].mxu0  ;;  %11045 = vmatmul.mubr.msk.f32.gmra.mrb[128].mxu0 %vm231_vm3, %v162_v30 }
 0x109   :  { %v2466_v44 = vmax.f32 %v2084_v41, %v2280_v42  ;;  %1892 = vst.msk [vmem:[#allocation2 + $0xb0] sm:$0xff] %vm1869_vm4, %v1000_v43  ;;  %11047 = vmatprep.mubr.msk.f32.mxu0 %vm231_vm3, %v163_v31  ;;  %2681 = vst.msk [vmem:[#allocation4 + $0x8] sm:$0xff] %vm1869_vm4, %v2677_v38  ;;  %v2674_v46 = vadd.f32 %v12967_v8, %v2664_v39  ;;  %v2675_v47 = vadd.f32 %v12967_v8, %v2665_v40  ;;  %v176_v39 = vld [vmem:[%s15494_s0 + $0x478] sm:$0xff]  ;;  %v177_v40 = vld [vmem:[%s15494_s0 + $0x480] sm:$0xff] }
 0x10a   :  { %v2685_v19 = vld [vmem:[#allocation3 + $0x38] sm:$0xff] }
 0x10b   :  { %2564 = vst.msk [vmem:[#allocation3 + $0x48] sm:$0xff] %vm1869_vm4, %v2466_v44  ;;  %v10890_v49 = vpop.f32.mrb[24].mxu0  ;;  %v2678_v50 = vmax.f32 %v2674_v46, 0.0  ;;  %v2679_v51 = vmax.f32 %v2675_v47, 0.0 }
 0x10c   :  { %v2086_v52 = vld [vmem:[#allocation2 + $0xa0] ss:$2 sm:$0xff]  ;;  %v2282_v53 = vld [vmem:[#allocation2 + $0xa1] ss:$2 sm:$0xff]  ;;  %1895 = vst.msk [vmem:[#allocation2 + $0xc8] sm:$0xff] %vm1869_vm4, %v10890_v49  ;;  %v1010_v54 = vpop.f32.mrb[25].mxu0  ;;  %11048 = vmatmul.mubr.msk.f32.gmra.mrb[130].mxu0 %vm231_vm3, %v164_v45 }
 0x10d   :  { %v2998_v55 = vld [vmem:[#allocation4] sm:$0xff]  ;;  %v2467_v56 = vmax.f32 %v2086_v52, %v2282_v53  ;;  %1894 = vst.msk [vmem:[#allocation2 + $0xc0] sm:$0xff] %vm1869_vm4, %v1010_v54  ;;  %11050 = vmatprep.mubr.msk.f32.mxu0 %vm231_vm3, %v165_v48  ;;  %2682 = vst.msk [vmem:[#allocation4 + $0x10] sm:$0xff] %vm1869_vm4, %v2678_v50  ;;  %v178_v54 = vld [vmem:[%s15494_s0 + $0x488] sm:$0xff] }
 0x10e   :  { %11162 = vmatprep.mubr.msk.f32.mxu1 %vm1869_vm4, %v2998_v55  ;;  %2684 = vst.msk [vmem:[#allocation4 + $0x18] sm:$0xf] %vm2683_vm5, %v2679_v51  ;;  %v2686_v30 = vld [vmem:[#allocation3 + $0x40] sm:$0xff] }
 0x10f   :  { %2565 = vst.msk [vmem:[#allocation3 + $0x50] sm:$0xff] %vm1869_vm4, %v2467_v56  ;;  %v10893_v59 = vpop.f32.mrb[26].mxu0 }
 0x110   :  { %v2088_v60 = vld [vmem:[#allocation2 + $0xb0] ss:$2 sm:$0xff]  ;;  %v2284_v61 = vld [vmem:[#allocation2 + $0xb1] ss:$2 sm:$0xff]  ;;  %1897 = vst.msk [vmem:[#allocation2 + $0xd8] sm:$0xff] %vm1869_vm4, %v10893_v59  ;;  %v1020_v62 = vpop.f32.mrb[27].mxu0  ;;  %11051 = vmatmul.mubr.msk.f32.gmra.mrb[132].mxu0 %vm231_vm3, %v166_v57 }
 0x111   :  { %v2999_v63 = vld [vmem:[#allocation4 + $0x8] sm:$0xff]  ;;  %v2468_v0 = vmax.f32 %v2088_v60, %v2284_v61  ;;  %1896 = vst.msk [vmem:[#allocation2 + $0xd0] sm:$0xff] %vm1869_vm4, %v1020_v62  ;;  %11053 = vmatprep.mubr.msk.f32.mxu0 %vm231_vm3, %v167_v58  ;;  %v179_v57 = vld [vmem:[%s15494_s0 + $0x490] sm:$0xff] }
 0x112   :  { %11163 = vmatmul.mubr.msk.f32.vlgmr.msra.gmra.mrb[8].mxu1 %vm1869_vm4, %v2999_v63  ;;  %v2687_v42 = vld [vmem:[#allocation3 + $0x48] sm:$0xff] }
 0x113   :  { %2566 = vst.msk [vmem:[#allocation3 + $0x58] sm:$0xff] %vm1869_vm4, %v2468_v0  ;;  %v10896_v3 = vpop.f32.mrb[28].mxu0 }
 0x114   :  { %v2090_v4 = vld [vmem:[#allocation2 + $0xc0] ss:$2 sm:$0xff]  ;;  %v2286_v5 = vld [vmem:[#allocation2 + $0xc1] ss:$2 sm:$0xff]  ;;  %1899 = vst.msk [vmem:[#allocation2 + $0xe8] sm:$0xff] %vm1869_vm4, %v10896_v3  ;;  %v1030_v6 = vpop.f32.mrb[29].mxu0  ;;  %11054 = vmatmul.mubr.msk.f32.gmra.mrb[134].mxu0 %vm231_vm3, %v168_v1 }
 0x115   :  { %v3000_v7 = vld [vmem:[#allocation4 + $0x10] sm:$0xff]  ;;  %v2469_v9 = vmax.f32 %v2090_v4, %v2286_v5  ;;  %1898 = vst.msk [vmem:[#allocation2 + $0xe0] sm:$0xff] %vm1869_vm4, %v1030_v6  ;;  %11056 = vmatprep.mubr.msk.f32.mxu0 %vm231_vm3, %v169_v2  ;;  %v180_v2 = vld [vmem:[%s15494_s0 + $0x498] sm:$0xff] }
 0x116   :  { %11165 = vmatprep.mubr.msk.f32.mxu1 %vm1869_vm4, %v3000_v7  ;;  %v2688_v44 = vld [vmem:[#allocation3 + $0x50] sm:$0xf]  ;;  %v181_v3 = vld [vmem:[%s15494_s0 + $0x4a0] sm:$0xff] }
 0x117   :  { %2567 = vst.msk [vmem:[#allocation3 + $0x60] sm:$0xff] %vm1869_vm4, %v2469_v9  ;;  %v10899_v12 = vpop.f32.mrb[30].mxu0 }
 0x118   :  { %v2092_v13 = vld [vmem:[#allocation2 + $0xd0] ss:$2 sm:$0xff]  ;;  %v2288_v14 = vld [vmem:[#allocation2 + $0xd1] ss:$2 sm:$0xff]  ;;  %1901 = vst.msk [vmem:[#allocation2 + $0xf8] sm:$0xff] %vm1869_vm4, %v10899_v12  ;;  %v1040_v15 = vpop.f32.mrb[31].mxu0  ;;  %11057 = vmatmul.mubr.msk.f32.gmra.mrb[136].mxu0 %vm231_vm3, %v170_v10 }
 0x119   :  { %v2470_v16 = vmax.f32 %v2092_v13, %v2288_v14  ;;  %1900 = vst.msk [vmem:[#allocation2 + $0xf0] sm:$0xff] %vm1869_vm4, %v1040_v15  ;;  %11059 = vmatprep.mubr.msk.f32.mxu0 %vm231_vm3, %v171_v11  ;;  %v182_v11 = vld [vmem:[%s15494_s0 + $0x4a8] sm:$0xff]  ;;  %v183_v12 = vld [vmem:[%s15494_s0 + $0x4b0] sm:$0xff] }
 0x11a   :  { %v2689_v20 = vld [vmem:[#allocation3 + $0x54] sm:$0xff] }
 0x11b   :  { %2568 = vst.msk [vmem:[#allocation3 + $0x68] sm:$0xff] %vm1869_vm4, %v2470_v16  ;;  %v10902_v21 = vpop.f32.mrb[32].mxu0  ;;  %v2693_v22 = vmax.f32 %v2685_v19, %v2689_v20  ;;  %v184_v20 = vld [vmem:[%s15494_s0 + $0x4b8] sm:$0xff] }
 0x11c   :  { %v2094_v23 = vld [vmem:[#allocation2 + $0xe0] ss:$2 sm:$0xff]  ;;  %v2290_v24 = vld [vmem:[#allocation2 + $0xe1] ss:$2 sm:$0xff]  ;;  %1903 = vst.msk [vmem:[#allocation2 + $0x108] sm:$0xff] %vm1869_vm4, %v10902_v21  ;;  %v1050_v25 = vpop.f32.mrb[33].mxu0  ;;  %11060 = vmatmul.mubr.msk.f32.gmra.mrb[138].mxu0 %vm231_vm3, %v172_v17 }
 0x11d   :  { %v2471_v26 = vmax.f32 %v2094_v23, %v2290_v24  ;;  %1902 = vst.msk [vmem:[#allocation2 + $0x100] sm:$0xff] %vm1869_vm4, %v1050_v25  ;;  %11062 = vmatprep.mubr.msk.f32.mxu0 %vm231_vm3, %v173_v18  ;;  %v2697_v28 = vadd.f32 %v12967_v8, %v2693_v22  ;;  %v185_v21 = vld [vmem:[%s15494_s0 + $0x4c0] sm:$0xff] }
 0x11e   :  { %v2690_v31 = vld [vmem:[#allocation3 + $0x5c] sm:$0xff] }
 0x11f   :  { %2569 = vst.msk [vmem:[#allocation3 + $0x70] sm:$0xff] %vm1869_vm4, %v2471_v26  ;;  %v10905_v32 = vpop.f32.mrb[34].mxu0  ;;  %v2701_v33 = vmax.f32 %v2697_v28, 0.0  ;;  %v2694_v34 = vmax.f32 %v2686_v30, %v2690_v31  ;;  %v187_v28 = vld [vmem:[%s15494_s0 + $0x4d0] sm:$0xff] }
 0x120   :  { %v2096_v35 = vld [vmem:[#allocation2 + $0xf0] ss:$2 sm:$0xff]  ;;  %v2292_v36 = vld [vmem:[#allocation2 + $0xf1] ss:$2 sm:$0xff]  ;;  %1905 = vst.msk [vmem:[#allocation2 + $0x118] sm:$0xff] %vm1869_vm4, %v10905_v32  ;;  %v1060_v37 = vpop.f32.mrb[35].mxu0  ;;  %11063 = vmatmul.mubr.msk.f32.gmra.mrb[140].mxu0 %vm231_vm3, %v174_v27 }
 0x121   :  { %v2472_v38 = vmax.f32 %v2096_v35, %v2292_v36  ;;  %1904 = vst.msk [vmem:[#allocation2 + $0x110] sm:$0xff] %vm1869_vm4, %v1060_v37  ;;  %11065 = vmatprep.mubr.msk.f32.mxu0 %vm231_vm3, %v175_v29  ;;  %2705 = vst.msk [vmem:[#allocation4 + $0x1c] sm:$0xff] %vm1869_vm4, %v2701_v33  ;;  %v2698_v41 = vadd.f32 %v12967_v8, %v2694_v34  ;;  %v186_v27 = vld [vmem:[%s15494_s0 + $0x4c8] sm:$0xff]  ;;  %v188_v37 = vld [vmem:[%s15494_s0 + $0x4d8] sm:$0xff] }
 0x122   :  { %v2691_v43 = vld [vmem:[#allocation3 + $0x64] sm:$0xff]  ;;  %v2692_v45 = vld [vmem:[#allocation3 + $0x6c] sm:$0xf] }
 0x123   :  { %2570 = vst.msk [vmem:[#allocation3 + $0x78] sm:$0xff] %vm1869_vm4, %v2472_v38  ;;  %v10908_v46 = vpop.f32.mrb[36].mxu0  ;;  %v2702_v47 = vmax.f32 %v2698_v41, 0.0  ;;  %v2695_v48 = vmax.f32 %v2687_v42, %v2691_v43  ;;  %v2696_v49 = vmax.f32 %v2688_v44, %v2692_v45 }
 0x124   :  { %v2098_v50 = vld [vmem:[#allocation2 + $0x100] ss:$2 sm:$0xff]  ;;  %v2294_v51 = vld [vmem:[#allocation2 + $0x101] ss:$2 sm:$0xff]  ;;  %1907 = vst.msk [vmem:[#allocation2 + $0x128] sm:$0xff] %vm1869_vm4, %v10908_v46  ;;  %v1070_v52 = vpop.f32.mrb[37].mxu0  ;;  %11066 = vmatmul.mubr.msk.f32.gmra.mrb[142].mxu0 %vm231_vm3, %v176_v39 }
 0x125   :  { %v2473_v53 = vmax.f32 %v2098_v50, %v2294_v51  ;;  %1906 = vst.msk [vmem:[#allocation2 + $0x120] sm:$0xff] %vm1869_vm4, %v1070_v52  ;;  %11068 = vmatprep.mubr.msk.f32.mxu0 %vm231_vm3, %v177_v40  ;;  %2706 = vst.msk [vmem:[#allocation4 + $0x24] sm:$0xff] %vm1869_vm4, %v2702_v47  ;;  %v2699_v55 = vadd.f32 %v12967_v8, %v2695_v48  ;;  %v2700_v56 = vadd.f32 %v12967_v8, %v2696_v49  ;;  %v189_v39 = vld [vmem:[%s15494_s0 + $0x4e0] sm:$0xff]  ;;  %v190_v49 = vld [vmem:[%s15494_s0 + $0x4e8] sm:$0xff] }
 0x126   :  { %v2709_v29 = vld [vmem:[#allocation3 + $0x70] sm:$0xff] }
 0x127   :  { %2571 = vst.msk [vmem:[#allocation3 + $0x80] sm:$0xff] %vm1869_vm4, %v2473_v53  ;;  %v10911_v58 = vpop.f32.mrb[38].mxu0  ;;  %v2703_v59 = vmax.f32 %v2699_v55, 0.0  ;;  %v2704_v60 = vmax.f32 %v2700_v56, 0.0  ;;  %v191_v50 = vld [vmem:[%s15494_s0 + $0x4f0] sm:$0xff] }
 0x128   :  { %v2100_v61 = vld [vmem:[#allocation2 + $0x110] ss:$2 sm:$0xff]  ;;  %v2296_v62 = vld [vmem:[#allocation2 + $0x111] ss:$2 sm:$0xff]  ;;  %1909 = vst.msk [vmem:[#allocation2 + $0x138] sm:$0xff] %vm1869_vm4, %v10911_v58  ;;  %v1080_v63 = vpop.f32.mrb[39].mxu0  ;;  %11069 = vmatmul.mubr.msk.f32.gmra.mrb[144].mxu0 %vm231_vm3, %v178_v54 }
 0x129   :  { %v3001_v0 = vld [vmem:[#allocation4 + $0x18] sm:$0xff]  ;;  %v2474_v1 = vmax.f32 %v2100_v61, %v2296_v62  ;;  %1908 = vst.msk [vmem:[#allocation2 + $0x130] sm:$0xff] %vm1869_vm4, %v1080_v63  ;;  %11071 = vmatprep.mubr.msk.f32.mxu0 %vm231_vm3, %v179_v57  ;;  %2707 = vst.msk [vmem:[#allocation4 + $0x2c] sm:$0xff] %vm1869_vm4, %v2703_v59 }
 0x12a   :  { %11166 = vmatmul.mubr.msk.f32.gmra.mrb[10].mxu1 %vm1869_vm4, %v3001_v0  ;;  %2708 = vst.msk [vmem:[#allocation4 + $0x34] sm:$0xf] %vm2683_vm5, %v2704_v60  ;;  %v2710_v40 = vld [vmem:[#allocation3 + $0x78] sm:$0xff] }
 0x12b   :  { %2572 = vst.msk [vmem:[#allocation3 + $0x88] sm:$0xff] %vm1869_vm4, %v2474_v1  ;;  %v10914_v4 = vpop.f32.mrb[40].mxu0  ;;  %v192_v0 = vld [vmem:[%s15494_s0 + $0x4f8] sm:$0xff] }
 0x12c   :  { %v2102_v5 = vld [vmem:[#allocation2 + $0x120] ss:$2 sm:$0xff]  ;;  %v2298_v6 = vld [vmem:[#allocation2 + $0x121] ss:$2 sm:$0xff]  ;;  %1911 = vst.msk [vmem:[#allocation2 + $0x148] sm:$0xff] %vm1869_vm4, %v10914_v4  ;;  %v1090_v7 = vpop.f32.mrb[41].mxu0  ;;  %11072 = vmatmul.mubr.msk.f32.gmra.mrb[146].mxu0 %vm231_vm3, %v180_v2 }
 0x12d   :  { %v3002_v9 = vld [vmem:[#allocation4 + $0x20] sm:$0xff]  ;;  %v2475_v10 = vmax.f32 %v2102_v5, %v2298_v6  ;;  %1910 = vst.msk [vmem:[#allocation2 + $0x140] sm:$0xff] %vm1869_vm4, %v1090_v7  ;;  %11074 = vmatprep.mubr.msk.f32.mxu0 %vm231_vm3, %v181_v3  ;;  %v193_v3 = vld [vmem:[%s15494_s0 + $0x500] sm:$0xff] }
 0x12e   :  { %11168 = vmatprep.mubr.msk.f32.mxu1 %vm1869_vm4, %v3002_v9  ;;  %v2711_v52 = vld [vmem:[#allocation3 + $0x80] sm:$0xff] }
 0x12f   :  { %2573 = vst.msk [vmem:[#allocation3 + $0x90] sm:$0xff] %vm1869_vm4, %v2475_v10  ;;  %v10917_v13 = vpop.f32.mrb[42].mxu0 }
 0x130   :  { %v2104_v14 = vld [vmem:[#allocation2 + $0x130] ss:$2 sm:$0xff]  ;;  %v2300_v15 = vld [vmem:[#allocation2 + $0x131] ss:$2 sm:$0xff]  ;;  %1913 = vst.msk [vmem:[#allocation2 + $0x158] sm:$0xff] %vm1869_vm4, %v10917_v13  ;;  %v1100_v16 = vpop.f32.mrb[43].mxu0  ;;  %11075 = vmatmul.mubr.msk.f32.gmra.mrb[148].mxu0 %vm231_vm3, %v182_v11 }
 0x131   :  { %v3003_v17 = vld [vmem:[#allocation4 + $0x28] sm:$0xff]  ;;  %v2476_v18 = vmax.f32 %v2104_v14, %v2300_v15  ;;  %1912 = vst.msk [vmem:[#allocation2 + $0x150] sm:$0xff] %vm1869_vm4, %v1100_v16  ;;  %v3004_v19 = vld [vmem:[#allocation4 + $0x30] sm:$0xff]  ;;  %11077 = vmatprep.mubr.msk.f32.mxu0 %vm231_vm3, %v183_v12  ;;  %v194_v13 = vld [vmem:[%s15494_s0 + $0x508] sm:$0xff] }
 0x132   :  { %11169 = vmatmul.mubr.msk.f32.gmra.mrb[12].mxu1 %vm1869_vm4, %v3003_v17  ;;  %v2712_v54 = vld [vmem:[#allocation3 + $0x88] sm:$0xf]  ;;  %v195_v14 = vld [vmem:[%s15494_s0 + $0x510] sm:$0xff] }
 0x133   :  { %11171 = vmatprep.mubr.msk.f32.mxu1 %vm1869_vm4, %v3004_v19  ;;  %2574 = vst.msk [vmem:[#allocation3 + $0x98] sm:$0xff] %vm1869_vm4, %v2476_v18  ;;  %v10920_v22 = vpop.f32.mrb[44].mxu0 }
 0x134   :  { %v2106_v23 = vld [vmem:[#allocation2 + $0x140] ss:$2 sm:$0xff]  ;;  %v2302_v24 = vld [vmem:[#allocation2 + $0x141] ss:$2 sm:$0xff]  ;;  %1915 = vst.msk [vmem:[#allocation2 + $0x168] sm:$0xff] %vm1869_vm4, %v10920_v22  ;;  %v1110_v25 = vpop.f32.mrb[45].mxu0  ;;  %11078 = vmatmul.mubr.msk.f32.gmra.mrb[150].mxu0 %vm231_vm3, %v184_v20 }
 0x135   :  { %v2477_v26 = vmax.f32 %v2106_v23, %v2302_v24  ;;  %1914 = vst.msk [vmem:[#allocation2 + $0x160] sm:$0xff] %vm1869_vm4, %v1110_v25  ;;  %11080 = vmatprep.mubr.msk.f32.mxu0 %vm231_vm3, %v185_v21  ;;  %v196_v21 = vld [vmem:[%s15494_s0 + $0x518] sm:$0xff]  ;;  %v197_v22 = vld [vmem:[%s15494_s0 + $0x520] sm:$0xff] }
 0x136   :  { %v2713_v30 = vld [vmem:[#allocation3 + $0x8c] sm:$0xff] }
 0x137   :  { %2575 = vst.msk [vmem:[#allocation3 + $0xa0] sm:$0xff] %vm1869_vm4, %v2477_v26  ;;  %v10923_v31 = vpop.f32.mrb[46].mxu0  ;;  %v2717_v32 = vmax.f32 %v2709_v29, %v2713_v30  ;;  %v198_v29 = vld [vmem:[%s15494_s0 + $0x528] sm:$0xff]  ;;  %v199_v30 = vld [vmem:[%s15494_s0 + $0x530] sm:$0xff] }
 0x138   :  { %v2108_v33 = vld [vmem:[#allocation2 + $0x150] ss:$2 sm:$0xff]  ;;  %v2304_v34 = vld [vmem:[#allocation2 + $0x151] ss:$2 sm:$0xff]  ;;  %1917 = vst.msk [vmem:[#allocation2 + $0x178] sm:$0xff] %vm1869_vm4, %v10923_v31  ;;  %v1120_v35 = vpop.f32.mrb[47].mxu0  ;;  %11081 = vmatmul.mubr.msk.f32.gmra.mrb[152].mxu0 %vm231_vm3, %v186_v27 }
 0x139   :  { %v2478_v36 = vmax.f32 %v2108_v33, %v2304_v34  ;;  %1916 = vst.msk [vmem:[#allocation2 + $0x170] sm:$0xff] %vm1869_vm4, %v1120_v35  ;;  %11083 = vmatprep.mubr.msk.f32.mxu0 %vm231_vm3, %v187_v28  ;;  %v2721_v38 = vadd.f32 %v12967_v8, %v2717_v32 }
 0x13a   :  { %v2714_v41 = vld [vmem:[#allocation3 + $0x94] sm:$0xff] }
 0x13b   :  { %2576 = vst.msk [vmem:[#allocation3 + $0xa8] sm:$0xff] %vm1869_vm4, %v2478_v36  ;;  %v10926_v42 = vpop.f32.mrb[48].mxu0  ;;  %v2725_v43 = vmax.f32 %v2721_v38, 0.0  ;;  %v2718_v44 = vmax.f32 %v2710_v40, %v2714_v41  ;;  %v200_v36 = vld [vmem:[%s15494_s0 + $0x538] sm:$0xff] }
 0x13c   :  { %v2110_v45 = vld [vmem:[#allocation2 + $0x160] ss:$2 sm:$0xff]  ;;  %v2306_v46 = vld [vmem:[#allocation2 + $0x161] ss:$2 sm:$0xff]  ;;  %1919 = vst.msk [vmem:[#allocation2 + $0x188] sm:$0xff] %vm1869_vm4, %v10926_v42  ;;  %v1130_v47 = vpop.f32.mrb[49].mxu0  ;;  %11084 = vmatmul.mubr.msk.f32.gmra.mrb[154].mxu0 %vm231_vm3, %v188_v37 }
 0x13d   :  { %v2479_v48 = vmax.f32 %v2110_v45, %v2306_v46  ;;  %1918 = vst.msk [vmem:[#allocation2 + $0x180] sm:$0xff] %vm1869_vm4, %v1130_v47  ;;  %11086 = vmatprep.mubr.msk.f32.mxu0 %vm231_vm3, %v189_v39  ;;  %2729 = vst.msk [vmem:[#allocation4 + $0x38] sm:$0xff] %vm1869_vm4, %v2725_v43  ;;  %v2722_v51 = vadd.f32 %v12967_v8, %v2718_v44  ;;  %v201_v37 = vld [vmem:[%s15494_s0 + $0x540] sm:$0xff]  ;;  %v202_v46 = vld [vmem:[%s15494_s0 + $0x548] sm:$0xff] }
 0x13e   :  { %v2715_v53 = vld [vmem:[#allocation3 + $0x9c] sm:$0xff]  ;;  %v2716_v55 = vld [vmem:[#allocation3 + $0xa4] sm:$0xf] }
 0x13f   :  { %2577 = vst.msk [vmem:[#allocation3 + $0xb0] sm:$0xff] %vm1869_vm4, %v2479_v48  ;;  %v10929_v56 = vpop.f32.mrb[50].mxu0  ;;  %v2726_v57 = vmax.f32 %v2722_v51, 0.0  ;;  %v2719_v58 = vmax.f32 %v2711_v52, %v2715_v53  ;;  %v2720_v59 = vmax.f32 %v2712_v54, %v2716_v55  ;;  %v203_v48 = vld [vmem:[%s15494_s0 + $0x550] sm:$0xff] }
 0x140   :  { %v2112_v60 = vld [vmem:[#allocation2 + $0x170] ss:$2 sm:$0xff]  ;;  %v2308_v61 = vld [vmem:[#allocation2 + $0x171] ss:$2 sm:$0xff]  ;;  %1921 = vst.msk [vmem:[#allocation2 + $0x198] sm:$0xff] %vm1869_vm4, %v10929_v56  ;;  %v1140_v62 = vpop.f32.mrb[51].mxu0  ;;  %11087 = vmatmul.mubr.msk.f32.gmra.mrb[156].mxu0 %vm231_vm3, %v190_v49 }
 0x141   :  { %v2480_v63 = vmax.f32 %v2112_v60, %v2308_v61  ;;  %1920 = vst.msk [vmem:[#allocation2 + $0x190] sm:$0xff] %vm1869_vm4, %v1140_v62  ;;  %11089 = vmatprep.mubr.msk.f32.mxu0 %vm231_vm3, %v191_v50  ;;  %2730 = vst.msk [vmem:[#allocation4 + $0x40] sm:$0xff] %vm1869_vm4, %v2726_v57  ;;  %v2723_v1 = vadd.f32 %v12967_v8, %v2719_v58  ;;  %v2724_v2 = vadd.f32 %v12967_v8, %v2720_v59  ;;  %v204_v58 = vld [vmem:[%s15494_s0 + $0x558] sm:$0xff]  ;;  %v205_v59 = vld [vmem:[%s15494_s0 + $0x560] sm:$0xff] }
 0x142   :  { %v2733_v38 = vld [vmem:[#allocation3 + $0xa8] sm:$0xff] }
 0x143   :  { %2578 = vst.msk [vmem:[#allocation3 + $0xb8] sm:$0xff] %vm1869_vm4, %v2480_v63  ;;  %v10932_v4 = vpop.f32.mrb[52].mxu0  ;;  %v2727_v5 = vmax.f32 %v2723_v1, 0.0  ;;  %v2728_v6 = vmax.f32 %v2724_v2, 0.0 }
 0x144   :  { %v2114_v7 = vld [vmem:[#allocation2 + $0x180] ss:$2 sm:$0xff]  ;;  %v2310_v9 = vld [vmem:[#allocation2 + $0x181] ss:$2 sm:$0xff]  ;;  %1923 = vst.msk [vmem:[#allocation2 + $0x1a8] sm:$0xff] %vm1869_vm4, %v10932_v4  ;;  %v1150_v10 = vpop.f32.mrb[53].mxu0  ;;  %11090 = vmatmul.mubr.msk.f32.gmra.mrb[158].mxu0 %vm231_vm3, %v192_v0 }
 0x145   :  { %v3005_v11 = vld [vmem:[#allocation4 + $0x38] sm:$0xff]  ;;  %v2481_v12 = vmax.f32 %v2114_v7, %v2310_v9  ;;  %1922 = vst.msk [vmem:[#allocation2 + $0x1a0] sm:$0xff] %vm1869_vm4, %v1150_v10  ;;  %11092 = vmatprep.mubr.msk.f32.mxu0 %vm231_vm3, %v193_v3  ;;  %2731 = vst.msk [vmem:[#allocation4 + $0x48] sm:$0xff] %vm1869_vm4, %v2727_v5 }
 0x146   :  { %11172 = vmatmul.mubr.msk.f32.gmra.mrb[14].mxu1 %vm1869_vm4, %v3005_v11  ;;  %2732 = vst.msk [vmem:[#allocation4 + $0x50] sm:$0xf] %vm2683_vm5, %v2728_v6  ;;  %v2734_v49 = vld [vmem:[#allocation3 + $0xb0] sm:$0xff]  ;;  %v206_v10 = vld [vmem:[%s15494_s0 + $0x568] sm:$0xff] }
 0x147   :  { %2579 = vst.msk [vmem:[#allocation3 + $0xc0] sm:$0xff] %vm1869_vm4, %v2481_v12  ;;  %v10935_v15 = vpop.f32.mrb[54].mxu0 }
 0x148   :  { %v2116_v16 = vld [vmem:[#allocation2 + $0x190] ss:$2 sm:$0xff]  ;;  %v2312_v17 = vld [vmem:[#allocation2 + $0x191] ss:$2 sm:$0xff]  ;;  %1925 = vst.msk [vmem:[#allocation2 + $0x1b8] sm:$0xff] %vm1869_vm4, %v10935_v15  ;;  %v1160_v18 = vpop.f32.mrb[55].mxu0  ;;  %11093 = vmatmul.mubr.msk.f32.gmra.mrb[160].mxu0 %vm231_vm3, %v194_v13 }
 0x149   :  { %v3006_v19 = vld [vmem:[#allocation4 + $0x40] sm:$0xff]  ;;  %v2482_v20 = vmax.f32 %v2116_v16, %v2312_v17  ;;  %1924 = vst.msk [vmem:[#allocation2 + $0x1b0] sm:$0xff] %vm1869_vm4, %v1160_v18  ;;  %11095 = vmatprep.mubr.msk.f32.mxu0 %vm231_vm3, %v195_v14  ;;  %v11136_v13 = vpop.f32.mrb[0].mxu1 }
 0x14a   :  { %11174 = vmatprep.mubr.msk.f32.mxu1 %vm1869_vm4, %v3006_v19  ;;  %v2735_v61 = vld [vmem:[#allocation3 + $0xb8] sm:$0xff]  ;;  %v207_v14 = vld [vmem:[%s15494_s0 + $0x570] sm:$0xff]  ;;  %2059 = vst.msk [vmem:[#allocation2 + $0x5e8] sm:$0xff] %vm1869_vm4, %v11136_v13  ;;  %v1830_v15 = vpop.f32.mrb[1].mxu1 }
 0x14b   :  { %2580 = vst.msk [vmem:[#allocation3 + $0xc8] sm:$0xff] %vm1869_vm4, %v2482_v20  ;;  %v10938_v23 = vpop.f32.mrb[56].mxu0  ;;  %2058 = vst.msk [vmem:[#allocation2 + $0x5e0] sm:$0xff] %vm1869_vm4, %v1830_v15  ;;  %v11139_v19 = vpop.f32.mrb[2].mxu1  ;;  %v216_v13 = vld [vmem:[%s15494_s0 + $0x5b8] sm:$0xff]  ;;  %v217_v15 = vld [vmem:[%s15494_s0 + $0x5c0] sm:$0xff] }
 0x14c   :  { %v2118_v24 = vld [vmem:[#allocation2 + $0x1a0] ss:$2 sm:$0xff]  ;;  %v2314_v25 = vld [vmem:[#allocation2 + $0x1a1] ss:$2 sm:$0xff]  ;;  %1927 = vst.msk [vmem:[#allocation2 + $0x1c8] sm:$0xff] %vm1869_vm4, %v10938_v23  ;;  %v1170_v26 = vpop.f32.mrb[57].mxu0  ;;  %11096 = vmatmul.mubr.msk.f32.gmra.mrb[162].mxu0 %vm231_vm3, %v196_v21 }
 0x14d   :  { %v3007_v27 = vld [vmem:[#allocation4 + $0x48] sm:$0xff]  ;;  %v2483_v28 = vmax.f32 %v2118_v24, %v2314_v25  ;;  %1926 = vst.msk [vmem:[#allocation2 + $0x1c0] sm:$0xff] %vm1869_vm4, %v1170_v26  ;;  %11098 = vmatprep.mubr.msk.f32.mxu0 %vm231_vm3, %v197_v22  ;;  %2061 = vst.msk [vmem:[#allocation2 + $0x5f8] sm:$0xff] %vm1869_vm4, %v11139_v19  ;;  %v1840_v26 = vpop.f32.mrb[3].mxu1 }
 0x14e   :  { %11175 = vmatmul.mubr.msk.f32.gmra.mrb[16].mxu1 %vm1869_vm4, %v3007_v27  ;;  %v2736_v63 = vld [vmem:[#allocation3 + $0xc0] sm:$0xf]  ;;  %v208_v25 = vld [vmem:[%s15494_s0 + $0x578] sm:$0xff]  ;;  %2060 = vst.msk [vmem:[#allocation2 + $0x5f0] sm:$0xff] %vm1869_vm4, %v1840_v26 }
 0x14f   :  { %2581 = vst.msk [vmem:[#allocation3 + $0xd0] sm:$0xff] %vm1869_vm4, %v2483_v28  ;;  %v10941_v31 = vpop.f32.mrb[58].mxu0  ;;  %v209_v27 = vld [vmem:[%s15494_s0 + $0x580] sm:$0xff]  ;;  %v11142_v28 = vpop.f32.mrb[4].mxu1 }
 0x150   :  { %v2120_v32 = vld [vmem:[#allocation2 + $0x1b0] ss:$2 sm:$0xff]  ;;  %v2316_v33 = vld [vmem:[#allocation2 + $0x1b1] ss:$2 sm:$0xff]  ;;  %1929 = vst.msk [vmem:[#allocation2 + $0x1d8] sm:$0xff] %vm1869_vm4, %v10941_v31  ;;  %v1180_v34 = vpop.f32.mrb[59].mxu0  ;;  %11099 = vmatmul.mubr.msk.f32.gmra.mrb[164].mxu0 %vm231_vm3, %v198_v29 }
 0x151   :  { %v2484_v35 = vmax.f32 %v2120_v32, %v2316_v33  ;;  %1928 = vst.msk [vmem:[#allocation2 + $0x1d0] sm:$0xff] %vm1869_vm4, %v1180_v34  ;;  %11101 = vmatprep.mubr.msk.f32.mxu0 %vm231_vm3, %v199_v30  ;;  %2063 = vst.msk [vmem:[#allocation2 + $0x608] sm:$0xff] %vm1869_vm4, %v11142_v28  ;;  %v1850_v30 = vpop.f32.mrb[5].mxu1  ;;  %v13365_v26 = vld [vmem:[%s15496_s2] ss:$0 sm:$0xff] }
 0x152   :  { %v2737_v39 = vld [vmem:[#allocation3 + $0xc4] sm:$0xff]  ;;  %2062 = vst.msk [vmem:[#allocation2 + $0x600] sm:$0xff] %vm1869_vm4, %v1850_v30 }
 0x153   :  { %2582 = vst.msk [vmem:[#allocation3 + $0xd8] sm:$0xff] %vm1869_vm4, %v2484_v35  ;;  %v10944_v40 = vpop.f32.mrb[60].mxu0  ;;  %v2741_v41 = vmax.f32 %v2733_v38, %v2737_v39  ;;  %v211_v38 = vld [vmem:[%s15494_s0 + $0x590] sm:$0xff] }
 0x154   :  { %v2122_v42 = vld [vmem:[#allocation2 + $0x1c0] ss:$2 sm:$0xff]  ;;  %v2318_v43 = vld [vmem:[#allocation2 + $0x1c1] ss:$2 sm:$0xff]  ;;  %1931 = vst.msk [vmem:[#allocation2 + $0x1e8] sm:$0xff] %vm1869_vm4, %v10944_v40  ;;  %v1190_v44 = vpop.f32.mrb[61].mxu0  ;;  %11102 = vmatmul.mubr.msk.f32.gmra.mrb[166].mxu0 %vm231_vm3, %v200_v36 }
 0x155   :  { %v2485_v45 = vmax.f32 %v2122_v42, %v2318_v43  ;;  %1930 = vst.msk [vmem:[#allocation2 + $0x1e0] sm:$0xff] %vm1869_vm4, %v1190_v44  ;;  %11104 = vmatprep.mubr.msk.f32.mxu0 %vm231_vm3, %v201_v37  ;;  %v2745_v47 = vadd.f32 %v12967_v8, %v2741_v41  ;;  %v210_v36 = vld [vmem:[%s15494_s0 + $0x588] sm:$0xff]  ;;  %v11145_v37 = vpop.f32.mrb[6].mxu1 }
 0x156   :  { %v2738_v50 = vld [vmem:[#allocation3 + $0xcc] sm:$0xff]  ;;  %2065 = vst.msk [vmem:[#allocation2 + $0x618] sm:$0xff] %vm1869_vm4, %v11145_v37  ;;  %v1860_v39 = vpop.f32.mrb[7].mxu1 }
 0x157   :  { %2583 = vst.msk [vmem:[#allocation3 + $0xe0] sm:$0xff] %vm1869_vm4, %v2485_v45  ;;  %v10947_v51 = vpop.f32.mrb[62].mxu0  ;;  %v2749_v52 = vmax.f32 %v2745_v47, 0.0  ;;  %v2742_v53 = vmax.f32 %v2734_v49, %v2738_v50  ;;  %v2254_v41 = vld [vmem:[#allocation2 + $0x5e0] ss:$2 sm:$0xff]  ;;  %2064 = vst.msk [vmem:[#allocation2 + $0x610] sm:$0xff] %vm1869_vm4, %v1860_v39 }
 0x158   :  { %v2124_v54 = vld [vmem:[#allocation2 + $0x1d0] ss:$2 sm:$0xff]  ;;  %v2320_v55 = vld [vmem:[#allocation2 + $0x1d1] ss:$2 sm:$0xff]  ;;  %1933 = vst.msk [vmem:[#allocation2 + $0x1f8] sm:$0xff] %vm1869_vm4, %v10947_v51  ;;  %v1200_v56 = vpop.f32.mrb[63].mxu0  ;;  %11105 = vmatmul.mubr.msk.f32.gmra.mrb[168].mxu0 %vm231_vm3, %v202_v46 }
 0x159   :  { %v2486_v57 = vmax.f32 %v2124_v54, %v2320_v55  ;;  %1932 = vst.msk [vmem:[#allocation2 + $0x1f0] sm:$0xff] %vm1869_vm4, %v1200_v56  ;;  %11107 = vmatprep.mubr.msk.f32.mxu0 %vm231_vm3, %v203_v48  ;;  %2753 = vst.msk [vmem:[#allocation4 + $0x54] sm:$0xff] %vm1869_vm4, %v2749_v52  ;;  %v2746_v60 = vadd.f32 %v12967_v8, %v2742_v53  ;;  %v2450_v42 = vld [vmem:[#allocation2 + $0x5e1] ss:$2 sm:$0xff]  ;;  %v212_v50 = vld [vmem:[%s15494_s0 + $0x598] sm:$0xff] }
 0x15a   :  { %v2739_v62 = vld [vmem:[#allocation3 + $0xd4] sm:$0xff]  ;;  %v2740_v0 = vld [vmem:[#allocation3 + $0xdc] sm:$0xf]  ;;  %v2551_v47 = vmax.f32 %v2254_v41, %v2450_v42  ;;  %v213_v51 = vld [vmem:[%s15494_s0 + $0x5a0] sm:$0xff] }
 0x15b   :  { %2584 = vst.msk [vmem:[#allocation3 + $0xe8] sm:$0xff] %vm1869_vm4, %v2486_v57  ;;  %v10950_v1 = vpop.f32.mrb[64].mxu0  ;;  %v2750_v2 = vmax.f32 %v2746_v60, 0.0  ;;  %v2743_v3 = vmax.f32 %v2735_v61, %v2739_v62  ;;  %v2744_v4 = vmax.f32 %v2736_v63, %v2740_v0  ;;  %v2256_v52 = vld [vmem:[#allocation2 + $0x5f0] ss:$2 sm:$0xff]  ;;  %v214_v63 = vld [vmem:[%s15494_s0 + $0x5a8] sm:$0xff] }
 0x15c   :  { %v2126_v5 = vld [vmem:[#allocation2 + $0x1e0] ss:$2 sm:$0xff]  ;;  %v2322_v6 = vld [vmem:[#allocation2 + $0x1e1] ss:$2 sm:$0xff]  ;;  %1935 = vst.msk [vmem:[#allocation2 + $0x208] sm:$0xff] %vm1869_vm4, %v10950_v1  ;;  %v1210_v7 = vpop.f32.mrb[65].mxu0  ;;  %11108 = vmatmul.mubr.msk.f32.gmra.mrb[170].mxu0 %vm231_vm3, %v204_v58 }
 0x15d   :  { %v2487_v9 = vmax.f32 %v2126_v5, %v2322_v6  ;;  %1934 = vst.msk [vmem:[#allocation2 + $0x200] sm:$0xff] %vm1869_vm4, %v1210_v7  ;;  %11110 = vmatprep.mubr.msk.f32.mxu0 %vm231_vm3, %v205_v59  ;;  %2754 = vst.msk [vmem:[#allocation4 + $0x5c] sm:$0xff] %vm1869_vm4, %v2750_v2  ;;  %v2747_v11 = vadd.f32 %v12967_v8, %v2743_v3  ;;  %v2748_v12 = vadd.f32 %v12967_v8, %v2744_v4  ;;  %v2452_v53 = vld [vmem:[#allocation2 + $0x5f1] ss:$2 sm:$0xff]  ;;  %v2258_v56 = vld [vmem:[#allocation2 + $0x600] ss:$2 sm:$0xff] }
 0x15e   :  { %2649 = vst.msk [vmem:[#allocation3 + $0x2f0] sm:$0xff] %vm1869_vm4, %v2551_v47  ;;  %v2552_v55 = vmax.f32 %v2256_v52, %v2452_v53  ;;  %v2454_v57 = vld [vmem:[#allocation2 + $0x601] ss:$2 sm:$0xff]  ;;  %v215_v0 = vld [vmem:[%s15494_s0 + $0x5b0] sm:$0xff] }
 0x15f   :  { %2585 = vst.msk [vmem:[#allocation3 + $0xf0] sm:$0xff] %vm1869_vm4, %v2487_v9  ;;  %v10953_v16 = vpop.f32.mrb[66].mxu0  ;;  %v2751_v17 = vmax.f32 %v2747_v11, 0.0  ;;  %v2752_v18 = vmax.f32 %v2748_v12, 0.0  ;;  %v2553_v61 = vmax.f32 %v2258_v56, %v2454_v57  ;;  %v2757_v1 = vld [vmem:[#allocation3 + $0xe0] sm:$0xff]  ;;  %v5805_v53 = vld [vmem:[#allocation4 + $0x26] sm:$0xff] }
 0x160   :  { %v2128_v20 = vld [vmem:[#allocation2 + $0x1f0] ss:$2 sm:$0xff]  ;;  %v2324_v21 = vld [vmem:[#allocation2 + $0x1f1] ss:$2 sm:$0xff]  ;;  %1937 = vst.msk [vmem:[#allocation2 + $0x218] sm:$0xff] %vm1869_vm4, %v10953_v16  ;;  %v1220_v22 = vpop.f32.mrb[67].mxu0  ;;  %11111 = vmatmul.mubr.msk.f32.gmra.mrb[172].mxu0 %vm231_vm3, %v206_v10 }
 0x161   :  { %v3008_v23 = vld [vmem:[#allocation4 + $0x50] sm:$0xff]  ;;  %v2488_v24 = vmax.f32 %v2128_v20, %v2324_v21  ;;  %1936 = vst.msk [vmem:[#allocation2 + $0x210] sm:$0xff] %vm1869_vm4, %v1220_v22  ;;  %11113 = vmatprep.mubr.msk.f32.mxu0 %vm231_vm3, %v207_v14  ;;  %2755 = vst.msk [vmem:[#allocation4 + $0x64] sm:$0xff] %vm1869_vm4, %v2751_v17  ;;  %v2260_v3 = vld [vmem:[#allocation2 + $0x610] ss:$2 sm:$0xff] }
 0x162   :  { %11177 = vmatprep.mubr.msk.f32.mxu1 %vm1869_vm4, %v3008_v23  ;;  %2756 = vst.msk [vmem:[#allocation4 + $0x6c] sm:$0xf] %vm2683_vm5, %v2752_v18  ;;  %v2456_v4 = vld [vmem:[#allocation2 + $0x611] ss:$2 sm:$0xff]  ;;  %v2758_v16 = vld [vmem:[#allocation3 + $0xe8] sm:$0xff] }
 0x163   :  { %2586 = vst.msk [vmem:[#allocation3 + $0xf8] sm:$0xff] %vm1869_vm4, %v2488_v24  ;;  %v10956_v29 = vpop.f32.mrb[68].mxu0  ;;  %2650 = vst.msk [vmem:[#allocation3 + $0x2f8] sm:$0xff] %vm1869_vm4, %v2552_v55  ;;  %v2554_v7 = vmax.f32 %v2260_v3, %v2456_v4  ;;  %v218_v24 = vld [vmem:[%s15494_s0 + $0x5c8] sm:$0xff] }
 0x164   :  { %v2130_v31 = vld [vmem:[#allocation2 + $0x200] ss:$2 sm:$0xff]  ;;  %v2326_v32 = vld [vmem:[#allocation2 + $0x201] ss:$2 sm:$0xff]  ;;  %1939 = vst.msk [vmem:[#allocation2 + $0x228] sm:$0xff] %vm1869_vm4, %v10956_v29  ;;  %v1230_v33 = vpop.f32.mrb[69].mxu0  ;;  %11114 = vmatmul.mubr.msk.f32.gmra.mrb[174].mxu0 %vm231_vm3, %v208_v25 }
 0x165   :  { %v3009_v34 = vld [vmem:[#allocation4 + $0x58] sm:$0xff]  ;;  %v2489_v35 = vmax.f32 %v2130_v31, %v2326_v32  ;;  %1938 = vst.msk [vmem:[#allocation2 + $0x220] sm:$0xff] %vm1869_vm4, %v1230_v33  ;;  %11116 = vmatprep.mubr.msk.f32.mxu0 %vm231_vm3, %v209_v27  ;;  %2651 = vst.msk [vmem:[#allocation3 + $0x300] sm:$0xff] %vm1869_vm4, %v2553_v61  ;;  %v219_v25 = vld [vmem:[%s15494_s0 + $0x5d0] sm:$0xff] }
 0x166   :  { %11178 = vmatmul.mubr.msk.f32.gmra.mrb[18].mxu1 %vm1869_vm4, %v3009_v34  ;;  %2652 = vst.msk [vmem:[#allocation3 + $0x308] sm:$0xff] %vm1869_vm4, %v2554_v7  ;;  %v2759_v28 = vld [vmem:[#allocation3 + $0xf0] sm:$0xff] }
 0x167   :  { %2587 = vst.msk [vmem:[#allocation3 + $0x100] sm:$0xff] %vm1869_vm4, %v2489_v35  ;;  %v10959_v40 = vpop.f32.mrb[70].mxu0 }
 0x168   :  { %v2132_v43 = vld [vmem:[#allocation2 + $0x210] ss:$2 sm:$0xff]  ;;  %v2328_v44 = vld [vmem:[#allocation2 + $0x211] ss:$2 sm:$0xff]  ;;  %1941 = vst.msk [vmem:[#allocation2 + $0x238] sm:$0xff] %vm1869_vm4, %v10959_v40  ;;  %v1240_v45 = vpop.f32.mrb[71].mxu0  ;;  %11117 = vmatmul.mubr.msk.f32.gmra.mrb[176].mxu0 %vm231_vm3, %v210_v36 }
 0x169   :  { %v3010_v46 = vld [vmem:[#allocation4 + $0x60] sm:$0xff]  ;;  %v2490_v48 = vmax.f32 %v2132_v43, %v2328_v44  ;;  %1940 = vst.msk [vmem:[#allocation2 + $0x230] sm:$0xff] %vm1869_vm4, %v1240_v45  ;;  %v3011_v49 = vld [vmem:[#allocation4 + $0x68] sm:$0xff]  ;;  %11119 = vmatprep.mubr.msk.f32.mxu0 %vm231_vm3, %v211_v38 }
 0x16a   :  { %11180 = vmatprep.mubr.msk.f32.mxu1 %vm1869_vm4, %v3010_v46  ;;  %v2760_v30 = vld [vmem:[#allocation3 + $0xf8] sm:$0xf]  ;;  %v5804_v44 = vld [vmem:[#allocation4 + $0x1e] sm:$0xff] }
 0x16b   :  { %11181 = vmatmul.mubr.msk.f32.gmra.mrb[20].mxu1 %vm1869_vm4, %v3011_v49  ;;  %2588 = vst.msk [vmem:[#allocation3 + $0x108] sm:$0xff] %vm1869_vm4, %v2490_v48  ;;  %v10962_v54 = vpop.f32.mrb[72].mxu0  ;;  %v220_v40 = vld [vmem:[%s15494_s0 + $0x5d8] sm:$0xff] }
 0x16c   :  { %v2134_v58 = vld [vmem:[#allocation2 + $0x220] ss:$2 sm:$0xff]  ;;  %v2330_v59 = vld [vmem:[#allocation2 + $0x221] ss:$2 sm:$0xff]  ;;  %1943 = vst.msk [vmem:[#allocation2 + $0x248] sm:$0xff] %vm1869_vm4, %v10962_v54  ;;  %v1250_v60 = vpop.f32.mrb[73].mxu0  ;;  %11120 = vmatmul.mubr.msk.f32.gmra.mrb[178].mxu0 %vm231_vm3, %v212_v50 }
 0x16d   :  { %v2491_v62 = vmax.f32 %v2134_v58, %v2330_v59  ;;  %1942 = vst.msk [vmem:[#allocation2 + $0x240] sm:$0xff] %vm1869_vm4, %v1250_v60  ;;  %11122 = vmatprep.mubr.msk.f32.mxu0 %vm231_vm3, %v213_v51  ;;  %v5806_v54 = vld [vmem:[#allocation4 + $0x2e] sm:$0xff]  ;;  %v5807_v60 = vld [vmem:[#allocation4 + $0x36] sm:$0xff] }
 0x16e   :  { %v2761_v2 = vld [vmem:[#allocation3 + $0xfc] sm:$0xff] }
 0x16f   :  { %2589 = vst.msk [vmem:[#allocation3 + $0x110] sm:$0xff] %vm1869_vm4, %v2491_v62  ;;  %v10965_v5 = vpop.f32.mrb[74].mxu0  ;;  %v2765_v6 = vmax.f32 %v2757_v1, %v2761_v2  ;;  %v5808_v62 = vld [vmem:[#allocation4 + $0x3e] sm:$0xff] }
 0x170   :  { %v2136_v9 = vld [vmem:[#allocation2 + $0x230] ss:$2 sm:$0xff]  ;;  %v2332_v10 = vld [vmem:[#allocation2 + $0x231] ss:$2 sm:$0xff]  ;;  %1945 = vst.msk [vmem:[#allocation2 + $0x258] sm:$0xff] %vm1869_vm4, %v10965_v5  ;;  %v1260_v11 = vpop.f32.mrb[75].mxu0  ;;  %11123 = vmatmul.mubr.msk.f32.gmra.mrb[180].mxu0 %vm231_vm3, %v214_v63 }
 0x171   :  { %v2492_v12 = vmax.f32 %v2136_v9, %v2332_v10  ;;  %1944 = vst.msk [vmem:[#allocation2 + $0x250] sm:$0xff] %vm1869_vm4, %v1260_v11  ;;  %11125 = vmatprep.mubr.msk.f32.mxu0 %vm231_vm3, %v215_v0  ;;  %v2769_v14 = vadd.f32 %v12967_v8, %v2765_v6  ;;  %v9622_v63 = vld [vmem:[%s15497_s3 + $0x40] sm:$0xff]  ;;  %v9623_v0 = vld [vmem:[%s15497_s3 + $0x48] sm:$0xff]  ;;  %v5809_v9 = vld [vmem:[#allocation4 + $0x46] sm:$0xff] }
 0x172   :  { %v2762_v17 = vld [vmem:[#allocation3 + $0x104] sm:$0xff]  ;;  %v11949_v5 = vpack.c.bf16 %v9623_v0, %v9622_v63 }
 0x173   :  { %2590 = vst.msk [vmem:[#allocation3 + $0x118] sm:$0xff] %vm1869_vm4, %v2492_v12  ;;  %v10968_v18 = vpop.f32.mrb[76].mxu0  ;;  %v2773_v19 = vmax.f32 %v2769_v14, 0.0  ;;  %v2766_v20 = vmax.f32 %v2758_v16, %v2762_v17 }
 0x174   :  { %v2138_v21 = vld [vmem:[#allocation2 + $0x240] ss:$2 sm:$0xff]  ;;  %v2334_v22 = vld [vmem:[#allocation2 + $0x241] ss:$2 sm:$0xff]  ;;  %1947 = vst.msk [vmem:[#allocation2 + $0x268] sm:$0xff] %vm1869_vm4, %v10968_v18  ;;  %v1270_v23 = vpop.f32.mrb[77].mxu0  ;;  %11126 = vmatmul.mubr.msk.f32.gmra.mrb[182].mxu0 %vm231_vm3, %v216_v13  ;;  %11950 = vmatprep.subr.bf16.mxu1 %v11949_v5 }
 0x175   :  { %v2493_v8 = vmax.f32 %v2138_v21, %v2334_v22  ;;  %1946 = vst.msk [vmem:[#allocation2 + $0x260] sm:$0xff] %vm1869_vm4, %v1270_v23  ;;  %11128 = vmatprep.mubr.msk.f32.mxu0 %vm231_vm3, %v217_v15  ;;  %2777 = vst.msk [vmem:[#allocation4 + $0x70] sm:$0xff] %vm1869_vm4, %v2773_v19  ;;  %v2770_v27 = vadd.f32 %v13365_v26, %v2766_v20  ;;  %11952 = vmatpush3.bf16.msra.mxu1 %v11949_v5  ;;  %v5810_v13 = vld [vmem:[#allocation4 + $0x4e] sm:$0xff]  ;;  %v5811_v18 = vld [vmem:[#allocation4 + $0x56] sm:$0xff] }
 0x176   :  { %v2763_v29 = vld [vmem:[#allocation3 + $0x10c] sm:$0xff]  ;;  %v2764_v31 = vld [vmem:[#allocation3 + $0x114] sm:$0xf] }
 0x177   :  { %2591 = vst.msk [vmem:[#allocation3 + $0x120] sm:$0xff] %vm1869_vm4, %v2493_v8  ;;  %v10971_v32 = vpop.f32.mrb[78].mxu0  ;;  %v2774_v33 = vmax.f32 %v2770_v27, 0.0  ;;  %v2767_v34 = vmax.f32 %v2759_v28, %v2763_v29  ;;  %v2768_v35 = vmax.f32 %v2760_v30, %v2764_v31  ;;  %v5812_v23 = vld [vmem:[#allocation4 + $0x5e] sm:$0xff]  ;;  %v5813_v29 = vld [vmem:[#allocation4 + $0x66] sm:$0xff] }
 0x178   :  { %v2140_v36 = vld [vmem:[#allocation2 + $0x250] ss:$2 sm:$0xff]  ;;  %v2336_v37 = vld [vmem:[#allocation2 + $0x251] ss:$2 sm:$0xff]  ;;  %1949 = vst.msk [vmem:[#allocation2 + $0x278] sm:$0xff] %vm1869_vm4, %v10971_v32  ;;  %v1280_v38 = vpop.f32.mrb[79].mxu0  ;;  %11129 = vmatmul.mubr.msk.f32.gmra.mrb[184].mxu0 %vm231_vm3, %v218_v24 }
 0x179   :  { %v2494_v39 = vmax.f32 %v2140_v36, %v2336_v37  ;;  %1948 = vst.msk [vmem:[#allocation2 + $0x270] sm:$0xff] %vm1869_vm4, %v1280_v38  ;;  %11131 = vmatprep.mubr.msk.f32.mxu0 %vm231_vm3, %v219_v25  ;;  %2778 = vst.msk [vmem:[#allocation4 + $0x78] sm:$0xff] %vm1869_vm4, %v2774_v33  ;;  %v2771_v41 = vadd.f32 %v13365_v26, %v2767_v34  ;;  %v2772_v42 = vadd.f32 %v13365_v26, %v2768_v35 }
 0x17a   :  { %v2781_v15 = vld [vmem:[#allocation3 + $0x118] sm:$0xff] }
 0x17b   :  { %2592 = vst.msk [vmem:[#allocation3 + $0x128] sm:$0xff] %vm1869_vm4, %v2494_v39  ;;  %v10974_v43 = vpop.f32.mrb[80].mxu0  ;;  %v2775_v45 = vmax.f32 %v2771_v41, 0.0  ;;  %v2776_v46 = vmax.f32 %v2772_v42, 0.0 }
 0x17c   :  { %v2142_v47 = vld [vmem:[#allocation2 + $0x260] ss:$2 sm:$0xff]  ;;  %v2338_v48 = vld [vmem:[#allocation2 + $0x261] ss:$2 sm:$0xff]  ;;  %1951 = vst.msk [vmem:[#allocation2 + $0x288] sm:$0xff] %vm1869_vm4, %v10974_v43  ;;  %v1290_v49 = vpop.f32.mrb[81].mxu0  ;;  %11132 = vmatmul.mubr.msk.f32.gmra.mrb[186].mxu0 %vm231_vm3, %v220_v40 }
 0x17d   :  { %v3012_v50 = vld [vmem:[#allocation4 + $0x70] sm:$0xff]  ;;  %v2495_v51 = vmax.f32 %v2142_v47, %v2338_v48  ;;  %1950 = vst.msk [vmem:[#allocation2 + $0x280] sm:$0xff] %vm1869_vm4, %v1290_v49  ;;  %11557 = vmatprep.mubr.msk.f32.mxu0 %vm1869_vm4, %v5804_v44  ;;  %2779 = vst.msk [vmem:[#allocation4 + $0x80] sm:$0xff] %vm1869_vm4, %v2775_v45 }
 0x17e   :  { %11183 = vmatprep.mubr.msk.f32.mxu1 %vm1869_vm4, %v3012_v50  ;;  %2780 = vst.msk [vmem:[#allocation4 + $0x88] sm:$0xf] %vm2683_vm5, %v2776_v46  ;;  %v2782_v25 = vld [vmem:[#allocation3 + $0x120] sm:$0xff] }
 0x17f   :  { %2593 = vst.msk [vmem:[#allocation3 + $0x130] sm:$0xff] %vm1869_vm4, %v2495_v51  ;;  %v10977_v52 = vpop.f32.mrb[82].mxu0  ;;  %v5814_v35 = vld [vmem:[#allocation4 + $0x6e] sm:$0xff] }
 0x180   :  { %v2144_v55 = vld [vmem:[#allocation2 + $0x270] ss:$2 sm:$0xff]  ;;  %v2340_v56 = vld [vmem:[#allocation2 + $0x271] ss:$2 sm:$0xff]  ;;  %1953 = vst.msk [vmem:[#allocation2 + $0x298] sm:$0xff] %vm1869_vm4, %v10977_v52  ;;  %v1300_v57 = vpop.f32.mrb[83].mxu0  ;;  %11558 = vmatmul.mubr.msk.f32.vlgmr.msra.gmra.mrb[188].mxu0 %vm1869_vm4, %v5805_v53 }
 0x181   :  { %v3013_v58 = vld [vmem:[#allocation4 + $0x78] sm:$0xff]  ;;  %v2496_v59 = vmax.f32 %v2144_v55, %v2340_v56  ;;  %1952 = vst.msk [vmem:[#allocation2 + $0x290] sm:$0xff] %vm1869_vm4, %v1300_v57  ;;  %11560 = vmatprep.mubr.msk.f32.mxu0 %vm1869_vm4, %v5806_v54  ;;  %v9624_v57 = vld [vmem:[%s15497_s3 + $0x50] sm:$0xff] }
 0x182   :  { %11184 = vmatmul.mubr.msk.f32.gmra.mrb[22].mxu1 %vm1869_vm4, %v3013_v58  ;;  %v2783_v38 = vld [vmem:[#allocation3 + $0x128] sm:$0xff]  ;;  %v9625_v58 = vld [vmem:[%s15497_s3 + $0x58] sm:$0xff] }
 0x183   :  { %2594 = vst.msk [vmem:[#allocation3 + $0x138] sm:$0xff] %vm1869_vm4, %v2496_v59  ;;  %v10980_v61 = vpop.f32.mrb[84].mxu0  ;;  %v5815_v43 = vld [vmem:[#allocation4 + $0x76] sm:$0xff]  ;;  %v11953_v63 = vpack.c.bf16 %v9625_v58, %v9624_v57 }
 0x184   :  { %v2146_v1 = vld [vmem:[#allocation2 + $0x280] ss:$2 sm:$0xff]  ;;  %v2342_v2 = vld [vmem:[#allocation2 + $0x281] ss:$2 sm:$0xff]  ;;  %1955 = vst.msk [vmem:[#allocation2 + $0x2a8] sm:$0xff] %vm1869_vm4, %v10980_v61  ;;  %v1310_v3 = vpop.f32.mrb[85].mxu0  ;;  %11561 = vmatmul.mubr.msk.f32.gmra.mrb[190].mxu0 %vm1869_vm4, %v5807_v60 }
 0x185   :  { %v3014_v4 = vld [vmem:[#allocation4 + $0x80] sm:$0xff]  ;;  %v2497_v6 = vmax.f32 %v2146_v1, %v2342_v2  ;;  %1954 = vst.msk [vmem:[#allocation2 + $0x2a0] sm:$0xff] %vm1869_vm4, %v1310_v3  ;;  %11563 = vmatprep.mubr.msk.f32.mxu0 %vm1869_vm4, %v5808_v62  ;;  %11954 = vmatprep.subr.bf16.mxu1 %v11953_v63 }
 0x186   :  { %11186 = vmatprep.mubr.msk.f32.mxu1 %vm1869_vm4, %v3014_v4  ;;  %v2784_v40 = vld [vmem:[#allocation3 + $0x130] sm:$0xf]  ;;  %11956 = vmatpush3.bf16.msra.mxu1 %v11953_v63 }
 0x187   :  { %2595 = vst.msk [vmem:[#allocation3 + $0x140] sm:$0xff] %vm1869_vm4, %v2497_v6  ;;  %v10983_v7 = vpop.f32.mrb[86].mxu0  ;;  %v5816_v50 = vld [vmem:[#allocation4 + $0x7e] sm:$0xff] }
 0x188   :  { %v2148_v10 = vld [vmem:[#allocation2 + $0x290] ss:$2 sm:$0xff]  ;;  %v2344_v11 = vld [vmem:[#allocation2 + $0x291] ss:$2 sm:$0xff]  ;;  %1957 = vst.msk [vmem:[#allocation2 + $0x2b8] sm:$0xff] %vm1869_vm4, %v10983_v7  ;;  %v1320_v12 = vpop.f32.mrb[87].mxu0  ;;  %11564 = vmatmul.mubr.msk.f32.gmra.mrb[192].mxu0 %vm1869_vm4, %v5809_v9 }
 0x189   :  { %v2498_v14 = vmax.f32 %v2148_v10, %v2344_v11  ;;  %1956 = vst.msk [vmem:[#allocation2 + $0x2b0] sm:$0xff] %vm1869_vm4, %v1320_v12  ;;  %11566 = vmatprep.mubr.msk.f32.mxu0 %vm1869_vm4, %v5810_v13 }
 0x18a   :  { %v2785_v16 = vld [vmem:[#allocation3 + $0x134] sm:$0xff] }
 0x18b   :  { %2596 = vst.msk [vmem:[#allocation3 + $0x148] sm:$0xff] %vm1869_vm4, %v2498_v14  ;;  %v10986_v17 = vpop.f32.mrb[88].mxu0  ;;  %v2789_v19 = vmax.f32 %v2781_v15, %v2785_v16 }
 0x18c   :  { %v2150_v20 = vld [vmem:[#allocation2 + $0x2a0] ss:$2 sm:$0xff]  ;;  %v2346_v21 = vld [vmem:[#allocation2 + $0x2a1] ss:$2 sm:$0xff]  ;;  %1959 = vst.msk [vmem:[#allocation2 + $0x2c8] sm:$0xff] %vm1869_vm4, %v10986_v17  ;;  %v1330_v22 = vpop.f32.mrb[89].mxu0  ;;  %11567 = vmatmul.mubr.msk.f32.gmra.mrb[194].mxu0 %vm1869_vm4, %v5811_v18 }
 0x18d   :  { %v2499_v8 = vmax.f32 %v2150_v20, %v2346_v21  ;;  %1958 = vst.msk [vmem:[#allocation2 + $0x2c0] sm:$0xff] %vm1869_vm4, %v1330_v22  ;;  %11569 = vmatprep.mubr.msk.f32.mxu0 %vm1869_vm4, %v5812_v23  ;;  %v2793_v24 = vadd.f32 %v13365_v26, %v2789_v19 }
 0x18e   :  { %v2786_v27 = vld [vmem:[#allocation3 + $0x13c] sm:$0xff] }
 0x18f   :  { %2597 = vst.msk [vmem:[#allocation3 + $0x150] sm:$0xff] %vm1869_vm4, %v2499_v8  ;;  %v10989_v28 = vpop.f32.mrb[90].mxu0  ;;  %v2797_v30 = vmax.f32 %v2793_v24, 0.0  ;;  %v2790_v31 = vmax.f32 %v2782_v25, %v2786_v27 }
 0x190   :  { %v2152_v32 = vld [vmem:[#allocation2 + $0x2b0] ss:$2 sm:$0xff]  ;;  %v2348_v33 = vld [vmem:[#allocation2 + $0x2b1] ss:$2 sm:$0xff]  ;;  %1961 = vst.msk [vmem:[#allocation2 + $0x2d8] sm:$0xff] %vm1869_vm4, %v10989_v28  ;;  %v1340_v34 = vpop.f32.mrb[91].mxu0  ;;  %11570 = vmatmul.mubr.msk.f32.gmra.mrb[196].mxu0 %vm1869_vm4, %v5813_v29 }
 0x191   :  { %v2500_v36 = vmax.f32 %v2152_v32, %v2348_v33  ;;  %1960 = vst.msk [vmem:[#allocation2 + $0x2d0] sm:$0xff] %vm1869_vm4, %v1340_v34  ;;  %11572 = vmatprep.mubr.msk.f32.mxu0 %vm1869_vm4, %v5814_v35  ;;  %2801 = vst.msk [vmem:[#allocation4 + $0x8c] sm:$0xff] %vm1869_vm4, %v2797_v30  ;;  %v2794_v37 = vadd.f32 %v13365_v26, %v2790_v31 }
 0x192   :  { %v2787_v39 = vld [vmem:[#allocation3 + $0x144] sm:$0xff]  ;;  %v2788_v41 = vld [vmem:[#allocation3 + $0x14c] sm:$0xf] }
 0x193   :  { %2598 = vst.msk [vmem:[#allocation3 + $0x158] sm:$0xff] %vm1869_vm4, %v2500_v36  ;;  %v10992_v42 = vpop.f32.mrb[92].mxu0  ;;  %v2798_v44 = vmax.f32 %v2794_v37, 0.0  ;;  %v2791_v45 = vmax.f32 %v2783_v38, %v2787_v39  ;;  %v2792_v46 = vmax.f32 %v2784_v40, %v2788_v41  ;;  %v9626_v38 = vld [vmem:[%s15497_s3 + $0x60] sm:$0xff]  ;;  %v9627_v39 = vld [vmem:[%s15497_s3 + $0x68] sm:$0xff] }
 0x194   :  { %v2154_v47 = vld [vmem:[#allocation2 + $0x2c0] ss:$2 sm:$0xff]  ;;  %v2350_v48 = vld [vmem:[#allocation2 + $0x2c1] ss:$2 sm:$0xff]  ;;  %1963 = vst.msk [vmem:[#allocation2 + $0x2e8] sm:$0xff] %vm1869_vm4, %v10992_v42  ;;  %v1350_v49 = vpop.f32.mrb[93].mxu0  ;;  %11573 = vmatmul.mubr.msk.f32.gmra.mrb[198].mxu0 %vm1869_vm4, %v5815_v43  ;;  %v11957_v43 = vpack.c.bf16 %v9627_v39, %v9626_v38 }
 0x195   :  { %v2501_v51 = vmax.f32 %v2154_v47, %v2350_v48  ;;  %1962 = vst.msk [vmem:[#allocation2 + $0x2e0] sm:$0xff] %vm1869_vm4, %v1350_v49  ;;  %11575 = vmatprep.mubr.msk.f32.mxu0 %vm1869_vm4, %v5816_v50  ;;  %2802 = vst.msk [vmem:[#allocation4 + $0x94] sm:$0xff] %vm1869_vm4, %v2798_v44  ;;  %v2795_v52 = vadd.f32 %v13365_v26, %v2791_v45  ;;  %v2796_v53 = vadd.f32 %v13365_v26, %v2792_v46 }
 0x196   :  { %v2805_v8 = vld [vmem:[#allocation3 + $0x150] sm:$0xff]  ;;  %11958 = vmatprep.subr.bf16.mxu1 %v11957_v43 }
 0x197   :  { %2599 = vst.msk [vmem:[#allocation3 + $0x160] sm:$0xff] %vm1869_vm4, %v2501_v51  ;;  %v10995_v54 = vpop.f32.mrb[94].mxu0  ;;  %v2799_v55 = vmax.f32 %v2795_v52, 0.0  ;;  %v2800_v56 = vmax.f32 %v2796_v53, 0.0  ;;  %11960 = vmatpush3.bf16.msra.mxu1 %v11957_v43 }
 0x198   :  { %v2156_v59 = vld [vmem:[#allocation2 + $0x2d0] ss:$2 sm:$0xff]  ;;  %v2352_v60 = vld [vmem:[#allocation2 + $0x2d1] ss:$2 sm:$0xff]  ;;  %1965 = vst.msk [vmem:[#allocation2 + $0x2f8] sm:$0xff] %vm1869_vm4, %v10995_v54  ;;  %v1360_v61 = vpop.f32.mrb[95].mxu0 }
 0x199   :  { %v3015_v62 = vld [vmem:[#allocation4 + $0x88] sm:$0xff]  ;;  %v2502_v0 = vmax.f32 %v2156_v59, %v2352_v60  ;;  %1964 = vst.msk [vmem:[#allocation2 + $0x2f0] sm:$0xff] %vm1869_vm4, %v1360_v61  ;;  %2803 = vst.msk [vmem:[#allocation4 + $0x9c] sm:$0xff] %vm1869_vm4, %v2799_v55 }
 0x19a   :  { %11187 = vmatmul.mubr.msk.f32.gmra.mrb[24].mxu1 %vm1869_vm4, %v3015_v62  ;;  %v5817_v1 = vld [vmem:[#allocation4 + $0x86] sm:$0xff]  ;;  %2804 = vst.msk [vmem:[#allocation4 + $0xa4] sm:$0xf] %vm2683_vm5, %v2800_v56 }
 0x19b   :  { %11576 = vmatmul.mubr.msk.f32.gmra.mrb[200].mxu0 %vm1869_vm4, %v5817_v1  ;;  %2600 = vst.msk [vmem:[#allocation3 + $0x168] sm:$0xff] %vm1869_vm4, %v2502_v0  ;;  %v10998_v2 = vpop.f32.mrb[96].mxu0  ;;  %v2806_v33 = vld [vmem:[#allocation3 + $0x158] sm:$0xff] }
 0x19c   :  { %v2158_v3 = vld [vmem:[#allocation2 + $0x2e0] ss:$2 sm:$0xff]  ;;  %v2354_v4 = vld [vmem:[#allocation2 + $0x2e1] ss:$2 sm:$0xff]  ;;  %1967 = vst.msk [vmem:[#allocation2 + $0x308] sm:$0xff] %vm1869_vm4, %v10998_v2  ;;  %v1370_v5 = vpop.f32.mrb[97].mxu0 }
 0x19d   :  { %v3016_v6 = vld [vmem:[#allocation4 + $0x90] sm:$0xff]  ;;  %v2503_v7 = vmax.f32 %v2158_v3, %v2354_v4  ;;  %1966 = vst.msk [vmem:[#allocation2 + $0x300] sm:$0xff] %vm1869_vm4, %v1370_v5 }
 0x19e   :  { %11189 = vmatprep.mubr.msk.f32.mxu1 %vm1869_vm4, %v3016_v6  ;;  %v5818_v9 = vld [vmem:[#allocation4 + $0x8e] sm:$0xff] }
 0x19f   :  { %11578 = vmatprep.mubr.msk.f32.mxu0 %vm1869_vm4, %v5818_v9  ;;  %2601 = vst.msk [vmem:[#allocation3 + $0x170] sm:$0xff] %vm1869_vm4, %v2503_v7  ;;  %v11001_v10 = vpop.f32.mrb[98].mxu0  ;;  %v2807_v46 = vld [vmem:[#allocation3 + $0x160] sm:$0xff] }
 0x1a0   :  { %v2160_v11 = vld [vmem:[#allocation2 + $0x2f0] ss:$2 sm:$0xff]  ;;  %v2356_v12 = vld [vmem:[#allocation2 + $0x2f1] ss:$2 sm:$0xff]  ;;  %1969 = vst.msk [vmem:[#allocation2 + $0x318] sm:$0xff] %vm1869_vm4, %v11001_v10  ;;  %v1380_v13 = vpop.f32.mrb[99].mxu0 }
 0x1a1   :  { %v3017_v14 = vld [vmem:[#allocation4 + $0x98] sm:$0xff]  ;;  %v2504_v15 = vmax.f32 %v2160_v11, %v2356_v12  ;;  %1968 = vst.msk [vmem:[#allocation2 + $0x310] sm:$0xff] %vm1869_vm4, %v1380_v13  ;;  %v3018_v17 = vld [vmem:[#allocation4 + $0xa0] sm:$0xff] }
 0x1a2   :  { %11190 = vmatmul.mubr.msk.f32.gmra.mrb[26].mxu1 %vm1869_vm4, %v3017_v14  ;;  %v5819_v16 = vld [vmem:[#allocation4 + $0x96] sm:$0xff]  ;;  %v5820_v18 = vld [vmem:[#allocation4 + $0x9e] sm:$0xff] }
 0x1a3   :  { %11579 = vmatmul.mubr.msk.f32.gmra.mrb[202].mxu0 %vm1869_vm4, %v5819_v16  ;;  %11192 = vmatprep.mubr.msk.f32.mxu1 %vm1869_vm4, %v3018_v17  ;;  %2602 = vst.msk [vmem:[#allocation3 + $0x178] sm:$0xff] %vm1869_vm4, %v2504_v15  ;;  %v11004_v19 = vpop.f32.mrb[100].mxu0  ;;  %v2808_v48 = vld [vmem:[#allocation3 + $0x168] sm:$0xf] }
 0x1a4   :  { %11581 = vmatprep.mubr.msk.f32.mxu0 %vm1869_vm4, %v5820_v18  ;;  %v2162_v20 = vld [vmem:[#allocation2 + $0x300] ss:$2 sm:$0xff]  ;;  %v2358_v21 = vld [vmem:[#allocation2 + $0x301] ss:$2 sm:$0xff]  ;;  %1971 = vst.msk [vmem:[#allocation2 + $0x328] sm:$0xff] %vm1869_vm4, %v11004_v19  ;;  %v1390_v22 = vpop.f32.mrb[101].mxu0 }
 0x1a5   :  { %v2505_v23 = vmax.f32 %v2162_v20, %v2358_v21  ;;  %1970 = vst.msk [vmem:[#allocation2 + $0x320] sm:$0xff] %vm1869_vm4, %v1390_v22  ;;  %v9628_v21 = vld [vmem:[%s15497_s3 + $0x70] sm:$0xff]  ;;  %v9629_v22 = vld [vmem:[%s15497_s3 + $0x78] sm:$0xff] }
 0x1a6   :  { %v2809_v24 = vld [vmem:[#allocation3 + $0x16c] sm:$0xff] }
 0x1a7   :  { %2603 = vst.msk [vmem:[#allocation3 + $0x180] sm:$0xff] %vm1869_vm4, %v2505_v23  ;;  %v11007_v25 = vpop.f32.mrb[102].mxu0  ;;  %v2813_v27 = vmax.f32 %v2805_v8, %v2809_v24 }
 0x1a8   :  { %v2164_v28 = vld [vmem:[#allocation2 + $0x310] ss:$2 sm:$0xff]  ;;  %v2360_v29 = vld [vmem:[#allocation2 + $0x311] ss:$2 sm:$0xff]  ;;  %1973 = vst.msk [vmem:[#allocation2 + $0x338] sm:$0xff] %vm1869_vm4, %v11007_v25  ;;  %v1400_v30 = vpop.f32.mrb[103].mxu0  ;;  %v11961_v25 = vpack.c.bf16 %v9629_v22, %v9628_v21 }
 0x1a9   :  { %v2506_v31 = vmax.f32 %v2164_v28, %v2360_v29  ;;  %1972 = vst.msk [vmem:[#allocation2 + $0x330] sm:$0xff] %vm1869_vm4, %v1400_v30  ;;  %v2817_v32 = vadd.f32 %v13365_v26, %v2813_v27 }
 0x1aa   :  { %v2810_v34 = vld [vmem:[#allocation3 + $0x174] sm:$0xff]  ;;  %11962 = vmatprep.subr.bf16.mxu1 %v11961_v25 }
 0x1ab   :  { %2604 = vst.msk [vmem:[#allocation3 + $0x188] sm:$0xff] %vm1869_vm4, %v2506_v31  ;;  %v11010_v35 = vpop.f32.mrb[104].mxu0  ;;  %v2821_v36 = vmax.f32 %v2817_v32, 0.0  ;;  %v2814_v37 = vmax.f32 %v2806_v33, %v2810_v34  ;;  %11964 = vmatpush3.bf16.msra.mxu1 %v11961_v25 }
 0x1ac   :  { %v2166_v40 = vld [vmem:[#allocation2 + $0x320] ss:$2 sm:$0xff]  ;;  %v2362_v41 = vld [vmem:[#allocation2 + $0x321] ss:$2 sm:$0xff]  ;;  %1975 = vst.msk [vmem:[#allocation2 + $0x348] sm:$0xff] %vm1869_vm4, %v11010_v35  ;;  %v1410_v42 = vpop.f32.mrb[105].mxu0 }
 0x1ad   :  { %v2507_v44 = vmax.f32 %v2166_v40, %v2362_v41  ;;  %1974 = vst.msk [vmem:[#allocation2 + $0x340] sm:$0xff] %vm1869_vm4, %v1410_v42  ;;  %2825 = vst.msk [vmem:[#allocation4 + $0xa8] sm:$0xff] %vm1869_vm4, %v2821_v36  ;;  %v2818_v45 = vadd.f32 %v13365_v26, %v2814_v37 }
 0x1ae   :  { %v2811_v47 = vld [vmem:[#allocation3 + $0x17c] sm:$0xff]  ;;  %v2812_v49 = vld [vmem:[#allocation3 + $0x184] sm:$0xf] }
 0x1af   :  { %2605 = vst.msk [vmem:[#allocation3 + $0x190] sm:$0xff] %vm1869_vm4, %v2507_v44  ;;  %v11013_v50 = vpop.f32.mrb[106].mxu0  ;;  %v2822_v51 = vmax.f32 %v2818_v45, 0.0  ;;  %v2815_v52 = vmax.f32 %v2807_v46, %v2811_v47  ;;  %v2816_v53 = vmax.f32 %v2808_v48, %v2812_v49 }
 0x1b0   :  { %v2168_v54 = vld [vmem:[#allocation2 + $0x330] ss:$2 sm:$0xff]  ;;  %v2364_v55 = vld [vmem:[#allocation2 + $0x331] ss:$2 sm:$0xff]  ;;  %1977 = vst.msk [vmem:[#allocation2 + $0x358] sm:$0xff] %vm1869_vm4, %v11013_v50  ;;  %v1420_v56 = vpop.f32.mrb[107].mxu0 }
 0x1b1   :  { %v2508_v57 = vmax.f32 %v2168_v54, %v2364_v55  ;;  %1976 = vst.msk [vmem:[#allocation2 + $0x350] sm:$0xff] %vm1869_vm4, %v1420_v56  ;;  %2826 = vst.msk [vmem:[#allocation4 + $0xb0] sm:$0xff] %vm1869_vm4, %v2822_v51  ;;  %v2819_v58 = vadd.f32 %v13365_v26, %v2815_v52  ;;  %v2820_v59 = vadd.f32 %v13365_v26, %v2816_v53 }
 0x1b2   :  { %v2829_v28 = vld [vmem:[#allocation3 + $0x188] sm:$0xff] }
 0x1b3   :  { %2606 = vst.msk [vmem:[#allocation3 + $0x198] sm:$0xff] %vm1869_vm4, %v2508_v57  ;;  %v11016_v60 = vpop.f32.mrb[108].mxu0  ;;  %v2823_v61 = vmax.f32 %v2819_v58, 0.0  ;;  %v2824_v62 = vmax.f32 %v2820_v59, 0.0 }
 0x1b4   :  { %v2170_v63 = vld [vmem:[#allocation2 + $0x340] ss:$2 sm:$0xff]  ;;  %v2366_v0 = vld [vmem:[#allocation2 + $0x341] ss:$2 sm:$0xff]  ;;  %1979 = vst.msk [vmem:[#allocation2 + $0x368] sm:$0xff] %vm1869_vm4, %v11016_v60  ;;  %v1430_v1 = vpop.f32.mrb[109].mxu0 }
 0x1b5   :  { %v3019_v2 = vld [vmem:[#allocation4 + $0xa8] sm:$0xff]  ;;  %v2509_v3 = vmax.f32 %v2170_v63, %v2366_v0  ;;  %1978 = vst.msk [vmem:[#allocation2 + $0x360] sm:$0xff] %vm1869_vm4, %v1430_v1  ;;  %2827 = vst.msk [vmem:[#allocation4 + $0xb8] sm:$0xff] %vm1869_vm4, %v2823_v61 }
 0x1b6   :  { %11193 = vmatmul.mubr.msk.f32.gmra.mrb[28].mxu1 %vm1869_vm4, %v3019_v2  ;;  %v5821_v4 = vld [vmem:[#allocation4 + $0xa6] sm:$0xff]  ;;  %2828 = vst.msk [vmem:[#allocation4 + $0xc0] sm:$0xf] %vm2683_vm5, %v2824_v62 }
 0x1b7   :  { %11582 = vmatmul.mubr.msk.f32.gmra.mrb[204].mxu0 %vm1869_vm4, %v5821_v4  ;;  %2607 = vst.msk [vmem:[#allocation3 + $0x1a0] sm:$0xff] %vm1869_vm4, %v2509_v3  ;;  %v11019_v5 = vpop.f32.mrb[110].mxu0  ;;  %v2830_v37 = vld [vmem:[#allocation3 + $0x190] sm:$0xff] }
 0x1b8   :  { %v2172_v6 = vld [vmem:[#allocation2 + $0x350] ss:$2 sm:$0xff]  ;;  %v2368_v7 = vld [vmem:[#allocation2 + $0x351] ss:$2 sm:$0xff]  ;;  %1981 = vst.msk [vmem:[#allocation2 + $0x378] sm:$0xff] %vm1869_vm4, %v11019_v5  ;;  %v1440_v9 = vpop.f32.mrb[111].mxu0 }
 0x1b9   :  { %v3020_v10 = vld [vmem:[#allocation4 + $0xb0] sm:$0xff]  ;;  %v2510_v11 = vmax.f32 %v2172_v6, %v2368_v7  ;;  %1980 = vst.msk [vmem:[#allocation2 + $0x370] sm:$0xff] %vm1869_vm4, %v1440_v9  ;;  %v9673_v9 = vld [vmem:[%s15497_s3 + $0x88] sm:$0xff] }
 0x1ba   :  { %11195 = vmatprep.mubr.msk.f32.mxu1 %vm1869_vm4, %v3020_v10  ;;  %v5822_v12 = vld [vmem:[#allocation4 + $0xae] sm:$0xff] }
 0x1bb   :  { %11584 = vmatprep.mubr.msk.f32.mxu0 %vm1869_vm4, %v5822_v12  ;;  %2608 = vst.msk [vmem:[#allocation3 + $0x1a8] sm:$0xff] %vm1869_vm4, %v2510_v11  ;;  %v11022_v13 = vpop.f32.mrb[112].mxu0  ;;  %v2831_v47 = vld [vmem:[#allocation3 + $0x198] sm:$0xff]  ;;  %v9672_v7 = vld [vmem:[%s15497_s3 + $0x80] sm:$0xff] }
 0x1bc   :  { %v2174_v14 = vld [vmem:[#allocation2 + $0x360] ss:$2 sm:$0xff]  ;;  %v2370_v15 = vld [vmem:[#allocation2 + $0x361] ss:$2 sm:$0xff]  ;;  %1983 = vst.msk [vmem:[#allocation2 + $0x388] sm:$0xff] %vm1869_vm4, %v11022_v13  ;;  %v1450_v16 = vpop.f32.mrb[113].mxu0 }
 0x1bd   :  { %v3021_v17 = vld [vmem:[#allocation4 + $0xb8] sm:$0xff]  ;;  %v2511_v18 = vmax.f32 %v2174_v14, %v2370_v15  ;;  %1982 = vst.msk [vmem:[#allocation2 + $0x380] sm:$0xff] %vm1869_vm4, %v1450_v16  ;;  %v13536_v14 = vpack.c.bf16 %v9673_v9, %v9672_v7 }
 0x1be   :  { %11196 = vmatmul.mubr.msk.f32.gmra.mrb[30].mxu1 %vm1869_vm4, %v3021_v17  ;;  %v5823_v19 = vld [vmem:[#allocation4 + $0xb6] sm:$0xff]  ;;  %v2832_v49 = vld [vmem:[#allocation3 + $0x1a0] sm:$0xf] }
 0x1bf   :  { %11585 = vmatmul.mubr.msk.f32.gmra.mrb[206].mxu0 %vm1869_vm4, %v5823_v19  ;;  %2609 = vst.msk [vmem:[#allocation3 + $0x1b0] sm:$0xff] %vm1869_vm4, %v2511_v18  ;;  %v11025_v20 = vpop.f32.mrb[114].mxu0  ;;  %11966 = vmatprep.subr.bf16.mxu1 %v13536_v14 }
 0x1c0   :  { %v2176_v23 = vld [vmem:[#allocation2 + $0x370] ss:$2 sm:$0xff]  ;;  %v2372_v8 = vld [vmem:[#allocation2 + $0x371] ss:$2 sm:$0xff]  ;;  %1985 = vst.msk [vmem:[#allocation2 + $0x398] sm:$0xff] %vm1869_vm4, %v11025_v20  ;;  %v1460_v24 = vpop.f32.mrb[115].mxu0 }
 0x1c1   :  { %v2512_v27 = vmax.f32 %v2176_v23, %v2372_v8  ;;  %1984 = vst.msk [vmem:[#allocation2 + $0x390] sm:$0xff] %vm1869_vm4, %v1460_v24 }
 0x1c2   :  { %v2833_v29 = vld [vmem:[#allocation3 + $0x1a4] sm:$0xff] }
 0x1c3   :  { %2610 = vst.msk [vmem:[#allocation3 + $0x1b8] sm:$0xff] %vm1869_vm4, %v2512_v27  ;;  %v11028_v30 = vpop.f32.mrb[116].mxu0  ;;  %v2837_v31 = vmax.f32 %v2829_v28, %v2833_v29 }
 0x1c4   :  { %v2178_v32 = vld [vmem:[#allocation2 + $0x380] ss:$2 sm:$0xff]  ;;  %v2374_v33 = vld [vmem:[#allocation2 + $0x381] ss:$2 sm:$0xff]  ;;  %1987 = vst.msk [vmem:[#allocation2 + $0x3a8] sm:$0xff] %vm1869_vm4, %v11028_v30  ;;  %v1470_v34 = vpop.f32.mrb[117].mxu0 }
 0x1c5   :  { %v2513_v35 = vmax.f32 %v2178_v32, %v2374_v33  ;;  %1986 = vst.msk [vmem:[#allocation2 + $0x3a0] sm:$0xff] %vm1869_vm4, %v1470_v34  ;;  %v2841_v36 = vadd.f32 %v13365_v26, %v2837_v31  ;;  %v9922_v30 = vld [vmem:[%s15497_s3 + $0x1c0] sm:$0xff]  ;;  %v9923_v32 = vld [vmem:[%s15497_s3 + $0x1c8] sm:$0xff] }
 0x1c6   :  { %v2834_v38 = vld [vmem:[#allocation3 + $0x1ac] sm:$0xff] }
 0x1c7   :  { %2611 = vst.msk [vmem:[#allocation3 + $0x1c0] sm:$0xff] %vm1869_vm4, %v2513_v35  ;;  %v11031_v39 = vpop.f32.mrb[118].mxu0  ;;  %v2845_v40 = vmax.f32 %v2841_v36, 0.0  ;;  %v2838_v41 = vmax.f32 %v2830_v37, %v2834_v38  ;;  %v12045_v35 = vpack.c.bf16 %v9923_v32, %v9922_v30 }
 0x1c8   :  { %v2180_v42 = vld [vmem:[#allocation2 + $0x390] ss:$2 sm:$0xff]  ;;  %v2376_v43 = vld [vmem:[#allocation2 + $0x391] ss:$2 sm:$0xff]  ;;  %1989 = vst.msk [vmem:[#allocation2 + $0x3b8] sm:$0xff] %vm1869_vm4, %v11031_v39  ;;  %v1480_v44 = vpop.f32.mrb[119].mxu0 }
 0x1c9   :  { %v2514_v45 = vmax.f32 %v2180_v42, %v2376_v43  ;;  %1988 = vst.msk [vmem:[#allocation2 + $0x3b0] sm:$0xff] %vm1869_vm4, %v1480_v44  ;;  %2849 = vst.msk [vmem:[#allocation4 + $0xc4] sm:$0xff] %vm1869_vm4, %v2845_v40  ;;  %v2842_v46 = vadd.f32 %v13365_v26, %v2838_v41  ;;  %12046 = vmatprep.subr.bf16.mxu0 %v12045_v35  ;;  %v9924_v41 = vld [vmem:[%s15497_s3 + $0x1d0] sm:$0xff]  ;;  %v9925_v44 = vld [vmem:[%s15497_s3 + $0x1d8] sm:$0xff] }
 0x1ca   :  { %v2835_v48 = vld [vmem:[#allocation3 + $0x1b4] sm:$0xff]  ;;  %v2836_v50 = vld [vmem:[#allocation3 + $0x1bc] sm:$0xf]  ;;  %12048 = vmatpush3.bf16.msra.mxu0 %v12045_v35 }
 0x1cb   :  { %2612 = vst.msk [vmem:[#allocation3 + $0x1c8] sm:$0xff] %vm1869_vm4, %v2514_v45  ;;  %v11034_v51 = vpop.f32.mrb[120].mxu0  ;;  %v2846_v52 = vmax.f32 %v2842_v46, 0.0  ;;  %v2839_v53 = vmax.f32 %v2831_v47, %v2835_v48  ;;  %v2840_v54 = vmax.f32 %v2832_v49, %v2836_v50  ;;  %v12049_v47 = vpack.c.bf16 %v9925_v44, %v9924_v41 }
 0x1cc   :  { %v2182_v55 = vld [vmem:[#allocation2 + $0x3a0] ss:$2 sm:$0xff]  ;;  %v2378_v56 = vld [vmem:[#allocation2 + $0x3a1] ss:$2 sm:$0xff]  ;;  %1991 = vst.msk [vmem:[#allocation2 + $0x3c8] sm:$0xff] %vm1869_vm4, %v11034_v51  ;;  %v1490_v57 = vpop.f32.mrb[121].mxu0 }
 0x1cd   :  { %v2515_v58 = vmax.f32 %v2182_v55, %v2378_v56  ;;  %1990 = vst.msk [vmem:[#allocation2 + $0x3c0] sm:$0xff] %vm1869_vm4, %v1490_v57  ;;  %2850 = vst.msk [vmem:[#allocation4 + $0xcc] sm:$0xff] %vm1869_vm4, %v2846_v52  ;;  %v2843_v59 = vadd.f32 %v13365_v26, %v2839_v53  ;;  %v2844_v60 = vadd.f32 %v13365_v26, %v2840_v54  ;;  %12050 = vmatprep.subr.bf16.mxu0 %v12049_v47 }
 0x1ce   :  { %v2853_v33 = vld [vmem:[#allocation3 + $0x1c0] sm:$0xff]  ;;  %12052 = vmatpush3.bf16.msra.mxu0 %v12049_v47 }
 0x1cf   :  { %2613 = vst.msk [vmem:[#allocation3 + $0x1d0] sm:$0xff] %vm1869_vm4, %v2515_v58  ;;  %v11037_v61 = vpop.f32.mrb[122].mxu0  ;;  %v2847_v62 = vmax.f32 %v2843_v59, 0.0  ;;  %v2848_v63 = vmax.f32 %v2844_v60, 0.0  ;;  %v9926_v59 = vld [vmem:[%s15497_s3 + $0x1e0] sm:$0xff]  ;;  %v9927_v60 = vld [vmem:[%s15497_s3 + $0x1e8] sm:$0xff] }
 0x1d0   :  { %v2184_v0 = vld [vmem:[#allocation2 + $0x3b0] ss:$2 sm:$0xff]  ;;  %v2380_v1 = vld [vmem:[#allocation2 + $0x3b1] ss:$2 sm:$0xff]  ;;  %1993 = vst.msk [vmem:[#allocation2 + $0x3d8] sm:$0xff] %vm1869_vm4, %v11037_v61  ;;  %v1500_v2 = vpop.f32.mrb[123].mxu0 }
 0x1d1   :  { %v3022_v3 = vld [vmem:[#allocation4 + $0xc0] sm:$0xff]  ;;  %v2516_v4 = vmax.f32 %v2184_v0, %v2380_v1  ;;  %1992 = vst.msk [vmem:[#allocation2 + $0x3d0] sm:$0xff] %vm1869_vm4, %v1500_v2  ;;  %2851 = vst.msk [vmem:[#allocation4 + $0xd4] sm:$0xff] %vm1869_vm4, %v2847_v62  ;;  %v12053_v0 = vpack.c.bf16 %v9927_v60, %v9926_v59 }
 0x1d2   :  { %11198 = vmatprep.mubr.msk.f32.mxu1 %vm1869_vm4, %v3022_v3  ;;  %v5824_v5 = vld [vmem:[#allocation4 + $0xbe] sm:$0xff]  ;;  %2852 = vst.msk [vmem:[#allocation4 + $0xdc] sm:$0xf] %vm2683_vm5, %v2848_v63 }
 0x1d3   :  { %11587 = vmatprep.mubr.msk.f32.mxu0 %vm1869_vm4, %v5824_v5  ;;  %2614 = vst.msk [vmem:[#allocation3 + $0x1d8] sm:$0xff] %vm1869_vm4, %v2516_v4  ;;  %v11040_v6 = vpop.f32.mrb[124].mxu0  ;;  %v2854_v45 = vld [vmem:[#allocation3 + $0x1c8] sm:$0xff]  ;;  %12054 = vmatprep.subr.bf16.mxu0 %v12053_v0 }
 0x1d4   :  { %v2186_v10 = vld [vmem:[#allocation2 + $0x3c0] ss:$2 sm:$0xff]  ;;  %v2382_v11 = vld [vmem:[#allocation2 + $0x3c1] ss:$2 sm:$0xff]  ;;  %1995 = vst.msk [vmem:[#allocation2 + $0x3e8] sm:$0xff] %vm1869_vm4, %v11040_v6  ;;  %v1510_v12 = vpop.f32.mrb[125].mxu0  ;;  %12056 = vmatpush3.bf16.msra.mxu0 %v12053_v0 }
 0x1d5   :  { %v3023_v13 = vld [vmem:[#allocation4 + $0xc8] sm:$0xff]  ;;  %v2517_v15 = vmax.f32 %v2186_v10, %v2382_v11  ;;  %1994 = vst.msk [vmem:[#allocation2 + $0x3e0] sm:$0xff] %vm1869_vm4, %v1510_v12  ;;  %v9928_v12 = vld [vmem:[%s15497_s3 + $0x1f0] sm:$0xff] }
 0x1d6   :  { %11199 = vmatmul.mubr.msk.f32.gmra.mrb[32].mxu1 %vm1869_vm4, %v3023_v13  ;;  %v5825_v16 = vld [vmem:[#allocation4 + $0xc6] sm:$0xff] }
 0x1d7   :  { %11588 = vmatmul.mubr.msk.f32.gmra.mrb[208].mxu0 %vm1869_vm4, %v5825_v16  ;;  %2615 = vst.msk [vmem:[#allocation3 + $0x1e0] sm:$0xff] %vm1869_vm4, %v2517_v15  ;;  %v11043_v17 = vpop.f32.mrb[126].mxu0  ;;  %v2855_v58 = vld [vmem:[#allocation3 + $0x1d0] sm:$0xff]  ;;  %v9929_v13 = vld [vmem:[%s15497_s3 + $0x1f8] sm:$0xff] }
 0x1d8   :  { %v2188_v18 = vld [vmem:[#allocation2 + $0x3d0] ss:$2 sm:$0xff]  ;;  %v2384_v19 = vld [vmem:[#allocation2 + $0x3d1] ss:$2 sm:$0xff]  ;;  %1997 = vst.msk [vmem:[#allocation2 + $0x3f8] sm:$0xff] %vm1869_vm4, %v11043_v17  ;;  %v1520_v20 = vpop.f32.mrb[127].mxu0  ;;  %v12057_v15 = vpack.c.bf16 %v9929_v13, %v9928_v12 }
 0x1d9   :  { %v3024_v21 = vld [vmem:[#allocation4 + $0xd0] sm:$0xff]  ;;  %v2518_v22 = vmax.f32 %v2188_v18, %v2384_v19  ;;  %1996 = vst.msk [vmem:[#allocation2 + $0x3f0] sm:$0xff] %vm1869_vm4, %v1520_v20  ;;  %v3025_v8 = vld [vmem:[#allocation4 + $0xd8] sm:$0xff] }
 0x1da   :  { %11201 = vmatprep.mubr.msk.f32.mxu1 %vm1869_vm4, %v3024_v21  ;;  %v5826_v23 = vld [vmem:[#allocation4 + $0xce] sm:$0xff]  ;;  %v5827_v24 = vld [vmem:[#allocation4 + $0xd6] sm:$0xff]  ;;  %v2856_v62 = vld [vmem:[#allocation3 + $0x1d8] sm:$0xf]  ;;  %12058 = vmatprep.subr.bf16.mxu0 %v12057_v15 }
 0x1db   :  { %11590 = vmatprep.mubr.msk.f32.mxu0 %vm1869_vm4, %v5826_v23  ;;  %11202 = vmatmul.mubr.msk.f32.gmra.mrb[34].mxu1 %vm1869_vm4, %v3025_v8  ;;  %2616 = vst.msk [vmem:[#allocation3 + $0x1e8] sm:$0xff] %vm1869_vm4, %v2518_v22  ;;  %v11046_v25 = vpop.f32.mrb[128].mxu0 }
 0x1dc   :  { %11591 = vmatmul.mubr.msk.f32.gmra.mrb[210].mxu0 %vm1869_vm4, %v5827_v24  ;;  %v2190_v27 = vld [vmem:[#allocation2 + $0x3e0] ss:$2 sm:$0xff]  ;;  %v2386_v28 = vld [vmem:[#allocation2 + $0x3e1] ss:$2 sm:$0xff]  ;;  %1999 = vst.msk [vmem:[#allocation2 + $0x408] sm:$0xff] %vm1869_vm4, %v11046_v25  ;;  %v1530_v29 = vpop.f32.mrb[129].mxu0 }
 0x1dd   :  { %v2519_v31 = vmax.f32 %v2190_v27, %v2386_v28  ;;  %1998 = vst.msk [vmem:[#allocation2 + $0x400] sm:$0xff] %vm1869_vm4, %v1530_v29  ;;  %12060 = vmatpush3.bf16.msra.mxu0 %v12057_v15 }
 0x1de   :  { %v2857_v34 = vld [vmem:[#allocation3 + $0x1dc] sm:$0xff] }
 0x1df   :  { %2617 = vst.msk [vmem:[#allocation3 + $0x1f0] sm:$0xff] %vm1869_vm4, %v2519_v31  ;;  %v11049_v36 = vpop.f32.mrb[130].mxu0  ;;  %v2861_v37 = vmax.f32 %v2853_v33, %v2857_v34 }
 0x1e0   :  { %v2192_v38 = vld [vmem:[#allocation2 + $0x3f0] ss:$2 sm:$0xff]  ;;  %v2388_v39 = vld [vmem:[#allocation2 + $0x3f1] ss:$2 sm:$0xff]  ;;  %2001 = vst.msk [vmem:[#allocation2 + $0x418] sm:$0xff] %vm1869_vm4, %v11049_v36  ;;  %v1540_v40 = vpop.f32.mrb[131].mxu0 }
 0x1e1   :  { %v2520_v42 = vmax.f32 %v2192_v38, %v2388_v39  ;;  %2000 = vst.msk [vmem:[#allocation2 + $0x410] sm:$0xff] %vm1869_vm4, %v1540_v40  ;;  %v2865_v43 = vadd.f32 %v13365_v26, %v2861_v37 }
 0x1e2   :  { %v2858_v46 = vld [vmem:[#allocation3 + $0x1e4] sm:$0xff] }
 0x1e3   :  { %2618 = vst.msk [vmem:[#allocation3 + $0x1f8] sm:$0xff] %vm1869_vm4, %v2520_v42  ;;  %v11052_v48 = vpop.f32.mrb[132].mxu0  ;;  %v2869_v49 = vmax.f32 %v2865_v43, 0.0  ;;  %v2862_v50 = vmax.f32 %v2854_v45, %v2858_v46 }
 0x1e4   :  { %v2194_v51 = vld [vmem:[#allocation2 + $0x400] ss:$2 sm:$0xff]  ;;  %v2390_v52 = vld [vmem:[#allocation2 + $0x401] ss:$2 sm:$0xff]  ;;  %2003 = vst.msk [vmem:[#allocation2 + $0x428] sm:$0xff] %vm1869_vm4, %v11052_v48  ;;  %v1550_v53 = vpop.f32.mrb[133].mxu0 }
 0x1e5   :  { %v11164_v54 = vpop.f32.mrb[8].mxu1  ;;  %v2521_v55 = vmax.f32 %v2194_v51, %v2390_v52  ;;  %2002 = vst.msk [vmem:[#allocation2 + $0x420] sm:$0xff] %vm1869_vm4, %v1550_v53  ;;  %2873 = vst.msk [vmem:[#allocation4 + $0xe0] sm:$0xff] %vm1869_vm4, %v2869_v49  ;;  %v2866_v57 = vadd.f32 %v13365_v26, %v2862_v50  ;;  %v13620_v53 = vld [vmem:[%s15496_s2] ss:$0 sm:$0xff] }
 0x1e6   :  { %3451 = vst.msk [vmem:[#allocation5 + $0x8] sm:$0xff] %vm3449_vm6, %v11164_v54  ;;  %v3240_v56 = vpop.f32.mrb[9].mxu1  ;;  %v2859_v61 = vld [vmem:[#allocation3 + $0x1ec] sm:$0xff]  ;;  %v2860_v63 = vld [vmem:[#allocation3 + $0x1f4] sm:$0xf] }
 0x1e7   :  { %3450 = vst.msk [vmem:[#allocation5] sm:$0xff] %vm3449_vm6, %v3240_v56  ;;  %v11055_v1 = vpop.f32.mrb[134].mxu0  ;;  %v2870_v2 = vmax.f32 %v2866_v57, 0.0  ;;  %v2863_v3 = vmax.f32 %v2855_v58, %v2859_v61  ;;  %v2864_v4 = vmax.f32 %v2856_v62, %v2860_v63 }
 0x1e8   :  { %2619 = vst.msk [vmem:[#allocation3 + $0x200] sm:$0xff] %vm1869_vm4, %v2521_v55  ;;  %v2196_v5 = vld [vmem:[#allocation2 + $0x410] ss:$2 sm:$0xff]  ;;  %v2392_v6 = vld [vmem:[#allocation2 + $0x411] ss:$2 sm:$0xff]  ;;  %2005 = vst.msk [vmem:[#allocation2 + $0x438] sm:$0xff] %vm1869_vm4, %v11055_v1 }
 0x1e9   :  { %v1560_v7 = vpop.f32.mrb[135].mxu0  ;;  %v2522_v9 = vmax.f32 %v2196_v5, %v2392_v6  ;;  %2874 = vst.msk [vmem:[#allocation4 + $0xe8] sm:$0xff] %vm1869_vm4, %v2870_v2  ;;  %v2867_v10 = vadd.f32 %v13365_v26, %v2863_v3  ;;  %v2868_v11 = vadd.f32 %v13365_v26, %v2864_v4 }
 0x1ea   :  { %2004 = vst.msk [vmem:[#allocation2 + $0x430] sm:$0xff] %vm1869_vm4, %v1560_v7  ;;  %v2877_v43 = vld [vmem:[#allocation3 + $0x1f8] sm:$0xff] }
 0x1eb   :  { %2620 = vst.msk [vmem:[#allocation3 + $0x208] sm:$0xff] %vm1869_vm4, %v2522_v9  ;;  %v11058_v16 = vpop.f32.mrb[136].mxu0  ;;  %v2871_v17 = vmax.f32 %v2867_v10, 0.0  ;;  %v2872_v18 = vmax.f32 %v2868_v11, 0.0 }
 0x1ec   :  { %v2198_v19 = vld [vmem:[#allocation2 + $0x420] ss:$2 sm:$0xff]  ;;  %v2394_v20 = vld [vmem:[#allocation2 + $0x421] ss:$2 sm:$0xff]  ;;  %2007 = vst.msk [vmem:[#allocation2 + $0x448] sm:$0xff] %vm1869_vm4, %v11058_v16  ;;  %v1570_v26 = vpop.f32.mrb[137].mxu0 }
 0x1ed   :  { %v3026_v21 = vld [vmem:[#allocation4 + $0xe0] sm:$0xff]  ;;  %v2523_v22 = vmax.f32 %v2198_v19, %v2394_v20  ;;  %2006 = vst.msk [vmem:[#allocation2 + $0x440] sm:$0xff] %vm1869_vm4, %v1570_v26  ;;  %2875 = vst.msk [vmem:[#allocation4 + $0xf0] sm:$0xff] %vm1869_vm4, %v2871_v17 }
 0x1ee   :  { %11204 = vmatprep.mubr.msk.f32.mxu1 %vm1869_vm4, %v3026_v21  ;;  %v5828_v23 = vld [vmem:[#allocation4 + $0xde] sm:$0xff]  ;;  %2876 = vst.msk [vmem:[#allocation4 + $0xf8] sm:$0xf] %vm2683_vm5, %v2872_v18 }
 0x1ef   :  { %11593 = vmatprep.mubr.msk.f32.mxu0 %vm1869_vm4, %v5828_v23  ;;  %2621 = vst.msk [vmem:[#allocation3 + $0x210] sm:$0xff] %vm1869_vm4, %v2523_v22  ;;  %v11061_v8 = vpop.f32.mrb[138].mxu0  ;;  %v2878_v55 = vld [vmem:[#allocation3 + $0x200] sm:$0xff] }
 0x1f0   :  { %2009 = vst.msk [vmem:[#allocation2 + $0x458] sm:$0xff] %vm1869_vm4, %v11061_v8  ;;  %v1580_v27 = vpop.f32.mrb[139].mxu0  ;;  %v3027_v28 = vld [vmem:[#allocation4 + $0xe8] sm:$0xff] }
 0x1f1   :  { %v2200_v24 = vld [vmem:[#allocation2 + $0x430] ss:$2 sm:$0xff]  ;;  %v2396_v25 = vld [vmem:[#allocation2 + $0x431] ss:$2 sm:$0xff]  ;;  %2008 = vst.msk [vmem:[#allocation2 + $0x450] sm:$0xff] %vm1869_vm4, %v1580_v27  ;;  %11205 = vmatmul.mubr.msk.f32.gmra.mrb[36].mxu1 %vm1869_vm4, %v3027_v28 }
 0x1f2   :  { %v2524_v29 = vmax.f32 %v2200_v24, %v2396_v25  ;;  %v5829_v30 = vld [vmem:[#allocation4 + $0xe6] sm:$0xff]  ;;  %v2879_v1 = vld [vmem:[#allocation3 + $0x208] sm:$0xff] }
 0x1f3   :  { %11594 = vmatmul.mubr.msk.f32.gmra.mrb[212].mxu0 %vm1869_vm4, %v5829_v30  ;;  %v11064_v31 = vpop.f32.mrb[140].mxu0 }
 0x1f4   :  { %2622 = vst.msk [vmem:[#allocation3 + $0x218] sm:$0xff] %vm1869_vm4, %v2524_v29  ;;  %v2202_v32 = vld [vmem:[#allocation2 + $0x440] ss:$2 sm:$0xff]  ;;  %v2398_v33 = vld [vmem:[#allocation2 + $0x441] ss:$2 sm:$0xff]  ;;  %2011 = vst.msk [vmem:[#allocation2 + $0x468] sm:$0xff] %vm1869_vm4, %v11064_v31 }
 0x1f5   :  { %v1590_v34 = vpop.f32.mrb[141].mxu0  ;;  %v3028_v35 = vld [vmem:[#allocation4 + $0xf0] sm:$0xff]  ;;  %v2525_v36 = vmax.f32 %v2202_v32, %v2398_v33 }
 0x1f6   :  { %2010 = vst.msk [vmem:[#allocation2 + $0x460] sm:$0xff] %vm1869_vm4, %v1590_v34  ;;  %11207 = vmatprep.mubr.msk.f32.mxu1 %vm1869_vm4, %v3028_v35  ;;  %v5830_v37 = vld [vmem:[#allocation4 + $0xee] sm:$0xff]  ;;  %v2880_v3 = vld [vmem:[#allocation3 + $0x210] sm:$0xf] }
 0x1f7   :  { %11596 = vmatprep.mubr.msk.f32.mxu0 %vm1869_vm4, %v5830_v37  ;;  %2623 = vst.msk [vmem:[#allocation3 + $0x220] sm:$0xff] %vm1869_vm4, %v2525_v36  ;;  %v11067_v38 = vpop.f32.mrb[142].mxu0 }
 0x1f8   :  { %v2204_v39 = vld [vmem:[#allocation2 + $0x450] ss:$2 sm:$0xff]  ;;  %v2400_v40 = vld [vmem:[#allocation2 + $0x451] ss:$2 sm:$0xff]  ;;  %2013 = vst.msk [vmem:[#allocation2 + $0x478] sm:$0xff] %vm1869_vm4, %v11067_v38  ;;  %v1600_v41 = vpop.f32.mrb[143].mxu0 }
 0x1f9   :  { %v2526_v42 = vmax.f32 %v2204_v39, %v2400_v40  ;;  %2012 = vst.msk [vmem:[#allocation2 + $0x470] sm:$0xff] %vm1869_vm4, %v1600_v41 }
 0x1fb   :  { %v2881_v44 = vld [vmem:[#allocation3 + $0x214] sm:$0xff]  ;;  %2624 = vst.msk [vmem:[#allocation3 + $0x228] sm:$0xff] %vm1869_vm4, %v2526_v42  ;;  %v11070_v45 = vpop.f32.mrb[144].mxu0 }
 0x1fc   :  { %v2885_v46 = vmax.f32 %v2877_v43, %v2881_v44  ;;  %2015 = vst.msk [vmem:[#allocation2 + $0x488] sm:$0xff] %vm1869_vm4, %v11070_v45  ;;  %v1610_v49 = vpop.f32.mrb[145].mxu0 }
 0x1fd   :  { %v2206_v47 = vld [vmem:[#allocation2 + $0x460] ss:$2 sm:$0xff]  ;;  %v2402_v48 = vld [vmem:[#allocation2 + $0x461] ss:$2 sm:$0xff]  ;;  %v11167_v50 = vpop.f32.mrb[10].mxu1  ;;  %2014 = vst.msk [vmem:[#allocation2 + $0x480] sm:$0xff] %vm1869_vm4, %v1610_v49 }
 0x1fe   :  { %v2527_v51 = vmax.f32 %v2206_v47, %v2402_v48  ;;  %3453 = vst.msk [vmem:[#allocation5 + $0x18] sm:$0xff] %vm3449_vm6, %v11167_v50  ;;  %v3250_v52 = vpop.f32.mrb[11].mxu1  ;;  %v2889_v54 = vadd.f32 %v13620_v53, %v2885_v46  ;;  %v2882_v56 = vld [vmem:[#allocation3 + $0x21c] sm:$0xff] }
 0x1ff   :  { %3452 = vst.msk [vmem:[#allocation5 + $0x10] sm:$0xff] %vm3449_vm6, %v3250_v52  ;;  %v11073_v57 = vpop.f32.mrb[146].mxu0  ;;  %v2886_v59 = vmax.f32 %v2878_v55, %v2882_v56 }
 0x200   :  { %2625 = vst.msk [vmem:[#allocation3 + $0x230] sm:$0xff] %vm1869_vm4, %v2527_v51  ;;  %v2893_v58 = vmax.f32 %v2889_v54, 0.0  ;;  %v2208_v60 = vld [vmem:[#allocation2 + $0x470] ss:$2 sm:$0xff]  ;;  %v2404_v61 = vld [vmem:[#allocation2 + $0x471] ss:$2 sm:$0xff] }
 0x201   :  { %2017 = vst.msk [vmem:[#allocation2 + $0x498] sm:$0xff] %vm1869_vm4, %v11073_v57  ;;  %v1620_v62 = vpop.f32.mrb[147].mxu0  ;;  %v2528_v63 = vmax.f32 %v2208_v60, %v2404_v61  ;;  %v2890_v0 = vadd.f32 %v13620_v53, %v2886_v59 }
 0x202   :  { %2016 = vst.msk [vmem:[#allocation2 + $0x490] sm:$0xff] %vm1869_vm4, %v1620_v62  ;;  %2897 = vst.msk [vmem:[#allocation4 + $0xfc] sm:$0xff] %vm1869_vm4, %v2893_v58  ;;  %v2883_v2 = vld [vmem:[#allocation3 + $0x224] sm:$0xff]  ;;  %v2884_v4 = vld [vmem:[#allocation3 + $0x22c] sm:$0xf] }
 0x203   :  { %2626 = vst.msk [vmem:[#allocation3 + $0x238] sm:$0xff] %vm1869_vm4, %v2528_v63  ;;  %v11076_v5 = vpop.f32.mrb[148].mxu0  ;;  %v2894_v6 = vmax.f32 %v2890_v0, 0.0  ;;  %v2887_v7 = vmax.f32 %v2879_v1, %v2883_v2  ;;  %v2888_v9 = vmax.f32 %v2880_v3, %v2884_v4 }
 0x204   :  { %v2210_v10 = vld [vmem:[#allocation2 + $0x480] ss:$2 sm:$0xff]  ;;  %v2406_v11 = vld [vmem:[#allocation2 + $0x481] ss:$2 sm:$0xff]  ;;  %2019 = vst.msk [vmem:[#allocation2 + $0x4a8] sm:$0xff] %vm1869_vm4, %v11076_v5  ;;  %v1630_v12 = vpop.f32.mrb[149].mxu0 }
 0x205   :  { %v11170_v13 = vpop.f32.mrb[12].mxu1  ;;  %v2529_v15 = vmax.f32 %v2210_v10, %v2406_v11  ;;  %2018 = vst.msk [vmem:[#allocation2 + $0x4a0] sm:$0xff] %vm1869_vm4, %v1630_v12  ;;  %2898 = vst.msk [vmem:[#allocation4 + $0x104] sm:$0xff] %vm1869_vm4, %v2894_v6  ;;  %v2891_v17 = vadd.f32 %v13620_v53, %v2887_v7  ;;  %v2892_v18 = vadd.f32 %v13620_v53, %v2888_v9 }
 0x206   :  { %3455 = vst.msk [vmem:[#allocation5 + $0x28] sm:$0xff] %vm3449_vm6, %v11170_v13  ;;  %v3260_v16 = vpop.f32.mrb[13].mxu1 }
 0x207   :  { %3454 = vst.msk [vmem:[#allocation5 + $0x20] sm:$0xff] %vm3449_vm6, %v3260_v16  ;;  %v11079_v19 = vpop.f32.mrb[150].mxu0  ;;  %v2895_v20 = vmax.f32 %v2891_v17, 0.0  ;;  %v2896_v26 = vmax.f32 %v2892_v18, 0.0  ;;  %v2901_v48 = vld [vmem:[#allocation3 + $0x230] sm:$0xff] }
 0x208   :  { %2627 = vst.msk [vmem:[#allocation3 + $0x240] sm:$0xff] %vm1869_vm4, %v2529_v15  ;;  %2021 = vst.msk [vmem:[#allocation2 + $0x4b8] sm:$0xff] %vm1869_vm4, %v11079_v19  ;;  %v1640_v23 = vpop.f32.mrb[151].mxu0 }
 0x209   :  { %v2212_v21 = vld [vmem:[#allocation2 + $0x490] ss:$2 sm:$0xff]  ;;  %v2408_v22 = vld [vmem:[#allocation2 + $0x491] ss:$2 sm:$0xff]  ;;  %v3029_v8 = vld [vmem:[#allocation4 + $0xf8] sm:$0xff]  ;;  %2020 = vst.msk [vmem:[#allocation2 + $0x4b0] sm:$0xff] %vm1869_vm4, %v1640_v23 }
 0x20a   :  { %v2530_v24 = vmax.f32 %v2212_v21, %v2408_v22  ;;  %11208 = vmatmul.mubr.msk.f32.gmra.mrb[38].mxu1 %vm1869_vm4, %v3029_v8  ;;  %v5831_v25 = vld [vmem:[#allocation4 + $0xf6] sm:$0xff]  ;;  %2899 = vst.msk [vmem:[#allocation4 + $0x10c] sm:$0xff] %vm1869_vm4, %v2895_v20  ;;  %v2902_v60 = vld [vmem:[#allocation3 + $0x238] sm:$0xff] }
 0x20b   :  { %2900 = vst.msk [vmem:[#allocation4 + $0x114] sm:$0xf] %vm2683_vm5, %v2896_v26  ;;  %11597 = vmatmul.mubr.msk.f32.gmra.mrb[214].mxu0 %vm1869_vm4, %v5831_v25  ;;  %v11082_v27 = vpop.f32.mrb[152].mxu0 }
 0x20c   :  { %2628 = vst.msk [vmem:[#allocation3 + $0x248] sm:$0xff] %vm1869_vm4, %v2530_v24  ;;  %v2214_v28 = vld [vmem:[#allocation2 + $0x4a0] ss:$2 sm:$0xff]  ;;  %v2410_v29 = vld [vmem:[#allocation2 + $0x4a1] ss:$2 sm:$0xff]  ;;  %2023 = vst.msk [vmem:[#allocation2 + $0x4c8] sm:$0xff] %vm1869_vm4, %v11082_v27 }
 0x20d   :  { %v1650_v30 = vpop.f32.mrb[153].mxu0  ;;  %v3030_v31 = vld [vmem:[#allocation4 + $0x100] sm:$0xff]  ;;  %v2531_v32 = vmax.f32 %v2214_v28, %v2410_v29 }
 0x20e   :  { %2022 = vst.msk [vmem:[#allocation2 + $0x4c0] sm:$0xff] %vm1869_vm4, %v1650_v30  ;;  %11210 = vmatprep.mubr.msk.f32.mxu1 %vm1869_vm4, %v3030_v31  ;;  %v5832_v33 = vld [vmem:[#allocation4 + $0xfe] sm:$0xff] }
 0x20f   :  { %11599 = vmatprep.mubr.msk.f32.mxu0 %vm1869_vm4, %v5832_v33  ;;  %2629 = vst.msk [vmem:[#allocation3 + $0x250] sm:$0xff] %vm1869_vm4, %v2531_v32  ;;  %v11085_v34 = vpop.f32.mrb[154].mxu0  ;;  %v2903_v6 = vld [vmem:[#allocation3 + $0x240] sm:$0xff] }
 0x210   :  { %v2216_v35 = vld [vmem:[#allocation2 + $0x4b0] ss:$2 sm:$0xff]  ;;  %v2412_v36 = vld [vmem:[#allocation2 + $0x4b1] ss:$2 sm:$0xff]  ;;  %2025 = vst.msk [vmem:[#allocation2 + $0x4d8] sm:$0xff] %vm1869_vm4, %v11085_v34  ;;  %v1660_v37 = vpop.f32.mrb[155].mxu0 }
 0x211   :  { %v3031_v38 = vld [vmem:[#allocation4 + $0x108] sm:$0xff]  ;;  %v2532_v39 = vmax.f32 %v2216_v35, %v2412_v36  ;;  %2024 = vst.msk [vmem:[#allocation2 + $0x4d0] sm:$0xff] %vm1869_vm4, %v1660_v37 }
 0x212   :  { %11211 = vmatmul.mubr.msk.f32.gmra.mrb[40].mxu1 %vm1869_vm4, %v3031_v38  ;;  %v5833_v40 = vld [vmem:[#allocation4 + $0x106] sm:$0xff]  ;;  %v3032_v41 = vld [vmem:[#allocation4 + $0x110] sm:$0xff] }
 0x213   :  { %v5834_v42 = vld [vmem:[#allocation4 + $0x10e] sm:$0xff]  ;;  %11600 = vmatmul.mubr.msk.f32.gmra.mrb[216].mxu0 %vm1869_vm4, %v5833_v40  ;;  %11213 = vmatprep.mubr.msk.f32.mxu1 %vm1869_vm4, %v3032_v41  ;;  %2630 = vst.msk [vmem:[#allocation3 + $0x258] sm:$0xff] %vm1869_vm4, %v2532_v39  ;;  %v11088_v43 = vpop.f32.mrb[156].mxu0  ;;  %v2904_v9 = vld [vmem:[#allocation3 + $0x248] sm:$0xf] }
 0x214   :  { %11602 = vmatprep.mubr.msk.f32.mxu0 %vm1869_vm4, %v5834_v42  ;;  %2027 = vst.msk [vmem:[#allocation2 + $0x4e8] sm:$0xff] %vm1869_vm4, %v11088_v43  ;;  %v1670_v46 = vpop.f32.mrb[157].mxu0 }
 0x215   :  { %v2218_v44 = vld [vmem:[#allocation2 + $0x4c0] ss:$2 sm:$0xff]  ;;  %v2414_v45 = vld [vmem:[#allocation2 + $0x4c1] ss:$2 sm:$0xff]  ;;  %2026 = vst.msk [vmem:[#allocation2 + $0x4e0] sm:$0xff] %vm1869_vm4, %v1670_v46 }
 0x216   :  { %v2533_v47 = vmax.f32 %v2218_v44, %v2414_v45  ;;  %v2905_v49 = vld [vmem:[#allocation3 + $0x24c] sm:$0xff] }
 0x217   :  { %v11091_v50 = vpop.f32.mrb[158].mxu0  ;;  %v2909_v51 = vmax.f32 %v2901_v48, %v2905_v49 }
 0x218   :  { %2631 = vst.msk [vmem:[#allocation3 + $0x260] sm:$0xff] %vm1869_vm4, %v2533_v47  ;;  %v2220_v52 = vld [vmem:[#allocation2 + $0x4d0] ss:$2 sm:$0xff]  ;;  %v2416_v54 = vld [vmem:[#allocation2 + $0x4d1] ss:$2 sm:$0xff]  ;;  %2029 = vst.msk [vmem:[#allocation2 + $0x4f8] sm:$0xff] %vm1869_vm4, %v11091_v50 }
 0x219   :  { %v1680_v55 = vpop.f32.mrb[159].mxu0  ;;  %v11173_v56 = vpop.f32.mrb[14].mxu1  ;;  %v2534_v57 = vmax.f32 %v2220_v52, %v2416_v54  ;;  %v2913_v59 = vadd.f32 %v13620_v53, %v2909_v51 }
 0x21a   :  { %2028 = vst.msk [vmem:[#allocation2 + $0x4f0] sm:$0xff] %vm1869_vm4, %v1680_v55  ;;  %v3270_v58 = vpop.f32.mrb[15].mxu1  ;;  %v2906_v61 = vld [vmem:[#allocation3 + $0x254] sm:$0xff] }
 0x21b   :  { %3457 = vst.msk [vmem:[#allocation5 + $0x38] sm:$0xff] %vm3449_vm6, %v11173_v56  ;;  %3456 = vst.msk [vmem:[#allocation5 + $0x30] sm:$0xff] %vm3449_vm6, %v3270_v58  ;;  %v11094_v62 = vpop.f32.mrb[160].mxu0  ;;  %v2917_v63 = vmax.f32 %v2913_v59, 0.0  ;;  %v2910_v0 = vmax.f32 %v2902_v60, %v2906_v61 }
 0x21c   :  { %2632 = vst.msk [vmem:[#allocation3 + $0x268] sm:$0xff] %vm1869_vm4, %v2534_v57  ;;  %v2222_v1 = vld [vmem:[#allocation2 + $0x4e0] ss:$2 sm:$0xff]  ;;  %v2418_v2 = vld [vmem:[#allocation2 + $0x4e1] ss:$2 sm:$0xff]  ;;  %2031 = vst.msk [vmem:[#allocation2 + $0x508] sm:$0xff] %vm1869_vm4, %v11094_v62 }
 0x21d   :  { %v1690_v3 = vpop.f32.mrb[161].mxu0  ;;  %v2535_v4 = vmax.f32 %v2222_v1, %v2418_v2  ;;  %2921 = vst.msk [vmem:[#allocation4 + $0x118] sm:$0xff] %vm1869_vm4, %v2917_v63  ;;  %v2914_v5 = vadd.f32 %v13620_v53, %v2910_v0 }
 0x21e   :  { %2030 = vst.msk [vmem:[#allocation2 + $0x500] sm:$0xff] %vm1869_vm4, %v1690_v3 }
 0x21f   :  { %v2907_v7 = vld [vmem:[#allocation3 + $0x25c] sm:$0xff]  ;;  %v2908_v10 = vld [vmem:[#allocation3 + $0x264] sm:$0xf]  ;;  %2633 = vst.msk [vmem:[#allocation3 + $0x270] sm:$0xff] %vm1869_vm4, %v2535_v4  ;;  %v11097_v11 = vpop.f32.mrb[162].mxu0  ;;  %v2918_v12 = vmax.f32 %v2914_v5, 0.0 }
 0x220   :  { %v2911_v13 = vmax.f32 %v2903_v6, %v2907_v7  ;;  %v2912_v15 = vmax.f32 %v2904_v9, %v2908_v10  ;;  %2033 = vst.msk [vmem:[#allocation2 + $0x518] sm:$0xff] %vm1869_vm4, %v11097_v11  ;;  %v1700_v18 = vpop.f32.mrb[163].mxu0 }
 0x221   :  { %v2224_v16 = vld [vmem:[#allocation2 + $0x4f0] ss:$2 sm:$0xff]  ;;  %v2420_v17 = vld [vmem:[#allocation2 + $0x4f1] ss:$2 sm:$0xff]  ;;  %v11176_v19 = vpop.f32.mrb[16].mxu1  ;;  %2032 = vst.msk [vmem:[#allocation2 + $0x510] sm:$0xff] %vm1869_vm4, %v1700_v18 }
 0x222   :  { %v2536_v20 = vmax.f32 %v2224_v16, %v2420_v17  ;;  %3459 = vst.msk [vmem:[#allocation5 + $0x48] sm:$0xff] %vm3449_vm6, %v11176_v19  ;;  %v3280_v26 = vpop.f32.mrb[17].mxu1  ;;  %v2915_v21 = vadd.f32 %v13620_v53, %v2911_v13  ;;  %v2916_v22 = vadd.f32 %v13620_v53, %v2912_v15 }
 0x223   :  { %2922 = vst.msk [vmem:[#allocation4 + $0x120] sm:$0xff] %vm1869_vm4, %v2918_v12  ;;  %v11100_v23 = vpop.f32.mrb[164].mxu0  ;;  %v2925_v51 = vld [vmem:[#allocation3 + $0x268] sm:$0xff] }
 0x224   :  { %3458 = vst.msk [vmem:[#allocation5 + $0x40] sm:$0xff] %vm3449_vm6, %v3280_v26  ;;  %v2919_v8 = vmax.f32 %v2915_v21, 0.0  ;;  %v2920_v24 = vmax.f32 %v2916_v22, 0.0  ;;  %v1710_v28 = vpop.f32.mrb[165].mxu0  ;;  %v3033_v29 = vld [vmem:[#allocation4 + $0x118] sm:$0xff] }
 0x225   :  { %2634 = vst.msk [vmem:[#allocation3 + $0x278] sm:$0xff] %vm1869_vm4, %v2536_v20  ;;  %v2226_v25 = vld [vmem:[#allocation2 + $0x500] ss:$2 sm:$0xff]  ;;  %v2422_v27 = vld [vmem:[#allocation2 + $0x501] ss:$2 sm:$0xff]  ;;  %2035 = vst.msk [vmem:[#allocation2 + $0x528] sm:$0xff] %vm1869_vm4, %v11100_v23  ;;  %11214 = vmatmul.mubr.msk.f32.gmra.mrb[42].mxu1 %vm1869_vm4, %v3033_v29 }
 0x226   :  { %v2537_v30 = vmax.f32 %v2226_v25, %v2422_v27  ;;  %2034 = vst.msk [vmem:[#allocation2 + $0x520] sm:$0xff] %vm1869_vm4, %v1710_v28  ;;  %v5835_v31 = vld [vmem:[#allocation4 + $0x116] sm:$0xff]  ;;  %2923 = vst.msk [vmem:[#allocation4 + $0x128] sm:$0xff] %vm1869_vm4, %v2919_v8  ;;  %v2926_v61 = vld [vmem:[#allocation3 + $0x270] sm:$0xff] }
 0x227   :  { %2924 = vst.msk [vmem:[#allocation4 + $0x130] sm:$0xf] %vm2683_vm5, %v2920_v24  ;;  %11603 = vmatmul.mubr.msk.f32.gmra.mrb[218].mxu0 %vm1869_vm4, %v5835_v31  ;;  %v11103_v32 = vpop.f32.mrb[166].mxu0 }
 0x228   :  { %2635 = vst.msk [vmem:[#allocation3 + $0x280] sm:$0xff] %vm1869_vm4, %v2537_v30  ;;  %v2228_v33 = vld [vmem:[#allocation2 + $0x510] ss:$2 sm:$0xff]  ;;  %v2424_v34 = vld [vmem:[#allocation2 + $0x511] ss:$2 sm:$0xff]  ;;  %2037 = vst.msk [vmem:[#allocation2 + $0x538] sm:$0xff] %vm1869_vm4, %v11103_v32 }
 0x229   :  { %v1720_v35 = vpop.f32.mrb[167].mxu0  ;;  %v2538_v37 = vmax.f32 %v2228_v33, %v2424_v34 }
 0x22a   :  { %v3034_v36 = vld [vmem:[#allocation4 + $0x120] sm:$0xff]  ;;  %2036 = vst.msk [vmem:[#allocation2 + $0x530] sm:$0xff] %vm1869_vm4, %v1720_v35 }
 0x22b   :  { %11216 = vmatprep.mubr.msk.f32.mxu1 %vm1869_vm4, %v3034_v36  ;;  %v5836_v38 = vld [vmem:[#allocation4 + $0x11e] sm:$0xff]  ;;  %2636 = vst.msk [vmem:[#allocation3 + $0x288] sm:$0xff] %vm1869_vm4, %v2538_v37  ;;  %v11106_v39 = vpop.f32.mrb[168].mxu0 }
 0x22c   :  { %11605 = vmatprep.mubr.msk.f32.mxu0 %vm1869_vm4, %v5836_v38  ;;  %2039 = vst.msk [vmem:[#allocation2 + $0x548] sm:$0xff] %vm1869_vm4, %v11106_v39  ;;  %v1730_v43 = vpop.f32.mrb[169].mxu0  ;;  %v2927_v10 = vld [vmem:[#allocation3 + $0x278] sm:$0xff] }
 0x22d   :  { %v2230_v40 = vld [vmem:[#allocation2 + $0x520] ss:$2 sm:$0xff]  ;;  %v2426_v41 = vld [vmem:[#allocation2 + $0x521] ss:$2 sm:$0xff]  ;;  %v3035_v42 = vld [vmem:[#allocation4 + $0x128] sm:$0xff]  ;;  %2038 = vst.msk [vmem:[#allocation2 + $0x540] sm:$0xff] %vm1869_vm4, %v1730_v43 }
 0x22e   :  { %v2539_v44 = vmax.f32 %v2230_v40, %v2426_v41  ;;  %11217 = vmatmul.mubr.msk.f32.gmra.mrb[44].mxu1 %vm1869_vm4, %v3035_v42  ;;  %v5837_v45 = vld [vmem:[#allocation4 + $0x126] sm:$0xff] }
 0x22f   :  { %11606 = vmatmul.mubr.msk.f32.gmra.mrb[220].mxu0 %vm1869_vm4, %v5837_v45  ;;  %v11109_v46 = vpop.f32.mrb[170].mxu0  ;;  %v2928_v12 = vld [vmem:[#allocation3 + $0x280] sm:$0xf]  ;;  %v9674_v43 = vld [vmem:[%s15497_s3 + $0x90] sm:$0xff] }
 0x230   :  { %2637 = vst.msk [vmem:[#allocation3 + $0x290] sm:$0xff] %vm1869_vm4, %v2539_v44  ;;  %2041 = vst.msk [vmem:[#allocation2 + $0x558] sm:$0xff] %vm1869_vm4, %v11109_v46  ;;  %v1740_v49 = vpop.f32.mrb[171].mxu0  ;;  %v9675_v44 = vld [vmem:[%s15497_s3 + $0x98] sm:$0xff] }
 0x231   :  { %v2232_v47 = vld [vmem:[#allocation2 + $0x530] ss:$2 sm:$0xff]  ;;  %v2428_v48 = vld [vmem:[#allocation2 + $0x531] ss:$2 sm:$0xff]  ;;  %2040 = vst.msk [vmem:[#allocation2 + $0x550] sm:$0xff] %vm1869_vm4, %v1740_v49 }
 0x232   :  { %v2540_v50 = vmax.f32 %v2232_v47, %v2428_v48  ;;  %v2929_v52 = vld [vmem:[#allocation3 + $0x284] sm:$0xff] }
 0x233   :  { %v11112_v54 = vpop.f32.mrb[172].mxu0  ;;  %v2933_v55 = vmax.f32 %v2925_v51, %v2929_v52 }
 0x234   :  { %2638 = vst.msk [vmem:[#allocation3 + $0x298] sm:$0xff] %vm1869_vm4, %v2540_v50  ;;  %v2234_v56 = vld [vmem:[#allocation2 + $0x540] ss:$2 sm:$0xff]  ;;  %v2430_v57 = vld [vmem:[#allocation2 + $0x541] ss:$2 sm:$0xff]  ;;  %2043 = vst.msk [vmem:[#allocation2 + $0x568] sm:$0xff] %vm1869_vm4, %v11112_v54 }
 0x235   :  { %v1750_v58 = vpop.f32.mrb[173].mxu0  ;;  %v2541_v59 = vmax.f32 %v2234_v56, %v2430_v57  ;;  %v2937_v60 = vadd.f32 %v13620_v53, %v2933_v55  ;;  %v3492_v54 = vld [vmem:[#allocation4 + $0x1] sm:$0xff] }
 0x236   :  { %2042 = vst.msk [vmem:[#allocation2 + $0x560] sm:$0xff] %vm1869_vm4, %v1750_v58 }
 0x237   :  { %v2930_v62 = vld [vmem:[#allocation3 + $0x28c] sm:$0xff]  ;;  %2639 = vst.msk [vmem:[#allocation3 + $0x2a0] sm:$0xff] %vm1869_vm4, %v2541_v59  ;;  %v11115_v63 = vpop.f32.mrb[174].mxu0  ;;  %v2941_v0 = vmax.f32 %v2937_v60, 0.0  ;;  %v11969_v60 = vpack.c.bf16 %v9675_v44, %v9674_v43  ;;  %v2977_v44 = vld [vmem:[#allocation3 + $0x2f4] sm:$0xff] }
 0x238   :  { %v2934_v1 = vmax.f32 %v2926_v61, %v2930_v62  ;;  %v2236_v2 = vld [vmem:[#allocation2 + $0x550] ss:$2 sm:$0xff]  ;;  %v2432_v3 = vld [vmem:[#allocation2 + $0x551] ss:$2 sm:$0xff]  ;;  %2045 = vst.msk [vmem:[#allocation2 + $0x578] sm:$0xff] %vm1869_vm4, %v11115_v63  ;;  %v1760_v5 = vpop.f32.mrb[175].mxu0 }
 0x239   :  { %v11179_v4 = vpop.f32.mrb[18].mxu1  ;;  %v2542_v6 = vmax.f32 %v2236_v2, %v2432_v3  ;;  %2044 = vst.msk [vmem:[#allocation2 + $0x570] sm:$0xff] %vm1869_vm4, %v1760_v5  ;;  %2945 = vst.msk [vmem:[#allocation4 + $0x134] sm:$0xff] %vm1869_vm4, %v2941_v0  ;;  %v3493_v62 = vld [vmem:[#allocation4 + $0x9] sm:$0xff]  ;;  %v9677_v0 = vld [vmem:[%s15497_s3 + $0xa8] sm:$0xff] }
 0x23a   :  { %3461 = vst.msk [vmem:[#allocation5 + $0x58] sm:$0xff] %vm3449_vm6, %v11179_v4  ;;  %v3290_v7 = vpop.f32.mrb[19].mxu1  ;;  %v2938_v9 = vadd.f32 %v13620_v53, %v2934_v1  ;;  %v9676_v63 = vld [vmem:[%s15497_s3 + $0xa0] sm:$0xff]  ;;  %v3495_v4 = vld [vmem:[#allocation4 + $0x19] sm:$0xff] }
 0x23b   :  { %3460 = vst.msk [vmem:[#allocation5 + $0x50] sm:$0xff] %vm3449_vm6, %v3290_v7  ;;  %v2931_v11 = vld [vmem:[#allocation3 + $0x294] sm:$0xff]  ;;  %v2932_v13 = vld [vmem:[#allocation3 + $0x29c] sm:$0xf]  ;;  %v11118_v15 = vpop.f32.mrb[176].mxu0  ;;  %v3494_v1 = vld [vmem:[#allocation4 + $0x11] sm:$0xff] }
 0x23c   :  { %2640 = vst.msk [vmem:[#allocation3 + $0x2a8] sm:$0xff] %vm1869_vm4, %v2542_v6  ;;  %v2942_v16 = vmax.f32 %v2938_v9, 0.0  ;;  %v2935_v17 = vmax.f32 %v2927_v10, %v2931_v11  ;;  %v2936_v18 = vmax.f32 %v2928_v12, %v2932_v13  ;;  %2047 = vst.msk [vmem:[#allocation2 + $0x588] sm:$0xff] %vm1869_vm4, %v11118_v15  ;;  %v1770_v26 = vpop.f32.mrb[177].mxu0  ;;  %v11973_v11 = vpack.c.bf16 %v9677_v0, %v9676_v63  ;;  %v3496_v13 = vld [vmem:[#allocation4 + $0x21] sm:$0xff]  ;;  %v2978_v0 = vld [vmem:[#allocation3 + $0x2fc] sm:$0xff] }
 0x23d   :  { %v2238_v19 = vld [vmem:[#allocation2 + $0x560] ss:$2 sm:$0xff]  ;;  %v2434_v20 = vld [vmem:[#allocation2 + $0x561] ss:$2 sm:$0xff]  ;;  %2046 = vst.msk [vmem:[#allocation2 + $0x580] sm:$0xff] %vm1869_vm4, %v1770_v26 }
 0x23e   :  { %v2543_v21 = vmax.f32 %v2238_v19, %v2434_v20  ;;  %v11182_v22 = vpop.f32.mrb[20].mxu1  ;;  %2946 = vst.msk [vmem:[#allocation4 + $0x13c] sm:$0xff] %vm1869_vm4, %v2942_v16  ;;  %v2939_v23 = vadd.f32 %v13620_v53, %v2935_v17  ;;  %v2940_v8 = vadd.f32 %v13620_v53, %v2936_v18  ;;  %v2949_v59 = vld [vmem:[#allocation3 + $0x2a0] sm:$0xff]  ;;  %v9679_v16 = vld [vmem:[%s15497_s3 + $0xb8] sm:$0xff]  ;;  %v2976_v18 = vld [vmem:[#allocation3 + $0x2f0] sm:$0xf] }
 0x23f   :  { %3463 = vst.msk [vmem:[#allocation5 + $0x68] sm:$0xff] %vm3449_vm6, %v11182_v22  ;;  %v3300_v24 = vpop.f32.mrb[21].mxu1  ;;  %v11121_v25 = vpop.f32.mrb[178].mxu0  ;;  %v2980_v19 = vld [vmem:[#allocation3 + $0x30c] sm:$0xf] }
 0x240   :  { %2641 = vst.msk [vmem:[#allocation3 + $0x2b0] sm:$0xff] %vm1869_vm4, %v2543_v21  ;;  %v2943_v27 = vmax.f32 %v2939_v23, 0.0  ;;  %v2944_v28 = vmax.f32 %v2940_v8, 0.0  ;;  %v2240_v29 = vld [vmem:[#allocation2 + $0x570] ss:$2 sm:$0xff]  ;;  %v3036_v31 = vld [vmem:[#allocation4 + $0x130] sm:$0xff]  ;;  %v2984_v8 = vmax.f32 %v2976_v18, %v2980_v19 }
 0x241   :  { %3462 = vst.msk [vmem:[#allocation5 + $0x60] sm:$0xff] %vm3449_vm6, %v3300_v24  ;;  %v2436_v30 = vld [vmem:[#allocation2 + $0x571] ss:$2 sm:$0xff]  ;;  %v1780_v32 = vpop.f32.mrb[179].mxu0  ;;  %11219 = vmatprep.mubr.msk.f32.mxu1 %vm1869_vm4, %v3036_v31 }
 0x242   :  { %2049 = vst.msk [vmem:[#allocation2 + $0x598] sm:$0xff] %vm1869_vm4, %v11121_v25  ;;  %v2544_v33 = vmax.f32 %v2240_v29, %v2436_v30  ;;  %v5838_v34 = vld [vmem:[#allocation4 + $0x12e] sm:$0xff]  ;;  %2048 = vst.msk [vmem:[#allocation2 + $0x590] sm:$0xff] %vm1869_vm4, %v1780_v32 }
 0x243   :  { %2947 = vst.msk [vmem:[#allocation4 + $0x144] sm:$0xff] %vm1869_vm4, %v2943_v27  ;;  %11608 = vmatprep.mubr.msk.f32.mxu0 %vm1869_vm4, %v5838_v34  ;;  %v11124_v35 = vpop.f32.mrb[180].mxu0  ;;  %v2950_v10 = vld [vmem:[#allocation3 + $0x2a8] sm:$0xff]  ;;  %v3497_v32 = vld [vmem:[#allocation4 + $0x29] sm:$0xff] }
 0x244   :  { %2948 = vst.msk [vmem:[#allocation4 + $0x14c] sm:$0xf] %vm2683_vm5, %v2944_v28  ;;  %v2242_v36 = vld [vmem:[#allocation2 + $0x580] ss:$2 sm:$0xff]  ;;  %v2438_v37 = vld [vmem:[#allocation2 + $0x581] ss:$2 sm:$0xff] }
 0x245   :  { %2642 = vst.msk [vmem:[#allocation3 + $0x2b8] sm:$0xff] %vm1869_vm4, %v2544_v33  ;;  %2051 = vst.msk [vmem:[#allocation2 + $0x5a8] sm:$0xff] %vm1869_vm4, %v11124_v35  ;;  %v3037_v38 = vld [vmem:[#allocation4 + $0x138] sm:$0xff]  ;;  %v1790_v39 = vpop.f32.mrb[181].mxu0  ;;  %v2545_v40 = vmax.f32 %v2242_v36, %v2438_v37  ;;  %v9722_v34 = vld [vmem:[%s15497_s3 + $0xc0] sm:$0xff]  ;;  %v2988_v36 = vadd.f32 %v13620_v53, %v2984_v8 }
 0x246   :  { %11220 = vmatmul.mubr.msk.f32.gmra.mrb[46].mxu1 %vm1869_vm4, %v3037_v38  ;;  %v5839_v41 = vld [vmem:[#allocation4 + $0x136] sm:$0xff]  ;;  %2050 = vst.msk [vmem:[#allocation2 + $0x5a0] sm:$0xff] %vm1869_vm4, %v1790_v39 }
 0x247   :  { %11609 = vmatmul.mubr.msk.f32.gmra.mrb[222].mxu0 %vm1869_vm4, %v5839_v41  ;;  %2643 = vst.msk [vmem:[#allocation3 + $0x2c0] sm:$0xff] %vm1869_vm4, %v2545_v40  ;;  %v11127_v42 = vpop.f32.mrb[182].mxu0  ;;  %v2951_v22 = vld [vmem:[#allocation3 + $0x2b0] sm:$0xff]  ;;  %v9723_v35 = vld [vmem:[%s15497_s3 + $0xc8] sm:$0xff] }
 0x248   :  { %2053 = vst.msk [vmem:[#allocation2 + $0x5b8] sm:$0xff] %vm1869_vm4, %v11127_v42  ;;  %v1800_v47 = vpop.f32.mrb[183].mxu0  ;;  %v3498_v37 = vld [vmem:[#allocation4 + $0x31] sm:$0xff] }
 0x249   :  { %v2244_v45 = vld [vmem:[#allocation2 + $0x590] ss:$2 sm:$0xff]  ;;  %v2440_v46 = vld [vmem:[#allocation2 + $0x591] ss:$2 sm:$0xff]  ;;  %2052 = vst.msk [vmem:[#allocation2 + $0x5b0] sm:$0xff] %vm1869_vm4, %v1800_v47 }
 0x24a   :  { %v3038_v48 = vld [vmem:[#allocation4 + $0x140] sm:$0xff]  ;;  %v2546_v49 = vmax.f32 %v2244_v45, %v2440_v46  ;;  %v2992_v45 = vmax.f32 %v2988_v36, 0.0 }
 0x24b   :  { %11222 = vmatprep.mubr.msk.f32.mxu1 %vm1869_vm4, %v3038_v48  ;;  %v5840_v50 = vld [vmem:[#allocation4 + $0x13e] sm:$0xff]  ;;  %v3039_v51 = vld [vmem:[#allocation4 + $0x148] sm:$0xff]  ;;  %v11130_v55 = vpop.f32.mrb[184].mxu0 }
 0x24c   :  { %v5841_v52 = vld [vmem:[#allocation4 + $0x146] sm:$0xff]  ;;  %11611 = vmatprep.mubr.msk.f32.mxu0 %vm1869_vm4, %v5840_v50  ;;  %11223 = vmatmul.mubr.msk.f32.gmra.mrb[48].mxu1 %vm1869_vm4, %v3039_v51  ;;  %2644 = vst.msk [vmem:[#allocation3 + $0x2c8] sm:$0xff] %vm1869_vm4, %v2546_v49  ;;  %2055 = vst.msk [vmem:[#allocation2 + $0x5c8] sm:$0xff] %vm1869_vm4, %v11130_v55  ;;  %v1810_v58 = vpop.f32.mrb[185].mxu0  ;;  %v13790_v49 = vpack.c.bf16 %v9723_v35, %v9722_v34  ;;  %v13792_v51 = vld [vmem:[#allocation4 + $0x39] sm:$0xff]  ;;  %v15504_v55 = vmov 0.0  }
 0x24d   :  { %11612 = vmatmul.mubr.msk.f32.gmra.mrb[224].mxu0 %vm1869_vm4, %v5841_v52  ;;  %11241 = vmatprep.mubr.msk.f32.mxu1 %vm1869_vm4, %v3492_v54  ;;  %v2246_v56 = vld [vmem:[#allocation2 + $0x5a0] ss:$2 sm:$0xff]  ;;  %v2442_v57 = vld [vmem:[#allocation2 + $0x5a1] ss:$2 sm:$0xff]  ;;  %2054 = vst.msk [vmem:[#allocation2 + $0x5c0] sm:$0xff] %vm1869_vm4, %v1810_v58  ;;  %2997 = vst.msk [vmem:[#allocation4 + $0x188] sm:$0xff] %vm1869_vm4, %v15504_v55 }
 0x24e   :  { %v2547_v61 = vmax.f32 %v2246_v56, %v2442_v57  ;;  %v2953_v2 = vld [vmem:[#allocation3 + $0x2bc] sm:$0xff]  ;;  %v2952_v23 = vld [vmem:[#allocation3 + $0x2b8] sm:$0xf]  ;;  %2996 = vst.msk [vmem:[#allocation4 + $0x184] sm:$0xf] %vm2683_vm5, %v2992_v45  ;;  %v3511_v36 = vld [vmem:[#allocation4 + $0x99] sm:$0xff] }
 0x24f   :  { %v11133_v3 = vpop.f32.mrb[186].mxu0  ;;  %v2957_v5 = vmax.f32 %v2949_v59, %v2953_v2  ;;  %v13802_v56 = vld [vmem:[#allocation4 + $0x41] sm:$0xff]  ;;  %v3510_v35 = vld [vmem:[#allocation4 + $0x91] sm:$0xff]  ;;  %v3515_v45 = vld [vmem:[#allocation4 + $0xb9] sm:$0xff] }
 0x250   :  { %11242 = vmatmul.mubr.msk.f32.vlgmr.msra.gmra.mrb[50].mxu1 %vm1869_vm4, %v3493_v62  ;;  %2645 = vst.msk [vmem:[#allocation3 + $0x2d0] sm:$0xff] %vm1869_vm4, %v2547_v61  ;;  %v2248_v6 = vld [vmem:[#allocation2 + $0x5b0] ss:$2 sm:$0xff]  ;;  %v2444_v7 = vld [vmem:[#allocation2 + $0x5b1] ss:$2 sm:$0xff]  ;;  %2057 = vst.msk [vmem:[#allocation2 + $0x5d8] sm:$0xff] %vm1869_vm4, %v11133_v3 }
 0x251   :  { %11968 = vmatpush3.bf16.msra.mxu1 %v13536_v14  ;;  %11244 = vmatprep.mubr.msk.f32.mxu1 %vm1869_vm4, %v3494_v1  ;;  %v1820_v9 = vpop.f32.mrb[187].mxu0  ;;  %v2548_v12 = vmax.f32 %v2248_v6, %v2444_v7  ;;  %v2961_v15 = vadd.f32 %v13620_v53, %v2957_v5  ;;  %v9678_v14 = vld [vmem:[%s15497_s3 + $0xb0] sm:$0xff]  ;;  %v3501_v1 = vld [vmem:[#allocation4 + $0x49] sm:$0xff]  ;;  %v3502_v3 = vld [vmem:[#allocation4 + $0x51] sm:$0xff] }
 0x252   :  { %11970 = vmatprep.subr.bf16.mxu1 %v11969_v60  ;;  %2056 = vst.msk [vmem:[#allocation2 + $0x5d0] sm:$0xff] %vm1869_vm4, %v1820_v9  ;;  %v11977_v29 = vpack.c.bf16 %v9679_v16, %v9678_v14 }
 0x253   :  { %v2954_v17 = vld [vmem:[#allocation3 + $0x2c4] sm:$0xff]  ;;  %2646 = vst.msk [vmem:[#allocation3 + $0x2d8] sm:$0xff] %vm1869_vm4, %v2548_v12  ;;  %v13768_v20 = vpop.f32.mrb[188].mxu0  ;;  %v2965_v26 = vmax.f32 %v2961_v15, 0.0  ;;  %v3504_v15 = vld [vmem:[#allocation4 + $0x61] sm:$0xff] }
 0x254   :  { %11245 = vmatmul.mubr.msk.f32.gmra.mrb[52].mxu1 %vm1869_vm4, %v3495_v4  ;;  %v2958_v21 = vmax.f32 %v2950_v10, %v2954_v17  ;;  %v2250_v24 = vld [vmem:[#allocation2 + $0x5c0] ss:$2 sm:$0xff]  ;;  %v2446_v25 = vld [vmem:[#allocation2 + $0x5c1] ss:$2 sm:$0xff]  ;;  %v13770_v28 = vpop.f32.mrb[189].mxu0 }
 0x255   :  { %11247 = vmatprep.mubr.msk.f32.mxu1 %vm1869_vm4, %v3496_v13  ;;  %11972 = vmatpush3.bf16.msra.mxu1 %v11969_v60  ;;  %v11185_v27 = vpop.f32.mrb[22].mxu1  ;;  %v2549_v30 = vmax.f32 %v2250_v24, %v2446_v25  ;;  %2969 = vst.msk [vmem:[#allocation4 + $0x150] sm:$0xff] %vm1869_vm4, %v2965_v26  ;;  %v3503_v12 = vld [vmem:[#allocation4 + $0x59] sm:$0xff] }
 0x256   :  { %11974 = vmatprep.subr.bf16.mxu1 %v11973_v11  ;;  %3465 = vst.msk [vmem:[#allocation5 + $0x78] sm:$0xff] %vm3449_vm6, %v11185_v27  ;;  %v3310_v31 = vpop.f32.mrb[23].mxu1  ;;  %v2962_v33 = vadd.f32 %v13620_v53, %v2958_v21  ;;  %v3505_v21 = vld [vmem:[#allocation4 + $0x69] sm:$0xff] }
 0x257   :  { %3464 = vst.msk [vmem:[#allocation5 + $0x70] sm:$0xff] %vm3449_vm6, %v3310_v31  ;;  %v2955_v38 = vld [vmem:[#allocation3 + $0x2cc] sm:$0xff]  ;;  %v2956_v39 = vld [vmem:[#allocation3 + $0x2d4] sm:$0xf]  ;;  %v13786_v40 = vpop.f32.mrb[190].mxu0 }
 0x258   :  { %11248 = vmatmul.mubr.msk.f32.gmra.mrb[54].mxu1 %vm1869_vm4, %v3497_v32  ;;  %2647 = vst.msk [vmem:[#allocation3 + $0x2e0] sm:$0xff] %vm1869_vm4, %v2549_v30  ;;  %v2966_v41 = vmax.f32 %v2962_v33, 0.0  ;;  %v2959_v42 = vmax.f32 %v2951_v22, %v2955_v38  ;;  %v2960_v43 = vmax.f32 %v2952_v23, %v2956_v39  ;;  %v13788_v48 = vpop.f32.mrb[191].mxu0  ;;  %v3506_v23 = vld [vmem:[#allocation4 + $0x71] sm:$0xff]  ;;  %v3509_v33 = vld [vmem:[#allocation4 + $0x89] sm:$0xff] }
 0x259   :  { %11250 = vmatprep.mubr.msk.f32.mxu1 %vm1869_vm4, %v3498_v37  ;;  %11976 = vmatpush3.bf16.msra.mxu1 %v11973_v11  ;;  %v2252_v46 = vld [vmem:[#allocation2 + $0x5d0] ss:$2 sm:$0xff]  ;;  %v2448_v47 = vld [vmem:[#allocation2 + $0x5d1] ss:$2 sm:$0xff]  ;;  %v2979_v11 = vld [vmem:[#allocation3 + $0x304] sm:$0xff] }
 0x25a   :  { %11978 = vmatprep.subr.bf16.mxu1 %v11977_v29  ;;  %v2550_v50 = vmax.f32 %v2252_v46, %v2448_v47  ;;  %2970 = vst.msk [vmem:[#allocation4 + $0x158] sm:$0xff] %vm1869_vm4, %v2966_v41  ;;  %v2963_v52 = vadd.f32 %v13620_v53, %v2959_v42  ;;  %v2964_v54 = vadd.f32 %v13620_v53, %v2960_v43  ;;  %v2973_v57 = vld [vmem:[#allocation3 + $0x2d8] sm:$0xff] }
 0x25b   :  { %v13807_v58 = vpop.f32.mrb[192].mxu0  ;;  %v2981_v61 = vmax.f32 %v2973_v57, %v2977_v44  ;;  %v3512_v37 = vld [vmem:[#allocation4 + $0xa1] sm:$0xff]  ;;  %v3513_v42 = vld [vmem:[#allocation4 + $0xa9] sm:$0xff]  ;;  %v3514_v44 = vld [vmem:[#allocation4 + $0xb1] sm:$0xff] }
 0x25c   :  { %11251 = vmatmul.mubr.msk.f32.gmra.mrb[56].mxu1 %vm1869_vm4, %v13792_v51  ;;  %2648 = vst.msk [vmem:[#allocation3 + $0x2e8] sm:$0xff] %vm1869_vm4, %v2550_v50  ;;  %v2967_v59 = vmax.f32 %v2963_v52, 0.0  ;;  %v2968_v60 = vmax.f32 %v2964_v54, 0.0  ;;  %v13809_v62 = vpop.f32.mrb[193].mxu0  ;;  %v5842_v63 = vld [vmem:[#allocation4 + $0x14e] sm:$0xff]  ;;  %v3516_v46 = vld [vmem:[#allocation4 + $0xc1] sm:$0xff] }
 0x25d   :  { %11253 = vmatprep.mubr.msk.f32.mxu1 %vm1869_vm4, %v13802_v56  ;;  %11980 = vmatpush3.bf16.msra.mxu1 %v11977_v29  ;;  %v2985_v2 = vadd.f32 %v13620_v53, %v2981_v61  ;;  %v3507_v29 = vld [vmem:[#allocation4 + $0x79] sm:$0xff]  ;;  %v3517_v47 = vld [vmem:[#allocation4 + $0xc9] sm:$0xff]  ;;  %v3518_v50 = vld [vmem:[#allocation4 + $0xd1] sm:$0xff] }
 0x25e   :  { %11982 = vmatprep.subr.bf16.mxu1 %v13790_v49  ;;  %11614 = vmatprep.mubr.msk.f32.mxu0 %vm1869_vm4, %v5842_v63  ;;  %2971 = vst.msk [vmem:[#allocation4 + $0x160] sm:$0xff] %vm1869_vm4, %v2967_v59  ;;  %v3520_v52 = vld [vmem:[#allocation4 + $0xe1] sm:$0xff]  ;;  %v3521_v54 = vld [vmem:[#allocation4 + $0xe9] sm:$0xff]  ;;  %v3523_v61 = vld [vmem:[#allocation4 + $0xf9] sm:$0xff] }
 0x25f   :  { %2972 = vst.msk [vmem:[#allocation4 + $0x168] sm:$0xf] %vm2683_vm5, %v2968_v60  ;;  %v2974_v4 = vld [vmem:[#allocation3 + $0x2e0] sm:$0xff]  ;;  %v13818_v5 = vpop.f32.mrb[194].mxu0  ;;  %v2989_v6 = vmax.f32 %v2985_v2, 0.0 }
 0x260   :  { %11254 = vmatmul.mubr.msk.f32.gmra.mrb[58].mxu1 %vm1869_vm4, %v3501_v1  ;;  %v2982_v7 = vmax.f32 %v2974_v4, %v2978_v0  ;;  %v13820_v9 = vpop.f32.mrb[195].mxu0  ;;  %v3524_v0 = vld [vmem:[#allocation4 + $0x101] sm:$0xff]  ;;  %v3526_v2 = vld [vmem:[#allocation4 + $0x111] sm:$0xff] }
 0x261   :  { %11256 = vmatprep.mubr.msk.f32.mxu1 %vm1869_vm4, %v3502_v3  ;;  %v5843_v10 = vld [vmem:[#allocation4 + $0x156] sm:$0xff]  ;;  %2993 = vst.msk [vmem:[#allocation4 + $0x16c] sm:$0xff] %vm1869_vm4, %v2989_v6 }
 0x262   :  { %11615 = vmatmul.mubr.msk.f32.gmra.mrb[226].mxu0 %vm1869_vm4, %v5843_v10  ;;  %v2986_v13 = vadd.f32 %v13620_v53, %v2982_v7  ;;  %v3527_v7 = vld [vmem:[#allocation4 + $0x119] sm:$0xff] }
 0x263   :  { %v2975_v14 = vld [vmem:[#allocation3 + $0x2e8] sm:$0xff]  ;;  %v13827_v16 = vpop.f32.mrb[196].mxu0 }
 0x264   :  { %11257 = vmatmul.mubr.msk.f32.gmra.mrb[60].mxu1 %vm1869_vm4, %v3503_v12  ;;  %v2990_v17 = vmax.f32 %v2986_v13, 0.0  ;;  %v2983_v18 = vmax.f32 %v2975_v14, %v2979_v11  ;;  %v13829_v19 = vpop.f32.mrb[197].mxu0  ;;  %v3528_v11 = vld [vmem:[#allocation4 + $0x121] sm:$0xff]  ;;  %v3530_v13 = vld [vmem:[#allocation4 + $0x131] sm:$0xff] }
 0x265   :  { %11259 = vmatprep.mubr.msk.f32.mxu1 %vm1869_vm4, %v3504_v15  ;;  %v5844_v26 = vld [vmem:[#allocation4 + $0x15e] sm:$0xff] }
 0x266   :  { %11617 = vmatprep.mubr.msk.f32.mxu0 %vm1869_vm4, %v5844_v26  ;;  %2994 = vst.msk [vmem:[#allocation4 + $0x174] sm:$0xff] %vm1869_vm4, %v2990_v17  ;;  %v2987_v22 = vadd.f32 %v13620_v53, %v2983_v18  ;;  %v3508_v53 = vld [vmem:[#allocation4 + $0x81] sm:$0xff]  ;;  %v3533_v17 = vld [vmem:[#allocation4 + $0x149] sm:$0xff] }
 0x267   :  { %v13836_v8 = vpop.f32.mrb[198].mxu0  ;;  %v3532_v14 = vld [vmem:[#allocation4 + $0x141] sm:$0xff] }
 0x268   :  { %11260 = vmatmul.mubr.msk.f32.gmra.mrb[62].mxu1 %vm1869_vm4, %v3505_v21  ;;  %v2991_v24 = vmax.f32 %v2987_v22, 0.0  ;;  %v13838_v25 = vpop.f32.mrb[199].mxu0  ;;  %v5845_v27 = vld [vmem:[#allocation4 + $0x166] sm:$0xff] }
 0x269   :  { %11262 = vmatprep.mubr.msk.f32.mxu1 %vm1869_vm4, %v3506_v23  ;;  %11618 = vmatmul.mubr.msk.f32.gmra.mrb[228].mxu0 %vm1869_vm4, %v5845_v27  ;;  %v9724_v18 = vld [vmem:[%s15497_s3 + $0xd0] sm:$0xff]  ;;  %v9725_v26 = vld [vmem:[%s15497_s3 + $0xd8] sm:$0xff]  ;;  %v9727_v27 = vld [vmem:[%s15497_s3 + $0xe8] sm:$0xff] }
 0x26a   :  { %2995 = vst.msk [vmem:[#allocation4 + $0x17c] sm:$0xff] %vm1869_vm4, %v2991_v24  ;;  %11715 = vmatprep.mubr.msk.f32.mxu0 %vm1869_vm4, %v13792_v51  ;;  %v3519_v51 = vld [vmem:[#allocation4 + $0xd9] sm:$0xff]  ;;  %v11985_v22 = vpack.c.bf16 %v9725_v26, %v9724_v18  ;;  %v9726_v24 = vld [vmem:[%s15497_s3 + $0xe0] sm:$0xff]  ;;  %v4086_v18 = vld [vmem:[#allocation4 + $0x82] sm:$0xff] }
 0x26b   :  { %v4087_v26 = vld [vmem:[#allocation4 + $0x8a] sm:$0xff] }
 0x26c   :  { %11263 = vmatmul.mubr.msk.f32.gmra.mrb[64].mxu1 %vm1869_vm4, %v3507_v29 }
 0x26d   :  { %11265 = vmatprep.mubr.msk.f32.mxu1 %vm1869_vm4, %v3508_v53  ;;  %v11188_v30 = vpop.f32.mrb[24].mxu1  ;;  %11716 = vmatmul.mubr.msk.f32.vlgmr.msra.gmra.mrb[230].mxu0 %vm1869_vm4, %v13802_v56  ;;  %v3522_v56 = vld [vmem:[#allocation4 + $0xf1] sm:$0xff] }
 0x26e   :  { %3467 = vst.msk [vmem:[#allocation5 + $0x88] sm:$0xff] %vm3449_vm6, %v11188_v30  ;;  %v13847_v31 = vpop.f32.mrb[200].mxu0  ;;  %v3320_v32 = vpop.f32.mrb[25].mxu1  ;;  %11718 = vmatprep.mubr.msk.f32.mxu0 %vm1869_vm4, %v3501_v1  ;;  %v3525_v1 = vld [vmem:[#allocation4 + $0x109] sm:$0xff]  ;;  %v4073_v30 = vld [vmem:[#allocation4 + $0x1a] sm:$0xff] }
 0x26f   :  { %3466 = vst.msk [vmem:[#allocation5 + $0x80] sm:$0xff] %vm3449_vm6, %v3320_v32  ;;  %v13852_v34 = vpop.f32.mrb[201].mxu0  ;;  %v9728_v32 = vld [vmem:[%s15497_s3 + $0xf0] sm:$0xff] }
 0x270   :  { %11266 = vmatmul.mubr.msk.f32.gmra.mrb[66].mxu1 %vm1869_vm4, %v3509_v33 }
 0x271   :  { %11268 = vmatprep.mubr.msk.f32.mxu1 %vm1869_vm4, %v3510_v35  ;;  %11719 = vmatmul.mubr.msk.f32.gmra.mrb[232].mxu0 %vm1869_vm4, %v3502_v3 }
 0x272   :  { %11721 = vmatprep.mubr.msk.f32.mxu0 %vm1869_vm4, %v3503_v12  ;;  %v3529_v12 = vld [vmem:[#allocation4 + $0x129] sm:$0xff] }
 0x274   :  { %11269 = vmatmul.mubr.msk.f32.gmra.mrb[68].mxu1 %vm1869_vm4, %v3511_v36 }
 0x275   :  { %11271 = vmatprep.mubr.msk.f32.mxu1 %vm1869_vm4, %v3512_v37  ;;  %v11191_v38 = vpop.f32.mrb[26].mxu1  ;;  %11722 = vmatmul.mubr.msk.f32.gmra.mrb[234].mxu0 %vm1869_vm4, %v3504_v15  ;;  %v3531_v15 = vld [vmem:[#allocation4 + $0x139] sm:$0xff] }
 0x276   :  { %3469 = vst.msk [vmem:[#allocation5 + $0x98] sm:$0xff] %vm3449_vm6, %v11191_v38  ;;  %v13862_v39 = vpop.f32.mrb[202].mxu0  ;;  %v3330_v41 = vpop.f32.mrb[27].mxu1  ;;  %11724 = vmatprep.mubr.msk.f32.mxu0 %vm1869_vm4, %v3505_v21  ;;  %v4070_v21 = vld [vmem:[#allocation4 + $0x2] sm:$0xff] }
 0x277   :  { %3468 = vst.msk [vmem:[#allocation5 + $0x90] sm:$0xff] %vm3449_vm6, %v3330_v41  ;;  %v13866_v43 = vpop.f32.mrb[203].mxu0  ;;  %v4075_v41 = vld [vmem:[#allocation4 + $0x2a] sm:$0xff] }
 0x278   :  { %11272 = vmatmul.mubr.msk.f32.gmra.mrb[70].mxu1 %vm1869_vm4, %v3513_v42 }
 0x279   :  { %11274 = vmatprep.mubr.msk.f32.mxu1 %vm1869_vm4, %v3514_v44  ;;  %11725 = vmatmul.mubr.msk.f32.gmra.mrb[236].mxu0 %vm1869_vm4, %v3506_v23  ;;  %v4071_v23 = vld [vmem:[#allocation4 + $0xa] sm:$0xff] }
 0x27a   :  { %11727 = vmatprep.mubr.msk.f32.mxu0 %vm1869_vm4, %v3507_v29  ;;  %v4072_v29 = vld [vmem:[#allocation4 + $0x12] sm:$0xff] }
 0x27c   :  { %11275 = vmatmul.mubr.msk.f32.gmra.mrb[72].mxu1 %vm1869_vm4, %v3515_v45 }
 0x27d   :  { %11277 = vmatprep.mubr.msk.f32.mxu1 %vm1869_vm4, %v3516_v46  ;;  %11728 = vmatmul.mubr.msk.f32.gmra.mrb[238].mxu0 %vm1869_vm4, %v3508_v53  ;;  %v11989_v53 = vpack.c.bf16 %v9727_v27, %v9726_v24  ;;  %v4089_v27 = vld [vmem:[#allocation4 + $0x9a] sm:$0xff] }
 0x27e   :  { %11730 = vmatprep.mubr.msk.f32.mxu0 %vm1869_vm4, %v3509_v33  ;;  %v9729_v33 = vld [vmem:[%s15497_s3 + $0xf8] sm:$0xff] }
 0x280   :  { %11278 = vmatmul.mubr.msk.f32.gmra.mrb[74].mxu1 %vm1869_vm4, %v3517_v47 }
 0x281   :  { %11280 = vmatprep.mubr.msk.f32.mxu1 %vm1869_vm4, %v3518_v50  ;;  %11731 = vmatmul.mubr.msk.f32.gmra.mrb[240].mxu0 %vm1869_vm4, %v3510_v35 }
 0x282   :  { %11733 = vmatprep.mubr.msk.f32.mxu0 %vm1869_vm4, %v3511_v36  ;;  %v11993_v36 = vpack.c.bf16 %v9729_v33, %v9728_v32  ;;  %v4092_v32 = vld [vmem:[#allocation4 + $0xb2] sm:$0xff]  ;;  %v4093_v33 = vld [vmem:[#allocation4 + $0xba] sm:$0xff] }
 0x284   :  { %11281 = vmatmul.mubr.msk.f32.gmra.mrb[76].mxu1 %vm1869_vm4, %v3519_v51 }
 0x285   :  { %11283 = vmatprep.mubr.msk.f32.mxu1 %vm1869_vm4, %v3520_v52  ;;  %11734 = vmatmul.mubr.msk.f32.gmra.mrb[242].mxu0 %vm1869_vm4, %v3512_v37 }
 0x286   :  { %11736 = vmatprep.mubr.msk.f32.mxu0 %vm1869_vm4, %v3513_v42  ;;  %v9772_v42 = vld [vmem:[%s15497_s3 + $0x100] sm:$0xff] }
 0x288   :  { %11284 = vmatmul.mubr.msk.f32.gmra.mrb[78].mxu1 %vm1869_vm4, %v3521_v54 }
 0x289   :  { %11286 = vmatprep.mubr.msk.f32.mxu1 %vm1869_vm4, %v3522_v56  ;;  %v11194_v57 = vpop.f32.mrb[28].mxu1  ;;  %11737 = vmatmul.mubr.msk.f32.gmra.mrb[244].mxu0 %vm1869_vm4, %v3514_v44  ;;  %v9773_v44 = vld [vmem:[%s15497_s3 + $0x108] sm:$0xff] }
 0x28a   :  { %3471 = vst.msk [vmem:[#allocation5 + $0xa8] sm:$0xff] %vm3449_vm6, %v11194_v57  ;;  %v13888_v59 = vpop.f32.mrb[204].mxu0  ;;  %v3340_v60 = vpop.f32.mrb[29].mxu1  ;;  %11739 = vmatprep.mubr.msk.f32.mxu0 %vm1869_vm4, %v3515_v45 }
 0x28b   :  { %3470 = vst.msk [vmem:[#allocation5 + $0xa0] sm:$0xff] %vm3449_vm6, %v3340_v60  ;;  %v13892_v63 = vpop.f32.mrb[205].mxu0  ;;  %v6995_v60 = vld [vmem:[#allocation4 + $0x151] sm:$0xff] }
 0x28c   :  { %11287 = vmatmul.mubr.msk.f32.gmra.mrb[80].mxu1 %vm1869_vm4, %v3523_v61 }
 0x28d   :  { %11289 = vmatprep.mubr.msk.f32.mxu1 %vm1869_vm4, %v3524_v0  ;;  %11740 = vmatmul.mubr.msk.f32.gmra.mrb[246].mxu0 %vm1869_vm4, %v3516_v46  ;;  %v4076_v46 = vld [vmem:[#allocation4 + $0x32] sm:$0xff] }
 0x28e   :  { %11742 = vmatprep.mubr.msk.f32.mxu0 %vm1869_vm4, %v3517_v47  ;;  %v13966_v47 = vpack.c.bf16 %v9773_v44, %v9772_v42  ;;  %v4099_v42 = vld [vmem:[#allocation4 + $0xea] sm:$0xff]  ;;  %v4100_v44 = vld [vmem:[#allocation4 + $0xf2] sm:$0xff] }
 0x290   :  { %11290 = vmatmul.mubr.msk.f32.gmra.mrb[82].mxu1 %vm1869_vm4, %v3525_v1 }
 0x291   :  { %11292 = vmatprep.mubr.msk.f32.mxu1 %vm1869_vm4, %v3526_v2  ;;  %v11197_v3 = vpop.f32.mrb[30].mxu1  ;;  %11743 = vmatmul.mubr.msk.f32.gmra.mrb[248].mxu0 %vm1869_vm4, %v3518_v50 }
 0x292   :  { %3473 = vst.msk [vmem:[#allocation5 + $0xb8] sm:$0xff] %vm3449_vm6, %v11197_v3  ;;  %v13902_v4 = vpop.f32.mrb[206].mxu0  ;;  %v3350_v6 = vpop.f32.mrb[31].mxu1  ;;  %11745 = vmatprep.mubr.msk.f32.mxu0 %vm1869_vm4, %v3519_v51  ;;  %v4077_v51 = vld [vmem:[#allocation4 + $0x3a] sm:$0xff] }
 0x293   :  { %3472 = vst.msk [vmem:[#allocation5 + $0xb0] sm:$0xff] %vm3449_vm6, %v3350_v6  ;;  %v13906_v10 = vpop.f32.mrb[207].mxu0  ;;  %v4081_v3 = vld [vmem:[#allocation4 + $0x5a] sm:$0xff]  ;;  %v6998_v6 = vld [vmem:[#allocation4 + $0x169] sm:$0xff] }
 0x294   :  { %11293 = vmatmul.mubr.msk.f32.gmra.mrb[84].mxu1 %vm1869_vm4, %v3527_v7 }
 0x295   :  { %11295 = vmatprep.mubr.msk.f32.mxu1 %vm1869_vm4, %v3528_v11  ;;  %11746 = vmatmul.mubr.msk.f32.gmra.mrb[250].mxu0 %vm1869_vm4, %v3520_v52 }
 0x296   :  { %11748 = vmatprep.mubr.msk.f32.mxu0 %vm1869_vm4, %v3521_v54 }
 0x298   :  { %11296 = vmatmul.mubr.msk.f32.gmra.mrb[86].mxu1 %vm1869_vm4, %v3529_v12 }
 0x299   :  { %11298 = vmatprep.mubr.msk.f32.mxu1 %vm1869_vm4, %v3530_v13  ;;  %11749 = vmatmul.mubr.msk.f32.gmra.mrb[252].mxu0 %vm1869_vm4, %v3522_v56  ;;  %v4078_v56 = vld [vmem:[#allocation4 + $0x42] sm:$0xff] }
 0x29a   :  { %11751 = vmatprep.mubr.msk.f32.mxu0 %vm1869_vm4, %v3523_v61  ;;  %v4079_v61 = vld [vmem:[#allocation4 + $0x4a] sm:$0xff] }
 0x29c   :  { %11299 = vmatmul.mubr.msk.f32.gmra.mrb[88].mxu1 %vm1869_vm4, %v3531_v15 }
 0x29d   :  { %11301 = vmatprep.mubr.msk.f32.mxu1 %vm1869_vm4, %v3532_v14  ;;  %11752 = vmatmul.mubr.msk.f32.gmra.mrb[254].mxu0 %vm1869_vm4, %v3524_v0  ;;  %v6996_v0 = vld [vmem:[#allocation4 + $0x159] sm:$0xff] }
 0x29e   :  { %11754 = vmatprep.mubr.msk.f32.mxu0 %vm1869_vm4, %v3525_v1  ;;  %v4080_v1 = vld [vmem:[#allocation4 + $0x52] sm:$0xff] }
 0x2a0   :  { %11302 = vmatmul.mubr.msk.f32.gmra.mrb[90].mxu1 %vm1869_vm4, %v3533_v17 }
 0x2a1   :  { %11320 = vmatprep.mubr.msk.f32.mxu1 %vm1869_vm4, %v4070_v21  ;;  %11755 = vmatmul.mubr.msk.f32.gmra.mrb[0].mxu0 %vm1869_vm4, %v3526_v2  ;;  %v6997_v2 = vld [vmem:[#allocation4 + $0x161] sm:$0xff]  ;;  %v4088_v21 = vld [vmem:[#allocation4 + $0x92] sm:$0xff] }
 0x2a2   :  { %11757 = vmatprep.mubr.msk.f32.mxu0 %vm1869_vm4, %v3527_v7  ;;  %v4082_v7 = vld [vmem:[#allocation4 + $0x62] sm:$0xff] }
 0x2a4   :  { %11321 = vmatmul.mubr.msk.f32.vlgmr.msra.gmra.mrb[92].mxu1 %vm1869_vm4, %v4071_v23 }
 0x2a5   :  { %11984 = vmatpush3.bf16.msra.mxu1 %v13790_v49  ;;  %11323 = vmatprep.mubr.msk.f32.mxu1 %vm1869_vm4, %v4072_v29  ;;  %v4074_v49 = vld [vmem:[#allocation4 + $0x22] sm:$0xff] }
 0x2a6   :  { %11986 = vmatprep.subr.bf16.mxu1 %v11985_v22  ;;  %11758 = vmatmul.mubr.msk.f32.gmra.mrb[2].mxu0 %vm1869_vm4, %v3528_v11  ;;  %v6999_v11 = vld [vmem:[#allocation4 + $0x171] sm:$0xff] }
 0x2a7   :  { %11760 = vmatprep.mubr.msk.f32.mxu0 %vm1869_vm4, %v3529_v12  ;;  %v7000_v12 = vld [vmem:[#allocation4 + $0x179] sm:$0xff] }
 0x2a8   :  { %11324 = vmatmul.mubr.msk.f32.gmra.mrb[94].mxu1 %vm1869_vm4, %v4073_v30  ;;  %v4091_v30 = vld [vmem:[#allocation4 + $0xaa] sm:$0xff] }
 0x2a9   :  { %11326 = vmatprep.mubr.msk.f32.mxu1 %vm1869_vm4, %v4074_v49  ;;  %11988 = vmatpush3.bf16.msra.mxu1 %v11985_v22  ;;  %v11200_v35 = vpop.f32.mrb[32].mxu1  ;;  %v4094_v49 = vld [vmem:[#allocation4 + $0xc2] sm:$0xff] }
 0x2aa   :  { %11990 = vmatprep.subr.bf16.mxu1 %v11989_v53  ;;  %3475 = vst.msk [vmem:[#allocation5 + $0xc8] sm:$0xff] %vm3449_vm6, %v11200_v35  ;;  %v13951_v37 = vpop.f32.mrb[208].mxu0  ;;  %v3360_v38 = vpop.f32.mrb[33].mxu1  ;;  %11761 = vmatmul.mubr.msk.f32.gmra.mrb[4].mxu0 %vm1869_vm4, %v3530_v13  ;;  %v4083_v13 = vld [vmem:[#allocation4 + $0x6a] sm:$0xff] }
 0x2ab   :  { %3474 = vst.msk [vmem:[#allocation5 + $0xc0] sm:$0xff] %vm3449_vm6, %v3360_v38  ;;  %v13961_v45 = vpop.f32.mrb[209].mxu0  ;;  %11763 = vmatprep.mubr.msk.f32.mxu0 %vm1869_vm4, %v3531_v15  ;;  %v4084_v15 = vld [vmem:[#allocation4 + $0x72] sm:$0xff]  ;;  %v4095_v35 = vld [vmem:[#allocation4 + $0xca] sm:$0xff]  ;;  %v4097_v38 = vld [vmem:[#allocation4 + $0xda] sm:$0xff] }
 0x2ac   :  { %11327 = vmatmul.mubr.msk.f32.gmra.mrb[96].mxu1 %vm1869_vm4, %v4075_v41  ;;  %v4098_v41 = vld [vmem:[#allocation4 + $0xe2] sm:$0xff] }
 0x2ad   :  { %11329 = vmatprep.mubr.msk.f32.mxu1 %vm1869_vm4, %v4076_v46  ;;  %11992 = vmatpush3.bf16.msra.mxu1 %v11989_v53  ;;  %v4090_v53 = vld [vmem:[#allocation4 + $0xa2] sm:$0xff] }
 0x2ae   :  { %11994 = vmatprep.subr.bf16.mxu1 %v11993_v36  ;;  %v11203_v50 = vpop.f32.mrb[34].mxu1  ;;  %11764 = vmatmul.mubr.msk.f32.gmra.mrb[6].mxu0 %vm1869_vm4, %v3532_v14  ;;  %v7001_v14 = vld [vmem:[#allocation4 + $0x181] sm:$0xff] }
 0x2af   :  { %3477 = vst.msk [vmem:[#allocation5 + $0xd8] sm:$0xff] %vm3449_vm6, %v11203_v50  ;;  %v13970_v52 = vpop.f32.mrb[210].mxu0  ;;  %v3370_v54 = vpop.f32.mrb[35].mxu1  ;;  %11766 = vmatprep.mubr.msk.f32.mxu0 %vm1869_vm4, %v3533_v17  ;;  %v4085_v17 = vld [vmem:[#allocation4 + $0x7a] sm:$0xff] }
 0x2b0   :  { %11330 = vmatmul.mubr.msk.f32.gmra.mrb[98].mxu1 %vm1869_vm4, %v4077_v51  ;;  %3476 = vst.msk [vmem:[#allocation5 + $0xd0] sm:$0xff] %vm3449_vm6, %v3370_v54  ;;  %v13975_v57 = vpop.f32.mrb[211].mxu0  ;;  %v4101_v54 = vld [vmem:[#allocation4 + $0xfa] sm:$0xff] }
 0x2b1   :  { %11332 = vmatprep.mubr.msk.f32.mxu1 %vm1869_vm4, %v4078_v56  ;;  %11996 = vmatpush3.bf16.msra.mxu1 %v11993_v36  ;;  %v4096_v36 = vld [vmem:[#allocation4 + $0xd2] sm:$0xff] }
 0x2b2   :  { %11998 = vmatprep.subr.bf16.mxu1 %v13966_v47  ;;  %11767 = vmatmul.mubr.msk.f32.gmra.mrb[8].mxu0 %vm1869_vm4, %v6995_v60  ;;  %v4102_v60 = vld [vmem:[#allocation4 + $0x102] sm:$0xff] }
 0x2b3   :  { %11769 = vmatprep.mubr.msk.f32.mxu0 %vm1869_vm4, %v6996_v0  ;;  %v4104_v0 = vld [vmem:[#allocation4 + $0x112] sm:$0xff] }
 0x2b4   :  { %11333 = vmatmul.mubr.msk.f32.gmra.mrb[100].mxu1 %vm1869_vm4, %v4079_v61  ;;  %v4103_v61 = vld [vmem:[#allocation4 + $0x10a] sm:$0xff] }
 0x2b5   :  { %11335 = vmatprep.mubr.msk.f32.mxu1 %vm1869_vm4, %v4080_v1 }
 0x2b6   :  { %11770 = vmatmul.mubr.msk.f32.gmra.mrb[10].mxu0 %vm1869_vm4, %v6997_v2 }
 0x2b7   :  { %11772 = vmatprep.mubr.msk.f32.mxu0 %vm1869_vm4, %v6998_v6  ;;  %v4105_v6 = vld [vmem:[#allocation4 + $0x11a] sm:$0xff] }
 0x2b8   :  { %11336 = vmatmul.mubr.msk.f32.gmra.mrb[102].mxu1 %vm1869_vm4, %v4081_v3 }
 0x2b9   :  { %11338 = vmatprep.mubr.msk.f32.mxu1 %vm1869_vm4, %v4082_v7 }
 0x2ba   :  { %11773 = vmatmul.mubr.msk.f32.gmra.mrb[12].mxu0 %vm1869_vm4, %v6999_v11  ;;  %v4106_v11 = vld [vmem:[#allocation4 + $0x122] sm:$0xff] }
 0x2bb   :  { %11775 = vmatprep.mubr.msk.f32.mxu0 %vm1869_vm4, %v7000_v12  ;;  %v4107_v12 = vld [vmem:[#allocation4 + $0x12a] sm:$0xff] }
 0x2bc   :  { %11339 = vmatmul.mubr.msk.f32.gmra.mrb[104].mxu1 %vm1869_vm4, %v4083_v13  ;;  %v4108_v13 = vld [vmem:[#allocation4 + $0x132] sm:$0xff] }
 0x2bd   :  { %11341 = vmatprep.mubr.msk.f32.mxu1 %vm1869_vm4, %v4084_v15  ;;  %v4109_v15 = vld [vmem:[#allocation4 + $0x13a] sm:$0xff] }
 0x2be   :  { %11776 = vmatmul.mubr.msk.f32.gmra.mrb[14].mxu0 %vm1869_vm4, %v7001_v14  ;;  %v4110_v14 = vld [vmem:[#allocation4 + $0x142] sm:$0xff] }
 0x2c0   :  { %11342 = vmatmul.mubr.msk.f32.gmra.mrb[106].mxu1 %vm1869_vm4, %v4085_v17  ;;  %v4111_v17 = vld [vmem:[#allocation4 + $0x14a] sm:$0xff] }
 0x2c1   :  { %11344 = vmatprep.mubr.msk.f32.mxu1 %vm1869_vm4, %v4086_v18  ;;  %v9774_v18 = vld [vmem:[%s15497_s3 + $0x110] sm:$0xff] }
 0x2c4   :  { %11345 = vmatmul.mubr.msk.f32.gmra.mrb[108].mxu1 %vm1869_vm4, %v4087_v26  ;;  %v11206_v22 = vpop.f32.mrb[36].mxu1  ;;  %v9775_v26 = vld [vmem:[%s15497_s3 + $0x118] sm:$0xff] }
 0x2c5   :  { %11347 = vmatprep.mubr.msk.f32.mxu1 %vm1869_vm4, %v4088_v21  ;;  %3479 = vst.msk [vmem:[#allocation5 + $0xe8] sm:$0xff] %vm3449_vm6, %v11206_v22  ;;  %v3380_v24 = vpop.f32.mrb[37].mxu1  ;;  %v4648_v21 = vld [vmem:[#allocation4 + $0x1c] sm:$0xff]  ;;  %v12001_v22 = vpack.c.bf16 %v9775_v26, %v9774_v18  ;;  %v4661_v18 = vld [vmem:[#allocation4 + $0x84] sm:$0xff]  ;;  %v4662_v26 = vld [vmem:[#allocation4 + $0x8c] sm:$0xff] }
 0x2c6   :  { %v13997_v23 = vpop.f32.mrb[212].mxu0  ;;  %3478 = vst.msk [vmem:[#allocation5 + $0xe0] sm:$0xff] %vm3449_vm6, %v3380_v24  ;;  %v4649_v24 = vld [vmem:[#allocation4 + $0x24] sm:$0xff] }
 0x2c7   :  { %v14000_v29 = vpop.f32.mrb[213].mxu0 }
 0x2c8   :  { %11348 = vmatmul.mubr.msk.f32.gmra.mrb[110].mxu1 %vm1869_vm4, %v4089_v27  ;;  %v9776_v27 = vld [vmem:[%s15497_s3 + $0x120] sm:$0xff] }
 0x2c9   :  { %11350 = vmatprep.mubr.msk.f32.mxu1 %vm1869_vm4, %v4090_v53  ;;  %v9777_v53 = vld [vmem:[%s15497_s3 + $0x128] sm:$0xff] }
 0x2cc   :  { %11351 = vmatmul.mubr.msk.f32.gmra.mrb[112].mxu1 %vm1869_vm4, %v4091_v30  ;;  %v4650_v30 = vld [vmem:[#allocation4 + $0x2c] sm:$0xff] }
 0x2cd   :  { %11353 = vmatprep.mubr.msk.f32.mxu1 %vm1869_vm4, %v4092_v32 }
 0x2d0   :  { %11354 = vmatmul.mubr.msk.f32.gmra.mrb[114].mxu1 %vm1869_vm4, %v4093_v33  ;;  %v12005_v33 = vpack.c.bf16 %v9777_v53, %v9776_v27  ;;  %v4666_v27 = vld [vmem:[#allocation4 + $0xac] sm:$0xff] }
 0x2d1   :  { %11356 = vmatprep.mubr.msk.f32.mxu1 %vm1869_vm4, %v4094_v49 }
 0x2d4   :  { %11357 = vmatmul.mubr.msk.f32.gmra.mrb[116].mxu1 %vm1869_vm4, %v4095_v35 }
 0x2d5   :  { %11359 = vmatprep.mubr.msk.f32.mxu1 %vm1869_vm4, %v4096_v36  ;;  %v4651_v36 = vld [vmem:[#allocation4 + $0x34] sm:$0xff] }
 0x2d8   :  { %11360 = vmatmul.mubr.msk.f32.gmra.mrb[118].mxu1 %vm1869_vm4, %v4097_v38  ;;  %v9778_v38 = vld [vmem:[%s15497_s3 + $0x130] sm:$0xff] }
 0x2d9   :  { %11362 = vmatprep.mubr.msk.f32.mxu1 %vm1869_vm4, %v4098_v41  ;;  %v9779_v41 = vld [vmem:[%s15497_s3 + $0x138] sm:$0xff] }
 0x2dc   :  { %11363 = vmatmul.mubr.msk.f32.gmra.mrb[120].mxu1 %vm1869_vm4, %v4099_v42  ;;  %v4652_v42 = vld [vmem:[#allocation4 + $0x3c] sm:$0xff] }
 0x2dd   :  { %11365 = vmatprep.mubr.msk.f32.mxu1 %vm1869_vm4, %v4100_v44  ;;  %v11209_v46 = vpop.f32.mrb[38].mxu1  ;;  %v12009_v44 = vpack.c.bf16 %v9779_v41, %v9778_v38  ;;  %v4669_v41 = vld [vmem:[#allocation4 + $0xc4] sm:$0xff] }
 0x2de   :  { %3481 = vst.msk [vmem:[#allocation5 + $0xf8] sm:$0xff] %vm3449_vm6, %v11209_v46  ;;  %v14015_v50 = vpop.f32.mrb[214].mxu0  ;;  %v3390_v51 = vpop.f32.mrb[39].mxu1  ;;  %v4653_v46 = vld [vmem:[#allocation4 + $0x44] sm:$0xff] }
 0x2df   :  { %3480 = vst.msk [vmem:[#allocation5 + $0xf0] sm:$0xff] %vm3449_vm6, %v3390_v51  ;;  %v14018_v56 = vpop.f32.mrb[215].mxu0  ;;  %v9872_v51 = vld [vmem:[%s15497_s3 + $0x180] sm:$0xff] }
 0x2e0   :  { %11366 = vmatmul.mubr.msk.f32.gmra.mrb[122].mxu1 %vm1869_vm4, %v4101_v54  ;;  %v9873_v54 = vld [vmem:[%s15497_s3 + $0x188] sm:$0xff] }
 0x2e1   :  { %11368 = vmatprep.mubr.msk.f32.mxu1 %vm1869_vm4, %v4102_v60  ;;  %v4654_v60 = vld [vmem:[#allocation4 + $0x4c] sm:$0xff] }
 0x2e4   :  { %11369 = vmatmul.mubr.msk.f32.gmra.mrb[124].mxu1 %vm1869_vm4, %v4103_v61 }
 0x2e5   :  { %11371 = vmatprep.mubr.msk.f32.mxu1 %vm1869_vm4, %v4104_v0  ;;  %v11212_v1 = vpop.f32.mrb[40].mxu1  ;;  %v14075_v0 = vpack.c.bf16 %v9873_v54, %v9872_v51 }
 0x2e6   :  { %3483 = vst.msk [vmem:[#allocation5 + $0x108] sm:$0xff] %vm3449_vm6, %v11212_v1  ;;  %v14025_v2 = vpop.f32.mrb[216].mxu0  ;;  %v3400_v3 = vpop.f32.mrb[41].mxu1 }
 0x2e7   :  { %3482 = vst.msk [vmem:[#allocation5 + $0x100] sm:$0xff] %vm3449_vm6, %v3400_v3  ;;  %v14028_v7 = vpop.f32.mrb[217].mxu0 }
 0x2e8   :  { %11372 = vmatmul.mubr.msk.f32.gmra.mrb[126].mxu1 %vm1869_vm4, %v4105_v6  ;;  %v4655_v6 = vld [vmem:[#allocation4 + $0x54] sm:$0xff] }
 0x2e9   :  { %11374 = vmatprep.mubr.msk.f32.mxu1 %vm1869_vm4, %v4106_v11 }
 0x2ec   :  { %11375 = vmatmul.mubr.msk.f32.gmra.mrb[128].mxu1 %vm1869_vm4, %v4107_v12  ;;  %v4656_v12 = vld [vmem:[#allocation4 + $0x5c] sm:$0xff] }
 0x2ed   :  { %11377 = vmatprep.mubr.msk.f32.mxu1 %vm1869_vm4, %v4108_v13  ;;  %v4657_v13 = vld [vmem:[#allocation4 + $0x64] sm:$0xff] }
 0x2f0   :  { %11378 = vmatmul.mubr.msk.f32.gmra.mrb[130].mxu1 %vm1869_vm4, %v4109_v15  ;;  %v4658_v15 = vld [vmem:[#allocation4 + $0x6c] sm:$0xff] }
 0x2f1   :  { %11380 = vmatprep.mubr.msk.f32.mxu1 %vm1869_vm4, %v4110_v14  ;;  %v4659_v14 = vld [vmem:[#allocation4 + $0x74] sm:$0xff] }
 0x2f4   :  { %11381 = vmatmul.mubr.msk.f32.gmra.mrb[132].mxu1 %vm1869_vm4, %v4111_v17  ;;  %v4660_v17 = vld [vmem:[#allocation4 + $0x7c] sm:$0xff] }
 0x2f5   :  { %11399 = vmatprep.mubr.msk.f32.mxu1 %vm1869_vm4, %v4648_v21  ;;  %v4663_v21 = vld [vmem:[#allocation4 + $0x94] sm:$0xff] }
 0x2f8   :  { %11400 = vmatmul.mubr.msk.f32.vlgmr.msra.gmra.mrb[134].mxu1 %vm1869_vm4, %v4649_v24  ;;  %v11215_v32 = vpop.f32.mrb[42].mxu1  ;;  %v4665_v24 = vld [vmem:[#allocation4 + $0xa4] sm:$0xff] }
 0x2f9   :  { %12000 = vmatpush3.bf16.msra.mxu1 %v13966_v47  ;;  %11402 = vmatprep.mubr.msk.f32.mxu1 %vm1869_vm4, %v4650_v30  ;;  %3485 = vst.msk [vmem:[#allocation5 + $0x118] sm:$0xff] %vm3449_vm6, %v11215_v32  ;;  %v3410_v35 = vpop.f32.mrb[43].mxu1 }
 0x2fa   :  { %12002 = vmatprep.subr.bf16.mxu1 %v12001_v22  ;;  %v14054_v49 = vpop.f32.mrb[218].mxu0  ;;  %3484 = vst.msk [vmem:[#allocation5 + $0x110] sm:$0xff] %vm3449_vm6, %v3410_v35 }
 0x2fb   :  { %v14063_v47 = vpop.f32.mrb[219].mxu0 }
 0x2fc   :  { %11403 = vmatmul.mubr.msk.f32.gmra.mrb[136].mxu1 %vm1869_vm4, %v4651_v36  ;;  %v4668_v36 = vld [vmem:[#allocation4 + $0xbc] sm:$0xff] }
 0x2fd   :  { %11405 = vmatprep.mubr.msk.f32.mxu1 %vm1869_vm4, %v4652_v42  ;;  %12004 = vmatpush3.bf16.msra.mxu1 %v12001_v22  ;;  %v4664_v22 = vld [vmem:[#allocation4 + $0x9c] sm:$0xff] }
 0x2fe   :  { %12006 = vmatprep.subr.bf16.mxu1 %v12005_v33 }
 0x300   :  { %11406 = vmatmul.mubr.msk.f32.gmra.mrb[138].mxu1 %vm1869_vm4, %v4653_v46  ;;  %v4670_v46 = vld [vmem:[#allocation4 + $0xcc] sm:$0xff] }
 0x301   :  { %11408 = vmatprep.mubr.msk.f32.mxu1 %vm1869_vm4, %v4654_v60  ;;  %12008 = vmatpush3.bf16.msra.mxu1 %v12005_v33  ;;  %v11218_v61 = vpop.f32.mrb[44].mxu1  ;;  %v4667_v33 = vld [vmem:[#allocation4 + $0xb4] sm:$0xff] }
 0x302   :  { %12010 = vmatprep.subr.bf16.mxu1 %v12009_v44  ;;  %3487 = vst.msk [vmem:[#allocation5 + $0x128] sm:$0xff] %vm3449_vm6, %v11218_v61  ;;  %v14078_v1 = vpop.f32.mrb[220].mxu0  ;;  %v3420_v3 = vpop.f32.mrb[45].mxu1  ;;  %v3945_v60 = vld [vmem:[#allocation5 + $0x8] sm:$0xff] }
 0x303   :  { %3486 = vst.msk [vmem:[#allocation5 + $0x120] sm:$0xff] %vm3449_vm6, %v3420_v3  ;;  %v14081_v11 = vpop.f32.mrb[221].mxu0  ;;  %v4671_v61 = vld [vmem:[#allocation4 + $0xd4] sm:$0xff] }
 0x304   :  { %11409 = vmatmul.mubr.msk.f32.gmra.mrb[140].mxu1 %vm1869_vm4, %v4655_v6 }
 0x305   :  { %11411 = vmatprep.mubr.msk.f32.mxu1 %vm1869_vm4, %v4656_v12  ;;  %12012 = vmatpush3.bf16.msra.mxu1 %v12009_v44  ;;  %v3944_v12 = vld [vmem:[#allocation5] sm:$0xff] }
 0x306   :  { %12030 = vmatprep.subr.bf16.mxu1 %v14075_v0 }
 0x308   :  { %11412 = vmatmul.mubr.msk.f32.gmra.mrb[142].mxu1 %vm1869_vm4, %v4657_v13  ;;  %v4672_v13 = vld [vmem:[#allocation4 + $0xdc] sm:$0xff] }
 0x309   :  { %11414 = vmatprep.mubr.msk.f32.mxu1 %vm1869_vm4, %v4658_v15 }
 0x30c   :  { %11415 = vmatmul.mubr.msk.f32.gmra.mrb[144].mxu1 %vm1869_vm4, %v4659_v14 }
 0x30d   :  { %11417 = vmatprep.mubr.msk.f32.mxu1 %vm1869_vm4, %v4660_v17  ;;  %v3947_v17 = vld [vmem:[#allocation5 + $0x18] sm:$0xff] }
 0x310   :  { %11418 = vmatmul.mubr.msk.f32.gmra.mrb[146].mxu1 %vm1869_vm4, %v4661_v18  ;;  %v4673_v18 = vld [vmem:[#allocation4 + $0xe4] sm:$0xff] }
 0x311   :  { %11420 = vmatprep.mubr.msk.f32.mxu1 %vm1869_vm4, %v4662_v26 }
 0x314   :  { %11421 = vmatmul.mubr.msk.f32.gmra.mrb[148].mxu1 %vm1869_vm4, %v4663_v21 }
 0x315   :  { %11423 = vmatprep.mubr.msk.f32.mxu1 %vm1869_vm4, %v4664_v22  ;;  %v3946_v22 = vld [vmem:[#allocation5 + $0x10] sm:$0xff] }
 0x318   :  { %11424 = vmatmul.mubr.msk.f32.gmra.mrb[150].mxu1 %vm1869_vm4, %v4665_v24  ;;  %v4674_v24 = vld [vmem:[#allocation4 + $0xec] sm:$0xff] }
 0x319   :  { %11426 = vmatprep.mubr.msk.f32.mxu1 %vm1869_vm4, %v4666_v27  ;;  %v11221_v53 = vpop.f32.mrb[46].mxu1 }
 0x31a   :  { %3489 = vst.msk [vmem:[#allocation5 + $0x138] sm:$0xff] %vm3449_vm6, %v11221_v53  ;;  %v14097_v30 = vpop.f32.mrb[222].mxu0  ;;  %v3430_v32 = vpop.f32.mrb[47].mxu1 }
 0x31b   :  { %3488 = vst.msk [vmem:[#allocation5 + $0x130] sm:$0xff] %vm3449_vm6, %v3430_v32  ;;  %v14100_v35 = vpop.f32.mrb[223].mxu0  ;;  %v3949_v32 = vld [vmem:[#allocation5 + $0x28] sm:$0xff] }
 0x31c   :  { %11427 = vmatmul.mubr.msk.f32.gmra.mrb[152].mxu1 %vm1869_vm4, %v4667_v33  ;;  %v4675_v33 = vld [vmem:[#allocation4 + $0xf4] sm:$0xff] }
 0x31d   :  { %11429 = vmatprep.mubr.msk.f32.mxu1 %vm1869_vm4, %v4668_v36 }
 0x31f   :  { %v11224_v38 = vpop.f32.mrb[48].mxu1 }
 0x320   :  { %3491 = vst.msk [vmem:[#allocation5 + $0x148] sm:$0xff] %vm3449_vm6, %v11224_v38  ;;  %v14105_v42 = vpop.f32.mrb[224].mxu0  ;;  %v3440_v44 = vpop.f32.mrb[49].mxu1  ;;  %11430 = vmatmul.mubr.msk.f32.gmra.mrb[154].mxu1 %vm1869_vm4, %v4669_v41  ;;  %v3948_v41 = vld [vmem:[#allocation5 + $0x20] sm:$0xff] }
 0x321   :  { %3490 = vst.msk [vmem:[#allocation5 + $0x140] sm:$0xff] %vm3449_vm6, %v3440_v44  ;;  %v14109_v51 = vpop.f32.mrb[225].mxu0  ;;  %11432 = vmatprep.mubr.msk.f32.mxu1 %vm1869_vm4, %v4670_v46  ;;  %v4676_v44 = vld [vmem:[#allocation4 + $0xfc] sm:$0xff] }
 0x323   :  { %v11243_v54 = vpop.f32.mrb[50].mxu1 }
 0x324   :  { %v3987_v3 = vadd.f32 %v11243_v54, %v3945_v60  ;;  %v3735_v6 = vpop.f32.mrb[51].mxu1  ;;  %11433 = vmatmul.mubr.msk.f32.gmra.mrb[156].mxu1 %vm1869_vm4, %v4671_v61  ;;  %v3951_v60 = vld [vmem:[#allocation5 + $0x38] sm:$0xff] }
 0x325   :  { %v3986_v15 = vadd.f32 %v3944_v12, %v3735_v6  ;;  %11435 = vmatprep.mubr.msk.f32.mxu1 %vm1869_vm4, %v4672_v13  ;;  %v4677_v61 = vld [vmem:[#allocation4 + $0x104] sm:$0xff]  ;;  %v4678_v13 = vld [vmem:[#allocation4 + $0x10c] sm:$0xff] }
 0x326   :  { %4029 = vst.msk [vmem:[#allocation5 + $0x8] sm:$0xff] %vm3449_vm6, %v3987_v3  ;;  %v3950_v12 = vld [vmem:[#allocation5 + $0x30] sm:$0xff] }
 0x327   :  { %4028 = vst.msk [vmem:[#allocation5] sm:$0xff] %vm3449_vm6, %v3986_v15  ;;  %v11246_v14 = vpop.f32.mrb[52].mxu1 }
 0x328   :  { %v3989_v26 = vadd.f32 %v11246_v14, %v3947_v17  ;;  %v3745_v21 = vpop.f32.mrb[53].mxu1  ;;  %11436 = vmatmul.mubr.msk.f32.gmra.mrb[158].mxu1 %vm1869_vm4, %v4673_v18  ;;  %v3953_v17 = vld [vmem:[#allocation5 + $0x48] sm:$0xff] }
 0x329   :  { %v3988_v27 = vadd.f32 %v3946_v22, %v3745_v21  ;;  %11438 = vmatprep.mubr.msk.f32.mxu1 %vm1869_vm4, %v4674_v24  ;;  %v4679_v18 = vld [vmem:[#allocation4 + $0x114] sm:$0xff]  ;;  %v4680_v24 = vld [vmem:[#allocation4 + $0x11c] sm:$0xff] }
 0x32a   :  { %4031 = vst.msk [vmem:[#allocation5 + $0x18] sm:$0xff] %vm3449_vm6, %v3989_v26  ;;  %v3952_v22 = vld [vmem:[#allocation5 + $0x40] sm:$0xff] }
 0x32b   :  { %4030 = vst.msk [vmem:[#allocation5 + $0x10] sm:$0xff] %vm3449_vm6, %v3988_v27  ;;  %v11249_v53 = vpop.f32.mrb[54].mxu1 }
 0x32c   :  { %v3991_v36 = vadd.f32 %v11249_v53, %v3949_v32  ;;  %v3755_v38 = vpop.f32.mrb[55].mxu1  ;;  %11439 = vmatmul.mubr.msk.f32.gmra.mrb[160].mxu1 %vm1869_vm4, %v4675_v33  ;;  %v3955_v33 = vld [vmem:[#allocation5 + $0x58] sm:$0xff] }
 0x32d   :  { %v3990_v46 = vadd.f32 %v3948_v41, %v3755_v38  ;;  %11441 = vmatprep.mubr.msk.f32.mxu1 %vm1869_vm4, %v4676_v44 }
 0x32e   :  { %4033 = vst.msk [vmem:[#allocation5 + $0x28] sm:$0xff] %vm3449_vm6, %v3991_v36  ;;  %v4681_v36 = vld [vmem:[#allocation4 + $0x124] sm:$0xff] }
 0x32f   :  { %4032 = vst.msk [vmem:[#allocation5 + $0x20] sm:$0xff] %vm3449_vm6, %v3990_v46  ;;  %v11252_v54 = vpop.f32.mrb[56].mxu1  ;;  %v3954_v46 = vld [vmem:[#allocation5 + $0x50] sm:$0xff] }
 0x330   :  { %v3993_v3 = vadd.f32 %v11252_v54, %v3951_v60  ;;  %v3765_v6 = vpop.f32.mrb[57].mxu1  ;;  %11442 = vmatmul.mubr.msk.f32.gmra.mrb[162].mxu1 %vm1869_vm4, %v4677_v61  ;;  %v4682_v54 = vld [vmem:[#allocation4 + $0x12c] sm:$0xff] }
 0x331   :  { %v3992_v15 = vadd.f32 %v3950_v12, %v3765_v6  ;;  %11444 = vmatprep.mubr.msk.f32.mxu1 %vm1869_vm4, %v4678_v13  ;;  %v4683_v6 = vld [vmem:[#allocation4 + $0x134] sm:$0xff] }
 0x332   :  { %4035 = vst.msk [vmem:[#allocation5 + $0x38] sm:$0xff] %vm3449_vm6, %v3993_v3  ;;  %v3957_v3 = vld [vmem:[#allocation5 + $0x68] sm:$0xff] }
 0x333   :  { %4034 = vst.msk [vmem:[#allocation5 + $0x30] sm:$0xff] %vm3449_vm6, %v3992_v15  ;;  %v11255_v14 = vpop.f32.mrb[58].mxu1  ;;  %v3956_v15 = vld [vmem:[#allocation5 + $0x60] sm:$0xff] }
 0x334   :  { %v3995_v26 = vadd.f32 %v11255_v14, %v3953_v17  ;;  %v3775_v21 = vpop.f32.mrb[59].mxu1  ;;  %11445 = vmatmul.mubr.msk.f32.gmra.mrb[164].mxu1 %vm1869_vm4, %v4679_v18  ;;  %v4684_v14 = vld [vmem:[#allocation4 + $0x13c] sm:$0xff] }
 0x335   :  { %v3994_v27 = vadd.f32 %v3952_v22, %v3775_v21  ;;  %11447 = vmatprep.mubr.msk.f32.mxu1 %vm1869_vm4, %v4680_v24  ;;  %v14131_v53 = vpop.f32.mrb[226].mxu0  ;;  %v3959_v21 = vld [vmem:[#allocation5 + $0x78] sm:$0xff] }
 0x336   :  { %4037 = vst.msk [vmem:[#allocation5 + $0x48] sm:$0xff] %vm3449_vm6, %v3995_v26  ;;  %v14134_v38 = vpop.f32.mrb[227].mxu0  ;;  %v4685_v22 = vld [vmem:[#allocation4 + $0x144] sm:$0xff] }
 0x337   :  { %4036 = vst.msk [vmem:[#allocation5 + $0x40] sm:$0xff] %vm3449_vm6, %v3994_v27  ;;  %v11258_v32 = vpop.f32.mrb[60].mxu1 }
 0x338   :  { %v3997_v41 = vadd.f32 %v11258_v32, %v3955_v33  ;;  %v3785_v44 = vpop.f32.mrb[61].mxu1  ;;  %11448 = vmatmul.mubr.msk.f32.gmra.mrb[166].mxu1 %vm1869_vm4, %v4681_v36  ;;  %v3958_v33 = vld [vmem:[#allocation5 + $0x70] sm:$0xff]  ;;  %v4686_v36 = vld [vmem:[#allocation4 + $0x14c] sm:$0xff] }
 0x339   :  { %v3996_v60 = vadd.f32 %v3954_v46, %v3785_v44  ;;  %11450 = vmatprep.mubr.msk.f32.mxu1 %vm1869_vm4, %v4682_v54  ;;  %v3961_v54 = vld [vmem:[#allocation5 + $0x88] sm:$0xff] }
 0x33a   :  { %4039 = vst.msk [vmem:[#allocation5 + $0x58] sm:$0xff] %vm3449_vm6, %v3997_v41 }
 0x33b   :  { %4038 = vst.msk [vmem:[#allocation5 + $0x50] sm:$0xff] %vm3449_vm6, %v3996_v60  ;;  %v11261_v61 = vpop.f32.mrb[62].mxu1 }
 0x33c   :  { %v3999_v12 = vadd.f32 %v11261_v61, %v3957_v3  ;;  %v3795_v13 = vpop.f32.mrb[63].mxu1  ;;  %11451 = vmatmul.mubr.msk.f32.gmra.mrb[168].mxu1 %vm1869_vm4, %v4683_v6  ;;  %v14143_v18 = vpop.f32.mrb[228].mxu0  ;;  %v4687_v61 = vld [vmem:[#allocation4 + $0x154] sm:$0xff] }
 0x33d   :  { %v3998_v17 = vadd.f32 %v3956_v15, %v3795_v13  ;;  %11453 = vmatprep.mubr.msk.f32.mxu1 %vm1869_vm4, %v4684_v14  ;;  %v14146_v24 = vpop.f32.mrb[229].mxu0  ;;  %v4688_v13 = vld [vmem:[#allocation4 + $0x15c] sm:$0xff] }
 0x33e   :  { %4041 = vst.msk [vmem:[#allocation5 + $0x68] sm:$0xff] %vm3449_vm6, %v3999_v12  ;;  %v3960_v12 = vld [vmem:[#allocation5 + $0x80] sm:$0xff] }
 0x33f   :  { %4040 = vst.msk [vmem:[#allocation5 + $0x60] sm:$0xff] %vm3449_vm6, %v3998_v17  ;;  %v11264_v26 = vpop.f32.mrb[64].mxu1  ;;  %v4689_v17 = vld [vmem:[#allocation4 + $0x164] sm:$0xff] }
 0x340   :  { %v4001_v27 = vadd.f32 %v11264_v26, %v3959_v21  ;;  %v3805_v32 = vpop.f32.mrb[65].mxu1  ;;  %11454 = vmatmul.mubr.msk.f32.gmra.mrb[170].mxu1 %vm1869_vm4, %v4685_v22  ;;  %v14151_v44 = vpop.f32.mrb[230].mxu0  ;;  %v3963_v21 = vld [vmem:[#allocation5 + $0x98] sm:$0xff] }
 0x341   :  { %v4000_v41 = vadd.f32 %v3958_v33, %v3805_v32  ;;  %11456 = vmatprep.mubr.msk.f32.mxu1 %vm1869_vm4, %v4686_v36  ;;  %v14154_v60 = vpop.f32.mrb[231].mxu0  ;;  %v9875_v32 = vld [vmem:[%s15497_s3 + $0x198] sm:$0xff] }
 0x342   :  { %4043 = vst.msk [vmem:[#allocation5 + $0x78] sm:$0xff] %vm3449_vm6, %v4001_v27  ;;  %v9874_v27 = vld [vmem:[%s15497_s3 + $0x190] sm:$0xff] }
 0x343   :  { %4042 = vst.msk [vmem:[#allocation5 + $0x70] sm:$0xff] %vm3449_vm6, %v4000_v41  ;;  %v11267_v46 = vpop.f32.mrb[66].mxu1  ;;  %v3962_v41 = vld [vmem:[#allocation5 + $0x90] sm:$0xff] }
 0x344   :  { %v4003_v3 = vadd.f32 %v11267_v46, %v3961_v54  ;;  %v3815_v6 = vpop.f32.mrb[67].mxu1  ;;  %11457 = vmatmul.mubr.msk.f32.gmra.mrb[172].mxu1 %vm1869_vm4, %v4687_v61  ;;  %v14159_v14 = vpop.f32.mrb[232].mxu0  ;;  %v5226_v46 = vld [vmem:[#allocation4 + $0x1d] sm:$0xff] }
 0x345   :  { %v4002_v15 = vadd.f32 %v3960_v12, %v3815_v6  ;;  %11459 = vmatprep.mubr.msk.f32.mxu1 %vm1869_vm4, %v4688_v13  ;;  %v14162_v22 = vpop.f32.mrb[233].mxu0  ;;  %v12033_v6 = vpack.c.bf16 %v9875_v32, %v9874_v27  ;;  %v3965_v13 = vld [vmem:[#allocation5 + $0xa8] sm:$0xff]  ;;  %v5228_v27 = vld [vmem:[#allocation4 + $0x2d] sm:$0xff] }
 0x346   :  { %4045 = vst.msk [vmem:[#allocation5 + $0x88] sm:$0xff] %vm3449_vm6, %v4003_v3  ;;  %v5227_v3 = vld [vmem:[#allocation4 + $0x25] sm:$0xff] }
 0x347   :  { %4044 = vst.msk [vmem:[#allocation5 + $0x80] sm:$0xff] %vm3449_vm6, %v4002_v15  ;;  %v11270_v26 = vpop.f32.mrb[68].mxu1 }
 0x348   :  { %v4005_v33 = vadd.f32 %v11270_v26, %v3963_v21  ;;  %v3825_v36 = vpop.f32.mrb[69].mxu1  ;;  %11460 = vmatmul.mubr.msk.f32.gmra.mrb[174].mxu1 %vm1869_vm4, %v4689_v17  ;;  %v14173_v61 = vpop.f32.mrb[234].mxu0  ;;  %v9876_v17 = vld [vmem:[%s15497_s3 + $0x1a0] sm:$0xff]  ;;  %v9877_v26 = vld [vmem:[%s15497_s3 + $0x1a8] sm:$0xff] }
 0x349   :  { %v4004_v54 = vadd.f32 %v3962_v41, %v3825_v36  ;;  %11478 = vmatprep.mubr.msk.f32.mxu1 %vm1869_vm4, %v5226_v46  ;;  %15506 = vst [vmem:[#allocation12_spill] sm:$0xff] %v14173_v61  ;;  %v14176_v15 = vpop.f32.mrb[235].mxu0  ;;  %v3964_v36 = vld [vmem:[#allocation5 + $0xa0] sm:$0xff] }
 0x34a   :  { %4047 = vst.msk [vmem:[#allocation5 + $0x98] sm:$0xff] %vm3449_vm6, %v4005_v33  ;;  %15507 = vst [vmem:[#allocation13_spill] sm:$0xff] %v14176_v15  ;;  %v5229_v46 = vld [vmem:[#allocation4 + $0x35] sm:$0xff] }
 0x34b   :  { %4046 = vst.msk [vmem:[#allocation5 + $0x90] sm:$0xff] %vm3449_vm6, %v4004_v54  ;;  %v11273_v12 = vpop.f32.mrb[70].mxu1  ;;  %v12037_v54 = vpack.c.bf16 %v9877_v26, %v9876_v17  ;;  %v5230_v17 = vld [vmem:[#allocation4 + $0x3d] sm:$0xff] }
 0x34c   :  { %v4007_v21 = vadd.f32 %v11273_v12, %v3965_v13  ;;  %v3835_v33 = vpop.f32.mrb[71].mxu1  ;;  %11479 = vmatmul.mubr.msk.f32.vlgmr.msra.gmra.mrb[176].mxu1 %vm1869_vm4, %v5227_v3  ;;  %v14188_v41 = vpop.f32.mrb[236].mxu0  ;;  %v3967_v13 = vld [vmem:[#allocation5 + $0xb8] sm:$0xff]  ;;  %v9878_v3 = vld [vmem:[%s15497_s3 + $0x1b0] sm:$0xff] }
 0x34d   :  { %v4006_v32 = vadd.f32 %v3964_v36, %v3835_v33  ;;  %12032 = vmatpush3.bf16.msra.mxu1 %v14075_v0  ;;  %11481 = vmatprep.mubr.msk.f32.mxu1 %vm1869_vm4, %v5228_v27  ;;  %15508 = vst [vmem:[#allocation14_spill] sm:$0xff] %v14188_v41  ;;  %v14191_v55 = vpop.f32.mrb[237].mxu0  ;;  %v9879_v0 = vld [vmem:[%s15497_s3 + $0x1b8] sm:$0xff]  ;;  %v3966_v36 = vld [vmem:[#allocation5 + $0xb0] sm:$0xff] }
 0x34e   :  { %4049 = vst.msk [vmem:[#allocation5 + $0xa8] sm:$0xff] %vm3449_vm6, %v4007_v21  ;;  %12034 = vmatprep.subr.bf16.mxu1 %v12033_v6  ;;  %15509 = vst [vmem:[#allocation15_spill] sm:$0xff] %v14191_v55  ;;  %v12041_v55 = vpack.c.bf16 %v9879_v0, %v9878_v3  ;;  %v5232_v3 = vld [vmem:[#allocation4 + $0x4d] sm:$0xff] }
 0x34f   :  { %4048 = vst.msk [vmem:[#allocation5 + $0xa0] sm:$0xff] %vm3449_vm6, %v4006_v32  ;;  %v11276_v12 = vpop.f32.mrb[72].mxu1  ;;  %v5231_v32 = vld [vmem:[#allocation4 + $0x45] sm:$0xff] }
 0x350   :  { %v4009_v21 = vadd.f32 %v11276_v12, %v3967_v13  ;;  %v3845_v33 = vpop.f32.mrb[73].mxu1  ;;  %11482 = vmatmul.mubr.msk.f32.gmra.mrb[178].mxu1 %vm1869_vm4, %v5229_v46  ;;  %v14202_v27 = vpop.f32.mrb[238].mxu0  ;;  %v3969_v12 = vld [vmem:[#allocation5 + $0xc8] sm:$0xff]  ;;  %v9972_v46 = vld [vmem:[%s15497_s3 + $0x200] sm:$0xff] }
 0x351   :  { %v4008_v26 = vadd.f32 %v3966_v36, %v3845_v33  ;;  %11484 = vmatprep.mubr.msk.f32.mxu1 %vm1869_vm4, %v5230_v17  ;;  %12036 = vmatpush3.bf16.msra.mxu1 %v12033_v6  ;;  %15510 = vst [vmem:[#allocation16_spill] sm:$0xff] %v14202_v27  ;;  %v14205_v13 = vpop.f32.mrb[239].mxu0  ;;  %v9973_v6 = vld [vmem:[%s15497_s3 + $0x208] sm:$0xff]  ;;  %v3968_v36 = vld [vmem:[#allocation5 + $0xc0] sm:$0xff] }
 0x352   :  { %4051 = vst.msk [vmem:[#allocation5 + $0xb8] sm:$0xff] %vm3449_vm6, %v4009_v21  ;;  %12038 = vmatprep.subr.bf16.mxu1 %v12037_v54  ;;  %15511 = vst [vmem:[#allocation17_spill] sm:$0xff] %v14205_v13  ;;  %v5233_v27 = vld [vmem:[#allocation4 + $0x55] sm:$0xff] }
 0x353   :  { %4050 = vst.msk [vmem:[#allocation5 + $0xb0] sm:$0xff] %vm3449_vm6, %v4008_v26  ;;  %v11279_v41 = vpop.f32.mrb[74].mxu1  ;;  %v14218_v26 = vpack.c.bf16 %v9973_v6, %v9972_v46 }
 0x354   :  { %v4011_v21 = vadd.f32 %v11279_v41, %v3969_v12  ;;  %v3855_v33 = vpop.f32.mrb[75].mxu1  ;;  %11485 = vmatmul.mubr.msk.f32.gmra.mrb[180].mxu1 %vm1869_vm4, %v5231_v32  ;;  %v14216_v17 = vpop.f32.mrb[240].mxu0  ;;  %v3971_v41 = vld [vmem:[#allocation5 + $0xd8] sm:$0xff] }
 0x355   :  { %v4010_v0 = vadd.f32 %v3968_v36, %v3855_v33  ;;  %11487 = vmatprep.mubr.msk.f32.mxu1 %vm1869_vm4, %v5232_v3  ;;  %12040 = vmatpush3.bf16.msra.mxu1 %v12037_v54  ;;  %15512 = vst [vmem:[#allocation18_spill] sm:$0xff] %v14216_v17  ;;  %v14221_v12 = vpop.f32.mrb[241].mxu0  ;;  %v3970_v33 = vld [vmem:[#allocation5 + $0xd0] sm:$0xff] }
 0x356   :  { %4053 = vst.msk [vmem:[#allocation5 + $0xc8] sm:$0xff] %vm3449_vm6, %v4011_v21  ;;  %12042 = vmatprep.subr.bf16.mxu1 %v12041_v55  ;;  %15513 = vst [vmem:[#allocation19_spill] sm:$0xff] %v14221_v12  ;;  %v5234_v54 = vld [vmem:[#allocation4 + $0x5d] sm:$0xff]  ;;  %v5235_v3 = vld [vmem:[#allocation4 + $0x65] sm:$0xff] }
 0x357   :  { %4052 = vst.msk [vmem:[#allocation5 + $0xc0] sm:$0xff] %vm3449_vm6, %v4010_v0  ;;  %v11282_v13 = vpop.f32.mrb[76].mxu1  ;;  %v3973_v21 = vld [vmem:[#allocation5 + $0xe8] sm:$0xff]  ;;  %v4538_v12 = vld [vmem:[#allocation5 + $0x80] sm:$0xff] }
 0x358   :  { %v4013_v32 = vadd.f32 %v11282_v13, %v3971_v41  ;;  %v3865_v15 = vpop.f32.mrb[77].mxu1  ;;  %11488 = vmatmul.mubr.msk.f32.gmra.mrb[182].mxu1 %vm1869_vm4, %v5233_v27  ;;  %v14226_v46 = vpop.f32.mrb[242].mxu0  ;;  %v3972_v41 = vld [vmem:[#allocation5 + $0xe0] sm:$0xff] }
 0x359   :  { %v4012_v36 = vadd.f32 %v3970_v33, %v3865_v15  ;;  %11490 = vmatprep.mubr.msk.f32.mxu1 %vm1869_vm4, %v5234_v54  ;;  %12044 = vmatpush3.bf16.msra.mxu1 %v12041_v55  ;;  %15514 = vst [vmem:[#allocation20_spill] sm:$0xff] %v14226_v46  ;;  %v14230_v13 = vpop.f32.mrb[243].mxu0  ;;  %v5236_v15 = vld [vmem:[#allocation4 + $0x6d] sm:$0xff]  ;;  %v3974_v46 = vld [vmem:[#allocation5 + $0xf0] sm:$0xff] }
 0x35a   :  { %4055 = vst.msk [vmem:[#allocation5 + $0xd8] sm:$0xff] %vm3449_vm6, %v4013_v32  ;;  %12062 = vmatprep.subr.bf16.mxu1 %v14218_v26  ;;  %15515 = vst [vmem:[#allocation21_spill] sm:$0xff] %v14230_v13  ;;  %v3975_v54 = vld [vmem:[#allocation5 + $0xf8] sm:$0xff]  ;;  %v5237_v13 = vld [vmem:[#allocation4 + $0x75] sm:$0xff] }
 0x35b   :  { %4054 = vst.msk [vmem:[#allocation5 + $0xd0] sm:$0xff] %vm3449_vm6, %v4012_v36  ;;  %v11285_v6 = vpop.f32.mrb[78].mxu1 }
 0x35c   :  { %v4015_v0 = vadd.f32 %v11285_v6, %v3973_v21  ;;  %v3875_v27 = vpop.f32.mrb[79].mxu1  ;;  %11491 = vmatmul.mubr.msk.f32.gmra.mrb[184].mxu1 %vm1869_vm4, %v5235_v3  ;;  %v14235_v32 = vpop.f32.mrb[244].mxu0  ;;  %v5238_v3 = vld [vmem:[#allocation4 + $0x7d] sm:$0xff] }
 0x35d   :  { %v4014_v55 = vadd.f32 %v3972_v41, %v3875_v27  ;;  %11493 = vmatprep.mubr.msk.f32.mxu1 %vm1869_vm4, %v5236_v15  ;;  %15516 = vst [vmem:[#allocation22_spill] sm:$0xff] %v14235_v32  ;;  %v14238_v36 = vpop.f32.mrb[245].mxu0  ;;  %v3977_v15 = vld [vmem:[#allocation5 + $0x108] sm:$0xff]  ;;  %v3976_v32 = vld [vmem:[#allocation5 + $0x100] sm:$0xff] }
 0x35e   :  { %4057 = vst.msk [vmem:[#allocation5 + $0xe8] sm:$0xff] %vm3449_vm6, %v4015_v0  ;;  %15517 = vst [vmem:[#allocation23_spill] sm:$0xff] %v14238_v36  ;;  %v5239_v36 = vld [vmem:[#allocation4 + $0x85] sm:$0xff] }
 0x35f   :  { %4056 = vst.msk [vmem:[#allocation5 + $0xe0] sm:$0xff] %vm3449_vm6, %v4014_v55  ;;  %v11288_v33 = vpop.f32.mrb[80].mxu1 }
 0x360   :  { %v4017_v6 = vadd.f32 %v11288_v33, %v3975_v54  ;;  %v3885_v21 = vpop.f32.mrb[81].mxu1  ;;  %11494 = vmatmul.mubr.msk.f32.gmra.mrb[186].mxu1 %vm1869_vm4, %v5237_v13  ;;  %v14243_v0 = vpop.f32.mrb[246].mxu0  ;;  %v5240_v13 = vld [vmem:[#allocation4 + $0x8d] sm:$0xff] }
 0x361   :  { %v4016_v27 = vadd.f32 %v3974_v46, %v3885_v21  ;;  %11496 = vmatprep.mubr.msk.f32.mxu1 %vm1869_vm4, %v5238_v3  ;;  %15518 = vst [vmem:[#allocation24_spill] sm:$0xff] %v14243_v0  ;;  %v14246_v55 = vpop.f32.mrb[247].mxu0  ;;  %v3979_v3 = vld [vmem:[#allocation5 + $0x118] sm:$0xff]  ;;  %v3978_v0 = vld [vmem:[#allocation5 + $0x110] sm:$0xff] }
 0x362   :  { %4059 = vst.msk [vmem:[#allocation5 + $0xf8] sm:$0xff] %vm3449_vm6, %v4017_v6  ;;  %15519 = vst [vmem:[#allocation25_spill] sm:$0xff] %v14246_v55  ;;  %v5241_v55 = vld [vmem:[#allocation4 + $0x95] sm:$0xff] }
 0x363   :  { %4058 = vst.msk [vmem:[#allocation5 + $0xf0] sm:$0xff] %vm3449_vm6, %v4016_v27  ;;  %v11291_v41 = vpop.f32.mrb[82].mxu1 }
 0x364   :  { %v4019_v33 = vadd.f32 %v11291_v41, %v3977_v15  ;;  %v3895_v54 = vpop.f32.mrb[83].mxu1  ;;  %11497 = vmatmul.mubr.msk.f32.gmra.mrb[188].mxu1 %vm1869_vm4, %v5239_v36  ;;  %v14251_v6 = vpop.f32.mrb[248].mxu0  ;;  %v5242_v36 = vld [vmem:[#allocation4 + $0x9d] sm:$0xff] }
 0x365   :  { %v4018_v46 = vadd.f32 %v3976_v32, %v3895_v54  ;;  %11499 = vmatprep.mubr.msk.f32.mxu1 %vm1869_vm4, %v5240_v13  ;;  %15520 = vst [vmem:[#allocation26_spill] sm:$0xff] %v14251_v6  ;;  %v14254_v27 = vpop.f32.mrb[249].mxu0  ;;  %v3981_v13 = vld [vmem:[#allocation5 + $0x128] sm:$0xff]  ;;  %v3980_v6 = vld [vmem:[#allocation5 + $0x120] sm:$0xff] }
 0x366   :  { %4061 = vst.msk [vmem:[#allocation5 + $0x108] sm:$0xff] %vm3449_vm6, %v4019_v33  ;;  %15521 = vst [vmem:[#allocation27_spill] sm:$0xff] %v14254_v27  ;;  %v5243_v27 = vld [vmem:[#allocation4 + $0xa5] sm:$0xff] }
 0x367   :  { %4060 = vst.msk [vmem:[#allocation5 + $0x100] sm:$0xff] %vm3449_vm6, %v4018_v46  ;;  %v11294_v21 = vpop.f32.mrb[84].mxu1 }
 0x368   :  { %v4021_v41 = vadd.f32 %v11294_v21, %v3979_v3  ;;  %v3905_v15 = vpop.f32.mrb[85].mxu1  ;;  %11500 = vmatmul.mubr.msk.f32.gmra.mrb[190].mxu1 %vm1869_vm4, %v5241_v55  ;;  %v14259_v33 = vpop.f32.mrb[250].mxu0  ;;  %v5244_v55 = vld [vmem:[#allocation4 + $0xad] sm:$0xff] }
 0x369   :  { %v4020_v32 = vadd.f32 %v3978_v0, %v3905_v15  ;;  %11502 = vmatprep.mubr.msk.f32.mxu1 %vm1869_vm4, %v5242_v36  ;;  %15522 = vst [vmem:[#allocation28_spill] sm:$0xff] %v14259_v33  ;;  %v14262_v46 = vpop.f32.mrb[251].mxu0  ;;  %v3983_v36 = vld [vmem:[#allocation5 + $0x138] sm:$0xff]  ;;  %v3982_v33 = vld [vmem:[#allocation5 + $0x130] sm:$0xff] }
 0x36a   :  { %4063 = vst.msk [vmem:[#allocation5 + $0x118] sm:$0xff] %vm3449_vm6, %v4021_v41  ;;  %15523 = vst [vmem:[#allocation29_spill] sm:$0xff] %v14262_v46  ;;  %v5245_v46 = vld [vmem:[#allocation4 + $0xb5] sm:$0xff] }
 0x36b   :  { %4062 = vst.msk [vmem:[#allocation5 + $0x110] sm:$0xff] %vm3449_vm6, %v4020_v32  ;;  %v11297_v54 = vpop.f32.mrb[86].mxu1 }
 0x36c   :  { %v4023_v21 = vadd.f32 %v11297_v54, %v3981_v13  ;;  %v3915_v3 = vpop.f32.mrb[87].mxu1  ;;  %11503 = vmatmul.mubr.msk.f32.gmra.mrb[192].mxu1 %vm1869_vm4, %v5243_v27  ;;  %v14267_v41 = vpop.f32.mrb[252].mxu0  ;;  %v5246_v27 = vld [vmem:[#allocation4 + $0xbd] sm:$0xff] }
 0x36d   :  { %v4022_v0 = vadd.f32 %v3980_v6, %v3915_v3  ;;  %11505 = vmatprep.mubr.msk.f32.mxu1 %vm1869_vm4, %v5244_v55  ;;  %15524 = vst [vmem:[#allocation30_spill] sm:$0xff] %v14267_v41  ;;  %v14270_v32 = vpop.f32.mrb[253].mxu0  ;;  %v3985_v55 = vld [vmem:[#allocation5 + $0x148] sm:$0xff]  ;;  %v3984_v41 = vld [vmem:[#allocation5 + $0x140] sm:$0xff] }
 0x36e   :  { %4065 = vst.msk [vmem:[#allocation5 + $0x128] sm:$0xff] %vm3449_vm6, %v4023_v21  ;;  %15525 = vst [vmem:[#allocation31_spill] sm:$0xff] %v14270_v32  ;;  %v5247_v32 = vld [vmem:[#allocation4 + $0xc5] sm:$0xff] }
 0x36f   :  { %4064 = vst.msk [vmem:[#allocation5 + $0x120] sm:$0xff] %vm3449_vm6, %v4022_v0  ;;  %v11300_v15 = vpop.f32.mrb[88].mxu1 }
 0x370   :  { %v4025_v54 = vadd.f32 %v11300_v15, %v3983_v36  ;;  %v3925_v13 = vpop.f32.mrb[89].mxu1  ;;  %11506 = vmatmul.mubr.msk.f32.gmra.mrb[194].mxu1 %vm1869_vm4, %v5245_v46  ;;  %v14275_v21 = vpop.f32.mrb[254].mxu0  ;;  %v5248_v46 = vld [vmem:[#allocation4 + $0xcd] sm:$0xff] }
 0x371   :  { %v4024_v6 = vadd.f32 %v3982_v33, %v3925_v13  ;;  %11508 = vmatprep.mubr.msk.f32.mxu1 %vm1869_vm4, %v5246_v27  ;;  %15526 = vst [vmem:[#allocation32_spill] sm:$0xff] %v14275_v21  ;;  %v14278_v0 = vpop.f32.mrb[255].mxu0  ;;  %v4523_v27 = vld [vmem:[#allocation5 + $0x8] sm:$0xff]  ;;  %v4522_v21 = vld [vmem:[#allocation5] sm:$0xff] }
 0x372   :  { %4067 = vst.msk [vmem:[#allocation5 + $0x138] sm:$0xff] %vm3449_vm6, %v4025_v54  ;;  %15527 = vst [vmem:[#allocation33_spill] sm:$0xff] %v14278_v0  ;;  %v5249_v0 = vld [vmem:[#allocation4 + $0xd5] sm:$0xff] }
 0x373   :  { %4066 = vst.msk [vmem:[#allocation5 + $0x130] sm:$0xff] %vm3449_vm6, %v4024_v6  ;;  %v11303_v3 = vpop.f32.mrb[90].mxu1 }
 0x374   :  { %v4027_v15 = vadd.f32 %v11303_v3, %v3985_v55  ;;  %v3935_v36 = vpop.f32.mrb[91].mxu1  ;;  %11509 = vmatmul.mubr.msk.f32.gmra.mrb[196].mxu1 %vm1869_vm4, %v5247_v32  ;;  %v14283_v54 = vpop.f32.mrb[0].mxu0  ;;  %v5250_v32 = vld [vmem:[#allocation4 + $0xdd] sm:$0xff] }
 0x375   :  { %v4026_v33 = vadd.f32 %v3984_v41, %v3935_v36  ;;  %11511 = vmatprep.mubr.msk.f32.mxu1 %vm1869_vm4, %v5248_v46  ;;  %15528 = vst [vmem:[#allocation34_spill] sm:$0xff] %v14283_v54  ;;  %v14286_v6 = vpop.f32.mrb[1].mxu0  ;;  %v4525_v46 = vld [vmem:[#allocation5 + $0x18] sm:$0xff]  ;;  %v4524_v54 = vld [vmem:[#allocation5 + $0x10] sm:$0xff] }
 0x376   :  { %4069 = vst.msk [vmem:[#allocation5 + $0x148] sm:$0xff] %vm3449_vm6, %v4027_v15  ;;  %15529 = vst [vmem:[#allocation35_spill] sm:$0xff] %v14286_v6  ;;  %v5251_v6 = vld [vmem:[#allocation4 + $0xe5] sm:$0xff] }
 0x377   :  { %4068 = vst.msk [vmem:[#allocation5 + $0x140] sm:$0xff] %vm3449_vm6, %v4026_v33  ;;  %v11322_v13 = vpop.f32.mrb[92].mxu1 }
 0x378   :  { %v4565_v3 = vadd.f32 %v11322_v13, %v4523_v27  ;;  %v4313_v55 = vpop.f32.mrb[93].mxu1  ;;  %11512 = vmatmul.mubr.msk.f32.gmra.mrb[198].mxu1 %vm1869_vm4, %v5249_v0  ;;  %v5252_v0 = vld [vmem:[#allocation4 + $0xed] sm:$0xff] }
 0x379   :  { %v4564_v41 = vadd.f32 %v4522_v21, %v4313_v55  ;;  %11514 = vmatprep.mubr.msk.f32.mxu1 %vm1869_vm4, %v5250_v32  ;;  %v14291_v15 = vpop.f32.mrb[2].mxu0  ;;  %v4527_v32 = vld [vmem:[#allocation5 + $0x28] sm:$0xff] }
 0x37a   :  { %4607 = vst.msk [vmem:[#allocation5 + $0x8] sm:$0xff] %vm3449_vm6, %v4565_v3  ;;  %15530 = vst [vmem:[#allocation36_spill] sm:$0xff] %v14291_v15  ;;  %v14294_v33 = vpop.f32.mrb[3].mxu0  ;;  %v4526_v15 = vld [vmem:[#allocation5 + $0x20] sm:$0xff] }
 0x37b   :  { %4606 = vst.msk [vmem:[#allocation5] sm:$0xff] %vm3449_vm6, %v4564_v41  ;;  %v11325_v36 = vpop.f32.mrb[94].mxu1  ;;  %15531 = vst [vmem:[#allocation37_spill] sm:$0xff] %v14294_v33  ;;  %v5253_v33 = vld [vmem:[#allocation4 + $0xf5] sm:$0xff] }
 0x37c   :  { %v4567_v13 = vadd.f32 %v11325_v36, %v4525_v46  ;;  %v4323_v27 = vpop.f32.mrb[95].mxu1  ;;  %11515 = vmatmul.mubr.msk.f32.gmra.mrb[200].mxu1 %vm1869_vm4, %v5251_v6  ;;  %v5254_v6 = vld [vmem:[#allocation4 + $0xfd] sm:$0xff] }
 0x37d   :  { %v4566_v21 = vadd.f32 %v4524_v54, %v4323_v27  ;;  %11517 = vmatprep.mubr.msk.f32.mxu1 %vm1869_vm4, %v5252_v0  ;;  %v14299_v3 = vpop.f32.mrb[4].mxu0  ;;  %v4529_v0 = vld [vmem:[#allocation5 + $0x38] sm:$0xff] }
 0x37e   :  { %4609 = vst.msk [vmem:[#allocation5 + $0x18] sm:$0xff] %vm3449_vm6, %v4567_v13  ;;  %15532 = vst [vmem:[#allocation38_spill] sm:$0xff] %v14299_v3  ;;  %v14302_v41 = vpop.f32.mrb[5].mxu0  ;;  %v4528_v3 = vld [vmem:[#allocation5 + $0x30] sm:$0xff] }
 0x37f   :  { %4608 = vst.msk [vmem:[#allocation5 + $0x10] sm:$0xff] %vm3449_vm6, %v4566_v21  ;;  %v11328_v55 = vpop.f32.mrb[96].mxu1  ;;  %15533 = vst [vmem:[#allocation39_spill] sm:$0xff] %v14302_v41  ;;  %v5255_v41 = vld [vmem:[#allocation4 + $0x105] sm:$0xff] }
 0x380   :  { %v4569_v36 = vadd.f32 %v11328_v55, %v4527_v32  ;;  %v4333_v46 = vpop.f32.mrb[97].mxu1  ;;  %11518 = vmatmul.mubr.msk.f32.gmra.mrb[202].mxu1 %vm1869_vm4, %v5253_v33  ;;  %v5256_v33 = vld [vmem:[#allocation4 + $0x10d] sm:$0xff] }
 0x381   :  { %v4568_v54 = vadd.f32 %v4526_v15, %v4333_v46  ;;  %11520 = vmatprep.mubr.msk.f32.mxu1 %vm1869_vm4, %v5254_v6  ;;  %v14307_v13 = vpop.f32.mrb[6].mxu0  ;;  %v4531_v6 = vld [vmem:[#allocation5 + $0x48] sm:$0xff] }
 0x382   :  { %4611 = vst.msk [vmem:[#allocation5 + $0x28] sm:$0xff] %vm3449_vm6, %v4569_v36  ;;  %15534 = vst [vmem:[#allocation40_spill] sm:$0xff] %v14307_v13  ;;  %v14310_v21 = vpop.f32.mrb[7].mxu0  ;;  %v4530_v13 = vld [vmem:[#allocation5 + $0x40] sm:$0xff] }
 0x383   :  { %4610 = vst.msk [vmem:[#allocation5 + $0x20] sm:$0xff] %vm3449_vm6, %v4568_v54  ;;  %v11331_v27 = vpop.f32.mrb[98].mxu1  ;;  %15535 = vst [vmem:[#allocation41_spill] sm:$0xff] %v14310_v21  ;;  %v5257_v21 = vld [vmem:[#allocation4 + $0x115] sm:$0xff] }
 0x384   :  { %v4571_v55 = vadd.f32 %v11331_v27, %v4529_v0  ;;  %v4343_v32 = vpop.f32.mrb[99].mxu1  ;;  %11521 = vmatmul.mubr.msk.f32.gmra.mrb[204].mxu1 %vm1869_vm4, %v5255_v41  ;;  %v5258_v41 = vld [vmem:[#allocation4 + $0x11d] sm:$0xff] }
 0x385   :  { %v4570_v15 = vadd.f32 %v4528_v3, %v4343_v32  ;;  %11523 = vmatprep.mubr.msk.f32.mxu1 %vm1869_vm4, %v5256_v33  ;;  %v14315_v36 = vpop.f32.mrb[8].mxu0  ;;  %v4533_v33 = vld [vmem:[#allocation5 + $0x58] sm:$0xff] }
 0x386   :  { %4613 = vst.msk [vmem:[#allocation5 + $0x38] sm:$0xff] %vm3449_vm6, %v4571_v55  ;;  %15536 = vst [vmem:[#allocation42_spill] sm:$0xff] %v14315_v36  ;;  %v14318_v54 = vpop.f32.mrb[9].mxu0  ;;  %v4532_v36 = vld [vmem:[#allocation5 + $0x50] sm:$0xff] }
 0x387   :  { %4612 = vst.msk [vmem:[#allocation5 + $0x30] sm:$0xff] %vm3449_vm6, %v4570_v15  ;;  %v11334_v46 = vpop.f32.mrb[100].mxu1  ;;  %15537 = vst [vmem:[#allocation43_spill] sm:$0xff] %v14318_v54  ;;  %v5259_v54 = vld [vmem:[#allocation4 + $0x125] sm:$0xff] }
 0x388   :  { %v4573_v27 = vadd.f32 %v11334_v46, %v4531_v6  ;;  %v4353_v0 = vpop.f32.mrb[101].mxu1  ;;  %11524 = vmatmul.mubr.msk.f32.gmra.mrb[206].mxu1 %vm1869_vm4, %v5257_v21  ;;  %v5260_v21 = vld [vmem:[#allocation4 + $0x12d] sm:$0xff] }
 0x389   :  { %v4572_v3 = vadd.f32 %v4530_v13, %v4353_v0  ;;  %11526 = vmatprep.mubr.msk.f32.mxu1 %vm1869_vm4, %v5258_v41  ;;  %v14323_v55 = vpop.f32.mrb[10].mxu0  ;;  %v4535_v41 = vld [vmem:[#allocation5 + $0x68] sm:$0xff] }
 0x38a   :  { %4615 = vst.msk [vmem:[#allocation5 + $0x48] sm:$0xff] %vm3449_vm6, %v4573_v27  ;;  %15538 = vst [vmem:[#allocation44_spill] sm:$0xff] %v14323_v55  ;;  %v14326_v15 = vpop.f32.mrb[11].mxu0  ;;  %v4534_v55 = vld [vmem:[#allocation5 + $0x60] sm:$0xff] }
 0x38b   :  { %4614 = vst.msk [vmem:[#allocation5 + $0x40] sm:$0xff] %vm3449_vm6, %v4572_v3  ;;  %v11337_v32 = vpop.f32.mrb[102].mxu1  ;;  %15539 = vst [vmem:[#allocation45_spill] sm:$0xff] %v14326_v15  ;;  %v5261_v3 = vld [vmem:[#allocation4 + $0x135] sm:$0xff] }
 0x38c   :  { %v4575_v46 = vadd.f32 %v11337_v32, %v4533_v33  ;;  %v4363_v6 = vpop.f32.mrb[103].mxu1  ;;  %11527 = vmatmul.mubr.msk.f32.gmra.mrb[208].mxu1 %vm1869_vm4, %v5259_v54  ;;  %v5262_v54 = vld [vmem:[#allocation4 + $0x13d] sm:$0xff] }
 0x38d   :  { %v4574_v13 = vadd.f32 %v4532_v36, %v4363_v6  ;;  %11529 = vmatprep.mubr.msk.f32.mxu1 %vm1869_vm4, %v5260_v21  ;;  %v14331_v27 = vpop.f32.mrb[12].mxu0  ;;  %v4537_v21 = vld [vmem:[#allocation5 + $0x78] sm:$0xff] }
 0x38e   :  { %4617 = vst.msk [vmem:[#allocation5 + $0x58] sm:$0xff] %vm3449_vm6, %v4575_v46  ;;  %15540 = vst [vmem:[#allocation46_spill] sm:$0xff] %v14331_v27  ;;  %v14334_v15 = vpop.f32.mrb[13].mxu0 }
 0x38f   :  { %4616 = vst.msk [vmem:[#allocation5 + $0x50] sm:$0xff] %vm3449_vm6, %v4574_v13  ;;  %v11340_v0 = vpop.f32.mrb[104].mxu1  ;;  %15541 = vst [vmem:[#allocation47_spill] sm:$0xff] %v14334_v15  ;;  %v5263_v13 = vld [vmem:[#allocation4 + $0x145] sm:$0xff] }
 0x390   :  { %v4577_v32 = vadd.f32 %v11340_v0, %v4535_v41  ;;  %v4373_v33 = vpop.f32.mrb[105].mxu1  ;;  %11530 = vmatmul.mubr.msk.f32.gmra.mrb[210].mxu1 %vm1869_vm4, %v5261_v3  ;;  %v4536_v15 = vld [vmem:[#allocation5 + $0x70] sm:$0xff]  ;;  %v5264_v3 = vld [vmem:[#allocation4 + $0x14d] sm:$0xff] }
 0x391   :  { %v4576_v36 = vadd.f32 %v4534_v55, %v4373_v33  ;;  %11532 = vmatprep.mubr.msk.f32.mxu1 %vm1869_vm4, %v5262_v54  ;;  %v14339_v46 = vpop.f32.mrb[14].mxu0  ;;  %v4539_v33 = vld [vmem:[#allocation5 + $0x88] sm:$0xff] }
 0x392   :  { %4619 = vst.msk [vmem:[#allocation5 + $0x68] sm:$0xff] %vm3449_vm6, %v4577_v32  ;;  %15542 = vst [vmem:[#allocation48_spill] sm:$0xff] %v14339_v46  ;;  %v14342_v27 = vpop.f32.mrb[15].mxu0  ;;  %v5265_v54 = vld [vmem:[#allocation4 + $0x155] sm:$0xff] }
 0x393   :  { %4618 = vst.msk [vmem:[#allocation5 + $0x60] sm:$0xff] %vm3449_vm6, %v4576_v36  ;;  %v11343_v6 = vpop.f32.mrb[106].mxu1  ;;  %15543 = vst [vmem:[#allocation49_spill] sm:$0xff] %v14342_v27  ;;  %v4545_v27 = vld [vmem:[#allocation5 + $0xb8] sm:$0xff] }
 0x394   :  { %v4579_v0 = vadd.f32 %v11343_v6, %v4537_v21  ;;  %v4383_v41 = vpop.f32.mrb[107].mxu1  ;;  %11533 = vmatmul.mubr.msk.f32.gmra.mrb[212].mxu1 %vm1869_vm4, %v5263_v13  ;;  %v5266_v6 = vld [vmem:[#allocation4 + $0x15d] sm:$0xff] }
 0x395   :  { %v4578_v55 = vadd.f32 %v4536_v15, %v4383_v41  ;;  %11535 = vmatprep.mubr.msk.f32.mxu1 %vm1869_vm4, %v5264_v3  ;;  %v5267_v15 = vld [vmem:[#allocation4 + $0x165] sm:$0xff] }
 0x396   :  { %4621 = vst.msk [vmem:[#allocation5 + $0x78] sm:$0xff] %vm3449_vm6, %v4579_v0  ;;  %v4541_v0 = vld [vmem:[#allocation5 + $0x98] sm:$0xff]  ;;  %v9974_v41 = vld [vmem:[%s15497_s3 + $0x210] sm:$0xff] }
 0x397   :  { %4620 = vst.msk [vmem:[#allocation5 + $0x70] sm:$0xff] %vm3449_vm6, %v4578_v55  ;;  %v11346_v32 = vpop.f32.mrb[108].mxu1  ;;  %v9975_v3 = vld [vmem:[%s15497_s3 + $0x218] sm:$0xff] }
 0x398   :  { %v4581_v36 = vadd.f32 %v11346_v32, %v4539_v33  ;;  %v4393_v46 = vpop.f32.mrb[109].mxu1  ;;  %11536 = vmatmul.mubr.msk.f32.gmra.mrb[214].mxu1 %vm1869_vm4, %v5265_v54  ;;  %v6383_v54 = vld [vmem:[#allocation4 + $0x40] sm:$0xff] }
 0x399   :  { %v4580_v21 = vadd.f32 %v4538_v12, %v4393_v46  ;;  %11538 = vmatprep.mubr.msk.f32.mxu1 %vm1869_vm4, %v5266_v6  ;;  %v4540_v12 = vld [vmem:[#allocation5 + $0x90] sm:$0xff]  ;;  %v6382_v46 = vld [vmem:[#allocation4 + $0x38] sm:$0xff] }
 0x39a   :  { %4623 = vst.msk [vmem:[#allocation5 + $0x88] sm:$0xff] %vm3449_vm6, %v4581_v36  ;;  %v12065_v36 = vpack.c.bf16 %v9975_v3, %v9974_v41  ;;  %v6385_v41 = vld [vmem:[#allocation4 + $0x50] sm:$0xff] }
 0x39b   :  { %4622 = vst.msk [vmem:[#allocation5 + $0x80] sm:$0xff] %vm3449_vm6, %v4580_v21  ;;  %v11349_v13 = vpop.f32.mrb[110].mxu1  ;;  %v4543_v21 = vld [vmem:[#allocation5 + $0xa8] sm:$0xff] }
 0x39c   :  { %v4583_v55 = vadd.f32 %v11349_v13, %v4541_v0  ;;  %v4403_v32 = vpop.f32.mrb[111].mxu1  ;;  %11539 = vmatmul.mubr.msk.f32.gmra.mrb[216].mxu1 %vm1869_vm4, %v5267_v15  ;;  %v9976_v13 = vld [vmem:[%s15497_s3 + $0x220] sm:$0xff]  ;;  %v9977_v15 = vld [vmem:[%s15497_s3 + $0x228] sm:$0xff] }
 0x39d   :  { %v4582_v33 = vadd.f32 %v4540_v12, %v4403_v32  ;;  %11636 = vmatprep.mubr.msk.f32.mxu1 %vm1869_vm4, %v6382_v46  ;;  %v4542_v12 = vld [vmem:[#allocation5 + $0xa0] sm:$0xff]  ;;  %v12069_v3 = vpack.c.bf16 %v9977_v15, %v9976_v13 }
 0x39e   :  { %4625 = vst.msk [vmem:[#allocation5 + $0x98] sm:$0xff] %vm3449_vm6, %v4583_v55  ;;  %v6384_v55 = vld [vmem:[#allocation4 + $0x48] sm:$0xff] }
 0x39f   :  { %4624 = vst.msk [vmem:[#allocation5 + $0x90] sm:$0xff] %vm3449_vm6, %v4582_v33  ;;  %v11352_v6 = vpop.f32.mrb[112].mxu1 }
 0x3a0   :  { %v4585_v0 = vadd.f32 %v11352_v6, %v4543_v21  ;;  %v4413_v32 = vpop.f32.mrb[113].mxu1  ;;  %11637 = vmatmul.mubr.msk.f32.vlgmr.msra.gmra.mrb[218].mxu1 %vm1869_vm4, %v6383_v54  ;;  %v9978_v6 = vld [vmem:[%s15497_s3 + $0x230] sm:$0xff]  ;;  %v9979_v54 = vld [vmem:[%s15497_s3 + $0x238] sm:$0xff] }
 0x3a1   :  { %v4584_v46 = vadd.f32 %v4542_v12, %v4413_v32  ;;  %12064 = vmatpush3.bf16.msra.mxu1 %v14218_v26  ;;  %11639 = vmatprep.mubr.msk.f32.mxu1 %vm1869_vm4, %v6384_v55  ;;  %v4544_v32 = vld [vmem:[#allocation5 + $0xb0] sm:$0xff]  ;;  %v12073_v13 = vpack.c.bf16 %v9979_v54, %v9978_v6  ;;  %v4547_v55 = vld [vmem:[#allocation5 + $0xc8] sm:$0xff]  ;;  %v4549_v6 = vld [vmem:[#allocation5 + $0xd8] sm:$0xff] }
 0x3a2   :  { %4627 = vst.msk [vmem:[#allocation5 + $0xa8] sm:$0xff] %vm3449_vm6, %v4585_v0  ;;  %12066 = vmatprep.subr.bf16.mxu1 %v12065_v36  ;;  %v6386_v0 = vld [vmem:[#allocation4 + $0x58] sm:$0xff]  ;;  %v6389_v54 = vld [vmem:[#allocation4 + $0x70] sm:$0xff] }
 0x3a3   :  { %4626 = vst.msk [vmem:[#allocation5 + $0xa0] sm:$0xff] %vm3449_vm6, %v4584_v46  ;;  %v11355_v33 = vpop.f32.mrb[114].mxu1  ;;  %v6387_v46 = vld [vmem:[#allocation4 + $0x60] sm:$0xff] }
 0x3a4   :  { %v4587_v26 = vadd.f32 %v11355_v33, %v4545_v27  ;;  %v4423_v21 = vpop.f32.mrb[115].mxu1  ;;  %11640 = vmatmul.mubr.msk.f32.gmra.mrb[220].mxu1 %vm1869_vm4, %v6385_v41  ;;  %v4546_v33 = vld [vmem:[#allocation5 + $0xc0] sm:$0xff]  ;;  %v6388_v41 = vld [vmem:[#allocation4 + $0x68] sm:$0xff] }
 0x3a5   :  { %v4586_v12 = vadd.f32 %v4544_v32, %v4423_v21  ;;  %11642 = vmatprep.mubr.msk.f32.mxu1 %vm1869_vm4, %v6386_v0  ;;  %12068 = vmatpush3.bf16.msra.mxu1 %v12065_v36  ;;  %v4548_v32 = vld [vmem:[#allocation5 + $0xd0] sm:$0xff]  ;;  %v6390_v0 = vld [vmem:[#allocation4 + $0x78] sm:$0xff] }
 0x3a6   :  { %4629 = vst.msk [vmem:[#allocation5 + $0xb8] sm:$0xff] %vm3449_vm6, %v4587_v26  ;;  %12070 = vmatprep.subr.bf16.mxu1 %v12069_v3 }
 0x3a7   :  { %4628 = vst.msk [vmem:[#allocation5 + $0xb0] sm:$0xff] %vm3449_vm6, %v4586_v12  ;;  %v11358_v15 = vpop.f32.mrb[116].mxu1 }
 0x3a8   :  { %v4589_v17 = vadd.f32 %v11358_v15, %v4547_v55  ;;  %v4433_v27 = vpop.f32.mrb[117].mxu1  ;;  %11643 = vmatmul.mubr.msk.f32.gmra.mrb[222].mxu1 %vm1869_vm4, %v6387_v46  ;;  %v4550_v46 = vld [vmem:[#allocation5 + $0xe0] sm:$0xff] }
 0x3a9   :  { %v4588_v61 = vadd.f32 %v4546_v33, %v4433_v27  ;;  %11645 = vmatprep.mubr.msk.f32.mxu1 %vm1869_vm4, %v6388_v41  ;;  %12072 = vmatpush3.bf16.msra.mxu1 %v12069_v3  ;;  %v4551_v3 = vld [vmem:[#allocation5 + $0xe8] sm:$0xff]  ;;  %v6392_v27 = vld [vmem:[#allocation4 + $0x88] sm:$0xff] }
 0x3aa   :  { %4631 = vst.msk [vmem:[#allocation5 + $0xc8] sm:$0xff] %vm3449_vm6, %v4589_v17  ;;  %12074 = vmatprep.subr.bf16.mxu1 %v12073_v13  ;;  %v4553_v41 = vld [vmem:[#allocation5 + $0xf8] sm:$0xff] }
 0x3ab   :  { %4630 = vst.msk [vmem:[#allocation5 + $0xc0] sm:$0xff] %vm3449_vm6, %v4588_v61  ;;  %v11361_v36 = vpop.f32.mrb[118].mxu1  ;;  %v6391_v61 = vld [vmem:[#allocation4 + $0x80] sm:$0xff] }
 0x3ac   :  { %v4591_v26 = vadd.f32 %v11361_v36, %v4549_v6  ;;  %v4443_v21 = vpop.f32.mrb[119].mxu1  ;;  %11646 = vmatmul.mubr.msk.f32.gmra.mrb[224].mxu1 %vm1869_vm4, %v6389_v54  ;;  %v6393_v36 = vld [vmem:[#allocation4 + $0x90] sm:$0xff] }
 0x3ad   :  { %v4590_v12 = vadd.f32 %v4548_v32, %v4443_v21  ;;  %11648 = vmatprep.mubr.msk.f32.mxu1 %vm1869_vm4, %v6390_v0  ;;  %12076 = vmatpush3.bf16.msra.mxu1 %v12073_v13  ;;  %v6394_v21 = vld [vmem:[#allocation4 + $0x98] sm:$0xff] }
 0x3ae   :  { %4633 = vst.msk [vmem:[#allocation5 + $0xd8] sm:$0xff] %vm3449_vm6, %v4591_v26  ;;  %v4552_v26 = vld [vmem:[#allocation5 + $0xf0] sm:$0xff] }
 0x3af   :  { %4632 = vst.msk [vmem:[#allocation5 + $0xd0] sm:$0xff] %vm3449_vm6, %v4590_v12  ;;  %v11364_v17 = vpop.f32.mrb[120].mxu1  ;;  %v4555_v12 = vld [vmem:[#allocation5 + $0x108] sm:$0xff] }
 0x3b0   :  { %v4593_v15 = vadd.f32 %v11364_v17, %v4551_v3  ;;  %v4453_v55 = vpop.f32.mrb[121].mxu1  ;;  %11649 = vmatmul.mubr.msk.f32.gmra.mrb[226].mxu1 %vm1869_vm4, %v6391_v61  ;;  %v6395_v17 = vld [vmem:[#allocation4 + $0xa0] sm:$0xff] }
 0x3b1   :  { %v4592_v33 = vadd.f32 %v4550_v46, %v4453_v55  ;;  %11651 = vmatprep.mubr.msk.f32.mxu1 %vm1869_vm4, %v6392_v27  ;;  %v6396_v55 = vld [vmem:[#allocation4 + $0xa8] sm:$0xff] }
 0x3b2   :  { %4635 = vst.msk [vmem:[#allocation5 + $0xe8] sm:$0xff] %vm3449_vm6, %v4593_v15  ;;  %v4554_v15 = vld [vmem:[#allocation5 + $0x100] sm:$0xff] }
 0x3b3   :  { %4634 = vst.msk [vmem:[#allocation5 + $0xe0] sm:$0xff] %vm3449_vm6, %v4592_v33  ;;  %v11367_v13 = vpop.f32.mrb[122].mxu1  ;;  %v4557_v33 = vld [vmem:[#allocation5 + $0x118] sm:$0xff] }
 0x3b4   :  { %v4595_v6 = vadd.f32 %v11367_v13, %v4553_v41  ;;  %v4463_v54 = vpop.f32.mrb[123].mxu1  ;;  %11652 = vmatmul.mubr.msk.f32.gmra.mrb[228].mxu1 %vm1869_vm4, %v6393_v36  ;;  %v6397_v13 = vld [vmem:[#allocation4 + $0xb0] sm:$0xff] }
 0x3b5   :  { %v4594_v32 = vadd.f32 %v4552_v26, %v4463_v54  ;;  %11654 = vmatprep.mubr.msk.f32.mxu1 %vm1869_vm4, %v6394_v21  ;;  %v6398_v54 = vld [vmem:[#allocation4 + $0xb8] sm:$0xff] }
 0x3b6   :  { %4637 = vst.msk [vmem:[#allocation5 + $0xf8] sm:$0xff] %vm3449_vm6, %v4595_v6  ;;  %v4556_v6 = vld [vmem:[#allocation5 + $0x110] sm:$0xff] }
 0x3b7   :  { %4636 = vst.msk [vmem:[#allocation5 + $0xf0] sm:$0xff] %vm3449_vm6, %v4594_v32  ;;  %v11370_v0 = vpop.f32.mrb[124].mxu1  ;;  %v4559_v32 = vld [vmem:[#allocation5 + $0x128] sm:$0xff] }
 0x3b8   :  { %v4597_v3 = vadd.f32 %v11370_v0, %v4555_v12  ;;  %v4473_v61 = vpop.f32.mrb[125].mxu1  ;;  %11655 = vmatmul.mubr.msk.f32.gmra.mrb[230].mxu1 %vm1869_vm4, %v6395_v17  ;;  %v6399_v0 = vld [vmem:[#allocation4 + $0xc0] sm:$0xff] }
 0x3b9   :  { %v4596_v46 = vadd.f32 %v4554_v15, %v4473_v61  ;;  %11657 = vmatprep.mubr.msk.f32.mxu1 %vm1869_vm4, %v6396_v55  ;;  %v6400_v61 = vld [vmem:[#allocation4 + $0xc8] sm:$0xff] }
 0x3ba   :  { %4639 = vst.msk [vmem:[#allocation5 + $0x108] sm:$0xff] %vm3449_vm6, %v4597_v3  ;;  %v4558_v3 = vld [vmem:[#allocation5 + $0x120] sm:$0xff] }
 0x3bb   :  { %4638 = vst.msk [vmem:[#allocation5 + $0x100] sm:$0xff] %vm3449_vm6, %v4596_v46  ;;  %v11373_v27 = vpop.f32.mrb[126].mxu1  ;;  %v4561_v46 = vld [vmem:[#allocation5 + $0x138] sm:$0xff] }
 0x3bc   :  { %v4599_v41 = vadd.f32 %v11373_v27, %v4557_v33  ;;  %v4483_v36 = vpop.f32.mrb[127].mxu1  ;;  %11658 = vmatmul.mubr.msk.f32.gmra.mrb[232].mxu1 %vm1869_vm4, %v6397_v13  ;;  %v6401_v27 = vld [vmem:[#allocation4 + $0xd0] sm:$0xff] }
 0x3bd   :  { %v4598_v26 = vadd.f32 %v4556_v6, %v4483_v36  ;;  %11660 = vmatprep.mubr.msk.f32.mxu1 %vm1869_vm4, %v6398_v54  ;;  %v6402_v36 = vld [vmem:[#allocation4 + $0xd8] sm:$0xff] }
 0x3be   :  { %4641 = vst.msk [vmem:[#allocation5 + $0x118] sm:$0xff] %vm3449_vm6, %v4599_v41  ;;  %v4560_v41 = vld [vmem:[#allocation5 + $0x130] sm:$0xff] }
 0x3bf   :  { %4640 = vst.msk [vmem:[#allocation5 + $0x110] sm:$0xff] %vm3449_vm6, %v4598_v26  ;;  %v11376_v21 = vpop.f32.mrb[128].mxu1  ;;  %v4563_v26 = vld [vmem:[#allocation5 + $0x148] sm:$0xff] }
 0x3c0   :  { %v4601_v12 = vadd.f32 %v11376_v21, %v4559_v32  ;;  %v4493_v17 = vpop.f32.mrb[129].mxu1  ;;  %11661 = vmatmul.mubr.msk.f32.gmra.mrb[234].mxu1 %vm1869_vm4, %v6399_v0  ;;  %v6403_v21 = vld [vmem:[#allocation4 + $0xe0] sm:$0xff] }
 0x3c1   :  { %v4600_v15 = vadd.f32 %v4558_v3, %v4493_v17  ;;  %11663 = vmatprep.mubr.msk.f32.mxu1 %vm1869_vm4, %v6400_v61  ;;  %v6404_v17 = vld [vmem:[#allocation4 + $0xe8] sm:$0xff] }
 0x3c2   :  { %4643 = vst.msk [vmem:[#allocation5 + $0x128] sm:$0xff] %vm3449_vm6, %v4601_v12  ;;  %v4562_v12 = vld [vmem:[#allocation5 + $0x140] sm:$0xff] }
 0x3c3   :  { %4642 = vst.msk [vmem:[#allocation5 + $0x120] sm:$0xff] %vm3449_vm6, %v4600_v15  ;;  %v11379_v55 = vpop.f32.mrb[130].mxu1  ;;  %v5101_v15 = vld [vmem:[#allocation5 + $0x8] sm:$0xff] }
 0x3c4   :  { %v4603_v33 = vadd.f32 %v11379_v55, %v4561_v46  ;;  %v4503_v13 = vpop.f32.mrb[131].mxu1  ;;  %11664 = vmatmul.mubr.msk.f32.gmra.mrb[236].mxu1 %vm1869_vm4, %v6401_v27  ;;  %v6405_v55 = vld [vmem:[#allocation4 + $0xf0] sm:$0xff] }
 0x3c5   :  { %v4602_v6 = vadd.f32 %v4560_v41, %v4503_v13  ;;  %11666 = vmatprep.mubr.msk.f32.mxu1 %vm1869_vm4, %v6402_v36  ;;  %v6406_v13 = vld [vmem:[#allocation4 + $0xf8] sm:$0xff] }
 0x3c6   :  { %4645 = vst.msk [vmem:[#allocation5 + $0x138] sm:$0xff] %vm3449_vm6, %v4603_v33  ;;  %v5100_v33 = vld [vmem:[#allocation5] sm:$0xff] }
 0x3c7   :  { %4644 = vst.msk [vmem:[#allocation5 + $0x130] sm:$0xff] %vm3449_vm6, %v4602_v6  ;;  %v11382_v54 = vpop.f32.mrb[132].mxu1  ;;  %v5103_v6 = vld [vmem:[#allocation5 + $0x18] sm:$0xff] }
 0x3c8   :  { %v4605_v32 = vadd.f32 %v11382_v54, %v4563_v26  ;;  %v4513_v0 = vpop.f32.mrb[133].mxu1  ;;  %11667 = vmatmul.mubr.msk.f32.gmra.mrb[238].mxu1 %vm1869_vm4, %v6403_v21  ;;  %v6407_v54 = vld [vmem:[#allocation4 + $0x100] sm:$0xff] }
 0x3c9   :  { %v4604_v3 = vadd.f32 %v4562_v12, %v4513_v0  ;;  %11669 = vmatprep.mubr.msk.f32.mxu1 %vm1869_vm4, %v6404_v17  ;;  %v6408_v0 = vld [vmem:[#allocation4 + $0x108] sm:$0xff] }
 0x3ca   :  { %4647 = vst.msk [vmem:[#allocation5 + $0x148] sm:$0xff] %vm3449_vm6, %v4605_v32  ;;  %v5102_v32 = vld [vmem:[#allocation5 + $0x10] sm:$0xff] }
 0x3cb   :  { %4646 = vst.msk [vmem:[#allocation5 + $0x140] sm:$0xff] %vm3449_vm6, %v4604_v3  ;;  %v11401_v61 = vpop.f32.mrb[134].mxu1  ;;  %v5105_v3 = vld [vmem:[#allocation5 + $0x28] sm:$0xff] }
 0x3cc   :  { %v5143_v46 = vadd.f32 %v11401_v61, %v5101_v15  ;;  %v4891_v27 = vpop.f32.mrb[135].mxu1  ;;  %11670 = vmatmul.mubr.msk.f32.gmra.mrb[240].mxu1 %vm1869_vm4, %v6405_v55  ;;  %v6409_v61 = vld [vmem:[#allocation4 + $0x110] sm:$0xff] }
 0x3cd   :  { %v5142_v41 = vadd.f32 %v5100_v33, %v4891_v27  ;;  %11672 = vmatprep.mubr.msk.f32.mxu1 %vm1869_vm4, %v6406_v13  ;;  %v6410_v27 = vld [vmem:[#allocation4 + $0x118] sm:$0xff] }
 0x3ce   :  { %5185 = vst.msk [vmem:[#allocation5 + $0x8] sm:$0xff] %vm3449_vm6, %v5143_v46  ;;  %v5104_v46 = vld [vmem:[#allocation5 + $0x20] sm:$0xff] }
 0x3cf   :  { %5184 = vst.msk [vmem:[#allocation5] sm:$0xff] %vm3449_vm6, %v5142_v41  ;;  %v11404_v36 = vpop.f32.mrb[136].mxu1  ;;  %v5107_v41 = vld [vmem:[#allocation5 + $0x38] sm:$0xff] }
 0x3d0   :  { %v5145_v26 = vadd.f32 %v11404_v36, %v5103_v6  ;;  %v4901_v21 = vpop.f32.mrb[137].mxu1  ;;  %11673 = vmatmul.mubr.msk.f32.gmra.mrb[242].mxu1 %vm1869_vm4, %v6407_v54  ;;  %v6411_v36 = vld [vmem:[#allocation4 + $0x120] sm:$0xff] }
 0x3d1   :  { %v5144_v12 = vadd.f32 %v5102_v32, %v4901_v21  ;;  %11675 = vmatprep.mubr.msk.f32.mxu1 %vm1869_vm4, %v6408_v0  ;;  %v6412_v21 = vld [vmem:[#allocation4 + $0x128] sm:$0xff] }
 0x3d2   :  { %5187 = vst.msk [vmem:[#allocation5 + $0x18] sm:$0xff] %vm3449_vm6, %v5145_v26  ;;  %v5106_v26 = vld [vmem:[#allocation5 + $0x30] sm:$0xff] }
 0x3d3   :  { %5186 = vst.msk [vmem:[#allocation5 + $0x10] sm:$0xff] %vm3449_vm6, %v5144_v12  ;;  %v11407_v17 = vpop.f32.mrb[138].mxu1  ;;  %v5109_v12 = vld [vmem:[#allocation5 + $0x48] sm:$0xff] }
 0x3d4   :  { %v5147_v15 = vadd.f32 %v11407_v17, %v5105_v3  ;;  %v4911_v55 = vpop.f32.mrb[139].mxu1  ;;  %11676 = vmatmul.mubr.msk.f32.gmra.mrb[244].mxu1 %vm1869_vm4, %v6409_v61  ;;  %v6413_v17 = vld [vmem:[#allocation4 + $0x130] sm:$0xff] }
 0x3d5   :  { %v5146_v33 = vadd.f32 %v5104_v46, %v4911_v55  ;;  %11678 = vmatprep.mubr.msk.f32.mxu1 %vm1869_vm4, %v6410_v27  ;;  %v6414_v55 = vld [vmem:[#allocation4 + $0x138] sm:$0xff] }
 0x3d6   :  { %5189 = vst.msk [vmem:[#allocation5 + $0x28] sm:$0xff] %vm3449_vm6, %v5147_v15  ;;  %v5108_v15 = vld [vmem:[#allocation5 + $0x40] sm:$0xff] }
 0x3d7   :  { %5188 = vst.msk [vmem:[#allocation5 + $0x20] sm:$0xff] %vm3449_vm6, %v5146_v33  ;;  %v11410_v13 = vpop.f32.mrb[140].mxu1  ;;  %v5111_v33 = vld [vmem:[#allocation5 + $0x58] sm:$0xff] }
 0x3d8   :  { %v5149_v6 = vadd.f32 %v11410_v13, %v5107_v41  ;;  %v4921_v54 = vpop.f32.mrb[141].mxu1  ;;  %11679 = vmatmul.mubr.msk.f32.gmra.mrb[246].mxu1 %vm1869_vm4, %v6411_v36  ;;  %v6415_v13 = vld [vmem:[#allocation4 + $0x140] sm:$0xff] }
 0x3d9   :  { %v5148_v32 = vadd.f32 %v5106_v26, %v4921_v54  ;;  %11681 = vmatprep.mubr.msk.f32.mxu1 %vm1869_vm4, %v6412_v21  ;;  %v6416_v54 = vld [vmem:[#allocation4 + $0x148] sm:$0xff] }
 0x3da   :  { %5191 = vst.msk [vmem:[#allocation5 + $0x38] sm:$0xff] %vm3449_vm6, %v5149_v6  ;;  %v5110_v6 = vld [vmem:[#allocation5 + $0x50] sm:$0xff] }
 0x3db   :  { %5190 = vst.msk [vmem:[#allocation5 + $0x30] sm:$0xff] %vm3449_vm6, %v5148_v32  ;;  %v11413_v0 = vpop.f32.mrb[142].mxu1  ;;  %v5113_v32 = vld [vmem:[#allocation5 + $0x68] sm:$0xff] }
 0x3dc   :  { %v5151_v3 = vadd.f32 %v11413_v0, %v5109_v12  ;;  %v4931_v61 = vpop.f32.mrb[143].mxu1  ;;  %11682 = vmatmul.mubr.msk.f32.gmra.mrb[248].mxu1 %vm1869_vm4, %v6413_v17  ;;  %v6417_v0 = vld [vmem:[#allocation4 + $0x150] sm:$0xff] }
 0x3dd   :  { %v5150_v46 = vadd.f32 %v5108_v15, %v4931_v61  ;;  %11684 = vmatprep.mubr.msk.f32.mxu1 %vm1869_vm4, %v6414_v55  ;;  %v6418_v61 = vld [vmem:[#allocation4 + $0x158] sm:$0xff] }
 0x3de   :  { %5193 = vst.msk [vmem:[#allocation5 + $0x48] sm:$0xff] %vm3449_vm6, %v5151_v3  ;;  %v5112_v3 = vld [vmem:[#allocation5 + $0x60] sm:$0xff] }
 0x3df   :  { %5192 = vst.msk [vmem:[#allocation5 + $0x40] sm:$0xff] %vm3449_vm6, %v5150_v46  ;;  %v11416_v27 = vpop.f32.mrb[144].mxu1  ;;  %v5115_v46 = vld [vmem:[#allocation5 + $0x78] sm:$0xff] }
 0x3e0   :  { %v5153_v41 = vadd.f32 %v11416_v27, %v5111_v33  ;;  %v4941_v36 = vpop.f32.mrb[145].mxu1  ;;  %11685 = vmatmul.mubr.msk.f32.gmra.mrb[250].mxu1 %vm1869_vm4, %v6415_v13  ;;  %v6419_v27 = vld [vmem:[#allocation4 + $0x160] sm:$0xff] }
 0x3e1   :  { %v5152_v26 = vadd.f32 %v5110_v6, %v4941_v36  ;;  %11687 = vmatprep.mubr.msk.f32.mxu1 %vm1869_vm4, %v6416_v54  ;;  %v6420_v36 = vld [vmem:[#allocation4 + $0x168] sm:$0xff] }
 0x3e2   :  { %5195 = vst.msk [vmem:[#allocation5 + $0x58] sm:$0xff] %vm3449_vm6, %v5153_v41  ;;  %v5114_v41 = vld [vmem:[#allocation5 + $0x70] sm:$0xff] }
 0x3e3   :  { %5194 = vst.msk [vmem:[#allocation5 + $0x50] sm:$0xff] %vm3449_vm6, %v5152_v26  ;;  %v11419_v21 = vpop.f32.mrb[146].mxu1  ;;  %v5117_v26 = vld [vmem:[#allocation5 + $0x88] sm:$0xff] }
 0x3e4   :  { %v5155_v12 = vadd.f32 %v11419_v21, %v5113_v32  ;;  %v4951_v17 = vpop.f32.mrb[147].mxu1  ;;  %11688 = vmatmul.mubr.msk.f32.gmra.mrb[252].mxu1 %vm1869_vm4, %v6417_v0  ;;  %v6421_v21 = vld [vmem:[#allocation4 + $0x170] sm:$0xff] }
 0x3e5   :  { %v5154_v15 = vadd.f32 %v5112_v3, %v4951_v17  ;;  %11690 = vmatprep.mubr.msk.f32.mxu1 %vm1869_vm4, %v6418_v61  ;;  %v6422_v17 = vld [vmem:[#allocation4 + $0x178] sm:$0xff] }
 0x3e6   :  { %5197 = vst.msk [vmem:[#allocation5 + $0x68] sm:$0xff] %vm3449_vm6, %v5155_v12  ;;  %v5116_v12 = vld [vmem:[#allocation5 + $0x80] sm:$0xff] }
 0x3e7   :  { %5196 = vst.msk [vmem:[#allocation5 + $0x60] sm:$0xff] %vm3449_vm6, %v5154_v15  ;;  %v11422_v55 = vpop.f32.mrb[148].mxu1  ;;  %v5119_v15 = vld [vmem:[#allocation5 + $0x98] sm:$0xff] }
 0x3e8   :  { %v5157_v33 = vadd.f32 %v11422_v55, %v5115_v46  ;;  %v4961_v13 = vpop.f32.mrb[149].mxu1  ;;  %11691 = vmatmul.mubr.msk.f32.gmra.mrb[254].mxu1 %vm1869_vm4, %v6419_v27  ;;  %v6423_v55 = vld [vmem:[#allocation4 + $0x180] sm:$0xff] }
 0x3e9   :  { %v5156_v6 = vadd.f32 %v5114_v41, %v4961_v13  ;;  %11693 = vmatprep.mubr.msk.f32.mxu1 %vm1869_vm4, %v6420_v36  ;;  %v7538_v13 = vld [vmem:[#allocation4 + $0x3a] sm:$0xff] }
 0x3ea   :  { %5199 = vst.msk [vmem:[#allocation5 + $0x78] sm:$0xff] %vm3449_vm6, %v5157_v33  ;;  %v5118_v33 = vld [vmem:[#allocation5 + $0x90] sm:$0xff] }
 0x3eb   :  { %5198 = vst.msk [vmem:[#allocation5 + $0x70] sm:$0xff] %vm3449_vm6, %v5156_v6  ;;  %v11425_v54 = vpop.f32.mrb[150].mxu1  ;;  %v5121_v6 = vld [vmem:[#allocation5 + $0xa8] sm:$0xff] }
 0x3ec   :  { %v5159_v32 = vadd.f32 %v11425_v54, %v5117_v26  ;;  %v4971_v0 = vpop.f32.mrb[151].mxu1  ;;  %11694 = vmatmul.mubr.msk.f32.gmra.mrb[0].mxu1 %vm1869_vm4, %v6421_v21  ;;  %v7539_v54 = vld [vmem:[#allocation4 + $0x42] sm:$0xff] }
 0x3ed   :  { %v5158_v3 = vadd.f32 %v5116_v12, %v4971_v0  ;;  %11696 = vmatprep.mubr.msk.f32.mxu1 %vm1869_vm4, %v6422_v17  ;;  %v7540_v0 = vld [vmem:[#allocation4 + $0x4a] sm:$0xff] }
 0x3ee   :  { %5201 = vst.msk [vmem:[#allocation5 + $0x88] sm:$0xff] %vm3449_vm6, %v5159_v32  ;;  %v5120_v32 = vld [vmem:[#allocation5 + $0xa0] sm:$0xff] }
 0x3ef   :  { %5200 = vst.msk [vmem:[#allocation5 + $0x80] sm:$0xff] %vm3449_vm6, %v5158_v3  ;;  %v11428_v61 = vpop.f32.mrb[152].mxu1  ;;  %v5123_v3 = vld [vmem:[#allocation5 + $0xb8] sm:$0xff] }
 0x3f0   :  { %v5161_v46 = vadd.f32 %v11428_v61, %v5119_v15  ;;  %v4981_v27 = vpop.f32.mrb[153].mxu1  ;;  %11697 = vmatmul.mubr.msk.f32.gmra.mrb[2].mxu1 %vm1869_vm4, %v6423_v55  ;;  %v7541_v61 = vld [vmem:[#allocation4 + $0x52] sm:$0xff] }
 0x3f1   :  { %v5160_v41 = vadd.f32 %v5118_v33, %v4981_v27  ;;  %11794 = vmatprep.mubr.msk.f32.mxu1 %vm1869_vm4, %v7538_v13  ;;  %v7542_v27 = vld [vmem:[#allocation4 + $0x5a] sm:$0xff] }
 0x3f2   :  { %5203 = vst.msk [vmem:[#allocation5 + $0x98] sm:$0xff] %vm3449_vm6, %v5161_v46  ;;  %v5122_v46 = vld [vmem:[#allocation5 + $0xb0] sm:$0xff] }
 0x3f3   :  { %5202 = vst.msk [vmem:[#allocation5 + $0x90] sm:$0xff] %vm3449_vm6, %v5160_v41  ;;  %v11431_v36 = vpop.f32.mrb[154].mxu1  ;;  %v5125_v41 = vld [vmem:[#allocation5 + $0xc8] sm:$0xff] }
 0x3f4   :  { %v5163_v26 = vadd.f32 %v11431_v36, %v5121_v6  ;;  %v4991_v21 = vpop.f32.mrb[155].mxu1  ;;  %11795 = vmatmul.mubr.msk.f32.vlgmr.msra.gmra.mrb[4].mxu1 %vm1869_vm4, %v7539_v54  ;;  %v7543_v36 = vld [vmem:[#allocation4 + $0x62] sm:$0xff] }
 0x3f5   :  { %v5162_v12 = vadd.f32 %v5120_v32, %v4991_v21  ;;  %11797 = vmatprep.mubr.msk.f32.mxu1 %vm1869_vm4, %v7540_v0  ;;  %v7544_v21 = vld [vmem:[#allocation4 + $0x6a] sm:$0xff] }
 0x3f6   :  { %5205 = vst.msk [vmem:[#allocation5 + $0xa8] sm:$0xff] %vm3449_vm6, %v5163_v26  ;;  %v5124_v26 = vld [vmem:[#allocation5 + $0xc0] sm:$0xff] }
 0x3f7   :  { %5204 = vst.msk [vmem:[#allocation5 + $0xa0] sm:$0xff] %vm3449_vm6, %v5162_v12  ;;  %v11434_v17 = vpop.f32.mrb[156].mxu1  ;;  %v5127_v12 = vld [vmem:[#allocation5 + $0xd8] sm:$0xff] }
 0x3f8   :  { %v5165_v15 = vadd.f32 %v11434_v17, %v5123_v3  ;;  %v5001_v55 = vpop.f32.mrb[157].mxu1  ;;  %11798 = vmatmul.mubr.msk.f32.gmra.mrb[6].mxu1 %vm1869_vm4, %v7541_v61  ;;  %v7545_v17 = vld [vmem:[#allocation4 + $0x72] sm:$0xff] }
 0x3f9   :  { %v5164_v33 = vadd.f32 %v5122_v46, %v5001_v55  ;;  %11800 = vmatprep.mubr.msk.f32.mxu1 %vm1869_vm4, %v7542_v27  ;;  %v7546_v55 = vld [vmem:[#allocation4 + $0x7a] sm:$0xff] }
 0x3fa   :  { %5207 = vst.msk [vmem:[#allocation5 + $0xb8] sm:$0xff] %vm3449_vm6, %v5165_v15  ;;  %v5126_v15 = vld [vmem:[#allocation5 + $0xd0] sm:$0xff] }
 0x3fb   :  { %5206 = vst.msk [vmem:[#allocation5 + $0xb0] sm:$0xff] %vm3449_vm6, %v5164_v33  ;;  %v11437_v13 = vpop.f32.mrb[158].mxu1  ;;  %v5129_v33 = vld [vmem:[#allocation5 + $0xe8] sm:$0xff] }
 0x3fc   :  { %v5167_v6 = vadd.f32 %v11437_v13, %v5125_v41  ;;  %v5011_v54 = vpop.f32.mrb[159].mxu1  ;;  %11801 = vmatmul.mubr.msk.f32.gmra.mrb[8].mxu1 %vm1869_vm4, %v7543_v36  ;;  %v7547_v13 = vld [vmem:[#allocation4 + $0x82] sm:$0xff] }
 0x3fd   :  { %v5166_v32 = vadd.f32 %v5124_v26, %v5011_v54  ;;  %11803 = vmatprep.mubr.msk.f32.mxu1 %vm1869_vm4, %v7544_v21  ;;  %v7548_v54 = vld [vmem:[#allocation4 + $0x8a] sm:$0xff] }
 0x3fe   :  { %5209 = vst.msk [vmem:[#allocation5 + $0xc8] sm:$0xff] %vm3449_vm6, %v5167_v6  ;;  %v5128_v6 = vld [vmem:[#allocation5 + $0xe0] sm:$0xff] }
 0x3ff   :  { %5208 = vst.msk [vmem:[#allocation5 + $0xc0] sm:$0xff] %vm3449_vm6, %v5166_v32  ;;  %v11440_v0 = vpop.f32.mrb[160].mxu1  ;;  %v5131_v32 = vld [vmem:[#allocation5 + $0xf8] sm:$0xff] }
 0x400   :  { %v5169_v3 = vadd.f32 %v11440_v0, %v5127_v12  ;;  %v5021_v61 = vpop.f32.mrb[161].mxu1  ;;  %11804 = vmatmul.mubr.msk.f32.gmra.mrb[10].mxu1 %vm1869_vm4, %v7545_v17  ;;  %v7549_v0 = vld [vmem:[#allocation4 + $0x92] sm:$0xff] }
 0x401   :  { %v5168_v46 = vadd.f32 %v5126_v15, %v5021_v61  ;;  %11806 = vmatprep.mubr.msk.f32.mxu1 %vm1869_vm4, %v7546_v55  ;;  %v7550_v61 = vld [vmem:[#allocation4 + $0x9a] sm:$0xff] }
 0x402   :  { %5211 = vst.msk [vmem:[#allocation5 + $0xd8] sm:$0xff] %vm3449_vm6, %v5169_v3  ;;  %v5130_v3 = vld [vmem:[#allocation5 + $0xf0] sm:$0xff] }
 0x403   :  { %5210 = vst.msk [vmem:[#allocation5 + $0xd0] sm:$0xff] %vm3449_vm6, %v5168_v46  ;;  %v11443_v27 = vpop.f32.mrb[162].mxu1  ;;  %v5133_v46 = vld [vmem:[#allocation5 + $0x108] sm:$0xff] }
 0x404   :  { %v5171_v41 = vadd.f32 %v11443_v27, %v5129_v33  ;;  %v5031_v36 = vpop.f32.mrb[163].mxu1  ;;  %11807 = vmatmul.mubr.msk.f32.gmra.mrb[12].mxu1 %vm1869_vm4, %v7547_v13  ;;  %v7551_v27 = vld [vmem:[#allocation4 + $0xa2] sm:$0xff] }
 0x405   :  { %v5170_v26 = vadd.f32 %v5128_v6, %v5031_v36  ;;  %11809 = vmatprep.mubr.msk.f32.mxu1 %vm1869_vm4, %v7548_v54  ;;  %v7552_v36 = vld [vmem:[#allocation4 + $0xaa] sm:$0xff] }
 0x406   :  { %5213 = vst.msk [vmem:[#allocation5 + $0xe8] sm:$0xff] %vm3449_vm6, %v5171_v41  ;;  %v5132_v41 = vld [vmem:[#allocation5 + $0x100] sm:$0xff] }
 0x407   :  { %5212 = vst.msk [vmem:[#allocation5 + $0xe0] sm:$0xff] %vm3449_vm6, %v5170_v26  ;;  %v11446_v21 = vpop.f32.mrb[164].mxu1  ;;  %v5135_v26 = vld [vmem:[#allocation5 + $0x118] sm:$0xff] }
 0x408   :  { %v5173_v12 = vadd.f32 %v11446_v21, %v5131_v32  ;;  %v5041_v17 = vpop.f32.mrb[165].mxu1  ;;  %11810 = vmatmul.mubr.msk.f32.gmra.mrb[14].mxu1 %vm1869_vm4, %v7549_v0  ;;  %v7553_v21 = vld [vmem:[#allocation4 + $0xb2] sm:$0xff] }
 0x409   :  { %v5172_v15 = vadd.f32 %v5130_v3, %v5041_v17  ;;  %11812 = vmatprep.mubr.msk.f32.mxu1 %vm1869_vm4, %v7550_v61  ;;  %v7554_v17 = vld [vmem:[#allocation4 + $0xba] sm:$0xff] }
 0x40a   :  { %5215 = vst.msk [vmem:[#allocation5 + $0xf8] sm:$0xff] %vm3449_vm6, %v5173_v12  ;;  %v5134_v12 = vld [vmem:[#allocation5 + $0x110] sm:$0xff] }
 0x40b   :  { %5214 = vst.msk [vmem:[#allocation5 + $0xf0] sm:$0xff] %vm3449_vm6, %v5172_v15  ;;  %v11449_v55 = vpop.f32.mrb[166].mxu1  ;;  %v5137_v15 = vld [vmem:[#allocation5 + $0x128] sm:$0xff] }
 0x40c   :  { %v5175_v33 = vadd.f32 %v11449_v55, %v5133_v46  ;;  %v5051_v13 = vpop.f32.mrb[167].mxu1  ;;  %11813 = vmatmul.mubr.msk.f32.gmra.mrb[16].mxu1 %vm1869_vm4, %v7551_v27  ;;  %v7555_v55 = vld [vmem:[#allocation4 + $0xc2] sm:$0xff] }
 0x40d   :  { %v5174_v6 = vadd.f32 %v5132_v41, %v5051_v13  ;;  %11815 = vmatprep.mubr.msk.f32.mxu1 %vm1869_vm4, %v7552_v36  ;;  %v7556_v13 = vld [vmem:[#allocation4 + $0xca] sm:$0xff] }
 0x40e   :  { %5217 = vst.msk [vmem:[#allocation5 + $0x108] sm:$0xff] %vm3449_vm6, %v5175_v33  ;;  %v5136_v33 = vld [vmem:[#allocation5 + $0x120] sm:$0xff] }
 0x40f   :  { %5216 = vst.msk [vmem:[#allocation5 + $0x100] sm:$0xff] %vm3449_vm6, %v5174_v6  ;;  %v11452_v54 = vpop.f32.mrb[168].mxu1  ;;  %v5139_v6 = vld [vmem:[#allocation5 + $0x138] sm:$0xff] }
 0x410   :  { %v5177_v32 = vadd.f32 %v11452_v54, %v5135_v26  ;;  %v5061_v0 = vpop.f32.mrb[169].mxu1  ;;  %11816 = vmatmul.mubr.msk.f32.gmra.mrb[18].mxu1 %vm1869_vm4, %v7553_v21  ;;  %v7557_v54 = vld [vmem:[#allocation4 + $0xd2] sm:$0xff] }
 0x411   :  { %v5176_v3 = vadd.f32 %v5134_v12, %v5061_v0  ;;  %11818 = vmatprep.mubr.msk.f32.mxu1 %vm1869_vm4, %v7554_v17  ;;  %v7558_v0 = vld [vmem:[#allocation4 + $0xda] sm:$0xff] }
 0x412   :  { %5219 = vst.msk [vmem:[#allocation5 + $0x118] sm:$0xff] %vm3449_vm6, %v5177_v32  ;;  %v5138_v32 = vld [vmem:[#allocation5 + $0x130] sm:$0xff] }
 0x413   :  { %5218 = vst.msk [vmem:[#allocation5 + $0x110] sm:$0xff] %vm3449_vm6, %v5176_v3  ;;  %v11455_v61 = vpop.f32.mrb[170].mxu1  ;;  %v5141_v3 = vld [vmem:[#allocation5 + $0x148] sm:$0xff] }
 0x414   :  { %v5179_v46 = vadd.f32 %v11455_v61, %v5137_v15  ;;  %v5071_v27 = vpop.f32.mrb[171].mxu1  ;;  %11819 = vmatmul.mubr.msk.f32.gmra.mrb[20].mxu1 %vm1869_vm4, %v7555_v55  ;;  %v7559_v61 = vld [vmem:[#allocation4 + $0xe2] sm:$0xff] }
 0x415   :  { %v5178_v41 = vadd.f32 %v5136_v33, %v5071_v27  ;;  %11821 = vmatprep.mubr.msk.f32.mxu1 %vm1869_vm4, %v7556_v13  ;;  %v7560_v27 = vld [vmem:[#allocation4 + $0xea] sm:$0xff] }
 0x416   :  { %5221 = vst.msk [vmem:[#allocation5 + $0x128] sm:$0xff] %vm3449_vm6, %v5179_v46  ;;  %v5140_v46 = vld [vmem:[#allocation5 + $0x140] sm:$0xff] }
 0x417   :  { %5220 = vst.msk [vmem:[#allocation5 + $0x120] sm:$0xff] %vm3449_vm6, %v5178_v41  ;;  %v11458_v36 = vpop.f32.mrb[172].mxu1  ;;  %v5679_v41 = vld [vmem:[#allocation5 + $0x8] sm:$0xff] }
 0x418   :  { %v5181_v26 = vadd.f32 %v11458_v36, %v5139_v6  ;;  %v5081_v21 = vpop.f32.mrb[173].mxu1  ;;  %11822 = vmatmul.mubr.msk.f32.gmra.mrb[22].mxu1 %vm1869_vm4, %v7557_v54  ;;  %v7561_v36 = vld [vmem:[#allocation4 + $0xf2] sm:$0xff] }
 0x419   :  { %v5180_v12 = vadd.f32 %v5138_v32, %v5081_v21  ;;  %11824 = vmatprep.mubr.msk.f32.mxu1 %vm1869_vm4, %v7558_v0  ;;  %v7562_v21 = vld [vmem:[#allocation4 + $0xfa] sm:$0xff] }
 0x41a   :  { %5223 = vst.msk [vmem:[#allocation5 + $0x138] sm:$0xff] %vm3449_vm6, %v5181_v26  ;;  %v5678_v26 = vld [vmem:[#allocation5] sm:$0xff] }
 0x41b   :  { %5222 = vst.msk [vmem:[#allocation5 + $0x130] sm:$0xff] %vm3449_vm6, %v5180_v12  ;;  %v11461_v17 = vpop.f32.mrb[174].mxu1  ;;  %v5681_v12 = vld [vmem:[#allocation5 + $0x18] sm:$0xff] }
 0x41c   :  { %v5183_v15 = vadd.f32 %v11461_v17, %v5141_v3  ;;  %v5091_v55 = vpop.f32.mrb[175].mxu1  ;;  %11825 = vmatmul.mubr.msk.f32.gmra.mrb[24].mxu1 %vm1869_vm4, %v7559_v61  ;;  %v7563_v17 = vld [vmem:[#allocation4 + $0x102] sm:$0xff] }
 0x41d   :  { %v5182_v33 = vadd.f32 %v5140_v46, %v5091_v55  ;;  %11827 = vmatprep.mubr.msk.f32.mxu1 %vm1869_vm4, %v7560_v27  ;;  %v7564_v55 = vld [vmem:[#allocation4 + $0x10a] sm:$0xff] }
 0x41e   :  { %5225 = vst.msk [vmem:[#allocation5 + $0x148] sm:$0xff] %vm3449_vm6, %v5183_v15  ;;  %v5680_v15 = vld [vmem:[#allocation5 + $0x10] sm:$0xff] }
 0x41f   :  { %5224 = vst.msk [vmem:[#allocation5 + $0x140] sm:$0xff] %vm3449_vm6, %v5182_v33  ;;  %v11480_v13 = vpop.f32.mrb[176].mxu1  ;;  %v5683_v33 = vld [vmem:[#allocation5 + $0x28] sm:$0xff] }
 0x420   :  { %v5721_v6 = vadd.f32 %v11480_v13, %v5679_v41  ;;  %v5469_v54 = vpop.f32.mrb[177].mxu1  ;;  %11828 = vmatmul.mubr.msk.f32.gmra.mrb[26].mxu1 %vm1869_vm4, %v7561_v36  ;;  %v7565_v13 = vld [vmem:[#allocation4 + $0x112] sm:$0xff] }
 0x421   :  { %v5720_v32 = vadd.f32 %v5678_v26, %v5469_v54  ;;  %11830 = vmatprep.mubr.msk.f32.mxu1 %vm1869_vm4, %v7562_v21  ;;  %v7566_v54 = vld [vmem:[#allocation4 + $0x11a] sm:$0xff] }
 0x422   :  { %5763 = vst.msk [vmem:[#allocation5 + $0x8] sm:$0xff] %vm3449_vm6, %v5721_v6  ;;  %v5682_v6 = vld [vmem:[#allocation5 + $0x20] sm:$0xff] }
 0x423   :  { %5762 = vst.msk [vmem:[#allocation5] sm:$0xff] %vm3449_vm6, %v5720_v32  ;;  %v11483_v0 = vpop.f32.mrb[178].mxu1 }
 0x424   :  { %v5723_v3 = vadd.f32 %v11483_v0, %v5681_v12  ;;  %v5479_v61 = vpop.f32.mrb[179].mxu1  ;;  %11831 = vmatmul.mubr.msk.f32.gmra.mrb[28].mxu1 %vm1869_vm4, %v7563_v17  ;;  %v5685_v17 = vld [vmem:[#allocation5 + $0x38] sm:$0xff] }
 0x425   :  { %v5722_v46 = vadd.f32 %v5680_v15, %v5479_v61  ;;  %11833 = vmatprep.mubr.msk.f32.mxu1 %vm1869_vm4, %v7564_v55 }
 0x426   :  { %5765 = vst.msk [vmem:[#allocation5 + $0x18] sm:$0xff] %vm3449_vm6, %v5723_v3  ;;  %v7567_v3 = vld [vmem:[#allocation4 + $0x122] sm:$0xff] }
 0x427   :  { %5764 = vst.msk [vmem:[#allocation5 + $0x10] sm:$0xff] %vm3449_vm6, %v5722_v46  ;;  %v11486_v27 = vpop.f32.mrb[180].mxu1  ;;  %v5684_v46 = vld [vmem:[#allocation5 + $0x30] sm:$0xff] }
 0x428   :  { %v5725_v41 = vadd.f32 %v11486_v27, %v5683_v33  ;;  %v5489_v36 = vpop.f32.mrb[181].mxu1  ;;  %11834 = vmatmul.mubr.msk.f32.gmra.mrb[30].mxu1 %vm1869_vm4, %v7565_v13  ;;  %v7568_v27 = vld [vmem:[#allocation4 + $0x12a] sm:$0xff] }
 0x429   :  { %v5724_v26 = vadd.f32 %v5682_v6, %v5489_v36  ;;  %11836 = vmatprep.mubr.msk.f32.mxu1 %vm1869_vm4, %v7566_v54  ;;  %v6257_v21 = vld [vmem:[#allocation5 + $0x8] sm:$0xff] }
 0x42a   :  { %5767 = vst.msk [vmem:[#allocation5 + $0x28] sm:$0xff] %vm3449_vm6, %v5725_v41  ;;  %v6299_v32 = vadd.f32 %v13768_v20, %v6257_v21  ;;  %v6256_v0 = vld [vmem:[#allocation5] sm:$0xff]  ;;  %v5687_v36 = vld [vmem:[#allocation5 + $0x48] sm:$0xff] }
 0x42b   :  { %5766 = vst.msk [vmem:[#allocation5 + $0x20] sm:$0xff] %vm3449_vm6, %v5724_v26  ;;  %v11489_v12 = vpop.f32.mrb[182].mxu1  ;;  %v6298_v61 = vadd.f32 %v6256_v0, %v13770_v28  ;;  %v7569_v6 = vld [vmem:[#allocation4 + $0x132] sm:$0xff]  ;;  %v7570_v0 = vld [vmem:[#allocation4 + $0x13a] sm:$0xff] }
 0x42c   :  { %v5727_v15 = vadd.f32 %v11489_v12, %v5685_v17  ;;  %v5499_v55 = vpop.f32.mrb[183].mxu1  ;;  %11837 = vmatmul.mubr.msk.f32.gmra.mrb[32].mxu1 %vm1869_vm4, %v7567_v3  ;;  %6341 = vst.msk [vmem:[#allocation5 + $0x8] sm:$0xff] %vm3449_vm6, %v6299_v32  ;;  %v5686_v32 = vld [vmem:[#allocation5 + $0x40] sm:$0xff] }
 0x42d   :  { %v5726_v33 = vadd.f32 %v5684_v46, %v5499_v55  ;;  %11839 = vmatprep.mubr.msk.f32.mxu1 %vm1869_vm4, %v7568_v27  ;;  %6340 = vst.msk [vmem:[#allocation5] sm:$0xff] %vm3449_vm6, %v6298_v61  ;;  %v6259_v20 = vld [vmem:[#allocation5 + $0x18] sm:$0xff] }
 0x42e   :  { %5769 = vst.msk [vmem:[#allocation5 + $0x38] sm:$0xff] %vm3449_vm6, %v5727_v15  ;;  %v6301_v13 = vadd.f32 %v13786_v40, %v6259_v20  ;;  %v6258_v41 = vld [vmem:[#allocation5 + $0x10] sm:$0xff]  ;;  %v5689_v61 = vld [vmem:[#allocation5 + $0x58] sm:$0xff] }
 0x42f   :  { %5768 = vst.msk [vmem:[#allocation5 + $0x30] sm:$0xff] %vm3449_vm6, %v5726_v33  ;;  %v11492_v28 = vpop.f32.mrb[184].mxu1  ;;  %v6300_v54 = vadd.f32 %v6258_v41, %v13788_v48  ;;  %v7571_v15 = vld [vmem:[#allocation4 + $0x142] sm:$0xff]  ;;  %v7572_v20 = vld [vmem:[#allocation4 + $0x14a] sm:$0xff] }
 0x430   :  { %v5729_v26 = vadd.f32 %v11492_v28, %v5687_v36  ;;  %v5509_v21 = vpop.f32.mrb[185].mxu1  ;;  %11840 = vmatmul.mubr.msk.f32.gmra.mrb[34].mxu1 %vm1869_vm4, %v7569_v6  ;;  %6343 = vst.msk [vmem:[#allocation5 + $0x18] sm:$0xff] %vm3449_vm6, %v6301_v13  ;;  %v5688_v33 = vld [vmem:[#allocation5 + $0x50] sm:$0xff]  ;;  %v5691_v36 = vld [vmem:[#allocation5 + $0x68] sm:$0xff] }
 0x431   :  { %v5728_v12 = vadd.f32 %v5686_v32, %v5509_v21  ;;  %11842 = vmatprep.mubr.msk.f32.mxu1 %vm1869_vm4, %v7570_v0  ;;  %6342 = vst.msk [vmem:[#allocation5 + $0x10] sm:$0xff] %vm3449_vm6, %v6300_v54  ;;  %v6261_v40 = vld [vmem:[#allocation5 + $0x28] sm:$0xff]  ;;  %v5690_v32 = vld [vmem:[#allocation5 + $0x60] sm:$0xff] }
 0x432   :  { %5771 = vst.msk [vmem:[#allocation5 + $0x48] sm:$0xff] %vm3449_vm6, %v5729_v26  ;;  %v6303_v17 = vadd.f32 %v13807_v58, %v6261_v40  ;;  %v6260_v3 = vld [vmem:[#allocation5 + $0x20] sm:$0xff]  ;;  %v7574_v0 = vld [vmem:[#allocation4 + $0x15a] sm:$0xff] }
 0x433   :  { %5770 = vst.msk [vmem:[#allocation5 + $0x40] sm:$0xff] %vm3449_vm6, %v5728_v12  ;;  %v11495_v48 = vpop.f32.mrb[186].mxu1  ;;  %v6302_v55 = vadd.f32 %v6260_v3, %v13809_v62  ;;  %v7573_v6 = vld [vmem:[#allocation4 + $0x152] sm:$0xff]  ;;  %v5693_v3 = vld [vmem:[#allocation5 + $0x78] sm:$0xff] }
 0x434   :  { %v5731_v46 = vadd.f32 %v11495_v48, %v5689_v61  ;;  %v5519_v27 = vpop.f32.mrb[187].mxu1  ;;  %11843 = vmatmul.mubr.msk.f32.gmra.mrb[36].mxu1 %vm1869_vm4, %v7571_v15  ;;  %6345 = vst.msk [vmem:[#allocation5 + $0x28] sm:$0xff] %vm3449_vm6, %v6303_v17  ;;  %v7575_v48 = vld [vmem:[#allocation4 + $0x162] sm:$0xff] }
 0x435   :  { %v5730_v13 = vadd.f32 %v5688_v33, %v5519_v27  ;;  %11845 = vmatprep.mubr.msk.f32.mxu1 %vm1869_vm4, %v7572_v20  ;;  %6344 = vst.msk [vmem:[#allocation5 + $0x20] sm:$0xff] %vm3449_vm6, %v6302_v55  ;;  %v6263_v58 = vld [vmem:[#allocation5 + $0x38] sm:$0xff] }
 0x436   :  { %5773 = vst.msk [vmem:[#allocation5 + $0x58] sm:$0xff] %vm3449_vm6, %v5731_v46  ;;  %v6305_v41 = vadd.f32 %v13818_v5, %v6263_v58  ;;  %v6262_v28 = vld [vmem:[#allocation5 + $0x30] sm:$0xff]  ;;  %v7576_v27 = vld [vmem:[#allocation4 + $0x16a] sm:$0xff]  ;;  %v5695_v58 = vld [vmem:[#allocation5 + $0x88] sm:$0xff] }
 0x437   :  { %5772 = vst.msk [vmem:[#allocation5 + $0x50] sm:$0xff] %vm3449_vm6, %v5730_v13  ;;  %v11498_v62 = vpop.f32.mrb[188].mxu1  ;;  %v6304_v54 = vadd.f32 %v6262_v28, %v13820_v9  ;;  %v5692_v46 = vld [vmem:[#allocation5 + $0x70] sm:$0xff] }
 0x438   :  { %v5733_v26 = vadd.f32 %v11498_v62, %v5691_v36  ;;  %v5529_v21 = vpop.f32.mrb[189].mxu1  ;;  %11846 = vmatmul.mubr.msk.f32.gmra.mrb[38].mxu1 %vm1869_vm4, %v7573_v6  ;;  %6347 = vst.msk [vmem:[#allocation5 + $0x38] sm:$0xff] %vm3449_vm6, %v6305_v41  ;;  %v7577_v41 = vld [vmem:[#allocation4 + $0x172] sm:$0xff] }
 0x439   :  { %v5732_v12 = vadd.f32 %v5690_v32, %v5529_v21  ;;  %11848 = vmatprep.mubr.msk.f32.mxu1 %vm1869_vm4, %v7574_v0  ;;  %6346 = vst.msk [vmem:[#allocation5 + $0x30] sm:$0xff] %vm3449_vm6, %v6304_v54  ;;  %v6265_v5 = vld [vmem:[#allocation5 + $0x48] sm:$0xff]  ;;  %v5694_v6 = vld [vmem:[#allocation5 + $0x80] sm:$0xff]  ;;  %v5697_v0 = vld [vmem:[#allocation5 + $0x98] sm:$0xff] }
 0x43a   :  { %5775 = vst.msk [vmem:[#allocation5 + $0x68] sm:$0xff] %vm3449_vm6, %v5733_v26  ;;  %v6307_v40 = vadd.f32 %v13827_v16, %v6265_v5  ;;  %v6264_v17 = vld [vmem:[#allocation5 + $0x40] sm:$0xff]  ;;  %v7578_v54 = vld [vmem:[#allocation4 + $0x17a] sm:$0xff] }
 0x43b   :  { %5774 = vst.msk [vmem:[#allocation5 + $0x60] sm:$0xff] %vm3449_vm6, %v5732_v12  ;;  %v11501_v9 = vpop.f32.mrb[190].mxu1  ;;  %v6306_v61 = vadd.f32 %v6264_v17, %v13829_v19  ;;  %v7579_v12 = vld [vmem:[#allocation4 + $0x182] sm:$0xff] }
 0x43c   :  { %v5735_v15 = vadd.f32 %v11501_v9, %v5693_v3  ;;  %v5539_v55 = vpop.f32.mrb[191].mxu1  ;;  %11849 = vmatmul.mubr.msk.f32.gmra.mrb[40].mxu1 %vm1869_vm4, %v7575_v48  ;;  %6349 = vst.msk [vmem:[#allocation5 + $0x48] sm:$0xff] %vm3449_vm6, %v6307_v40  ;;  %v5696_v9 = vld [vmem:[#allocation5 + $0x90] sm:$0xff] }
 0x43d   :  { %v5734_v33 = vadd.f32 %v5692_v46, %v5539_v55  ;;  %11851 = vmatprep.mubr.msk.f32.mxu1 %vm1869_vm4, %v7576_v27  ;;  %6348 = vst.msk [vmem:[#allocation5 + $0x40] sm:$0xff] %vm3449_vm6, %v6306_v61  ;;  %v6267_v16 = vld [vmem:[#allocation5 + $0x58] sm:$0xff] }
 0x43e   :  { %5777 = vst.msk [vmem:[#allocation5 + $0x78] sm:$0xff] %vm3449_vm6, %v5735_v15  ;;  %v6309_v20 = vadd.f32 %v13836_v8, %v6267_v16  ;;  %v6266_v13 = vld [vmem:[#allocation5 + $0x50] sm:$0xff] }
 0x43f   :  { %5776 = vst.msk [vmem:[#allocation5 + $0x70] sm:$0xff] %vm3449_vm6, %v5734_v33  ;;  %v11504_v19 = vpop.f32.mrb[192].mxu1  ;;  %v6308_v28 = vadd.f32 %v6266_v13, %v13838_v25  ;;  %v5698_v33 = vld [vmem:[#allocation5 + $0xa0] sm:$0xff] }
 0x440   :  { %v5737_v62 = vadd.f32 %v11504_v19, %v5695_v58  ;;  %v5549_v36 = vpop.f32.mrb[193].mxu1  ;;  %11852 = vmatmul.mubr.msk.f32.gmra.mrb[42].mxu1 %vm1869_vm4, %v7577_v41  ;;  %6351 = vst.msk [vmem:[#allocation5 + $0x58] sm:$0xff] %vm3449_vm6, %v6309_v20  ;;  %v5701_v58 = vld [vmem:[#allocation5 + $0xb8] sm:$0xff] }
 0x441   :  { %v5736_v26 = vadd.f32 %v5694_v6, %v5549_v36  ;;  %11854 = vmatprep.mubr.msk.f32.mxu1 %vm1869_vm4, %v7578_v54  ;;  %6350 = vst.msk [vmem:[#allocation5 + $0x50] sm:$0xff] %vm3449_vm6, %v6308_v28  ;;  %v6269_v8 = vld [vmem:[#allocation5 + $0x68] sm:$0xff] }
 0x442   :  { %5779 = vst.msk [vmem:[#allocation5 + $0x88] sm:$0xff] %vm3449_vm6, %v5737_v62  ;;  %v6311_v21 = vadd.f32 %v13847_v31, %v6269_v8  ;;  %v6268_v32 = vld [vmem:[#allocation5 + $0x60] sm:$0xff]  ;;  %v5700_v62 = vld [vmem:[#allocation5 + $0xb0] sm:$0xff]  ;;  %v5703_v8 = vld [vmem:[#allocation5 + $0xc8] sm:$0xff] }
 0x443   :  { %5778 = vst.msk [vmem:[#allocation5 + $0x80] sm:$0xff] %vm3449_vm6, %v5736_v26  ;;  %v11507_v25 = vpop.f32.mrb[194].mxu1  ;;  %v6310_v5 = vadd.f32 %v6268_v32, %v13852_v34  ;;  %v5699_v34 = vld [vmem:[#allocation5 + $0xa8] sm:$0xff] }
 0x444   :  { %v5739_v40 = vadd.f32 %v11507_v25, %v5697_v0  ;;  %v5559_v17 = vpop.f32.mrb[195].mxu1  ;;  %11855 = vmatmul.mubr.msk.f32.gmra.mrb[44].mxu1 %vm1869_vm4, %v7579_v12  ;;  %6353 = vst.msk [vmem:[#allocation5 + $0x68] sm:$0xff] %vm3449_vm6, %v6311_v21  ;;  %v5702_v25 = vld [vmem:[#allocation5 + $0xc0] sm:$0xff] }
 0x445   :  { %v5738_v3 = vadd.f32 %v5696_v9, %v5559_v17  ;;  %6352 = vst.msk [vmem:[#allocation5 + $0x60] sm:$0xff] %vm3449_vm6, %v6310_v5  ;;  %v6271_v48 = vld [vmem:[#allocation5 + $0x78] sm:$0xff] }
 0x446   :  { %5781 = vst.msk [vmem:[#allocation5 + $0x98] sm:$0xff] %vm3449_vm6, %v5739_v40  ;;  %v6313_v31 = vadd.f32 %v13862_v39, %v6271_v48  ;;  %v6270_v61 = vld [vmem:[#allocation5 + $0x70] sm:$0xff]  ;;  %v5705_v17 = vld [vmem:[#allocation5 + $0xd8] sm:$0xff] }
 0x447   :  { %5780 = vst.msk [vmem:[#allocation5 + $0x90] sm:$0xff] %vm3449_vm6, %v5738_v3  ;;  %v11510_v15 = vpop.f32.mrb[196].mxu1  ;;  %v6312_v55 = vadd.f32 %v6270_v61, %v13866_v43  ;;  %v5704_v48 = vld [vmem:[#allocation5 + $0xd0] sm:$0xff] }
 0x448   :  { %v5741_v46 = vadd.f32 %v11510_v15, %v5699_v34  ;;  %v5569_v27 = vpop.f32.mrb[197].mxu1  ;;  %6355 = vst.msk [vmem:[#allocation5 + $0x78] sm:$0xff] %vm3449_vm6, %v6313_v31 }
 0x449   :  { %v5740_v16 = vadd.f32 %v5698_v33, %v5569_v27  ;;  %6354 = vst.msk [vmem:[#allocation5 + $0x70] sm:$0xff] %vm3449_vm6, %v6312_v55  ;;  %v6273_v20 = vld [vmem:[#allocation5 + $0x88] sm:$0xff]  ;;  %v5706_v33 = vld [vmem:[#allocation5 + $0xe0] sm:$0xff] }
 0x44a   :  { %5783 = vst.msk [vmem:[#allocation5 + $0xa8] sm:$0xff] %vm3449_vm6, %v5741_v46  ;;  %v6315_v39 = vadd.f32 %v13888_v59, %v6273_v20  ;;  %v6272_v13 = vld [vmem:[#allocation5 + $0x80] sm:$0xff]  ;;  %v5707_v55 = vld [vmem:[#allocation5 + $0xe8] sm:$0xff] }
 0x44b   :  { %5782 = vst.msk [vmem:[#allocation5 + $0xa0] sm:$0xff] %vm3449_vm6, %v5740_v16  ;;  %v11513_v19 = vpop.f32.mrb[198].mxu1  ;;  %v6314_v43 = vadd.f32 %v6272_v13, %v13892_v63 }
 0x44c   :  { %v5743_v41 = vadd.f32 %v11513_v19, %v5701_v58  ;;  %v5579_v28 = vpop.f32.mrb[199].mxu1  ;;  %6357 = vst.msk [vmem:[#allocation5 + $0x88] sm:$0xff] %vm3449_vm6, %v6315_v39  ;;  %v5709_v19 = vld [vmem:[#allocation5 + $0xf8] sm:$0xff] }
 0x44d   :  { %v5742_v36 = vadd.f32 %v5700_v62, %v5579_v28  ;;  %6356 = vst.msk [vmem:[#allocation5 + $0x80] sm:$0xff] %vm3449_vm6, %v6314_v43  ;;  %v6275_v6 = vld [vmem:[#allocation5 + $0x98] sm:$0xff] }
 0x44e   :  { %5785 = vst.msk [vmem:[#allocation5 + $0xb8] sm:$0xff] %vm3449_vm6, %v5743_v41  ;;  %v6317_v59 = vadd.f32 %v13902_v4, %v6275_v6  ;;  %v6274_v54 = vld [vmem:[#allocation5 + $0x90] sm:$0xff] }
 0x44f   :  { %5784 = vst.msk [vmem:[#allocation5 + $0xb0] sm:$0xff] %vm3449_vm6, %v5742_v36  ;;  %v11516_v26 = vpop.f32.mrb[200].mxu1  ;;  %v6316_v63 = vadd.f32 %v6274_v54, %v13906_v10  ;;  %v5708_v41 = vld [vmem:[#allocation5 + $0xf0] sm:$0xff] }
 0x450   :  { %v5745_v21 = vadd.f32 %v11516_v26, %v5703_v8  ;;  %v5589_v32 = vpop.f32.mrb[201].mxu1  ;;  %6359 = vst.msk [vmem:[#allocation5 + $0x98] sm:$0xff] %vm3449_vm6, %v6317_v59  ;;  %v5711_v59 = vld [vmem:[#allocation5 + $0x108] sm:$0xff]  ;;  %v5710_v8 = vld [vmem:[#allocation5 + $0x100] sm:$0xff] }
 0x451   :  { %v5744_v0 = vadd.f32 %v5702_v25, %v5589_v32  ;;  %6358 = vst.msk [vmem:[#allocation5 + $0x90] sm:$0xff] %vm3449_vm6, %v6316_v63  ;;  %v6277_v12 = vld [vmem:[#allocation5 + $0xa8] sm:$0xff] }
 0x452   :  { %5787 = vst.msk [vmem:[#allocation5 + $0xc8] sm:$0xff] %vm3449_vm6, %v5745_v21  ;;  %v6319_v4 = vadd.f32 %v13951_v37, %v6277_v12  ;;  %v6276_v5 = vld [vmem:[#allocation5 + $0xa0] sm:$0xff] }
 0x453   :  { %5786 = vst.msk [vmem:[#allocation5 + $0xc0] sm:$0xff] %vm3449_vm6, %v5744_v0  ;;  %v11519_v40 = vpop.f32.mrb[202].mxu1  ;;  %v6318_v10 = vadd.f32 %v6276_v5, %v13961_v45  ;;  %v5713_v0 = vld [vmem:[#allocation5 + $0x118] sm:$0xff]  ;;  %v5712_v5 = vld [vmem:[#allocation5 + $0x110] sm:$0xff] }
 0x454   :  { %v5747_v9 = vadd.f32 %v11519_v40, %v5705_v17  ;;  %v5599_v3 = vpop.f32.mrb[203].mxu1  ;;  %6361 = vst.msk [vmem:[#allocation5 + $0xa8] sm:$0xff] %vm3449_vm6, %v6319_v4 }
 0x455   :  { %v5746_v31 = vadd.f32 %v5704_v48, %v5599_v3  ;;  %6360 = vst.msk [vmem:[#allocation5 + $0xa0] sm:$0xff] %vm3449_vm6, %v6318_v10  ;;  %v6279_v61 = vld [vmem:[#allocation5 + $0xb8] sm:$0xff]  ;;  %v5715_v3 = vld [vmem:[#allocation5 + $0x128] sm:$0xff] }
 0x456   :  { %5789 = vst.msk [vmem:[#allocation5 + $0xd8] sm:$0xff] %vm3449_vm6, %v5747_v9  ;;  %v6321_v37 = vadd.f32 %v13970_v52, %v6279_v61  ;;  %v6278_v15 = vld [vmem:[#allocation5 + $0xb0] sm:$0xff]  ;;  %v5714_v61 = vld [vmem:[#allocation5 + $0x120] sm:$0xff] }
 0x457   :  { %5788 = vst.msk [vmem:[#allocation5 + $0xd0] sm:$0xff] %vm3449_vm6, %v5746_v31  ;;  %v11522_v34 = vpop.f32.mrb[204].mxu1  ;;  %v6320_v45 = vadd.f32 %v6278_v15, %v13975_v57 }
 0x458   :  { %v5749_v46 = vadd.f32 %v11522_v34, %v5707_v55  ;;  %v5609_v27 = vpop.f32.mrb[205].mxu1  ;;  %6363 = vst.msk [vmem:[#allocation5 + $0xb8] sm:$0xff] %vm3449_vm6, %v6321_v37 }
 0x459   :  { %v5748_v16 = vadd.f32 %v5706_v33, %v5609_v27  ;;  %6362 = vst.msk [vmem:[#allocation5 + $0xb0] sm:$0xff] %vm3449_vm6, %v6320_v45  ;;  %v6281_v20 = vld [vmem:[#allocation5 + $0xc8] sm:$0xff]  ;;  %v5717_v45 = vld [vmem:[#allocation5 + $0x138] sm:$0xff]  ;;  %v5716_v33 = vld [vmem:[#allocation5 + $0x130] sm:$0xff] }
 0x45a   :  { %5791 = vst.msk [vmem:[#allocation5 + $0xe8] sm:$0xff] %vm3449_vm6, %v5749_v46  ;;  %v6323_v52 = vadd.f32 %v13997_v23, %v6281_v20  ;;  %v6280_v39 = vld [vmem:[#allocation5 + $0xc0] sm:$0xff] }
 0x45b   :  { %5790 = vst.msk [vmem:[#allocation5 + $0xe0] sm:$0xff] %vm3449_vm6, %v5748_v16  ;;  %v11525_v13 = vpop.f32.mrb[206].mxu1  ;;  %v6322_v57 = vadd.f32 %v6280_v39, %v14000_v29 }
 0x45c   :  { %v5751_v58 = vadd.f32 %v11525_v13, %v5709_v19  ;;  %v5619_v43 = vpop.f32.mrb[207].mxu1  ;;  %6365 = vst.msk [vmem:[#allocation5 + $0xc8] sm:$0xff] %vm3449_vm6, %v6323_v52  ;;  %v5719_v13 = vld [vmem:[#allocation5 + $0x148] sm:$0xff] }
 0x45d   :  { %v5750_v28 = vadd.f32 %v5708_v41, %v5619_v43  ;;  %6364 = vst.msk [vmem:[#allocation5 + $0xc0] sm:$0xff] %vm3449_vm6, %v6322_v57  ;;  %v6283_v62 = vld [vmem:[#allocation5 + $0xd8] sm:$0xff] }
 0x45e   :  { %5793 = vst.msk [vmem:[#allocation5 + $0xf8] sm:$0xff] %vm3449_vm6, %v5751_v58  ;;  %v6325_v23 = vadd.f32 %v14015_v50, %v6283_v62  ;;  %v6282_v36 = vld [vmem:[#allocation5 + $0xd0] sm:$0xff]  ;;  %v5718_v58 = vld [vmem:[#allocation5 + $0x140] sm:$0xff] }
 0x45f   :  { %5792 = vst.msk [vmem:[#allocation5 + $0xf0] sm:$0xff] %vm3449_vm6, %v5750_v28  ;;  %v11528_v6 = vpop.f32.mrb[208].mxu1  ;;  %v6324_v29 = vadd.f32 %v6282_v36, %v14018_v56 }
 0x460   :  { %v5753_v54 = vadd.f32 %v11528_v6, %v5711_v59  ;;  %v5629_v26 = vpop.f32.mrb[209].mxu1  ;;  %6367 = vst.msk [vmem:[#allocation5 + $0xd8] sm:$0xff] %vm3449_vm6, %v6325_v23  ;;  %v6835_v23 = vld [vmem:[#allocation5 + $0x8] sm:$0xff]  ;;  %v6834_v59 = vld [vmem:[#allocation5] sm:$0xff] }
 0x461   :  { %v5752_v63 = vadd.f32 %v5710_v8, %v5629_v26  ;;  %6366 = vst.msk [vmem:[#allocation5 + $0xd0] sm:$0xff] %vm3449_vm6, %v6324_v29  ;;  %v6285_v21 = vld [vmem:[#allocation5 + $0xe8] sm:$0xff] }
 0x462   :  { %5795 = vst.msk [vmem:[#allocation5 + $0x108] sm:$0xff] %vm3449_vm6, %v5753_v54  ;;  %v6327_v50 = vadd.f32 %v14025_v2, %v6285_v21  ;;  %v6284_v32 = vld [vmem:[#allocation5 + $0xe0] sm:$0xff] }
 0x463   :  { %5794 = vst.msk [vmem:[#allocation5 + $0x100] sm:$0xff] %vm3449_vm6, %v5752_v63  ;;  %v11531_v25 = vpop.f32.mrb[210].mxu1  ;;  %v6326_v56 = vadd.f32 %v6284_v32, %v14028_v7  ;;  %v6837_v63 = vld [vmem:[#allocation5 + $0x18] sm:$0xff]  ;;  %v6836_v32 = vld [vmem:[#allocation5 + $0x10] sm:$0xff] }
 0x464   :  { %v5755_v12 = vadd.f32 %v11531_v25, %v5713_v0  ;;  %v5639_v4 = vpop.f32.mrb[211].mxu1  ;;  %6369 = vst.msk [vmem:[#allocation5 + $0xe8] sm:$0xff] %vm3449_vm6, %v6327_v50 }
 0x465   :  { %v5754_v40 = vadd.f32 %v5712_v5, %v5639_v4  ;;  %6368 = vst.msk [vmem:[#allocation5 + $0xe0] sm:$0xff] %vm3449_vm6, %v6326_v56  ;;  %v6287_v17 = vld [vmem:[#allocation5 + $0xf8] sm:$0xff]  ;;  %v6839_v4 = vld [vmem:[#allocation5 + $0x28] sm:$0xff] }
 0x466   :  { %5797 = vst.msk [vmem:[#allocation5 + $0x118] sm:$0xff] %vm3449_vm6, %v5755_v12  ;;  %v6329_v2 = vadd.f32 %v14054_v49, %v6287_v17  ;;  %v6286_v10 = vld [vmem:[#allocation5 + $0xf0] sm:$0xff]  ;;  %v6838_v17 = vld [vmem:[#allocation5 + $0x20] sm:$0xff] }
 0x467   :  { %5796 = vst.msk [vmem:[#allocation5 + $0x110] sm:$0xff] %vm3449_vm6, %v5754_v40  ;;  %v11534_v9 = vpop.f32.mrb[212].mxu1  ;;  %v6328_v7 = vadd.f32 %v6286_v10, %v14063_v47 }
 0x468   :  { %v5757_v48 = vadd.f32 %v11534_v9, %v5715_v3  ;;  %v5649_v31 = vpop.f32.mrb[213].mxu1  ;;  %6371 = vst.msk [vmem:[#allocation5 + $0xf8] sm:$0xff] %vm3449_vm6, %v6329_v2 }
 0x469   :  { %v5756_v37 = vadd.f32 %v5714_v61, %v5649_v31  ;;  %6370 = vst.msk [vmem:[#allocation5 + $0xf0] sm:$0xff] %vm3449_vm6, %v6328_v7  ;;  %v6289_v15 = vld [vmem:[#allocation5 + $0x108] sm:$0xff]  ;;  %v6841_v7 = vld [vmem:[#allocation5 + $0x38] sm:$0xff]  ;;  %v6840_v61 = vld [vmem:[#allocation5 + $0x30] sm:$0xff] }
 0x46a   :  { %5799 = vst.msk [vmem:[#allocation5 + $0x128] sm:$0xff] %vm3449_vm6, %v5757_v48  ;;  %v6331_v49 = vadd.f32 %v14078_v1, %v6289_v15  ;;  %v6288_v34 = vld [vmem:[#allocation5 + $0x100] sm:$0xff] }
 0x46b   :  { %5798 = vst.msk [vmem:[#allocation5 + $0x120] sm:$0xff] %vm3449_vm6, %v5756_v37  ;;  %v11537_v55 = vpop.f32.mrb[214].mxu1  ;;  %v6330_v47 = vadd.f32 %v6288_v34, %v14081_v11 }
 0x46c   :  { %v5759_v46 = vadd.f32 %v11537_v55, %v5717_v45  ;;  %v5659_v27 = vpop.f32.mrb[215].mxu1  ;;  %6373 = vst.msk [vmem:[#allocation5 + $0x108] sm:$0xff] %vm3449_vm6, %v6331_v49  ;;  %v6843_v55 = vld [vmem:[#allocation5 + $0x48] sm:$0xff] }
 0x46d   :  { %v5758_v16 = vadd.f32 %v5716_v33, %v5659_v27  ;;  %6372 = vst.msk [vmem:[#allocation5 + $0x100] sm:$0xff] %vm3449_vm6, %v6330_v47  ;;  %v6291_v20 = vld [vmem:[#allocation5 + $0x118] sm:$0xff] }
 0x46e   :  { %5801 = vst.msk [vmem:[#allocation5 + $0x138] sm:$0xff] %vm3449_vm6, %v5759_v46  ;;  %v6333_v1 = vadd.f32 %v14097_v30, %v6291_v20  ;;  %v6290_v52 = vld [vmem:[#allocation5 + $0x110] sm:$0xff]  ;;  %v6842_v46 = vld [vmem:[#allocation5 + $0x40] sm:$0xff] }
 0x46f   :  { %5800 = vst.msk [vmem:[#allocation5 + $0x130] sm:$0xff] %vm3449_vm6, %v5758_v16  ;;  %v11540_v39 = vpop.f32.mrb[216].mxu1  ;;  %v6332_v11 = vadd.f32 %v6290_v52, %v14100_v35  ;;  %v15544_v16 = vld [vmem:[#allocation12_spill] sm:$0xff]  ;;  %v6845_v52 = vld [vmem:[#allocation5 + $0x58] sm:$0xff] }
 0x470   :  { %v5761_v19 = vadd.f32 %v11540_v39, %v5719_v13  ;;  %v5669_v57 = vpop.f32.mrb[217].mxu1  ;;  %6375 = vst.msk [vmem:[#allocation5 + $0x118] sm:$0xff] %vm3449_vm6, %v6333_v1  ;;  %v15545_v39 = vld [vmem:[#allocation13_spill] sm:$0xff] }
 0x471   :  { %v5760_v43 = vadd.f32 %v5718_v58, %v5669_v57  ;;  %6374 = vst.msk [vmem:[#allocation5 + $0x110] sm:$0xff] %vm3449_vm6, %v6332_v11  ;;  %v6293_v41 = vld [vmem:[#allocation5 + $0x128] sm:$0xff] }
 0x472   :  { %5803 = vst.msk [vmem:[#allocation5 + $0x148] sm:$0xff] %vm3449_vm6, %v5761_v19  ;;  %v6335_v30 = vadd.f32 %v14105_v42, %v6293_v41  ;;  %v6292_v28 = vld [vmem:[#allocation5 + $0x120] sm:$0xff]  ;;  %v6844_v19 = vld [vmem:[#allocation5 + $0x50] sm:$0xff] }
 0x473   :  { %5802 = vst.msk [vmem:[#allocation5 + $0x140] sm:$0xff] %vm3449_vm6, %v5760_v43  ;;  %v11638_v62 = vpop.f32.mrb[218].mxu1  ;;  %v6334_v35 = vadd.f32 %v6292_v28, %v14109_v51  ;;  %v15546_v43 = vld [vmem:[#allocation14_spill] sm:$0xff] }
 0x474   :  { %v6877_v36 = vadd.f32 %v11638_v62, %v6835_v23  ;;  %v6625_v6 = vpop.f32.mrb[219].mxu1  ;;  %6377 = vst.msk [vmem:[#allocation5 + $0x128] sm:$0xff] %vm3449_vm6, %v6335_v30  ;;  %v6847_v62 = vld [vmem:[#allocation5 + $0x68] sm:$0xff]  ;;  %v15547_v23 = vld [vmem:[#allocation15_spill] sm:$0xff] }
 0x475   :  { %v6876_v29 = vadd.f32 %v6834_v59, %v6625_v6  ;;  %6376 = vst.msk [vmem:[#allocation5 + $0x120] sm:$0xff] %vm3449_vm6, %v6334_v35  ;;  %v6295_v54 = vld [vmem:[#allocation5 + $0x138] sm:$0xff]  ;;  %v6846_v59 = vld [vmem:[#allocation5 + $0x60] sm:$0xff] }
 0x476   :  { %6919 = vst.msk [vmem:[#allocation5 + $0x8] sm:$0xff] %vm3449_vm6, %v6877_v36  ;;  %v6337_v42 = vadd.f32 %v14131_v53, %v6295_v54  ;;  %v6294_v26 = vld [vmem:[#allocation5 + $0x130] sm:$0xff] }
 0x477   :  { %6918 = vst.msk [vmem:[#allocation5] sm:$0xff] %vm3449_vm6, %v6876_v29  ;;  %v11641_v8 = vpop.f32.mrb[220].mxu1  ;;  %v6336_v51 = vadd.f32 %v6294_v26, %v14134_v38 }
 0x478   :  { %v6879_v21 = vadd.f32 %v11641_v8, %v6837_v63  ;;  %v6635_v50 = vpop.f32.mrb[221].mxu1  ;;  %6379 = vst.msk [vmem:[#allocation5 + $0x138] sm:$0xff] %vm3449_vm6, %v6337_v42  ;;  %v15548_v42 = vld [vmem:[#allocation16_spill] sm:$0xff] }
 0x479   :  { %v6878_v25 = vadd.f32 %v6836_v32, %v6635_v50  ;;  %6378 = vst.msk [vmem:[#allocation5 + $0x130] sm:$0xff] %vm3449_vm6, %v6336_v51  ;;  %v6297_v0 = vld [vmem:[#allocation5 + $0x148] sm:$0xff]  ;;  %v6849_v51 = vld [vmem:[#allocation5 + $0x78] sm:$0xff] }
 0x47a   :  { %6921 = vst.msk [vmem:[#allocation5 + $0x18] sm:$0xff] %vm3449_vm6, %v6879_v21  ;;  %v6339_v53 = vadd.f32 %v14143_v18, %v6297_v0  ;;  %v6296_v56 = vld [vmem:[#allocation5 + $0x140] sm:$0xff]  ;;  %v15549_v21 = vld [vmem:[#allocation17_spill] sm:$0xff] }
 0x47b   :  { %6920 = vst.msk [vmem:[#allocation5 + $0x10] sm:$0xff] %vm3449_vm6, %v6878_v25  ;;  %v11644_v12 = vpop.f32.mrb[222].mxu1  ;;  %v6338_v38 = vadd.f32 %v6296_v56, %v14146_v24  ;;  %v6848_v0 = vld [vmem:[#allocation5 + $0x70] sm:$0xff] }
 0x47c   :  { %v6881_v5 = vadd.f32 %v11644_v12, %v6839_v4  ;;  %v6645_v40 = vpop.f32.mrb[223].mxu1  ;;  %6381 = vst.msk [vmem:[#allocation5 + $0x148] sm:$0xff] %vm3449_vm6, %v6339_v53  ;;  %v15550_v12 = vld [vmem:[#allocation18_spill] sm:$0xff] }
 0x47d   :  { %v6880_v2 = vadd.f32 %v6838_v17, %v6645_v40  ;;  %6380 = vst.msk [vmem:[#allocation5 + $0x140] sm:$0xff] %vm3449_vm6, %v6338_v38  ;;  %v7413_v10 = vld [vmem:[#allocation5 + $0x8] sm:$0xff]  ;;  %v15551_v17 = vld [vmem:[#allocation19_spill] sm:$0xff] }
 0x47e   :  { %6923 = vst.msk [vmem:[#allocation5 + $0x28] sm:$0xff] %vm3449_vm6, %v6881_v5  ;;  %v7455_v18 = vadd.f32 %v14151_v44, %v7413_v10  ;;  %v7412_v9 = vld [vmem:[#allocation5] sm:$0xff]  ;;  %v6851_v40 = vld [vmem:[#allocation5 + $0x88] sm:$0xff] }
 0x47f   :  { %6922 = vst.msk [vmem:[#allocation5 + $0x20] sm:$0xff] %vm3449_vm6, %v6880_v2  ;;  %v11647_v3 = vpop.f32.mrb[224].mxu1  ;;  %v7454_v24 = vadd.f32 %v7412_v9, %v14154_v60  ;;  %v6850_v9 = vld [vmem:[#allocation5 + $0x80] sm:$0xff] }
 0x480   :  { %v6883_v48 = vadd.f32 %v11647_v3, %v6841_v7  ;;  %v6655_v31 = vpop.f32.mrb[225].mxu1  ;;  %7497 = vst.msk [vmem:[#allocation5 + $0x8] sm:$0xff] %vm3449_vm6, %v7455_v18 }
 0x481   :  { %v6882_v37 = vadd.f32 %v6840_v61, %v6655_v31  ;;  %7496 = vst.msk [vmem:[#allocation5] sm:$0xff] %vm3449_vm6, %v7454_v24  ;;  %v7415_v15 = vld [vmem:[#allocation5 + $0x18] sm:$0xff]  ;;  %v15552_v24 = vld [vmem:[#allocation20_spill] sm:$0xff] }
 0x482   :  { %6925 = vst.msk [vmem:[#allocation5 + $0x38] sm:$0xff] %vm3449_vm6, %v6883_v48  ;;  %v7457_v44 = vadd.f32 %v14159_v14, %v7415_v15  ;;  %v7414_v49 = vld [vmem:[#allocation5 + $0x10] sm:$0xff] }
 0x483   :  { %6924 = vst.msk [vmem:[#allocation5 + $0x30] sm:$0xff] %vm3449_vm6, %v6882_v37  ;;  %v11650_v34 = vpop.f32.mrb[226].mxu1  ;;  %v7456_v60 = vadd.f32 %v7414_v49, %v14162_v22  ;;  %v6853_v37 = vld [vmem:[#allocation5 + $0x98] sm:$0xff]  ;;  %v15553_v15 = vld [vmem:[#allocation21_spill] sm:$0xff] }
 0x484   :  { %v6885_v45 = vadd.f32 %v11650_v34, %v6843_v55  ;;  %v6665_v47 = vpop.f32.mrb[227].mxu1  ;;  %7499 = vst.msk [vmem:[#allocation5 + $0x18] sm:$0xff] %vm3449_vm6, %v7457_v44  ;;  %v6852_v55 = vld [vmem:[#allocation5 + $0x90] sm:$0xff] }
 0x485   :  { %v6884_v27 = vadd.f32 %v6842_v46, %v6665_v47  ;;  %7498 = vst.msk [vmem:[#allocation5 + $0x10] sm:$0xff] %vm3449_vm6, %v7456_v60  ;;  %v7417_v33 = vld [vmem:[#allocation5 + $0x28] sm:$0xff]  ;;  %v15554_v47 = vld [vmem:[#allocation22_spill] sm:$0xff] }
 0x486   :  { %6927 = vst.msk [vmem:[#allocation5 + $0x48] sm:$0xff] %vm3449_vm6, %v6885_v45  ;;  %v7459_v14 = vadd.f32 %v15544_v16, %v7417_v33  ;;  %v7416_v20 = vld [vmem:[#allocation5 + $0x20] sm:$0xff]  ;;  %v6855_v16 = vld [vmem:[#allocation5 + $0xa8] sm:$0xff] }
 0x487   :  { %6926 = vst.msk [vmem:[#allocation5 + $0x40] sm:$0xff] %vm3449_vm6, %v6884_v27  ;;  %v11653_v1 = vpop.f32.mrb[228].mxu1  ;;  %v7458_v22 = vadd.f32 %v7416_v20, %v15545_v39  ;;  %v6854_v39 = vld [vmem:[#allocation5 + $0xa0] sm:$0xff] }
 0x488   :  { %v6887_v13 = vadd.f32 %v11653_v1, %v6845_v52  ;;  %v6675_v11 = vpop.f32.mrb[229].mxu1  ;;  %7501 = vst.msk [vmem:[#allocation5 + $0x28] sm:$0xff] %vm3449_vm6, %v7459_v14  ;;  %v15555_v14 = vld [vmem:[#allocation23_spill] sm:$0xff] }
 0x489   :  { %v6886_v57 = vadd.f32 %v6844_v19, %v6675_v11  ;;  %7500 = vst.msk [vmem:[#allocation5 + $0x20] sm:$0xff] %vm3449_vm6, %v7458_v22  ;;  %v7419_v58 = vld [vmem:[#allocation5 + $0x38] sm:$0xff]  ;;  %v15556_v11 = vld [vmem:[#allocation24_spill] sm:$0xff] }
 0x48a   :  { %6929 = vst.msk [vmem:[#allocation5 + $0x58] sm:$0xff] %vm3449_vm6, %v6887_v13  ;;  %v7461_v41 = vadd.f32 %v15546_v43, %v7419_v58  ;;  %v7418_v30 = vld [vmem:[#allocation5 + $0x30] sm:$0xff]  ;;  %v6857_v43 = vld [vmem:[#allocation5 + $0xb8] sm:$0xff] }
 0x48b   :  { %6928 = vst.msk [vmem:[#allocation5 + $0x50] sm:$0xff] %vm3449_vm6, %v6886_v57  ;;  %v11656_v28 = vpop.f32.mrb[230].mxu1  ;;  %v7460_v35 = vadd.f32 %v7418_v30, %v15547_v23  ;;  %v6856_v23 = vld [vmem:[#allocation5 + $0xb0] sm:$0xff] }
 0x48c   :  { %v6889_v36 = vadd.f32 %v11656_v28, %v6847_v62  ;;  %v6685_v6 = vpop.f32.mrb[231].mxu1  ;;  %7503 = vst.msk [vmem:[#allocation5 + $0x38] sm:$0xff] %vm3449_vm6, %v7461_v41  ;;  %v15557_v41 = vld [vmem:[#allocation25_spill] sm:$0xff] }
 0x48d   :  { %v6888_v29 = vadd.f32 %v6846_v59, %v6685_v6  ;;  %7502 = vst.msk [vmem:[#allocation5 + $0x30] sm:$0xff] %vm3449_vm6, %v7460_v35  ;;  %v7421_v54 = vld [vmem:[#allocation5 + $0x48] sm:$0xff]  ;;  %v15558_v6 = vld [vmem:[#allocation26_spill] sm:$0xff] }
 0x48e   :  { %6931 = vst.msk [vmem:[#allocation5 + $0x68] sm:$0xff] %vm3449_vm6, %v6889_v36  ;;  %v7463_v26 = vadd.f32 %v15548_v42, %v7421_v54  ;;  %v7420_v8 = vld [vmem:[#allocation5 + $0x40] sm:$0xff]  ;;  %v6859_v42 = vld [vmem:[#allocation5 + $0xc8] sm:$0xff] }
 0x48f   :  { %6930 = vst.msk [vmem:[#allocation5 + $0x60] sm:$0xff] %vm3449_vm6, %v6888_v29  ;;  %v11659_v63 = vpop.f32.mrb[232].mxu1  ;;  %v7462_v50 = vadd.f32 %v7420_v8, %v15549_v21  ;;  %v6858_v21 = vld [vmem:[#allocation5 + $0xc0] sm:$0xff] }
 0x490   :  { %v6891_v32 = vadd.f32 %v11659_v63, %v6849_v51  ;;  %v6695_v25 = vpop.f32.mrb[233].mxu1  ;;  %7505 = vst.msk [vmem:[#allocation5 + $0x48] sm:$0xff] %vm3449_vm6, %v7463_v26  ;;  %v15559_v26 = vld [vmem:[#allocation27_spill] sm:$0xff] }
 0x491   :  { %v6890_v53 = vadd.f32 %v6848_v0, %v6695_v25  ;;  %7504 = vst.msk [vmem:[#allocation5 + $0x40] sm:$0xff] %vm3449_vm6, %v7462_v50  ;;  %v7423_v56 = vld [vmem:[#allocation5 + $0x58] sm:$0xff]  ;;  %v15560_v25 = vld [vmem:[#allocation28_spill] sm:$0xff] }
 0x492   :  { %6933 = vst.msk [vmem:[#allocation5 + $0x78] sm:$0xff] %vm3449_vm6, %v6891_v32  ;;  %v7465_v4 = vadd.f32 %v15550_v12, %v7423_v56  ;;  %v7422_v38 = vld [vmem:[#allocation5 + $0x50] sm:$0xff]  ;;  %v6861_v12 = vld [vmem:[#allocation5 + $0xd8] sm:$0xff] }
 0x493   :  { %6932 = vst.msk [vmem:[#allocation5 + $0x70] sm:$0xff] %vm3449_vm6, %v6890_v53  ;;  %v11662_v5 = vpop.f32.mrb[234].mxu1  ;;  %v7464_v2 = vadd.f32 %v7422_v38, %v15551_v17  ;;  %v6860_v17 = vld [vmem:[#allocation5 + $0xd0] sm:$0xff] }
 0x494   :  { %v6893_v10 = vadd.f32 %v11662_v5, %v6851_v40  ;;  %v6705_v18 = vpop.f32.mrb[235].mxu1  ;;  %7507 = vst.msk [vmem:[#allocation5 + $0x58] sm:$0xff] %vm3449_vm6, %v7465_v4  ;;  %v15561_v4 = vld [vmem:[#allocation29_spill] sm:$0xff] }
 0x495   :  { %v6892_v3 = vadd.f32 %v6850_v9, %v6705_v18  ;;  %7506 = vst.msk [vmem:[#allocation5 + $0x50] sm:$0xff] %vm3449_vm6, %v7464_v2  ;;  %v7425_v7 = vld [vmem:[#allocation5 + $0x68] sm:$0xff]  ;;  %v15562_v18 = vld [vmem:[#allocation30_spill] sm:$0xff] }
 0x496   :  { %6935 = vst.msk [vmem:[#allocation5 + $0x88] sm:$0xff] %vm3449_vm6, %v6893_v10  ;;  %v7467_v48 = vadd.f32 %v15552_v24, %v7425_v7  ;;  %v7424_v31 = vld [vmem:[#allocation5 + $0x60] sm:$0xff]  ;;  %v6863_v24 = vld [vmem:[#allocation5 + $0xe8] sm:$0xff] }
 0x497   :  { %6934 = vst.msk [vmem:[#allocation5 + $0x80] sm:$0xff] %vm3449_vm6, %v6892_v3  ;;  %v11665_v61 = vpop.f32.mrb[236].mxu1  ;;  %v7466_v44 = vadd.f32 %v7424_v31, %v15553_v15  ;;  %v6862_v15 = vld [vmem:[#allocation5 + $0xe0] sm:$0xff] }
 0x498   :  { %v6895_v49 = vadd.f32 %v11665_v61, %v6853_v37  ;;  %v6715_v34 = vpop.f32.mrb[237].mxu1  ;;  %7509 = vst.msk [vmem:[#allocation5 + $0x68] sm:$0xff] %vm3449_vm6, %v7467_v48  ;;  %v15563_v48 = vld [vmem:[#allocation31_spill] sm:$0xff] }
 0x499   :  { %v6894_v60 = vadd.f32 %v6852_v55, %v6715_v34  ;;  %7508 = vst.msk [vmem:[#allocation5 + $0x60] sm:$0xff] %vm3449_vm6, %v7466_v44  ;;  %v7427_v45 = vld [vmem:[#allocation5 + $0x78] sm:$0xff]  ;;  %v15564_v34 = vld [vmem:[#allocation32_spill] sm:$0xff] }
 0x49a   :  { %6937 = vst.msk [vmem:[#allocation5 + $0x98] sm:$0xff] %vm3449_vm6, %v6895_v49  ;;  %v7469_v46 = vadd.f32 %v15554_v47, %v7427_v45  ;;  %v7426_v27 = vld [vmem:[#allocation5 + $0x70] sm:$0xff]  ;;  %v6865_v47 = vld [vmem:[#allocation5 + $0xf8] sm:$0xff] }
 0x49b   :  { %6936 = vst.msk [vmem:[#allocation5 + $0x90] sm:$0xff] %vm3449_vm6, %v6894_v60  ;;  %v11668_v33 = vpop.f32.mrb[238].mxu1  ;;  %v7468_v20 = vadd.f32 %v7426_v27, %v15555_v14  ;;  %v6864_v14 = vld [vmem:[#allocation5 + $0xf0] sm:$0xff] }
 0x49c   :  { %v6897_v1 = vadd.f32 %v11668_v33, %v6855_v16  ;;  %v6725_v52 = vpop.f32.mrb[239].mxu1  ;;  %7511 = vst.msk [vmem:[#allocation5 + $0x78] sm:$0xff] %vm3449_vm6, %v7469_v46  ;;  %v15565_v46 = vld [vmem:[#allocation33_spill] sm:$0xff] }
 0x49d   :  { %v6896_v22 = vadd.f32 %v6854_v39, %v6725_v52  ;;  %7510 = vst.msk [vmem:[#allocation5 + $0x70] sm:$0xff] %vm3449_vm6, %v7468_v20  ;;  %v7429_v13 = vld [vmem:[#allocation5 + $0x88] sm:$0xff]  ;;  %v15566_v52 = vld [vmem:[#allocation34_spill] sm:$0xff] }
 0x49e   :  { %6939 = vst.msk [vmem:[#allocation5 + $0xa8] sm:$0xff] %vm3449_vm6, %v6897_v1  ;;  %v7471_v19 = vadd.f32 %v15556_v11, %v7429_v13  ;;  %v7428_v57 = vld [vmem:[#allocation5 + $0x80] sm:$0xff]  ;;  %v6867_v11 = vld [vmem:[#allocation5 + $0x108] sm:$0xff] }
 0x49f   :  { %6938 = vst.msk [vmem:[#allocation5 + $0xa0] sm:$0xff] %vm3449_vm6, %v6896_v22  ;;  %v11671_v58 = vpop.f32.mrb[240].mxu1  ;;  %v7470_v30 = vadd.f32 %v7428_v57, %v15557_v41  ;;  %v6866_v41 = vld [vmem:[#allocation5 + $0x100] sm:$0xff] }
 0x4a0   :  { %v6899_v28 = vadd.f32 %v11671_v58, %v6857_v43  ;;  %v6735_v62 = vpop.f32.mrb[241].mxu1  ;;  %7513 = vst.msk [vmem:[#allocation5 + $0x88] sm:$0xff] %vm3449_vm6, %v7471_v19  ;;  %v15567_v19 = vld [vmem:[#allocation35_spill] sm:$0xff] }
 0x4a1   :  { %v6898_v35 = vadd.f32 %v6856_v23, %v6735_v62  ;;  %7512 = vst.msk [vmem:[#allocation5 + $0x80] sm:$0xff] %vm3449_vm6, %v7470_v30  ;;  %v7431_v36 = vld [vmem:[#allocation5 + $0x98] sm:$0xff]  ;;  %v15568_v62 = vld [vmem:[#allocation36_spill] sm:$0xff] }
 0x4a2   :  { %6941 = vst.msk [vmem:[#allocation5 + $0xb8] sm:$0xff] %vm3449_vm6, %v6899_v28  ;;  %v7473_v59 = vadd.f32 %v15558_v6, %v7431_v36  ;;  %v7430_v29 = vld [vmem:[#allocation5 + $0x90] sm:$0xff]  ;;  %v6869_v6 = vld [vmem:[#allocation5 + $0x118] sm:$0xff] }
 0x4a3   :  { %6940 = vst.msk [vmem:[#allocation5 + $0xb0] sm:$0xff] %vm3449_vm6, %v6898_v35  ;;  %v11674_v54 = vpop.f32.mrb[242].mxu1  ;;  %v7472_v8 = vadd.f32 %v7430_v29, %v15559_v26  ;;  %v6868_v26 = vld [vmem:[#allocation5 + $0x110] sm:$0xff] }
 0x4a4   :  { %v6901_v63 = vadd.f32 %v11674_v54, %v6859_v42  ;;  %v6745_v51 = vpop.f32.mrb[243].mxu1  ;;  %7515 = vst.msk [vmem:[#allocation5 + $0x98] sm:$0xff] %vm3449_vm6, %v7473_v59  ;;  %v15569_v59 = vld [vmem:[#allocation37_spill] sm:$0xff] }
 0x4a5   :  { %v6900_v50 = vadd.f32 %v6858_v21, %v6745_v51  ;;  %7514 = vst.msk [vmem:[#allocation5 + $0x90] sm:$0xff] %vm3449_vm6, %v7472_v8  ;;  %v7433_v32 = vld [vmem:[#allocation5 + $0xa8] sm:$0xff]  ;;  %v15570_v51 = vld [vmem:[#allocation38_spill] sm:$0xff] }
 0x4a6   :  { %6943 = vst.msk [vmem:[#allocation5 + $0xc8] sm:$0xff] %vm3449_vm6, %v6901_v63  ;;  %v7475_v0 = vadd.f32 %v15560_v25, %v7433_v32  ;;  %v7432_v53 = vld [vmem:[#allocation5 + $0xa0] sm:$0xff]  ;;  %v6871_v25 = vld [vmem:[#allocation5 + $0x128] sm:$0xff] }
 0x4a7   :  { %6942 = vst.msk [vmem:[#allocation5 + $0xc0] sm:$0xff] %vm3449_vm6, %v6900_v50  ;;  %v11677_v56 = vpop.f32.mrb[244].mxu1  ;;  %v7474_v38 = vadd.f32 %v7432_v53, %v15561_v4  ;;  %v6870_v4 = vld [vmem:[#allocation5 + $0x120] sm:$0xff] }
 0x4a8   :  { %v6903_v5 = vadd.f32 %v11677_v56, %v6861_v12  ;;  %v6755_v40 = vpop.f32.mrb[245].mxu1  ;;  %7517 = vst.msk [vmem:[#allocation5 + $0xa8] sm:$0xff] %vm3449_vm6, %v7475_v0  ;;  %v15571_v0 = vld [vmem:[#allocation39_spill] sm:$0xff] }
 0x4a9   :  { %v6902_v2 = vadd.f32 %v6860_v17, %v6755_v40  ;;  %7516 = vst.msk [vmem:[#allocation5 + $0xa0] sm:$0xff] %vm3449_vm6, %v7474_v38  ;;  %v7435_v10 = vld [vmem:[#allocation5 + $0xb8] sm:$0xff]  ;;  %v15572_v40 = vld [vmem:[#allocation40_spill] sm:$0xff] }
 0x4aa   :  { %6945 = vst.msk [vmem:[#allocation5 + $0xd8] sm:$0xff] %vm3449_vm6, %v6903_v5  ;;  %v7477_v9 = vadd.f32 %v15562_v18, %v7435_v10  ;;  %v7434_v3 = vld [vmem:[#allocation5 + $0xb0] sm:$0xff]  ;;  %v6873_v18 = vld [vmem:[#allocation5 + $0x138] sm:$0xff] }
 0x4ab   :  { %6944 = vst.msk [vmem:[#allocation5 + $0xd0] sm:$0xff] %vm3449_vm6, %v6902_v2  ;;  %v11680_v7 = vpop.f32.mrb[246].mxu1  ;;  %v7476_v31 = vadd.f32 %v7434_v3, %v15563_v48  ;;  %v6872_v48 = vld [vmem:[#allocation5 + $0x130] sm:$0xff] }
 0x4ac   :  { %v6905_v61 = vadd.f32 %v11680_v7, %v6863_v24  ;;  %v6765_v37 = vpop.f32.mrb[247].mxu1  ;;  %7519 = vst.msk [vmem:[#allocation5 + $0xb8] sm:$0xff] %vm3449_vm6, %v7477_v9  ;;  %v15573_v9 = vld [vmem:[#allocation41_spill] sm:$0xff] }
 0x4ad   :  { %v6904_v44 = vadd.f32 %v6862_v15, %v6765_v37  ;;  %7518 = vst.msk [vmem:[#allocation5 + $0xb0] sm:$0xff] %vm3449_vm6, %v7476_v31  ;;  %v7437_v49 = vld [vmem:[#allocation5 + $0xc8] sm:$0xff]  ;;  %v15574_v37 = vld [vmem:[#allocation42_spill] sm:$0xff] }
 0x4ae   :  { %6947 = vst.msk [vmem:[#allocation5 + $0xe8] sm:$0xff] %vm3449_vm6, %v6905_v61  ;;  %v7479_v55 = vadd.f32 %v15564_v34, %v7437_v49  ;;  %v7436_v60 = vld [vmem:[#allocation5 + $0xc0] sm:$0xff]  ;;  %v6875_v34 = vld [vmem:[#allocation5 + $0x148] sm:$0xff] }
 0x4af   :  { %6946 = vst.msk [vmem:[#allocation5 + $0xe0] sm:$0xff] %vm3449_vm6, %v6904_v44  ;;  %v11683_v45 = vpop.f32.mrb[248].mxu1  ;;  %v7478_v27 = vadd.f32 %v7436_v60, %v15565_v46  ;;  %v6874_v46 = vld [vmem:[#allocation5 + $0x140] sm:$0xff] }
 0x4b0   :  { %v6907_v33 = vadd.f32 %v11683_v45, %v6865_v47  ;;  %v6775_v16 = vpop.f32.mrb[249].mxu1  ;;  %7521 = vst.msk [vmem:[#allocation5 + $0xc8] sm:$0xff] %vm3449_vm6, %v7479_v55  ;;  %v15575_v55 = vld [vmem:[#allocation43_spill] sm:$0xff] }
 0x4b1   :  { %v6906_v20 = vadd.f32 %v6864_v14, %v6775_v16  ;;  %7520 = vst.msk [vmem:[#allocation5 + $0xc0] sm:$0xff] %vm3449_vm6, %v7478_v27  ;;  %v7439_v1 = vld [vmem:[#allocation5 + $0xd8] sm:$0xff]  ;;  %v8734_v16 = vld [vmem:[%s15499_s5 + $0x80] sm:$0xff]  ;;  %v8735_v14 = vld [vmem:[%s15499_s5 + $0x88] sm:$0xff] }
 0x4b2   :  { %6949 = vst.msk [vmem:[#allocation5 + $0xf8] sm:$0xff] %vm3449_vm6, %v6907_v33  ;;  %v7481_v39 = vadd.f32 %v15566_v52, %v7439_v1  ;;  %v7438_v22 = vld [vmem:[#allocation5 + $0xd0] sm:$0xff] }
 0x4b3   :  { %6948 = vst.msk [vmem:[#allocation5 + $0xf0] sm:$0xff] %vm3449_vm6, %v6906_v20  ;;  %v11686_v13 = vpop.f32.mrb[250].mxu1  ;;  %v7480_v57 = vadd.f32 %v7438_v22, %v15567_v19  ;;  %v15576_v20 = vld [vmem:[#allocation44_spill] sm:$0xff] }
 0x4b4   :  { %v6909_v58 = vadd.f32 %v11686_v13, %v6867_v11  ;;  %v6785_v43 = vpop.f32.mrb[251].mxu1  ;;  %7523 = vst.msk [vmem:[#allocation5 + $0xd8] sm:$0xff] %vm3449_vm6, %v7481_v39  ;;  %v12077_v39 = vpack.c.bf16 %v8735_v14, %v8734_v16  ;;  %v8718_v22 = vld [vmem:[%s15499_s5] sm:$0xff]  ;;  %v8719_v13 = vld [vmem:[%s15499_s5 + $0x8] sm:$0xff] }
 0x4b5   :  { %v6908_v30 = vadd.f32 %v6866_v41, %v6785_v43  ;;  %7522 = vst.msk [vmem:[#allocation5 + $0xd0] sm:$0xff] %vm3449_vm6, %v7480_v57  ;;  %v7441_v28 = vld [vmem:[#allocation5 + $0xe8] sm:$0xff]  ;;  %v12079_v43 = vpack.c.bf16 %v8719_v13, %v8718_v22  ;;  %v8742_v14 = vld [vmem:[%s15499_s5 + $0xc0] sm:$0xff]  ;;  %v7997_v13 = vld [vmem:[#allocation5 + $0x38] sm:$0xff] }
 0x4b6   :  { %6951 = vst.msk [vmem:[#allocation5 + $0x108] sm:$0xff] %vm3449_vm6, %v6909_v58  ;;  %v7483_v23 = vadd.f32 %v15568_v62, %v7441_v28  ;;  %v7440_v35 = vld [vmem:[#allocation5 + $0xe0] sm:$0xff]  ;;  %v7991_v19 = vld [vmem:[#allocation5 + $0x8] sm:$0xff]  ;;  %12078 = vmatprep.subr.bf16.mxu0 %v12077_v39 }
 0x4b7   :  { %6950 = vst.msk [vmem:[#allocation5 + $0x100] sm:$0xff] %vm3449_vm6, %v6908_v30  ;;  %v11689_v36 = vpop.f32.mrb[252].mxu1  ;;  %v7482_v29 = vadd.f32 %v7440_v35, %v15569_v59  ;;  %v15577_v57 = vld [vmem:[#allocation45_spill] sm:$0xff]  ;;  %v7990_v28 = vld [vmem:[#allocation5] sm:$0xff]  ;;  %12080 = vmatpush3.bf16.msra.mxu0 %v12079_v43 }
 0x4b8   :  { %v6911_v54 = vadd.f32 %v11689_v36, %v6869_v6  ;;  %v6795_v42 = vpop.f32.mrb[253].mxu1  ;;  %7525 = vst.msk [vmem:[#allocation5 + $0xe8] sm:$0xff] %vm3449_vm6, %v7483_v23  ;;  %v8736_v35 = vld [vmem:[%s15499_s5 + $0x90] sm:$0xff]  ;;  %v8737_v36 = vld [vmem:[%s15499_s5 + $0x98] sm:$0xff]  ;;  %v8727_v39 = vld [vmem:[%s15499_s5 + $0x48] sm:$0xff] }
 0x4b9   :  { %v6910_v8 = vadd.f32 %v6868_v26, %v6795_v42  ;;  %7524 = vst.msk [vmem:[#allocation5 + $0xe0] sm:$0xff] %vm3449_vm6, %v7482_v29  ;;  %v7443_v63 = vld [vmem:[#allocation5 + $0xf8] sm:$0xff]  ;;  %v8720_v42 = vld [vmem:[%s15499_s5 + $0x10] sm:$0xff] }
 0x4ba   :  { %6953 = vst.msk [vmem:[#allocation5 + $0x118] sm:$0xff] %vm3449_vm6, %v6911_v54  ;;  %v7485_v21 = vadd.f32 %v15570_v51, %v7443_v63  ;;  %v7442_v50 = vld [vmem:[#allocation5 + $0xf0] sm:$0xff]  ;;  %v12081_v54 = vpack.c.bf16 %v8737_v36, %v8736_v35  ;;  %v8721_v26 = vld [vmem:[%s15499_s5 + $0x18] sm:$0xff] }
 0x4bb   :  { %6952 = vst.msk [vmem:[#allocation5 + $0x110] sm:$0xff] %vm3449_vm6, %v6910_v8  ;;  %v11692_v32 = vpop.f32.mrb[254].mxu1  ;;  %v7484_v53 = vadd.f32 %v7442_v50, %v15571_v0  ;;  %v15578_v6 = vld [vmem:[#allocation46_spill] sm:$0xff]  ;;  %v15579_v51 = vld [vmem:[#allocation47_spill] sm:$0xff]  ;;  %v12083_v50 = vpack.c.bf16 %v8721_v26, %v8720_v42 }
 0x4bc   :  { %v6913_v56 = vadd.f32 %v11692_v32, %v6871_v25  ;;  %v6805_v12 = vpop.f32.mrb[255].mxu1  ;;  %7527 = vst.msk [vmem:[#allocation5 + $0xf8] sm:$0xff] %vm3449_vm6, %v7485_v21  ;;  %v7993_v63 = vld [vmem:[#allocation5 + $0x18] sm:$0xff]  ;;  %v8738_v32 = vld [vmem:[%s15499_s5 + $0xa0] sm:$0xff]  ;;  %v8739_v25 = vld [vmem:[%s15499_s5 + $0xa8] sm:$0xff]  ;;  %12082 = vmatprep.subr.bf16.mxu0 %v12081_v54 }
 0x4bd   :  { %v6912_v38 = vadd.f32 %v6870_v4, %v6805_v12  ;;  %7526 = vst.msk [vmem:[#allocation5 + $0xf0] sm:$0xff] %vm3449_vm6, %v7484_v53  ;;  %v7445_v5 = vld [vmem:[#allocation5 + $0x108] sm:$0xff]  ;;  %v12085_v12 = vpack.c.bf16 %v8739_v25, %v8738_v32  ;;  %v8722_v4 = vld [vmem:[%s15499_s5 + $0x20] sm:$0xff]  ;;  %12084 = vmatpush3.bf16.msra.mxu0 %v12083_v50 }
 0x4be   :  { %6955 = vst.msk [vmem:[#allocation5 + $0x128] sm:$0xff] %vm3449_vm6, %v6913_v56  ;;  %v7487_v17 = vadd.f32 %v15572_v40, %v7445_v5  ;;  %v7444_v2 = vld [vmem:[#allocation5 + $0x100] sm:$0xff]  ;;  %v7992_v56 = vld [vmem:[#allocation5 + $0x10] sm:$0xff] }
 0x4bf   :  { %6954 = vst.msk [vmem:[#allocation5 + $0x120] sm:$0xff] %vm3449_vm6, %v6912_v38  ;;  %v11695_v10 = vpop.f32.mrb[0].mxu1  ;;  %v7486_v3 = vadd.f32 %v7444_v2, %v15573_v9  ;;  %v8723_v38 = vld [vmem:[%s15499_s5 + $0x28] sm:$0xff]  ;;  %v8740_v2 = vld [vmem:[%s15499_s5 + $0xb0] sm:$0xff]  ;;  %12086 = vmatprep.subr.bf16.mxu0 %v12085_v12 }
 0x4c0   :  { %v6915_v7 = vadd.f32 %v11695_v10, %v6873_v18  ;;  %v6815_v24 = vpop.f32.mrb[1].mxu1  ;;  %7529 = vst.msk [vmem:[#allocation5 + $0x108] sm:$0xff] %vm3449_vm6, %v7487_v17  ;;  %v12087_v17 = vpack.c.bf16 %v8723_v38, %v8722_v4  ;;  %v8741_v10 = vld [vmem:[%s15499_s5 + $0xb8] sm:$0xff]  ;;  %v15580_v18 = vld [vmem:[#allocation48_spill] sm:$0xff] }
 0x4c1   :  { %v6914_v31 = vadd.f32 %v6872_v48, %v6815_v24  ;;  %7528 = vst.msk [vmem:[#allocation5 + $0x100] sm:$0xff] %vm3449_vm6, %v7486_v3  ;;  %v7447_v61 = vld [vmem:[#allocation5 + $0x118] sm:$0xff]  ;;  %v8724_v24 = vld [vmem:[%s15499_s5 + $0x30] sm:$0xff]  ;;  %v8003_v38 = vld [vmem:[#allocation5 + $0x68] sm:$0xff] }
 0x4c2   :  { %6957 = vst.msk [vmem:[#allocation5 + $0x138] sm:$0xff] %vm3449_vm6, %v6915_v7  ;;  %v7489_v15 = vadd.f32 %v15574_v37, %v7447_v61  ;;  %v7446_v44 = vld [vmem:[#allocation5 + $0x110] sm:$0xff]  ;;  %v12089_v7 = vpack.c.bf16 %v8741_v10, %v8740_v2  ;;  %v8725_v48 = vld [vmem:[%s15499_s5 + $0x38] sm:$0xff]  ;;  %v7995_v61 = vld [vmem:[#allocation5 + $0x28] sm:$0xff]  ;;  %12088 = vmatpush3.bf16.msra.mxu0 %v12087_v17 }
 0x4c3   :  { %6956 = vst.msk [vmem:[#allocation5 + $0x130] sm:$0xff] %vm3449_vm6, %v6914_v31  ;;  %v11698_v49 = vpop.f32.mrb[2].mxu1  ;;  %v7488_v60 = vadd.f32 %v7446_v44, %v15575_v55  ;;  %v15581_v37 = vld [vmem:[#allocation49_spill] sm:$0xff]  ;;  %v8798_v44 = vld [vmem:[%s15499_s5 + $0x280] sm:$0xff] }
 0x4c4   :  { %v6917_v45 = vadd.f32 %v11698_v49, %v6875_v34  ;;  %v6825_v47 = vpop.f32.mrb[3].mxu1  ;;  %7531 = vst.msk [vmem:[#allocation5 + $0x118] sm:$0xff] %vm3449_vm6, %v7489_v15  ;;  %v8799_v49 = vld [vmem:[%s15499_s5 + $0x288] sm:$0xff]  ;;  %12090 = vmatprep.subr.bf16.mxu0 %v12089_v7  ;;  %v8002_v17 = vld [vmem:[#allocation5 + $0x60] sm:$0xff] }
 0x4c5   :  { %v6916_v27 = vadd.f32 %v6874_v46, %v6825_v47  ;;  %7530 = vst.msk [vmem:[#allocation5 + $0x110] sm:$0xff] %vm3449_vm6, %v7488_v60  ;;  %v7449_v33 = vld [vmem:[#allocation5 + $0x128] sm:$0xff]  ;;  %v7994_v60 = vld [vmem:[#allocation5 + $0x20] sm:$0xff] }
 0x4c6   :  { %6959 = vst.msk [vmem:[#allocation5 + $0x148] sm:$0xff] %vm3449_vm6, %v6917_v45  ;;  %v7491_v1 = vadd.f32 %v15576_v20, %v7449_v33  ;;  %v7448_v52 = vld [vmem:[#allocation5 + $0x120] sm:$0xff]  ;;  %v12141_v45 = vpack.c.bf16 %v8799_v49, %v8798_v44  ;;  %v8783_v46 = vld [vmem:[%s15499_s5 + $0x208] sm:$0xff]  ;;  %v12091_v33 = vpack.c.bf16 %v8725_v48, %v8724_v24  ;;  %v8004_v24 = vld [vmem:[#allocation5 + $0x70] sm:$0xff] }
 0x4c7   :  { %6958 = vst.msk [vmem:[#allocation5 + $0x140] sm:$0xff] %vm3449_vm6, %v6916_v27  ;;  %v11796_v11 = vpop.f32.mrb[4].mxu1  ;;  %v7490_v58 = vadd.f32 %v7448_v52, %v15577_v57  ;;  %v8782_v47 = vld [vmem:[%s15499_s5 + $0x200] sm:$0xff]  ;;  %v8743_v20 = vld [vmem:[%s15499_s5 + $0xc8] sm:$0xff]  ;;  %v7996_v57 = vld [vmem:[#allocation5 + $0x30] sm:$0xff] }
 0x4c8   :  { %v8033_v41 = vadd.f32 %v11796_v11, %v7991_v19  ;;  %v7781_v30 = vpop.f32.mrb[5].mxu1  ;;  %7533 = vst.msk [vmem:[#allocation5 + $0x128] sm:$0xff] %vm3449_vm6, %v7491_v1  ;;  %v12143_v16 = vpack.c.bf16 %v8783_v46, %v8782_v47  ;;  %12142 = vmatprep.subr.bf16.mxu1 %v12141_v45  ;;  %v12093_v1 = vpack.c.bf16 %v8743_v20, %v8742_v14  ;;  %v8726_v52 = vld [vmem:[%s15499_s5 + $0x40] sm:$0xff] }
 0x4c9   :  { %v8032_v62 = vadd.f32 %v7990_v28, %v7781_v30  ;;  %7532 = vst.msk [vmem:[#allocation5 + $0x120] sm:$0xff] %vm3449_vm6, %v7490_v58  ;;  %v7451_v23 = vld [vmem:[#allocation5 + $0x138] sm:$0xff]  ;;  %12092 = vmatpush3.bf16.msra.mxu0 %v12091_v33  ;;  %v12095_v43 = vpack.c.bf16 %v8727_v39, %v8726_v52  ;;  %v7999_v30 = vld [vmem:[#allocation5 + $0x48] sm:$0xff]  ;;  %v8006_v46 = vld [vmem:[#allocation5 + $0x80] sm:$0xff] }
 0x4ca   :  { %8075 = vst.msk [vmem:[#allocation5 + $0x8] sm:$0xff] %vm3449_vm6, %v8033_v41  ;;  %v7493_v59 = vadd.f32 %v15578_v6, %v7451_v23  ;;  %v7450_v29 = vld [vmem:[#allocation5 + $0x130] sm:$0xff]  ;;  %12144 = vmatpush3.bf16.msra.mxu1 %v12143_v16  ;;  %12094 = vmatprep.subr.bf16.mxu0 %v12093_v1  ;;  %v7998_v23 = vld [vmem:[#allocation5 + $0x40] sm:$0xff] }
 0x4cb   :  { %8074 = vst.msk [vmem:[#allocation5] sm:$0xff] %vm3449_vm6, %v8032_v62  ;;  %v11799_v8 = vpop.f32.mrb[6].mxu1  ;;  %v7492_v21 = vadd.f32 %v7450_v29, %v15579_v51 }
 0x4cc   :  { %v8035_v0 = vadd.f32 %v11799_v8, %v7993_v63  ;;  %v7791_v53 = vpop.f32.mrb[7].mxu1  ;;  %7535 = vst.msk [vmem:[#allocation5 + $0x138] sm:$0xff] %vm3449_vm6, %v7493_v59  ;;  %v8001_v8 = vld [vmem:[#allocation5 + $0x58] sm:$0xff] }
 0x4cd   :  { %v8034_v5 = vadd.f32 %v7992_v56, %v7791_v53  ;;  %7534 = vst.msk [vmem:[#allocation5 + $0x130] sm:$0xff] %vm3449_vm6, %v7492_v21  ;;  %v7453_v40 = vld [vmem:[#allocation5 + $0x148] sm:$0xff]  ;;  %12096 = vmatpush3.bf16.msra.mxu0 %v12095_v43  ;;  %v8000_v21 = vld [vmem:[#allocation5 + $0x50] sm:$0xff] }
 0x4ce   :  { %8077 = vst.msk [vmem:[#allocation5 + $0x18] sm:$0xff] %vm3449_vm6, %v8035_v0  ;;  %v7495_v9 = vadd.f32 %v15580_v18, %v7453_v40  ;;  %v7452_v3 = vld [vmem:[#allocation5 + $0x140] sm:$0xff]  ;;  %v8005_v18 = vld [vmem:[#allocation5 + $0x78] sm:$0xff] }
 0x4cf   :  { %8076 = vst.msk [vmem:[#allocation5 + $0x10] sm:$0xff] %vm3449_vm6, %v8034_v5  ;;  %v11802_v31 = vpop.f32.mrb[8].mxu1  ;;  %v7494_v15 = vadd.f32 %v7452_v3, %v15581_v37 }
 0x4d0   :  { %v8037_v34 = vadd.f32 %v11802_v31, %v7995_v61  ;;  %v7801_v55 = vpop.f32.mrb[9].mxu1  ;;  %7537 = vst.msk [vmem:[#allocation5 + $0x148] sm:$0xff] %vm3449_vm6, %v7495_v9  ;;  %v14867_v9 = vld [vmem:[%s15498_s4] ss:$0 sm:$0xff] }
 0x4d1   :  { %v8036_v27 = vadd.f32 %v7994_v60, %v7801_v55  ;;  %7536 = vst.msk [vmem:[#allocation5 + $0x140] sm:$0xff] %vm3449_vm6, %v7494_v15  ;;  %v8117_v35 = vld [vmem:[#allocation5 + $0x8] sm:$0xff] }
 0x4d2   :  { %8079 = vst.msk [vmem:[#allocation5 + $0x28] sm:$0xff] %vm3449_vm6, %v8037_v34  ;;  %v8116_v6 = vld [vmem:[#allocation5] sm:$0xff]  ;;  %v8007_v55 = vld [vmem:[#allocation5 + $0x88] sm:$0xff] }
 0x4d3   :  { %8078 = vst.msk [vmem:[#allocation5 + $0x20] sm:$0xff] %vm3449_vm6, %v8036_v27  ;;  %v11805_v22 = vpop.f32.mrb[10].mxu1 }
 0x4d4   :  { %v8039_v11 = vadd.f32 %v11805_v22, %v7997_v13  ;;  %v7811_v19 = vpop.f32.mrb[11].mxu1 }
 0x4d5   :  { %v8038_v58 = vadd.f32 %v7996_v57, %v7811_v19  ;;  %v8119_v50 = vld [vmem:[#allocation5 + $0x18] sm:$0xf] }
 0x4d6   :  { %8081 = vst.msk [vmem:[#allocation5 + $0x38] sm:$0xff] %vm3449_vm6, %v8039_v11  ;;  %v8118_v25 = vld [vmem:[#allocation5 + $0x10] sm:$0xff]  ;;  %v8009_v57 = vld [vmem:[#allocation5 + $0x98] sm:$0xff] }
 0x4d7   :  { %8080 = vst.msk [vmem:[#allocation5 + $0x30] sm:$0xff] %vm3449_vm6, %v8038_v58  ;;  %v11808_v41 = vpop.f32.mrb[12].mxu1 }
 0x4d8   :  { %v8041_v28 = vadd.f32 %v11808_v41, %v7999_v30  ;;  %v7821_v62 = vpop.f32.mrb[13].mxu1  ;;  %v8008_v41 = vld [vmem:[#allocation5 + $0x90] sm:$0xff] }
 0x4d9   :  { %v8040_v36 = vadd.f32 %v7998_v23, %v7821_v62  ;;  %v8011_v62 = vld [vmem:[#allocation5 + $0xa8] sm:$0xff] }
 0x4da   :  { %v8120_v59 = vld [vmem:[#allocation5 + $0x1c] sm:$0xff]  ;;  %v8121_v29 = vld [vmem:[#allocation5 + $0x24] sm:$0xff]  ;;  %8083 = vst.msk [vmem:[#allocation5 + $0x48] sm:$0xff] %vm3449_vm6, %v8041_v28 }
 0x4db   :  { %v8124_v54 = vmax.f32 %v8116_v6, %v8120_v59  ;;  %v8125_v42 = vmax.f32 %v8117_v35, %v8121_v29  ;;  %8082 = vst.msk [vmem:[#allocation5 + $0x40] sm:$0xff] %vm3449_vm6, %v8040_v36  ;;  %v11811_v26 = vpop.f32.mrb[14].mxu1  ;;  %v8010_v36 = vld [vmem:[#allocation5 + $0xa0] sm:$0xff] }
 0x4dc   :  { %v8043_v63 = vadd.f32 %v11811_v26, %v8001_v8  ;;  %v7831_v51 = vpop.f32.mrb[15].mxu1 }
 0x4dd   :  { %8128 = vst.msk [vmem:[#allocation6] sm:$0xff] %vm3449_vm6, %v8124_v54  ;;  %8129 = vst.msk [vmem:[#allocation6 + $0x8] sm:$0xff] %vm3449_vm6, %v8125_v42  ;;  %v8042_v32 = vadd.f32 %v8000_v21, %v7831_v51  ;;  %v8133_v15 = vld [vmem:[#allocation5 + $0x38] sm:$0xff]  ;;  %v12294_v42 = vmov 1983009808  }
 0x4de   :  { %v8122_v0 = vld [vmem:[#allocation5 + $0x2c] sm:$0xff]  ;;  %v8123_v53 = vld [vmem:[#allocation5 + $0x34] sm:$0xf]  ;;  %8085 = vst.msk [vmem:[#allocation5 + $0x58] sm:$0xff] %vm3449_vm6, %v8043_v63  ;;  %v8314_v26 = vunpack.c.l.s4 %v12294_v42  ;;  %v8013_v51 = vld [vmem:[#allocation5 + $0xb8] sm:$0xff] }
 0x4df   :  { %v8126_v56 = vmax.f32 %v8118_v25, %v8122_v0  ;;  %v8127_v12 = vmax.f32 %v8119_v50, %v8123_v53  ;;  %8084 = vst.msk [vmem:[#allocation5 + $0x50] sm:$0xff] %vm3449_vm6, %v8042_v32  ;;  %v11814_v4 = vpop.f32.mrb[16].mxu1  ;;  %v8316_v50 = vlaneseq  ;;  %v8012_v0 = vld [vmem:[#allocation5 + $0xb0] sm:$0xff] }
 0x4e0   :  { %v8045_v5 = vadd.f32 %v11814_v4, %v8003_v38  ;;  %v7841_v40 = vpop.f32.mrb[17].mxu1 }
 0x4e1   :  { %8130 = vst.msk [vmem:[#allocation6 + $0x10] sm:$0xff] %vm3449_vm6, %v8126_v56  ;;  %v8044_v2 = vadd.f32 %v8002_v17, %v7841_v40  ;;  %v8135_v27 = vld [vmem:[#allocation5 + $0x48] sm:$0xff] }
 0x4e2   :  { %8132 = vst.msk [vmem:[#allocation6 + $0x18] sm:$0xf] %vm8131_vm7, %v8127_v12  ;;  %v8134_v1 = vld [vmem:[#allocation5 + $0x40] sm:$0xff] }
 0x4e3   :  { %8087 = vst.msk [vmem:[#allocation5 + $0x68] sm:$0xff] %vm3449_vm6, %v8045_v5  ;;  %8086 = vst.msk [vmem:[#allocation5 + $0x60] sm:$0xff] %vm3449_vm6, %v8044_v2  ;;  %v11817_v10 = vpop.f32.mrb[18].mxu1 }
 0x4e4   :  { %v8047_v3 = vadd.f32 %v11817_v10, %v8005_v18  ;;  %v7851_v7 = vpop.f32.mrb[19].mxu1  ;;  %v8213_v48 = vld [vmem:[#allocation6] ss:$2 sm:$0xff]  ;;  %v8235_v31 = vld [vmem:[#allocation6 + $0x1] ss:$2 sm:$0xff]  ;;  %v8315_v10 = vunpack.c.0.s8 %v8314_v26 }
 0x4e5   :  { %v8046_v61 = vadd.f32 %v8004_v24, %v7851_v7  ;;  %v8256_v37 = vmax.f32 %v8213_v48, %v8235_v31  ;;  %v8015_v24 = vld [vmem:[#allocation5 + $0xc8] sm:$0xff]  ;;  %v8317_v48 = vshrl.u32 %v8316_v50, 7  ;;  %v8802_v50 = vld [vmem:[%s15499_s5 + $0x2a0] sm:$0xff] }
 0x4e6   :  { %v8137_v44 = vld [vmem:[#allocation5 + $0x54] sm:$0xff]  ;;  %8089 = vst.msk [vmem:[#allocation5 + $0x78] sm:$0xff] %vm3449_vm6, %v8047_v3  ;;  %v8136_v33 = vld [vmem:[#allocation5 + $0x50] sm:$0xf] }
 0x4e7   :  { %v8141_v49 = vmax.f32 %v8133_v15, %v8137_v44  ;;  %8088 = vst.msk [vmem:[#allocation5 + $0x70] sm:$0xff] %vm3449_vm6, %v8046_v61  ;;  %v11820_v34 = vpop.f32.mrb[20].mxu1  ;;  %v8274_v60 = vadd.f32 %v14867_v9, %v8256_v37  ;;  %v8014_v44 = vld [vmem:[#allocation5 + $0xc0] sm:$0xff] }
 0x4e8   :  { %v8049_v45 = vadd.f32 %v11820_v34, %v8007_v55  ;;  %v7861_v47 = vpop.f32.mrb[21].mxu1 }
 0x4e9   :  { %8145 = vst.msk [vmem:[#allocation6 + $0x1c] sm:$0xff] %vm3449_vm6, %v8141_v49  ;;  %v8048_v14 = vadd.f32 %v8006_v46, %v7861_v47  ;;  %v8285_v20 = vmax.f32 %v8274_v60, 0.0  ;;  %v8800_v60 = vld [vmem:[%s15499_s5 + $0x290] sm:$0xff] }
 0x4ea   :  { %v8140_v16 = vld [vmem:[#allocation5 + $0x6c] sm:$0xf]  ;;  %v8138_v39 = vld [vmem:[#allocation5 + $0x5c] sm:$0xff]  ;;  %v8139_v22 = vld [vmem:[#allocation5 + $0x64] sm:$0xff]  ;;  %8091 = vst.msk [vmem:[#allocation5 + $0x88] sm:$0xff] %vm3449_vm6, %v8049_v45 }
 0x4eb   :  { %v8144_v52 = vmax.f32 %v8136_v33, %v8140_v16  ;;  %v8142_v13 = vmax.f32 %v8134_v1, %v8138_v39  ;;  %v8143_v11 = vmax.f32 %v8135_v27, %v8139_v22  ;;  %8090 = vst.msk [vmem:[#allocation5 + $0x80] sm:$0xff] %vm3449_vm6, %v8048_v14  ;;  %v11823_v19 = vpop.f32.mrb[22].mxu1  ;;  %8296 = vst.msk [vmem:[#allocation7] sm:$0xff] %vm3449_vm6, %v8285_v20  ;;  %v8801_v45 = vld [vmem:[%s15499_s5 + $0x298] sm:$0xff]  ;;  %v8784_v33 = vld [vmem:[%s15499_s5 + $0x210] sm:$0xff] }
 0x4ec   :  { %v8051_v58 = vadd.f32 %v11823_v19, %v8009_v57  ;;  %v7871_v43 = vpop.f32.mrb[23].mxu1  ;;  %v12145_v27 = vpack.c.bf16 %v8801_v45, %v8800_v60  ;;  %v8017_v1 = vld [vmem:[#allocation5 + $0xd8] sm:$0xff]  ;;  %v14902_v39 = vsub.s32 %v8315_v10, %v8317_v48  ;;  %v8744_v57 = vld [vmem:[%s15499_s5 + $0xd0] sm:$0xff]  ;;  %v8786_v10 = vld [vmem:[%s15499_s5 + $0x220] sm:$0xff] }
 0x4ed   :  { %8148 = vst.msk [vmem:[#allocation6 + $0x34] sm:$0xf] %vm8131_vm7, %v8144_v52  ;;  %v8050_v30 = vadd.f32 %v8008_v41, %v7871_v43  ;;  %v8150_v12 = vld [vmem:[#allocation5 + $0x78] sm:$0xff]  ;;  %v8016_v52 = vld [vmem:[#allocation5 + $0xd0] sm:$0xff] }
 0x4ee   :  { %8146 = vst.msk [vmem:[#allocation6 + $0x24] sm:$0xff] %vm3449_vm6, %v8142_v13  ;;  %8147 = vst.msk [vmem:[#allocation6 + $0x2c] sm:$0xff] %vm3449_vm6, %v8143_v11  ;;  %v8149_v40 = vld [vmem:[#allocation5 + $0x70] sm:$0xff]  ;;  %v8785_v22 = vld [vmem:[%s15499_s5 + $0x218] sm:$0xff]  ;;  %12146 = vmatprep.subr.bf16.mxu1 %v12145_v27 }
 0x4ef   :  { %8093 = vst.msk [vmem:[#allocation5 + $0x98] sm:$0xff] %vm3449_vm6, %v8051_v58  ;;  %8092 = vst.msk [vmem:[#allocation5 + $0x90] sm:$0xff] %vm3449_vm6, %v8050_v30  ;;  %v11826_v28 = vpop.f32.mrb[24].mxu1  ;;  %v12147_v19 = vpack.c.bf16 %v8785_v22, %v8784_v33  ;;  %v8745_v58 = vld [vmem:[%s15499_s5 + $0xd8] sm:$0xff]  ;;  %v8728_v43 = vld [vmem:[%s15499_s5 + $0x50] sm:$0xff] }
 0x4f0   :  { %v8053_v23 = vadd.f32 %v11826_v28, %v8011_v62  ;;  %v7881_v35 = vpop.f32.mrb[25].mxu1  ;;  %v8215_v6 = vld [vmem:[#allocation6 + $0x10] ss:$2 sm:$0xff]  ;;  %v8237_v59 = vld [vmem:[#allocation6 + $0x11] ss:$2 sm:$0xff]  ;;  %v12097_v30 = vpack.c.bf16 %v8745_v58, %v8744_v57  ;;  %v8729_v28 = vld [vmem:[%s15499_s5 + $0x58] sm:$0xff] }
 0x4f1   :  { %v8052_v29 = vadd.f32 %v8010_v36, %v7881_v35  ;;  %v8257_v54 = vmax.f32 %v8215_v6, %v8237_v59  ;;  %v8152_v61 = vld [vmem:[#allocation5 + $0x88] sm:$0xf]  ;;  %12148 = vmatpush3.bf16.msra.mxu1 %v12147_v19  ;;  %v8018_v6 = vld [vmem:[#allocation5 + $0xe0] sm:$0xff] }
 0x4f2   :  { %8095 = vst.msk [vmem:[#allocation5 + $0xa8] sm:$0xff] %vm3449_vm6, %v8053_v23  ;;  %v8307_v8 = vld [vmem:[#allocation7] ss:$7 sm:$0x3]  ;;  %v8151_v49 = vld [vmem:[#allocation5 + $0x80] sm:$0xff]  ;;  %v12099_v23 = vpack.c.bf16 %v8729_v28, %v8728_v43  ;;  %v8019_v36 = vld [vmem:[#allocation5 + $0xe8] sm:$0xff]  ;;  %12098 = vmatprep.subr.bf16.mxu0 %v12097_v30 }
 0x4f3   :  { %8094 = vst.msk [vmem:[#allocation5 + $0xa0] sm:$0xff] %vm3449_vm6, %v8052_v29  ;;  %v11829_v63 = vpop.f32.mrb[26].mxu1  ;;  %v8275_v21 = vadd.f32 %v14867_v9, %v8257_v54  ;;  %v8747_v19 = vld [vmem:[%s15499_s5 + $0xe8] sm:$0xff]  ;;  %v8022_v43 = vld [vmem:[#allocation5 + $0x100] sm:$0xff] }
 0x4f4   :  { %8309 = vst.msk [vmem:[#allocation8] sm:$0x3] %vm8308_vm8, %v8307_v8  ;;  %v8055_v32 = vadd.f32 %v11829_v63, %v8013_v51  ;;  %v7891_v25 = vpop.f32.mrb[27].mxu1  ;;  %12100 = vmatpush3.bf16.msra.mxu0 %v12099_v23  ;;  %v8021_v63 = vld [vmem:[#allocation5 + $0xf8] sm:$0xff]  ;;  %v8730_v23 = vld [vmem:[%s15499_s5 + $0x60] sm:$0xff] }
 0x4f5   :  { %v8217_v53 = vld [vmem:[#allocation6 + $0x20] ss:$2 sm:$0xff]  ;;  %v8239_v56 = vld [vmem:[#allocation6 + $0x21] ss:$2 sm:$0xff]  ;;  %v8054_v4 = vadd.f32 %v8012_v0, %v7891_v25  ;;  %v8286_v38 = vmax.f32 %v8275_v21, 0.0 }
 0x4f6   :  { %v8258_v5 = vmax.f32 %v8217_v53, %v8239_v56  ;;  %v8153_v17 = vld [vmem:[#allocation5 + $0x8c] sm:$0xff]  ;;  %v8154_v2 = vld [vmem:[#allocation5 + $0x94] sm:$0xff]  ;;  %8097 = vst.msk [vmem:[#allocation5 + $0xb8] sm:$0xff] %vm3449_vm6, %v8055_v32 }
 0x4f7   :  { %v8157_v18 = vmax.f32 %v8149_v40, %v8153_v17  ;;  %v8158_v3 = vmax.f32 %v8150_v12, %v8154_v2  ;;  %8096 = vst.msk [vmem:[#allocation5 + $0xb0] sm:$0xff] %vm3449_vm6, %v8054_v4  ;;  %v11832_v7 = vpop.f32.mrb[28].mxu1  ;;  %8297 = vst.msk [vmem:[#allocation7 + $0x8] sm:$0xff] %vm3449_vm6, %v8286_v38  ;;  %v8020_v0 = vld [vmem:[#allocation5 + $0xf0] sm:$0xff]  ;;  %v8803_v2 = vld [vmem:[%s15499_s5 + $0x2a8] sm:$0xff] }
 0x4f8   :  { %v8276_v31 = vadd.f32 %v14867_v9, %v8258_v5  ;;  %v8057_v37 = vadd.f32 %v11832_v7, %v8015_v24  ;;  %v7901_v15 = vpop.f32.mrb[29].mxu1 }
 0x4f9   :  { %8161 = vst.msk [vmem:[#allocation6 + $0x38] sm:$0xff] %vm3449_vm6, %v8157_v18  ;;  %8162 = vst.msk [vmem:[#allocation6 + $0x40] sm:$0xff] %vm3449_vm6, %v8158_v3  ;;  %v8056_v34 = vadd.f32 %v8014_v44, %v7901_v15  ;;  %v8165_v32 = vld [vmem:[#allocation5 + $0xa8] sm:$0xff] }
 0x4fa   :  { %v8287_v55 = vmax.f32 %v8276_v31, 0.0  ;;  %v8155_v47 = vld [vmem:[#allocation5 + $0x9c] sm:$0xff]  ;;  %v8156_v46 = vld [vmem:[#allocation5 + $0xa4] sm:$0xf]  ;;  %8099 = vst.msk [vmem:[#allocation5 + $0xc8] sm:$0xff] %vm3449_vm6, %v8057_v37  ;;  %v8787_v37 = vld [vmem:[%s15499_s5 + $0x228] sm:$0xff] }
 0x4fb   :  { %v8159_v16 = vmax.f32 %v8151_v49, %v8155_v47  ;;  %v8160_v14 = vmax.f32 %v8152_v61, %v8156_v46  ;;  %8098 = vst.msk [vmem:[#allocation5 + $0xc0] sm:$0xff] %vm3449_vm6, %v8056_v34  ;;  %v11835_v20 = vpop.f32.mrb[30].mxu1  ;;  %v12149_v61 = vpack.c.bf16 %v8803_v2, %v8802_v50  ;;  %v12151_v60 = vpack.c.bf16 %v8787_v37, %v8786_v10  ;;  %v8805_v50 = vld [vmem:[%s15499_s5 + $0x2b8] sm:$0xff] }
 0x4fc   :  { %8298 = vst.msk [vmem:[#allocation7 + $0x10] sm:$0xff] %vm3449_vm6, %v8287_v55  ;;  %v8059_v13 = vadd.f32 %v11835_v20, %v8017_v1  ;;  %v7911_v11 = vpop.f32.mrb[31].mxu1 }
 0x4fd   :  { %8163 = vst.msk [vmem:[#allocation6 + $0x48] sm:$0xff] %vm3449_vm6, %v8159_v16  ;;  %v8058_v41 = vadd.f32 %v8016_v52, %v7911_v11  ;;  %v8167_v18 = vld [vmem:[#allocation5 + $0xb8] sm:$0xff]  ;;  %12150 = vmatprep.subr.bf16.mxu1 %v12149_v61  ;;  %v8023_v52 = vld [vmem:[#allocation5 + $0x108] sm:$0xff]  ;;  %v8746_v11 = vld [vmem:[%s15499_s5 + $0xe0] sm:$0xff] }
 0x4fe   :  { %8164 = vst.msk [vmem:[#allocation6 + $0x50] sm:$0xf] %vm8131_vm7, %v8160_v14  ;;  %v8311_v62 = vld [vmem:[#allocation7 + $0x1] ss:$7 sm:$0x3]  ;;  %v8166_v15 = vld [vmem:[#allocation5 + $0xb0] sm:$0xff]  ;;  %12152 = vmatpush3.bf16.msra.mxu1 %v12151_v60  ;;  %v12101_v30 = vpack.c.bf16 %v8747_v19, %v8746_v11 }
 0x4ff   :  { %8101 = vst.msk [vmem:[#allocation5 + $0xd8] sm:$0xff] %vm3449_vm6, %v8059_v13  ;;  %8100 = vst.msk [vmem:[#allocation5 + $0xd0] sm:$0xff] %vm3449_vm6, %v8058_v41  ;;  %v11838_v35 = vpop.f32.mrb[32].mxu1  ;;  %v8319_v59 = vrot.slane %v8311_v62, %v14902_v39  ;;  %v8359_v42 = vld [vmem:[#allocation7 + $0x5] ss:$7 sm:$0x3] }
 0x500   :  { %v8061_v29 = vadd.f32 %v11838_v35, %v8019_v36  ;;  %v7921_v54 = vpop.f32.mrb[33].mxu1  ;;  %v8219_v26 = vld [vmem:[#allocation6 + $0x30] ss:$2 sm:$0xff]  ;;  %v14926_v51 = vld [vmem:[#allocation7 + $0x2] ss:$7 sm:$0x3]  ;;  %v8367_v5 = vrot.slane %v8359_v42, %v14902_v39  ;;  %12102 = vmatprep.subr.bf16.mxu0 %v12101_v30 }
 0x501   :  { %v8060_v8 = vadd.f32 %v8018_v6, %v7921_v54  ;;  %8320 = vrot.lane.b32.xlu0 %v8319_v59, %s12295_s30  ;;  %v8241_v21 = vld [vmem:[#allocation6 + $0x31] ss:$2 sm:$0xff]  ;;  %v8334_v27 = vrot.slane %v14926_v51, %v14902_v39  ;;  %v8341_v41 = vld [vmem:[#allocation7 + $0x3] ss:$7 sm:$0x3]  ;;  %v8748_v11 = vld [vmem:[%s15499_s5 + $0xf0] sm:$0xff] }
 0x502   :  { %v8169_v25 = vld [vmem:[#allocation5 + $0xc4] sm:$0xff]  ;;  %8103 = vst.msk [vmem:[#allocation5 + $0xe8] sm:$0xff] %vm3449_vm6, %v8061_v29  ;;  %v8259_v56 = vmax.f32 %v8219_v26, %v8241_v21  ;;  %v8168_v12 = vld [vmem:[#allocation5 + $0xc0] sm:$0xf]  ;;  %v8025_v6 = vld [vmem:[#allocation5 + $0x118] sm:$0xff]  ;;  %v8349_v59 = vrot.slane %v8341_v41, %v14902_v39 }
 0x503   :  { %v8373_v53 = vld [vmem:[#allocation7 + $0xe] ss:$7 sm:$0x3]  ;;  %v8173_v4 = vmax.f32 %v8165_v32, %v8169_v25  ;;  %8102 = vst.msk [vmem:[#allocation5 + $0xe0] sm:$0xff] %vm3449_vm6, %v8060_v8  ;;  %v11841_v38 = vpop.f32.mrb[34].mxu1  ;;  %v8024_v26 = vld [vmem:[#allocation5 + $0x110] sm:$0xff] }
 0x504   :  { %v8381_v40 = vrot.slane %v8373_v53, %v14902_v39  ;;  %v8387_v17 = vld [vmem:[#allocation7 + $0xf] ss:$7 sm:$0x3]  ;;  %v8063_v3 = vadd.f32 %v11841_v38, %v8021_v63  ;;  %v7931_v7 = vpop.f32.mrb[35].mxu1  ;;  %v8277_v24 = vadd.f32 %v14867_v9, %v8259_v56  ;;  %v8221_v48 = vld [vmem:[#allocation6 + $0x40] ss:$2 sm:$0xff] }
 0x505   :  { %v8243_v31 = vld [vmem:[#allocation6 + $0x41] ss:$2 sm:$0xff]  ;;  %8177 = vst.msk [vmem:[#allocation6 + $0x54] sm:$0xff] %vm3449_vm6, %v8173_v4  ;;  %v8062_v49 = vadd.f32 %v8020_v0, %v7931_v7  ;;  %8368 = vrot.lane.b32.xlu0 %v8367_v5, %s12295_s30  ;;  %v8356_v55 = vld [vmem:[#allocation7 + $0x4] ss:$7 sm:$0x3]  ;;  %v8395_v22 = vrot.slane %v8387_v17, %v14902_v39 }
 0x506   :  { %v8172_v44 = vld [vmem:[#allocation5 + $0xdc] sm:$0xf]  ;;  %8382 = vrot.lane.b32.xlu1 %v8381_v40, %s12296_s1  ;;  %v8260_v34 = vmax.f32 %v8221_v48, %v8243_v31  ;;  %v8170_v47 = vld [vmem:[#allocation5 + $0xcc] sm:$0xff]  ;;  %v8171_v46 = vld [vmem:[#allocation5 + $0xd4] sm:$0xff]  ;;  %8105 = vst.msk [vmem:[#allocation5 + $0xf8] sm:$0xff] %vm3449_vm6, %v8063_v3  ;;  %v8288_v33 = vmax.f32 %v8277_v24, 0.0 }
 0x507   :  { %v8176_v45 = vmax.f32 %v8168_v12, %v8172_v44  ;;  %8357 = vst.msk [vmem:[#allocation8 + $0x2] sm:$0x3] %vm8308_vm8, %v8356_v55  ;;  %v8401_v16 = vld [vmem:[#allocation7 + $0x10] ss:$7 sm:$0x3]  ;;  %v8174_v14 = vmax.f32 %v8166_v15, %v8170_v47  ;;  %v8175_v20 = vmax.f32 %v8167_v18, %v8171_v46  ;;  %v11844_v1 = vpop.f32.mrb[36].mxu1 }
 0x508   :  { %8104 = vst.msk [vmem:[#allocation5 + $0xf0] sm:$0xff] %vm3449_vm6, %v8062_v49  ;;  %v8278_v13 = vadd.f32 %v14867_v9, %v8260_v34  ;;  %v8065_v57 = vadd.f32 %v11844_v1, %v8023_v52  ;;  %v7941_v58 = vpop.f32.mrb[37].mxu1  ;;  %8299 = vst.msk [vmem:[#allocation7 + $0x18] sm:$0xff] %vm3449_vm6, %v8288_v33  ;;  %v8731_v35 = vld [vmem:[%s15499_s5 + $0x68] sm:$0xff]  ;;  %v8026_v51 = vld [vmem:[#allocation5 + $0x120] sm:$0xff] }
 0x509   :  { %8402 = vst.msk [vmem:[#allocation8 + $0x4] sm:$0x3] %vm8308_vm8, %v8401_v16  ;;  %v8064_v28 = vadd.f32 %v8022_v43, %v7941_v58  ;;  %8335 = vrot.lane.b32.xlu0 %v8334_v27, %s12296_s1  ;;  %v12103_v29 = vpack.c.bf16 %v8731_v35, %v8730_v23  ;;  %v8027_v63 = vld [vmem:[#allocation5 + $0x128] sm:$0xff]  ;;  %v8804_v21 = vld [vmem:[%s15499_s5 + $0x2b0] sm:$0xff]  ;;  %v8789_v56 = vld [vmem:[%s15499_s5 + $0x238] sm:$0xff] }
 0x50a   :  { %8180 = vst.msk [vmem:[#allocation6 + $0x6c] sm:$0xf] %vm8131_vm7, %v8176_v45  ;;  %8396 = vrot.lane.b32.xlu1 %v8395_v22, %s12297_s19  ;;  %v8289_v62 = vmax.f32 %v8278_v13, 0.0  ;;  %v12153_v0 = vpack.c.bf16 %v8805_v50, %v8804_v21  ;;  %v8788_v53 = vld [vmem:[%s15499_s5 + $0x230] sm:$0xff]  ;;  %v8182_v12 = vld [vmem:[#allocation5 + $0xe8] sm:$0xff]  ;;  %v8181_v10 = vld [vmem:[#allocation5 + $0xe0] sm:$0xff] }
 0x50b   :  { %8178 = vst.msk [vmem:[#allocation6 + $0x5c] sm:$0xff] %vm3449_vm6, %v8174_v14  ;;  %8179 = vst.msk [vmem:[#allocation6 + $0x64] sm:$0xff] %vm3449_vm6, %v8175_v20  ;;  %v11847_v36 = vpop.f32.mrb[38].mxu1  ;;  %12104 = vmatpush3.bf16.msra.mxu0 %v12103_v29  ;;  %v12155_v2 = vpack.c.bf16 %v8789_v56, %v8788_v53  ;;  %v8029_v49 = vld [vmem:[#allocation5 + $0x138] sm:$0xff]  ;;  %v8028_v34 = vld [vmem:[#allocation5 + $0x130] sm:$0xff] }
 0x50c   :  { %8107 = vst.msk [vmem:[#allocation5 + $0x108] sm:$0xff] %vm3449_vm6, %v8065_v57  ;;  %8106 = vst.msk [vmem:[#allocation5 + $0x100] sm:$0xff] %vm3449_vm6, %v8064_v28  ;;  %v8067_v54 = vadd.f32 %v11847_v36, %v8025_v6  ;;  %v7951_v42 = vpop.f32.mrb[39].mxu1  ;;  %12154 = vmatprep.subr.bf16.mxu1 %v12153_v0  ;;  %v8031_v52 = vld [vmem:[#allocation5 + $0x148] sm:$0xff]  ;;  %v8749_v43 = vld [vmem:[%s15499_s5 + $0xf8] sm:$0xff] }
 0x50d   :  { %8300 = vst.msk [vmem:[#allocation7 + $0x20] sm:$0xff] %vm3449_vm6, %v8289_v62  ;;  %v8066_v8 = vadd.f32 %v8024_v26, %v7951_v42  ;;  %8350 = vrot.lane.b32.xlu0 %v8349_v59, %s12297_s19  ;;  %12156 = vmatpush3.bf16.msra.mxu1 %v12155_v2  ;;  %v8184_v45 = vld [vmem:[#allocation5 + $0xf8] sm:$0xf]  ;;  %v12105_v23 = vpack.c.bf16 %v8749_v43, %v8748_v11  ;;  %v8732_v35 = vld [vmem:[%s15499_s5 + $0x70] sm:$0xff]  ;;  %v8790_v56 = vld [vmem:[%s15499_s5 + $0x240] sm:$0xff] }
 0x50e   :  { %8109 = vst.msk [vmem:[#allocation5 + $0x118] sm:$0xff] %vm3449_vm6, %v8067_v54  ;;  %v8733_v36 = vld [vmem:[%s15499_s5 + $0x78] sm:$0xff]  ;;  %v8030_v54 = vld [vmem:[#allocation5 + $0x140] sm:$0xff]  ;;  %v8792_v11 = vld [vmem:[%s15499_s5 + $0x250] sm:$0xff] }
 0x50f   :  { %8108 = vst.msk [vmem:[#allocation5 + $0x110] sm:$0xff] %vm3449_vm6, %v8066_v8  ;;  %v11850_v32 = vpop.f32.mrb[40].mxu1  ;;  %v8418_v25 = vld [vmem:[#allocation7 + $0x12] ss:$7 sm:$0x3]  ;;  %v12107_v26 = vpack.c.bf16 %v8733_v36, %v8732_v35  ;;  %v8806_v8 = vld [vmem:[%s15499_s5 + $0x2c0] sm:$0xff]  ;;  %12106 = vmatprep.subr.bf16.mxu0 %v12105_v23 }
 0x510   :  { %v8069_v4 = vadd.f32 %v11850_v32, %v8027_v63  ;;  %v7961_v38 = vpop.f32.mrb[41].mxu1  ;;  %v8426_v5 = vrot.slane %v8418_v25, %v14902_v39  ;;  %v8404_v40 = vld [vmem:[#allocation7 + $0x11] ss:$7 sm:$0x3]  ;;  %v8793_v43 = vld [vmem:[%s15499_s5 + $0x258] sm:$0xff] }
 0x511   :  { %v8068_v18 = vadd.f32 %v8026_v51, %v7961_v38  ;;  %v8412_v3 = vrot.slane %v8404_v40, %v14902_v39  ;;  %v8432_v7 = vld [vmem:[#allocation7 + $0x13] ss:$7 sm:$0x3]  ;;  %12108 = vmatpush3.bf16.msra.mxu0 %v12107_v26 }
 0x512   :  { %v8223_v17 = vld [vmem:[#allocation6 + $0x50] ss:$2 sm:$0xff]  ;;  %v8225_v24 = vld [vmem:[#allocation6 + $0x60] ss:$2 sm:$0xff]  ;;  %8111 = vst.msk [vmem:[#allocation5 + $0x128] sm:$0xff] %vm3449_vm6, %v8069_v4  ;;  %8427 = vrot.lane.b32.xlu0 %v8426_v5, %s12296_s1  ;;  %v8440_v27 = vrot.slane %v8432_v7, %v14902_v39 }
 0x513   :  { %v8185_v48 = vld [vmem:[#allocation5 + $0xfc] sm:$0xff]  ;;  %v8186_v31 = vld [vmem:[#allocation5 + $0x104] sm:$0xff]  ;;  %8110 = vst.msk [vmem:[#allocation5 + $0x120] sm:$0xff] %vm3449_vm6, %v8068_v18  ;;  %8413 = vrot.lane.b32.xlu1 %v8412_v3, %s12295_s30  ;;  %v11853_v44 = vpop.f32.mrb[42].mxu1  ;;  %v8183_v20 = vld [vmem:[#allocation5 + $0xf0] sm:$0xff] }
 0x514   :  { %v8449_v61 = vld [vmem:[#allocation7 + $0x1d] ss:$7 sm:$0x3]  ;;  %v8189_v37 = vmax.f32 %v8181_v10, %v8185_v48  ;;  %v8190_v15 = vmax.f32 %v8182_v12, %v8186_v31  ;;  %v8245_v60 = vld [vmem:[#allocation6 + $0x51] ss:$2 sm:$0xff]  ;;  %v8071_v47 = vadd.f32 %v11853_v44, %v8029_v49  ;;  %v7971_v46 = vpop.f32.mrb[43].mxu1 }
 0x515   :  { %v8457_v55 = vrot.slane %v8449_v61, %v14902_v39  ;;  %v8463_v33 = vld [vmem:[#allocation7 + $0x1e] ss:$7 sm:$0x3]  ;;  %v8261_v14 = vmax.f32 %v8223_v17, %v8245_v60  ;;  %v8070_v1 = vadd.f32 %v8028_v34, %v7971_v46  ;;  %v8446_v13 = vld [vmem:[#allocation7 + $0x1c] ss:$7 sm:$0x3] }
 0x516   :  { %v8247_v16 = vld [vmem:[#allocation6 + $0x61] ss:$2 sm:$0xff]  ;;  %8193 = vst.msk [vmem:[#allocation6 + $0x70] sm:$0xff] %vm3449_vm6, %v8189_v37  ;;  %8194 = vst.msk [vmem:[#allocation6 + $0x78] sm:$0xff] %vm3449_vm6, %v8190_v15  ;;  %8441 = vrot.lane.b32.xlu0 %v8440_v27, %s12297_s19  ;;  %v8807_v63 = vld [vmem:[%s15499_s5 + $0x2c8] sm:$0xff]  ;;  %v8471_v21 = vrot.slane %v8463_v33, %v14902_v39 }
 0x517   :  { %v8262_v22 = vmax.f32 %v8225_v24, %v8247_v16  ;;  %v8187_v19 = vld [vmem:[#allocation5 + $0x10c] sm:$0xff]  ;;  %v8188_v57 = vld [vmem:[#allocation5 + $0x114] sm:$0xf]  ;;  %8113 = vst.msk [vmem:[#allocation5 + $0x138] sm:$0xff] %vm3449_vm6, %v8071_v47  ;;  %v8279_v58 = vadd.f32 %v14867_v9, %v8261_v14  ;;  %8112 = vst.msk [vmem:[#allocation5 + $0x130] sm:$0xff] %vm3449_vm6, %v8070_v1  ;;  %8458 = vrot.lane.b32.xlu1 %v8457_v55, %s12295_s30  ;;  %v11856_v28 = vpop.f32.mrb[44].mxu1  ;;  %v12157_v32 = vpack.c.bf16 %v8807_v63, %v8806_v8 }
 0x518   :  { %8447 = vst.msk [vmem:[#allocation8 + $0x6] sm:$0x3] %vm8308_vm8, %v8446_v13  ;;  %v8191_v41 = vmax.f32 %v8183_v20, %v8187_v19  ;;  %v8192_v30 = vmax.f32 %v8184_v45, %v8188_v57  ;;  %v8491_v6 = vld [vmem:[#allocation7 + $0x20] ss:$7 sm:$0x3]  ;;  %v8073_v59 = vadd.f32 %v11856_v28, %v8031_v52  ;;  %v7981_v29 = vpop.f32.mrb[45].mxu1 }
 0x519   :  { %v8280_v62 = vadd.f32 %v14867_v9, %v8262_v22  ;;  %v8290_v42 = vmax.f32 %v8279_v58, 0.0  ;;  %8492 = vst.msk [vmem:[#allocation8 + $0x8] sm:$0x3] %vm8308_vm8, %v8491_v6  ;;  %v8072_v51 = vadd.f32 %v8030_v54, %v7981_v29  ;;  %v8477_v25 = vld [vmem:[#allocation7 + $0x1f] ss:$7 sm:$0x3]  ;;  %12158 = vmatprep.subr.bf16.mxu1 %v12157_v32 }
 0x51a   :  { %8195 = vst.msk [vmem:[#allocation6 + $0x80] sm:$0xff] %vm3449_vm6, %v8191_v41  ;;  %8115 = vst.msk [vmem:[#allocation5 + $0x148] sm:$0xff] %vm3449_vm6, %v8073_v59  ;;  %v8485_v12 = vrot.slane %v8477_v25, %v14902_v39  ;;  %v8791_v38 = vld [vmem:[%s15499_s5 + $0x248] sm:$0xff]  ;;  %v8197_v5 = vld [vmem:[#allocation5 + $0x118] sm:$0xff] }
 0x51b   :  { %8196 = vst.msk [vmem:[#allocation6 + $0x88] sm:$0xf] %vm8131_vm7, %v8192_v30  ;;  %v8291_v50 = vmax.f32 %v8280_v62, 0.0  ;;  %8472 = vrot.lane.b32.xlu1 %v8471_v21, %s12296_s1  ;;  %v12159_v17 = vpack.c.bf16 %v8791_v38, %v8790_v56  ;;  %v8199_v18 = vld [vmem:[#allocation5 + $0x128] sm:$0xff]  ;;  %v8198_v3 = vld [vmem:[#allocation5 + $0x120] sm:$0xff]  ;;  %v8808_v22 = vld [vmem:[%s15499_s5 + $0x2d0] sm:$0xff]  ;;  %v12163_v30 = vpack.c.bf16 %v8793_v43, %v8792_v11 }
 0x51c   :  { %8301 = vst.msk [vmem:[#allocation7 + $0x28] sm:$0xff] %vm3449_vm6, %v8290_v42  ;;  %8114 = vst.msk [vmem:[#allocation5 + $0x140] sm:$0xff] %vm3449_vm6, %v8072_v51  ;;  %v8766_v24 = vld [vmem:[%s15499_s5 + $0x180] sm:$0xff]  ;;  %v8767_v48 = vld [vmem:[%s15499_s5 + $0x188] sm:$0xff] }
 0x51d   :  { %8302 = vst.msk [vmem:[#allocation7 + $0x30] sm:$0xff] %vm3449_vm6, %v8291_v50  ;;  %v8227_v0 = vld [vmem:[#allocation6 + $0x70] ss:$2 sm:$0xff]  ;;  %v8249_v53 = vld [vmem:[#allocation6 + $0x71] ss:$2 sm:$0xff]  ;;  %12160 = vmatpush3.bf16.msra.mxu1 %v12159_v17  ;;  %v12109_v15 = vpack.c.bf16 %v8767_v48, %v8766_v24  ;;  %v8809_v13 = vld [vmem:[%s15499_s5 + $0x2d8] sm:$0xff] }
 0x51e   :  { %v8263_v4 = vmax.f32 %v8227_v0, %v8249_v53  ;;  %v8201_v40 = vld [vmem:[#allocation5 + $0x134] sm:$0xff]  ;;  %v8200_v7 = vld [vmem:[#allocation5 + $0x130] sm:$0xf]  ;;  %v12161_v58 = vpack.c.bf16 %v8809_v13, %v8808_v22  ;;  %v8810_v42 = vld [vmem:[%s15499_s5 + $0x2e0] sm:$0xff] }
 0x51f   :  { %v8205_v2 = vmax.f32 %v8197_v5, %v8201_v40  ;;  %8486 = vrot.lane.b32.xlu1 %v8485_v12, %s12297_s19  ;;  %12110 = vmatprep.subr.bf16.mxu0 %v12109_v15  ;;  %v8811_v8 = vld [vmem:[%s15499_s5 + $0x2e8] sm:$0xff]  ;;  %v8794_v50 = vld [vmem:[%s15499_s5 + $0x260] sm:$0xff]  ;;  %v8796_v48 = vld [vmem:[%s15499_s5 + $0x270] sm:$0xff] }
 0x520   :  { %v8281_v10 = vadd.f32 %v14867_v9, %v8263_v4  ;;  %12162 = vmatprep.subr.bf16.mxu1 %v12161_v58  ;;  %v12165_v21 = vpack.c.bf16 %v8811_v8, %v8810_v42  ;;  %v8795_v32 = vld [vmem:[%s15499_s5 + $0x268] sm:$0xff] }
 0x521   :  { %8209 = vst.msk [vmem:[#allocation6 + $0x8c] sm:$0xff] %vm3449_vm6, %v8205_v2  ;;  %v8204_v31 = vld [vmem:[#allocation5 + $0x14c] sm:$0xf]  ;;  %12164 = vmatpush3.bf16.msra.mxu1 %v12163_v30  ;;  %v12167_v53 = vpack.c.bf16 %v8795_v32, %v8794_v50  ;;  %v8813_v2 = vld [vmem:[%s15499_s5 + $0x2f8] sm:$0xff]  ;;  %v8770_v32 = vld [vmem:[%s15499_s5 + $0x1a0] sm:$0xff] }
 0x522   :  { %v8292_v37 = vmax.f32 %v8281_v10, 0.0  ;;  %v8208_v44 = vmax.f32 %v8200_v7, %v8204_v31  ;;  %12166 = vmatprep.subr.bf16.mxu1 %v12165_v21  ;;  %v8797_v31 = vld [vmem:[%s15499_s5 + $0x278] sm:$0xff] }
 0x523   :  { %v8494_v61 = vld [vmem:[#allocation7 + $0x21] ss:$7 sm:$0x3]  ;;  %v8203_v34 = vld [vmem:[#allocation5 + $0x144] sm:$0xff]  ;;  %v12171_v15 = vpack.c.bf16 %v8797_v31, %v8796_v48  ;;  %v8776_v31 = vld [vmem:[%s15499_s5 + $0x1d0] sm:$0xff] }
 0x524   :  { %v8202_v49 = vld [vmem:[#allocation5 + $0x13c] sm:$0xff]  ;;  %v8539_v55 = vld [vmem:[#allocation7 + $0x2d] ss:$7 sm:$0x3]  ;;  %v8502_v60 = vrot.slane %v8494_v61, %v14902_v39  ;;  %v8207_v47 = vmax.f32 %v8199_v18, %v8203_v34  ;;  %8303 = vst.msk [vmem:[#allocation7 + $0x38] sm:$0xff] %vm3449_vm6, %v8292_v37 }
 0x525   :  { %v8206_v45 = vmax.f32 %v8198_v3, %v8202_v49  ;;  %v8547_v46 = vrot.slane %v8539_v55, %v14902_v39  ;;  %v8508_v27 = vld [vmem:[#allocation7 + $0x2a] ss:$7 sm:$0x3]  ;;  %8212 = vst.msk [vmem:[#allocation6 + $0xa4] sm:$0xf] %vm8131_vm7, %v8208_v44  ;;  %12168 = vmatpush3.bf16.msra.mxu1 %v12167_v53 }
 0x526   :  { %8503 = vrot.lane.b32.xlu0 %v8502_v60, %s12295_s30  ;;  %v8553_v33 = vld [vmem:[#allocation7 + $0x2e] ss:$7 sm:$0x3]  ;;  %8211 = vst.msk [vmem:[#allocation6 + $0x9c] sm:$0xff] %vm3449_vm6, %v8207_v47  ;;  %v8516_v14 = vrot.slane %v8508_v27, %v14902_v39  ;;  %v12298_v60 = vmov 0.0|0.0  }
 0x527   :  { %8210 = vst.msk [vmem:[#allocation6 + $0x94] sm:$0xff] %vm3449_vm6, %v8206_v45  ;;  %8548 = vrot.lane.b32.xlu1 %v8547_v46, %s12295_s30  ;;  %v8536_v16 = vld [vmem:[#allocation7 + $0x2c] ss:$7 sm:$0x3]  ;;  %v8561_v52 = vrot.slane %v8553_v33, %v14902_v39 }
 0x528   :  { %v8567_v20 = vld [vmem:[#allocation7 + $0x2f] ss:$7 sm:$0x3]  ;;  %v8522_v1 = vld [vmem:[#allocation7 + $0x2b] ss:$7 sm:$0x3] }
 0x529   :  { %8537 = vst.msk [vmem:[#allocation8 + $0xa] sm:$0x3] %vm8308_vm8, %v8536_v16  ;;  %v8229_v19 = vld [vmem:[#allocation6 + $0x80] ss:$2 sm:$0xff]  ;;  %v8251_v57 = vld [vmem:[#allocation6 + $0x81] ss:$2 sm:$0xff]  ;;  %v8530_v28 = vrot.slane %v8522_v1, %v14902_v39  ;;  %v8575_v62 = vrot.slane %v8567_v20, %v14902_v39 }
 0x52a   :  { %8517 = vrot.lane.b32.xlu0 %v8516_v14, %s12296_s1  ;;  %v8264_v41 = vmax.f32 %v8229_v19, %v8251_v57  ;;  %v8759_v48 = vld [vmem:[%s15499_s5 + $0x148] sm:$0xff] }
 0x52b   :  { %8562 = vrot.lane.b32.xlu1 %v8561_v52, %s12296_s1  ;;  %v8581_v35 = vld [vmem:[#allocation7 + $0x38] ss:$7 sm:$0x3] }
 0x52c   :  { %v8282_v23 = vadd.f32 %v14867_v9, %v8264_v41  ;;  %8582 = vst.msk [vmem:[#allocation8 + $0xc] sm:$0x3] %vm8308_vm8, %v8581_v35 }
 0x52d   :  { %v8233_v54 = vld [vmem:[#allocation6 + $0xa0] ss:$2 sm:$0xf]  ;;  %v8255_v26 = vld [vmem:[#allocation6 + $0xa1] ss:$2 sm:$0xf] }
 0x52e   :  { %8531 = vrot.lane.b32.xlu0 %v8530_v28, %s12297_s19  ;;  %v8231_v36 = vld [vmem:[#allocation6 + $0x90] ss:$2 sm:$0xff]  ;;  %v8253_v6 = vld [vmem:[#allocation6 + $0x91] ss:$2 sm:$0xff]  ;;  %v8293_v59 = vmax.f32 %v8282_v23, 0.0  ;;  %v8266_v51 = vmax.f32 %v8233_v54, %v8255_v26 }
 0x52f   :  { %8576 = vrot.lane.b32.xlu1 %v8575_v62, %s12297_s19  ;;  %v8265_v29 = vmax.f32 %v8231_v36, %v8253_v6  ;;  %v8750_v28 = vld [vmem:[%s15499_s5 + $0x100] sm:$0xff]  ;;  %v8751_v62 = vld [vmem:[%s15499_s5 + $0x108] sm:$0xff]  ;;  %v8768_v6 = vld [vmem:[%s15499_s5 + $0x190] sm:$0xff] }
 0x530   :  { %8304 = vst.msk [vmem:[#allocation7 + $0x40] sm:$0xff] %vm3449_vm6, %v8293_v59  ;;  %v8284_v0 = vadd.f32 %v14867_v9, %v8266_v51  ;;  %v8769_v59 = vld [vmem:[%s15499_s5 + $0x198] sm:$0xff]  ;;  %v12111_v42 = vpack.c.bf16 %v8751_v62, %v8750_v28 }
 0x531   :  { %v8283_v63 = vadd.f32 %v14867_v9, %v8265_v29  ;;  %v8812_v9 = vld [vmem:[%s15499_s5 + $0x2f0] sm:$0xff]  ;;  %v12113_v8 = vpack.c.bf16 %v8769_v59, %v8768_v6  ;;  %v8753_v51 = vld [vmem:[%s15499_s5 + $0x118] sm:$0xff] }
 0x532   :  { %v8295_v56 = vmax.f32 %v8284_v0, 0.0  ;;  %v12169_v10 = vpack.c.bf16 %v8813_v2, %v8812_v9  ;;  %v8756_v9 = vld [vmem:[%s15499_s5 + $0x130] sm:$0xff]  ;;  %v8757_v2 = vld [vmem:[%s15499_s5 + $0x138] sm:$0xff] }
 0x533   :  { %v8294_v25 = vmax.f32 %v8283_v63, 0.0  ;;  %v8752_v63 = vld [vmem:[%s15499_s5 + $0x110] sm:$0xff]  ;;  %v8833_v59 = vld [vmem:[%s15499_s5 + $0x398] sm:$0xff] }
 0x534   :  { %8306 = vst.msk [vmem:[#allocation7 + $0x50] sm:$0xf] %vm8131_vm7, %v8295_v56  ;;  %12170 = vmatprep.subr.bf16.mxu1 %v12169_v10  ;;  %v12115_v53 = vpack.c.bf16 %v8753_v51, %v8752_v63  ;;  %v8774_v10 = vld [vmem:[%s15499_s5 + $0x1c0] sm:$0xff]  ;;  %v8832_v6 = vld [vmem:[%s15499_s5 + $0x390] sm:$0xff] }
 0x535   :  { %8305 = vst.msk [vmem:[#allocation7 + $0x48] sm:$0xff] %vm3449_vm6, %v8294_v25  ;;  %12172 = vmatpush3.bf16.msra.mxu1 %v12171_v15  ;;  %v8771_v25 = vld [vmem:[%s15499_s5 + $0x1a8] sm:$0xff] }
 0x536   :  { %12205 = vmatprep.subr.bf16.mxu1 %v12298_v60  ;;  %v12117_v56 = vpack.c.bf16 %v8771_v25, %v8770_v32  ;;  %v8816_v32 = vld [vmem:[%s15499_s5 + $0x310] sm:$0xff]  ;;  %v8817_v25 = vld [vmem:[%s15499_s5 + $0x318] sm:$0xff] }
 0x537   :  { %v8629_v12 = vld [vmem:[#allocation7 + $0x3d] ss:$7 sm:$0x3]  ;;  %v8584_v4 = vld [vmem:[#allocation7 + $0x39] ss:$7 sm:$0x3] }
 0x538   :  { %v8637_v38 = vrot.slane %v8629_v12, %v14902_v39  ;;  %v8592_v5 = vrot.slane %v8584_v4, %v14902_v39  ;;  %v8598_v40 = vld [vmem:[#allocation7 + $0x3a] ss:$7 sm:$0x3]  ;;  %v8626_v17 = vld [vmem:[#allocation7 + $0x3c] ss:$7 sm:$0x3] }
 0x539   :  { %8627 = vst.msk [vmem:[#allocation8 + $0xe] sm:$0x3] %vm8308_vm8, %v8626_v17  ;;  %v8606_v3 = vrot.slane %v8598_v40, %v14902_v39  ;;  %v8612_v61 = vld [vmem:[#allocation7 + $0x3b] ss:$7 sm:$0x3]  ;;  %v8754_v12 = vld [vmem:[%s15499_s5 + $0x120] sm:$0xff] }
 0x53a   :  { %8638 = vrot.lane.b32.xlu1 %v8637_v38, %s12295_s30  ;;  %8593 = vrot.lane.b32.xlu0 %v8592_v5, %s12295_s30  ;;  %v8620_v44 = vrot.slane %v8612_v61, %v14902_v39  ;;  %v8755_v4 = vld [vmem:[%s15499_s5 + $0x128] sm:$0xff]  ;;  %v8772_v38 = vld [vmem:[%s15499_s5 + $0x1b0] sm:$0xff] }
 0x53b   :  { %v8773_v5 = vld [vmem:[%s15499_s5 + $0x1b8] sm:$0xff]  ;;  %v12119_v40 = vpack.c.bf16 %v8755_v4, %v8754_v12  ;;  %v8834_v12 = vld [vmem:[%s15499_s5 + $0x3a0] sm:$0xff]  ;;  %v8835_v4 = vld [vmem:[%s15499_s5 + $0x3a8] sm:$0xff] }
 0x53c   :  { %v8643_v18 = vld [vmem:[#allocation7 + $0x46] ss:$7 sm:$0x3]  ;;  %v8671_v24 = vld [vmem:[#allocation7 + $0x48] ss:$7 sm:$0x3]  ;;  %v12121_v17 = vpack.c.bf16 %v8773_v5, %v8772_v38 }
 0x53d   :  { %v8651_v7 = vrot.slane %v8643_v18, %v14902_v39  ;;  %v8657_v37 = vld [vmem:[#allocation7 + $0x47] ss:$7 sm:$0x3]  ;;  %8672 = vst.msk [vmem:[#allocation8 + $0x10] sm:$0x3] %vm8308_vm8, %v8671_v24  ;;  %v8775_v18 = vld [vmem:[%s15499_s5 + $0x1c8] sm:$0xff] }
 0x53e   :  { %8607 = vrot.lane.b32.xlu0 %v8606_v3, %s12296_s1  ;;  %v8665_v49 = vrot.slane %v8657_v37, %v14902_v39  ;;  %v8674_v34 = vld [vmem:[#allocation7 + $0x49] ss:$7 sm:$0x3]  ;;  %v8688_v55 = vld [vmem:[#allocation7 + $0x4a] ss:$7 sm:$0x3]  ;;  %v12123_v3 = vpack.c.bf16 %v8757_v2, %v8756_v9 }
 0x53f   :  { %8652 = vrot.lane.b32.xlu1 %v8651_v7, %s12296_s1  ;;  %v8682_v45 = vrot.slane %v8674_v34, %v14902_v39  ;;  %v8696_v47 = vrot.slane %v8688_v55, %v14902_v39  ;;  %v8702_v46 = vld [vmem:[#allocation7 + $0x4b] ss:$7 sm:$0x3]  ;;  %v12125_v7 = vpack.c.bf16 %v8775_v18, %v8774_v10  ;;  %v8777_v61 = vld [vmem:[%s15499_s5 + $0x1d8] sm:$0xff]  ;;  %v8760_v34 = vld [vmem:[%s15499_s5 + $0x150] sm:$0xff] }
 0x540   :  { %v8710_v27 = vrot.slane %v8702_v46, %v14902_v39  ;;  %v8758_v24 = vld [vmem:[%s15499_s5 + $0x140] sm:$0xff]  ;;  %v8761_v55 = vld [vmem:[%s15499_s5 + $0x158] sm:$0xff]  ;;  %v8848_v38 = vld [vmem:[%s15499_s5 + $0x410] sm:$0xff] }
 0x541   :  { %v8849_v5 = vld [vmem:[%s15499_s5 + $0x418] sm:$0xff]  ;;  %v8819_v9 = vld [vmem:[%s15499_s5 + $0x328] sm:$0xff]  ;;  %v8836_v10 = vld [vmem:[%s15499_s5 + $0x3b0] sm:$0xff] }
 0x542   :  { %8621 = vrot.lane.b32.xlu0 %v8620_v44, %s12297_s19  ;;  %v12127_v44 = vpack.c.bf16 %v8759_v48, %v8758_v24  ;;  %v12209_v2 = vpack.c.bf16 %v8849_v5, %v8848_v38  ;;  %v8837_v18 = vld [vmem:[%s15499_s5 + $0x3b8] sm:$0xff]  ;;  %v15582_v24 = vmov 0.0  }
 0x543   :  { %8666 = vrot.lane.b32.xlu1 %v8665_v49, %s12297_s19  ;;  %v12129_v49 = vpack.c.bf16 %v8777_v61, %v8776_v31  ;;  %v12185_v31 = vpack.c.bf16 %v8837_v18, %v8836_v10  ;;  %v8820_v61 = vld [vmem:[%s15499_s5 + $0x330] sm:$0xff]  ;;  %v9281_v10 = vld [vmem:[%s15501_s7 + $0x40] sm:$0xff]  ;;  %v9282_v18 = vld [vmem:[%s15501_s7 + $0x48] sm:$0xff] }
 0x546   :  { %8683 = vrot.lane.b32.xlu0 %v8682_v45, %s12295_s30  ;;  %v8778_v45 = vld [vmem:[%s15499_s5 + $0x1e0] sm:$0xff] }
 0x547   :  { %8697 = vrot.lane.b32.xlu1 %v8696_v47, %s12296_s1  ;;  %v8779_v47 = vld [vmem:[%s15499_s5 + $0x1e8] sm:$0xff] }
 0x54a   :  { %8711 = vrot.lane.b32.xlu0 %v8710_v27, %s12297_s19 }
 0x573   :  { %v8321_v33 = vpop.permute.xlu0 %8320 }
 0x574   :  { %8324 = vst.msk [vmem:[#allocation8] sm:$0x3] %vm8323_vm9, %v8321_v33  ;;  %v12131_v33 = vpack.c.bf16 %v8761_v55, %v8760_v34  ;;  %v8852_v34 = vld [vmem:[%s15499_s5 + $0x430] sm:$0xff]  ;;  %v8853_v55 = vld [vmem:[%s15499_s5 + $0x438] sm:$0xff] }
 0x577   :  { %v8369_v16 = vpop.permute.xlu0 %8368 }
 0x578   :  { %v8383_v14 = vpop.permute.xlu1 %8382  ;;  %8371 = vst.msk [vmem:[#allocation8 + $0x2] sm:$0x3] %vm8323_vm9, %v8369_v16  ;;  %v12133_v16 = vpack.c.bf16 %v8779_v47, %v8778_v45 }
 0x579   :  { %8385 = vst.msk [vmem:[#allocation8 + $0x2] sm:$0x3] %vm8338_vm10, %v8383_v14  ;;  %v8762_v14 = vld [vmem:[%s15499_s5 + $0x160] sm:$0xff] }
 0x57b   :  { %v8336_v20 = vpop.permute.xlu0 %8335 }
 0x57c   :  { %v8397_v1 = vpop.permute.xlu1 %8396  ;;  %8339 = vst.msk [vmem:[#allocation8] sm:$0x3] %vm8338_vm10, %v8336_v20  ;;  %v8763_v20 = vld [vmem:[%s15499_s5 + $0x168] sm:$0xff] }
 0x57d   :  { %8399 = vst.msk [vmem:[#allocation8 + $0x2] sm:$0x3] %vm8353_vm11, %v8397_v1  ;;  %v8780_v1 = vld [vmem:[%s15499_s5 + $0x1f0] sm:$0xff] }
 0x57f   :  { %v8351_v52 = vpop.permute.xlu0 %8350 }
 0x580   :  { %8354 = vst.msk [vmem:[#allocation8] sm:$0x3] %vm8353_vm11, %v8351_v52  ;;  %v8781_v52 = vld [vmem:[%s15499_s5 + $0x1f8] sm:$0xff] }
 0x584   :  { %v8428_v22 = vpop.permute.xlu0 %8427 }
 0x585   :  { %v8414_v13 = vpop.permute.xlu1 %8413 }
 0x586   :  { %8416 = vst.msk [vmem:[#allocation8 + $0x4] sm:$0x3] %vm8323_vm9, %v8414_v13 }
 0x587   :  { %8430 = vst.msk [vmem:[#allocation8 + $0x4] sm:$0x3] %vm8338_vm10, %v8428_v22 }
 0x588   :  { %v8442_v11 = vpop.permute.xlu0 %8441 }
 0x589   :  { %8444 = vst.msk [vmem:[#allocation8 + $0x4] sm:$0x3] %vm8353_vm11, %v8442_v11  ;;  %v8459_v19 = vpop.permute.xlu1 %8458  ;;  %v12135_v11 = vpack.c.bf16 %v8763_v20, %v8762_v14  ;;  %v8841_v14 = vld [vmem:[%s15499_s5 + $0x3d8] sm:$0xff]  ;;  %v8854_v20 = vld [vmem:[%s15499_s5 + $0x440] sm:$0xff] }
 0x58a   :  { %8461 = vst.msk [vmem:[#allocation8 + $0x6] sm:$0x3] %vm8323_vm9, %v8459_v19  ;;  %v12137_v19 = vpack.c.bf16 %v8781_v52, %v8780_v1  ;;  %v8855_v1 = vld [vmem:[%s15499_s5 + $0x448] sm:$0xff] }
 0x58d   :  { %v8473_v57 = vpop.permute.xlu1 %8472 }
 0x58e   :  { %8475 = vst.msk [vmem:[#allocation8 + $0x6] sm:$0x3] %vm8338_vm10, %v8473_v57  ;;  %v8764_v57 = vld [vmem:[%s15499_s5 + $0x170] sm:$0xff] }
 0x591   :  { %v8487_v58 = vpop.permute.xlu1 %8486 }
 0x592   :  { %8489 = vst.msk [vmem:[#allocation8 + $0x6] sm:$0x3] %vm8353_vm11, %v8487_v58  ;;  %v8765_v58 = vld [vmem:[%s15499_s5 + $0x178] sm:$0xff] }
 0x593   :  { %v12139_v62 = vpack.c.bf16 %v8765_v58, %v8764_v57  ;;  %v8842_v57 = vld [vmem:[%s15499_s5 + $0x3e0] sm:$0xff]  ;;  %v8843_v58 = vld [vmem:[%s15499_s5 + $0x3e8] sm:$0xff] }
 0x598   :  { %v8504_v43 = vpop.permute.xlu0 %8503 }
 0x599   :  { %v8549_v41 = vpop.permute.xlu1 %8548  ;;  %8506 = vst.msk [vmem:[#allocation8 + $0x8] sm:$0x3] %vm8323_vm9, %v8504_v43  ;;  %v8715_v30 = vld [vmem:[#allocation8] sm:$0xff]  ;;  %v8830_v43 = vld [vmem:[%s15499_s5 + $0x380] sm:$0xff] }
 0x59a   :  { %8551 = vst.msk [vmem:[#allocation8 + $0xa] sm:$0x3] %vm8323_vm9, %v8549_v41  ;;  %v8879_v35 = vrot.slane %v8715_v30, %v14902_v39  ;;  %v8872_v36 = vcombine.high %v8715_v30, %v8715_v30  ;;  %v8831_v41 = vld [vmem:[%s15499_s5 + $0x388] sm:$0xff] }
 0x59c   :  { %v8518_v23 = vpop.permute.xlu0 %8517  ;;  %v8887_v54 = vcombine.high %v8879_v35, %v8879_v35  ;;  %v15164_v26 = vrot.slane %v8872_v36, %v14902_v39  ;;  %v8815_v36 = vld [vmem:[%s15499_s5 + $0x308] sm:$0xff] }
 0x59d   :  { %v8563_v29 = vpop.permute.xlu1 %8562  ;;  %8520 = vst.msk [vmem:[#allocation8 + $0x8] sm:$0x3] %vm8338_vm10, %v8518_v23  ;;  %v12173_v23 = vpack.c.bf16 %v8831_v41, %v8830_v43  ;;  %v8856_v43 = vld [vmem:[%s15499_s5 + $0x450] sm:$0xff]  ;;  %v8857_v41 = vld [vmem:[%s15499_s5 + $0x458] sm:$0xff] }
 0x59e   :  { %8565 = vst.msk [vmem:[#allocation8 + $0xa] sm:$0x3] %vm8338_vm10, %v8563_v29  ;;  %8986 = vmatprep.mubr.f32.mxu0 %v8887_v54  ;;  %v8888_v50 = vcombine.high %v15164_v26, %v15164_v26 }
 0x59f   :  { %8987 = vmatmul.mubr.f32.vlgmr.msra.gmra.mrb[16].mxu0 %v8879_v35  ;;  %v8814_v35 = vld [vmem:[%s15499_s5 + $0x300] sm:$0xff] }
 0x5a0   :  { %v8532_v21 = vpop.permute.xlu0 %8531  ;;  %12112 = vmatpush3.bf16.msra.mxu0 %v12111_v42  ;;  %9056 = vmatprep.mubr.f32.mxu0 %v8888_v50  ;;  %v8846_v42 = vld [vmem:[%s15499_s5 + $0x400] sm:$0xff]  ;;  %v12175_v63 = vpack.c.bf16 %v8815_v36, %v8814_v35  ;;  %v12177_v50 = vpack.c.bf16 %v8833_v59, %v8832_v6  ;;  %v12221_v35 = vpack.c.bf16 %v8857_v41, %v8856_v43  ;;  %v8844_v36 = vld [vmem:[%s15499_s5 + $0x3f0] sm:$0xff]  ;;  %v8845_v6 = vld [vmem:[%s15499_s5 + $0x3f8] sm:$0xff] }
 0x5a1   :  { %v8577_v0 = vpop.permute.xlu1 %8576  ;;  %8534 = vst.msk [vmem:[#allocation8 + $0x8] sm:$0x3] %vm8353_vm11, %v8532_v21  ;;  %12114 = vmatprep.subr.bf16.mxu0 %v12113_v8  ;;  %v8847_v8 = vld [vmem:[%s15499_s5 + $0x408] sm:$0xff]  ;;  %v8858_v59 = vld [vmem:[%s15499_s5 + $0x460] sm:$0xff] }
 0x5a2   :  { %8579 = vst.msk [vmem:[#allocation8 + $0xa] sm:$0x3] %vm8353_vm11, %v8577_v0 }
 0x5a4   :  { %12116 = vmatpush3.bf16.msra.mxu0 %v12115_v53  ;;  %v12206_v53 = vpack.c.bf16 %v8847_v8, %v8846_v42  ;;  %v12201_v42 = vpack.c.bf16 %v8845_v6, %v8844_v36  ;;  %v8828_v8 = vld [vmem:[%s15499_s5 + $0x370] sm:$0xff] }
 0x5a5   :  { %12118 = vmatprep.subr.bf16.mxu0 %v12117_v56 }
 0x5a8   :  { %12120 = vmatpush3.bf16.msra.mxu0 %v12119_v40 }
 0x5a9   :  { %12122 = vmatprep.subr.bf16.mxu0 %v12121_v17  ;;  %v12181_v17 = vpack.c.bf16 %v8835_v4, %v8834_v12  ;;  %v9274_v12 = vld [vmem:[%s15501_s7 + $0x8] sm:$0xff]  ;;  %v9275_v4 = vld [vmem:[%s15501_s7 + $0x10] sm:$0xff] }
 0x5ac   :  { %v8639_v37 = vpop.permute.xlu1 %8638  ;;  %v8594_v15 = vpop.permute.xlu0 %8593  ;;  %12124 = vmatpush3.bf16.msra.mxu0 %v12123_v3  ;;  %v8850_v3 = vld [vmem:[%s15499_s5 + $0x420] sm:$0xff] }
 0x5ad   :  { %8641 = vst.msk [vmem:[#allocation8 + $0xe] sm:$0x3] %vm8323_vm9, %v8639_v37  ;;  %8596 = vst.msk [vmem:[#allocation8 + $0xc] sm:$0x3] %vm8323_vm9, %v8594_v15  ;;  %12126 = vmatprep.subr.bf16.mxu0 %v12125_v7  ;;  %v8851_v7 = vld [vmem:[%s15499_s5 + $0x428] sm:$0xff]  ;;  %v8821_v37 = vld [vmem:[%s15499_s5 + $0x338] sm:$0xff] }
 0x5ae   :  { %v12212_v15 = vpack.c.bf16 %v8851_v7, %v8850_v3  ;;  %v12187_v45 = vpack.c.bf16 %v8821_v37, %v8820_v61  ;;  %v12242_v3 = vpack.c.bf16 %v9282_v18, %v9281_v10  ;;  %v9283_v7 = vld [vmem:[%s15501_s7 + $0x50] sm:$0xff]  ;;  %v9286_v61 = vld [vmem:[%s15501_s7 + $0x68] sm:$0xff] }
 0x5b0   :  { %v8608_v46 = vpop.permute.xlu0 %8607  ;;  %12128 = vmatpush3.bf16.msra.mxu0 %v12127_v44  ;;  %v8838_v44 = vld [vmem:[%s15499_s5 + $0x3c0] sm:$0xff] }
 0x5b1   :  { %v8653_v27 = vpop.permute.xlu1 %8652  ;;  %8610 = vst.msk [vmem:[#allocation8 + $0xc] sm:$0x3] %vm8338_vm10, %v8608_v46  ;;  %12130 = vmatprep.subr.bf16.mxu0 %v12129_v49  ;;  %v8839_v49 = vld [vmem:[%s15499_s5 + $0x3c8] sm:$0xff]  ;;  %v8822_v46 = vld [vmem:[%s15499_s5 + $0x340] sm:$0xff] }
 0x5b2   :  { %8655 = vst.msk [vmem:[#allocation8 + $0xe] sm:$0x3] %vm8338_vm10, %v8653_v27  ;;  %v12189_v47 = vpack.c.bf16 %v8839_v49, %v8838_v44  ;;  %v8823_v27 = vld [vmem:[%s15499_s5 + $0x348] sm:$0xff]  ;;  %v9288_v44 = vld [vmem:[%s15501_s7 + $0x78] sm:$0xff] }
 0x5b3   :  { %v12191_v52 = vpack.c.bf16 %v8823_v27, %v8822_v46 }
 0x5b4   :  { %v8622_v22 = vpop.permute.xlu0 %8621  ;;  %12132 = vmatpush3.bf16.msra.mxu0 %v12131_v33  ;;  %v12215_v33 = vpack.c.bf16 %v8853_v55, %v8852_v34 }
 0x5b5   :  { %v8667_v13 = vpop.permute.xlu1 %8666  ;;  %8624 = vst.msk [vmem:[#allocation8 + $0xc] sm:$0x3] %vm8353_vm11, %v8622_v22  ;;  %12134 = vmatprep.subr.bf16.mxu0 %v12133_v16  ;;  %v8840_v16 = vld [vmem:[%s15499_s5 + $0x3d0] sm:$0xff] }
 0x5b6   :  { %8669 = vst.msk [vmem:[#allocation8 + $0xe] sm:$0x3] %vm8353_vm11, %v8667_v13  ;;  %v12193_v22 = vpack.c.bf16 %v8841_v14, %v8840_v16  ;;  %v8824_v13 = vld [vmem:[%s15499_s5 + $0x350] sm:$0xff] }
 0x5b8   :  { %v8684_v30 = vpop.permute.xlu0 %8683  ;;  %12136 = vmatpush3.bf16.msra.mxu0 %v12135_v11  ;;  %v8825_v11 = vld [vmem:[%s15499_s5 + $0x358] sm:$0xff] }
 0x5b9   :  { %v8698_v28 = vpop.permute.xlu1 %8697  ;;  %8686 = vst.msk [vmem:[#allocation8 + $0x10] sm:$0x3] %vm8323_vm9, %v8684_v30  ;;  %12138 = vmatprep.subr.bf16.mxu0 %v12137_v19  ;;  %v12218_v19 = vpack.c.bf16 %v8855_v1, %v8854_v20  ;;  %v12195_v30 = vpack.c.bf16 %v8825_v11, %v8824_v13 }
 0x5ba   :  { %8700 = vst.msk [vmem:[#allocation8 + $0x10] sm:$0x3] %vm8338_vm10, %v8698_v28  ;;  %v12197_v28 = vpack.c.bf16 %v8843_v58, %v8842_v57 }
 0x5bc   :  { %v8712_v29 = vpop.permute.xlu0 %8711  ;;  %12140 = vmatpush3.bf16.msra.mxu0 %v12139_v62  ;;  %v8826_v62 = vld [vmem:[%s15499_s5 + $0x360] sm:$0xff] }
 0x5bd   :  { %v8716_v54 = vld [vmem:[#allocation8 + $0x8] sm:$0xff]  ;;  %8714 = vst.msk [vmem:[#allocation8 + $0x10] sm:$0x3] %vm8353_vm11, %v8712_v29  ;;  %12174 = vmatprep.subr.bf16.mxu0 %v12173_v23  ;;  %v8827_v23 = vld [vmem:[%s15499_s5 + $0x368] sm:$0xff] }
 0x5be   :  { %v8896_v51 = vrot.slane %v8716_v54, %v14902_v39  ;;  %v8889_v21 = vcombine.high %v8716_v54, %v8716_v54  ;;  %v8859_v29 = vld [vmem:[%s15499_s5 + $0x468] sm:$0xff]  ;;  %v12199_v54 = vpack.c.bf16 %v8827_v23, %v8826_v62 }
 0x5bf   :  { %9057 = vmatmul.mubr.f32.vlgmr.msra.gmra.mrb[18].mxu0 %v15164_v26  ;;  %v8818_v26 = vld [vmem:[%s15499_s5 + $0x320] sm:$0xff] }
 0x5c0   :  { %v8904_v0 = vcombine.high %v8896_v51, %v8896_v51  ;;  %v15289_v56 = vrot.slane %v8889_v21, %v14902_v39  ;;  %12176 = vmatpush3.bf16.msra.mxu0 %v12175_v63  ;;  %v12179_v39 = vpack.c.bf16 %v8817_v25, %v8816_v32  ;;  %v12183_v48 = vpack.c.bf16 %v8819_v9, %v8818_v26  ;;  %v8829_v63 = vld [vmem:[%s15499_s5 + $0x378] sm:$0xff]  ;;  %v8860_v21 = vld [vmem:[%s15499_s5 + $0x470] sm:$0xff] }
 0x5c1   :  { %12178 = vmatprep.subr.bf16.mxu0 %v12177_v50  ;;  %v8861_v50 = vld [vmem:[%s15499_s5 + $0x478] sm:$0xff]  ;;  %v12203_v32 = vpack.c.bf16 %v8829_v63, %v8828_v8  ;;  %v9279_v26 = vld [vmem:[%s15501_s7 + $0x30] sm:$0xff] }
 0x5c2   :  { %9126 = vmatprep.mubr.f32.mxu1 %v8904_v0  ;;  %v8905_v40 = vcombine.high %v15289_v56, %v15289_v56  ;;  %v12227_v25 = vpack.c.bf16 %v8861_v50, %v8860_v21  ;;  %v9280_v9 = vld [vmem:[%s15501_s7 + $0x38] sm:$0xff] }
 0x5c3   :  { %9127 = vmatmul.mubr.f32.vlgmr.msra.gmra.mrb[46].mxu1 %v8896_v51  ;;  %v12224_v51 = vpack.c.bf16 %v8859_v29, %v8858_v59 }
 0x5c4   :  { %12207 = vmatpush3.bf16.msra.mxu1 %v12206_v53  ;;  %9196 = vmatprep.mubr.f32.mxu0 %v8905_v40  ;;  %v10024_v0 = vld.sshfl [vmem:[#allocation8 + $0x10] sm:$0x3 pattern:$0x76325410]  ;;  %v9278_v40 = vld [vmem:[%s15501_s7 + $0x28] sm:$0xff] }
 0x5c5   :  { %12208 = vmatprep.subr.bf16.mxu1 %v12298_v60  ;;  %11889 = vmatprep.mubr.msk.f32.mxu1 %vm12299_vm12, %v15582_v24  ;;  %v9273_v53 = vld [vmem:[%s15501_s7] sm:$0xff] }
 0x5c6   :  { %12180 = vmatpush3.bf16.msra.mxu0 %v12179_v39  ;;  %v12230_v38 = vpack.c.bf16 %v9274_v12, %v9273_v53  ;;  %v9277_v39 = vld [vmem:[%s15501_s7 + $0x20] sm:$0xff] }
 0x5c7   :  { %12182 = vmatprep.subr.bf16.mxu0 %v12181_v17  ;;  %v12236_v17 = vpack.c.bf16 %v9278_v40, %v9277_v39 }
 0x5c8   :  { %12210 = vmatpush3.bf16.msra.mxu1 %v12209_v2  ;;  %v12239_v2 = vpack.c.bf16 %v9280_v9, %v9279_v26 }
 0x5c9   :  { %12211 = vmatprep.subr.bf16.mxu1 %v12298_v60 }
 0x5ca   :  { %12184 = vmatpush3.bf16.msra.mxu0 %v12183_v48 }
 0x5cb   :  { %12186 = vmatprep.subr.bf16.mxu0 %v12185_v31  ;;  %v9285_v31 = vld [vmem:[%s15501_s7 + $0x60] sm:$0xff] }
 0x5cc   :  { %12213 = vmatpush3.bf16.msra.mxu1 %v12212_v15  ;;  %v12248_v37 = vpack.c.bf16 %v9286_v61, %v9285_v31  ;;  %v9287_v15 = vld [vmem:[%s15501_s7 + $0x70] sm:$0xff] }
 0x5cd   :  { %12214 = vmatprep.subr.bf16.mxu1 %v12298_v60  ;;  %v12251_v49 = vpack.c.bf16 %v9288_v44, %v9287_v15 }
 0x5ce   :  { %12188 = vmatpush3.bf16.msra.mxu0 %v12187_v45 }
 0x5cf   :  { %12190 = vmatprep.subr.bf16.mxu0 %v12189_v47  ;;  %v10023_v47 = vld [vmem:[%s15500_s6] ss:$0 sm:$0xff] }
 0x5d0   :  { %12216 = vmatpush3.bf16.msra.mxu1 %v12215_v33 }
 0x5d1   :  { %12217 = vmatprep.subr.bf16.mxu1 %v12298_v60 }
 0x5d2   :  { %12192 = vmatpush3.bf16.msra.mxu0 %v12191_v52 }
 0x5d3   :  { %12194 = vmatprep.subr.bf16.mxu0 %v12193_v22 }
 0x5d4   :  { %12219 = vmatpush3.bf16.msra.mxu1 %v12218_v19 }
 0x5d5   :  { %12220 = vmatprep.subr.bf16.mxu1 %v12298_v60 }
 0x5d6   :  { %12196 = vmatpush3.bf16.msra.mxu0 %v12195_v30  ;;  %v10025_v30 = vld [vmem:[%s15502_s8] ss:$0 sm:$0xff] }
 0x5d7   :  { %12198 = vmatprep.subr.bf16.mxu0 %v12197_v28 }
 0x5d8   :  { %12222 = vmatpush3.bf16.msra.mxu1 %v12221_v35 }
 0x5d9   :  { %12223 = vmatprep.subr.bf16.mxu1 %v12298_v60 }
 0x5da   :  { %12200 = vmatpush3.bf16.msra.mxu0 %v12199_v54 }
 0x5db   :  { %12202 = vmatprep.subr.bf16.mxu0 %v12201_v42 }
 0x5dc   :  { %12225 = vmatpush3.bf16.msra.mxu1 %v12224_v51 }
 0x5dd   :  { %12226 = vmatprep.subr.bf16.mxu1 %v12298_v60 }
 0x5de   :  { %12204 = vmatpush3.bf16.msra.mxu0 %v12203_v32 }
 0x5df   :  { %12229 = vmatprep.subr.bf16.mxu0 %v12298_v60 }
 0x5e0   :  { %12228 = vmatpush3.bf16.msra.mxu1 %v12227_v25 }
 0x5e1   :  { %9197 = vmatmul.mubr.f32.vlgmr.msra.gmra.mrb[20].mxu0 %v15289_v56  ;;  %v9276_v56 = vld [vmem:[%s15501_s7 + $0x18] sm:$0xff] }
 0x5e2   :  { %11924 = vmatprep.mubr.msk.f32.mxu0 %vm12299_vm12, %v15582_v24  ;;  %12231 = vmatpush3.bf16.msra.mxu0 %v12230_v38  ;;  %v12233_v5 = vpack.c.bf16 %v9276_v56, %v9275_v4  ;;  %v9284_v24 = vld [vmem:[%s15501_s7 + $0x58] sm:$0xff] }
 0x5e3   :  { %11890 = vmatmul.mubr.f32.vlgmr.msra.gmra.mrb[48].mxu1 %v10024_v0  ;;  %12232 = vmatprep.subr.bf16.mxu0 %v12298_v60  ;;  %v12245_v48 = vpack.c.bf16 %v9284_v24, %v9283_v7 }
 0x5e6   :  { %12234 = vmatpush3.bf16.msra.mxu0 %v12233_v5 }
 0x5e7   :  { %12235 = vmatprep.subr.bf16.mxu0 %v12298_v60 }
 0x5ea   :  { %12237 = vmatpush3.bf16.msra.mxu0 %v12236_v17 }
 0x5eb   :  { %12238 = vmatprep.subr.bf16.mxu0 %v12298_v60 }
 0x5ee   :  { %12240 = vmatpush3.bf16.msra.mxu0 %v12239_v2 }
 0x5ef   :  { %12241 = vmatprep.subr.bf16.mxu0 %v12298_v60 }
 0x5f2   :  { %12243 = vmatpush3.bf16.msra.mxu0 %v12242_v3 }
 0x5f3   :  { %12244 = vmatprep.subr.bf16.mxu0 %v12298_v60 }
 0x5f6   :  { %12246 = vmatpush3.bf16.msra.mxu0 %v12245_v48 }
 0x5f7   :  { %12247 = vmatprep.subr.bf16.mxu0 %v12298_v60 }
 0x5fa   :  { %12249 = vmatpush3.bf16.msra.mxu0 %v12248_v37 }
 0x5fb   :  { %12250 = vmatprep.subr.bf16.mxu0 %v12298_v60 }
 0x5fe   :  { %12252 = vmatpush3.bf16.msra.mxu0 %v12251_v49 }
 0x672   :  { %v10706_v34 = vpop.f32.mrb[16].mxu0 }
 0x673   :  { %v10707_v55 = vpop.f32.mrb[17].mxu0 }
 0x674   :  { %v10708_v45 = vadd.f32 %v10707_v55, %v10706_v34 }
 0x676   :  { %v8989_v60 = vadd.f32 %v10708_v45, %v10023_v47 }
 0x692   :  { %v10741_v46 = vpop.f32.mrb[18].mxu0 }
 0x693   :  { %v10742_v27 = vpop.f32.mrb[19].mxu0 }
 0x694   :  { %v10743_v33 = vadd.f32 %v10742_v27, %v10741_v46 }
 0x696   :  { %v10776_v16 = vpop.f32.mrb[46].mxu1  ;;  %v9059_v20 = vadd.f32 %v10743_v33, %v8989_v60 }
 0x697   :  { %v10777_v14 = vpop.f32.mrb[47].mxu1 }
 0x698   :  { %v10778_v1 = vadd.f32 %v10777_v14, %v10776_v16 }
 0x69a   :  { %v9129_v52 = vadd.f32 %v10778_v1, %v9059_v20 }
 0x6b4   :  { %v10811_v22 = vpop.f32.mrb[20].mxu0 }
 0x6b5   :  { %v10812_v13 = vpop.f32.mrb[21].mxu0 }
 0x6b6   :  { %v10813_v11 = vadd.f32 %v10812_v13, %v10811_v22  ;;  %v9268_v19 = vpop.f32.mrb[48].mxu1 }
 0x6b7   :  { %v11891_v57 = vpop.f32.mrb[49].mxu1 }
 0x6b8   :  { %v9199_v58 = vadd.f32 %v10813_v11, %v9129_v52 }
 0x6ba   :  { %v9269_v43 = vadd.f32 %v9268_v19, %v9199_v58 }
 0x6bc   :  { %v9272_v41 = vmax.f32 %v9269_v43, 0.0 }
 0x6be   :  { %11925 = vmatmul.mubr.f32.vlgmr.msra.gmra.mrb[22].mxu0 %v9272_v41 }
 0x791   :  { %v9362_v28 = vpop.f32.mrb[22].mxu0 }
 0x792   :  { %v9363_v62 = vadd.f32 %v10025_v30, %v9362_v28  ;;  %v11926_v23 = vpop.f32.mrb[23].mxu0 }
 0x794   :  { %9367 = vst.msk [vmem:[#allocation9] sm:$0x3] %vm9366_vm13, %v9363_v62 }
 0x795   :  { %12279 = shalt.err (!%p12276_p4)
}
 0x796   :  { %s12280_s16 = scalar_lea.hbm %s15503_s9, 32 }
 0x797   :  { %p12281_p5 = scmp.ne.s32.totalorder %s15503_s9, %s12280_s16  ;;  %p12284_p6 = scmp.lt.u32.totalorder %s12280_s16, %s15503_s9 }
 0x799   :  { %p12286_p7 = pnand %p12284_p6, %p12281_p5 }
 0x79b   :  { %12289 = shalt.err (!%p12286_p7)
}
 0x79c   :  { %9377 = dma.vmem_to_hbm [thread:$0]  %s9375_s13, 32, %s15503_s9, [#allocation10]  }
 0x79d   :  { %12290 = dma.done.wait [#allocation10], 32  }
 0x79e   :  { %12291 = vsyncadd [#allocation10], 4294967264 }
 0x79f   :  { %9381 = vsyncpa [#allocation10], 1 }

</bundles_post_ra>
